<compile_context>
chip_gen: v7x
topology: tpu7x:2x2x1
jax: 0.10.0
libtpu: 0.0.40
codegen_flags: <defaults>
</compile_context>

<pallas_src>
import functools

import jax
import jax.numpy as jnp
from jax import lax
from jax.experimental import pallas as pl
from jax.experimental.pallas import tpu as pltpu


C_PAD = 64             # all conv channel counts padded to 64 (sublane axis)
K_IM2COL = 3 * C_PAD   # 192: im2col contraction depth
L_EMB = 125            # length of the emb-stage input
L_OUT = 500            # length of the layers stage
LANES = 512            # scratch lane width (>= L_OUT, multiple of 128)


# ----------------------------------------------------------------------------
# Fused whole-network kernel (one grid step per batch element)
# ----------------------------------------------------------------------------
def _net_kernel(locs_ref, ctrl_ref, meta_ref, c_ref, pos1_ref, pos2_ref,
                w_emb_ref, b_emb_ref, w_lay_ref, b_lay_ref,
                o_ref, h_ref, xcol_ref):
    f32 = jnp.float32

    def conv3(h, w, b, relu):
        """Conv1d(k=3, padding=1) on (C_PAD, L) via one im2col MXU matmul."""
        L = h.shape[1]
        zcol = jnp.zeros((C_PAD, 1), f32)
        # rows [0:64)    <- x[l-1]  (zero at l=0)
        xcol_ref[0:C_PAD, 0:1] = zcol
        xcol_ref[0:C_PAD, 1:L] = h[:, 0:L - 1]
        # rows [64:128)  <- x[l]
        xcol_ref[C_PAD:2 * C_PAD, 0:L] = h
        # rows [128:192) <- x[l+1]  (zero at l=L-1)
        xcol_ref[2 * C_PAD:3 * C_PAD, 0:L - 1] = h[:, 1:L]
        xcol_ref[2 * C_PAD:3 * C_PAD, L - 1:L] = zcol
        xcol = xcol_ref[:, 0:L]                                    # (192, L)
        acc = jnp.dot(w, xcol, preferred_element_type=f32) + b     # (64, L)
        if relu:
            acc = jnp.maximum(acc, 0.0)
        return acc

    def maxpool2(h):
        """MaxPool1d(kernel=2, stride=2) along lanes via even/odd selection matmuls."""
        L = h.shape[1]
        Lp = L // 2
        r = lax.broadcasted_iota(jnp.int32, (L, Lp), 0)
        q = lax.broadcasted_iota(jnp.int32, (L, Lp), 1)
        sel_even = jnp.where(r == 2 * q, 1.0, 0.0).astype(f32)
        sel_odd = jnp.where(r == 2 * q + 1, 1.0, 0.0).astype(f32)
        return jnp.maximum(jnp.dot(h, sel_even, preferred_element_type=f32),
                           jnp.dot(h, sel_odd, preferred_element_type=f32))

    # ----- stage 1: assemble (42ch -> pad 64) x 125 input, run the emb stack -----
    h_ref[...] = jnp.zeros((C_PAD, LANES), f32)
    locs = locs_ref[0]                                   # (14, 125)
    scale = c_ref[...]                                   # (14, 1)
    xyz = locs[0:3, :]
    xyz = xyz - jnp.mean(xyz, axis=1, keepdims=True)
    h_ref[0:3, 0:L_EMB] = xyz * scale[0:3, :]
    h_ref[3:14, 0:L_EMB] = locs[3:14, :] * scale[3:14, :]
    h_ref[14:30, 0:L_EMB] = pos1_ref[...]
    h_ref[30:42, 0:L_EMB] = jnp.broadcast_to(meta_ref[0], (12, L_EMB))
    h = h_ref[:, 0:L_EMB]                                # (64, 125)

    for i in range(5):
        h = maxpool2(conv3(h, w_emb_ref[i], b_emb_ref[i], relu=True))
    h = conv3(h, w_emb_ref[5], b_emb_ref[5], relu=False)           # (64, 3)
    emb = jnp.mean(h[0:16, :], axis=1, keepdims=True)              # (16, 1)

    # ----- stage 2: assemble (47ch -> pad 64) x 500 input, run the layers stack -----
    h_ref[...] = jnp.zeros((C_PAD, LANES), f32)
    h_ref[0:16, 0:L_OUT] = jnp.broadcast_to(emb, (16, L_OUT))
    h_ref[16:19, 0:L_OUT] = ctrl_ref[0]
    h_ref[19:35, 0:L_OUT] = pos2_ref[...]
    h_ref[35:47, 0:L_OUT] = jnp.broadcast_to(meta_ref[0], (12, L_OUT))
    h = h_ref[:, 0:L_OUT]                                # (64, 500)

    for i in range(6):
        h = conv3(h, w_lay_ref[i], b_lay_ref[i], relu=(i < 5))

    # fused head: tanh + scale (real channels are rows 0 and 1 of the padded output)
    o_ref[0, 0:1, :] = jnp.tanh(h[0:1, :]) * 0.0095 - 0.003
    o_ref[0, 1:2, :] = jnp.tanh(h[1:2, :]) * 0.032


def _run_net(params, locs, controls, meta_e):
    B = locs.shape[0]
    return pl.pallas_call(
        _net_kernel,
        out_shape=jax.ShapeDtypeStruct((B, 2, L_OUT), jnp.float32),
        grid=(B,),
        in_specs=[
            pl.BlockSpec((1, 14, L_EMB), lambda b: (b, 0, 0)),        # locs
            pl.BlockSpec((1, 3, L_OUT), lambda b: (b, 0, 0)),         # controls
            pl.BlockSpec((1, 12, 1), lambda b: (b, 0, 0)),            # meta embeddings
            pl.BlockSpec((14, 1), lambda b: (0, 0)),                  # c
            pl.BlockSpec((16, L_EMB), lambda b: (0, 0)),              # pos_emb1
            pl.BlockSpec((16, L_OUT), lambda b: (0, 0)),              # pos_emb2
            pl.BlockSpec((6, C_PAD, K_IM2COL), lambda b: (0, 0, 0)),  # w_emb (resident)
            pl.BlockSpec((6, C_PAD, 1), lambda b: (0, 0, 0)),         # b_emb
            pl.BlockSpec((6, C_PAD, K_IM2COL), lambda b: (0, 0, 0)),  # w_lay (resident)
            pl.BlockSpec((6, C_PAD, 1), lambda b: (0, 0, 0)),         # b_lay
        ],
        out_specs=pl.BlockSpec((1, 2, L_OUT), lambda b: (b, 0, 0)),
        scratch_shapes=[
            pltpu.VMEM((C_PAD, LANES), jnp.float32),       # activation assembly buffer
            pltpu.VMEM((K_IM2COL, LANES), jnp.float32),    # im2col buffer
        ],
        compiler_params=pltpu.CompilerParams(
            dimension_semantics=("parallel",),
            vmem_limit_bytes=32 * 1024 * 1024,
        ),
    )(locs, controls, meta_e,
      params["c"], params["pos_emb1"], params["pos_emb2"],
      params["w_emb"], params["b_emb"], params["w_lay"], params["b_lay"])


# ----------------------------------------------------------------------------
# Parameters (deterministic init; weights pre-packed ONCE into im2col layout)
# ----------------------------------------------------------------------------
def _conv_init(key, c_in, c_out):
    kw, kb = jax.random.split(key)
    bound = 1.0 / (3.0 * c_in) ** 0.5
    w = jax.random.uniform(kw, (c_out, c_in, 3), jnp.float32, -bound, bound)
    b = jax.random.uniform(kb, (c_out,), jnp.float32, -bound, bound)
    return w, b


def _pack_conv(w, b):
    """Pad a (C_out, C_in, 3) PyTorch-layout conv to 64x64 and pack to (64, 192)."""
    c_out, c_in, _ = w.shape
    wp = jnp.zeros((C_PAD, C_PAD, 3), jnp.float32).at[:c_out, :c_in, :].set(w)
    # column blocks: [W[:,:,0] | W[:,:,1] | W[:,:,2]]  <=> taps on x[l-1], x[l], x[l+1]
    wcat = jnp.concatenate([wp[:, :, 0], wp[:, :, 1], wp[:, :, 2]], axis=1)
    bp = jnp.zeros((C_PAD, 1), jnp.float32).at[:c_out, 0].set(b)
    return wcat, bp


def init_params(key):
    keys = jax.random.split(key, 16)
    emb_dims = [(14 + 16 + 12, 64), (64, 64), (64, 64), (64, 64), (64, 64), (64, 16)]
    lay_dims = [(16 + 3 + 16 + 12, 64), (64, 64), (64, 64), (64, 64), (64, 64), (64, 2)]

    w_emb, b_emb = zip(*[_pack_conv(*_conv_init(keys[i], ci, co))
                         for i, (ci, co) in enumerate(emb_dims)])
    w_lay, b_lay = zip(*[_pack_conv(*_conv_init(keys[6 + i], ci, co))
                         for i, (ci, co) in enumerate(lay_dims)])

    return {
        "w_emb": jnp.stack(w_emb), "b_emb": jnp.stack(b_emb),      # (6,64,192), (6,64,1)
        "w_lay": jnp.stack(w_lay), "b_lay": jnp.stack(b_lay),
        "c": jnp.array([0.1, 0.1, 1, 50, 50, 1, 1, 1, 1, 10, 10, 10, 1000, 100],
                       dtype=jnp.float32).reshape(14, 1),
        "pos_emb1": jax.random.normal(keys[12], (16, L_EMB), jnp.float32),
        "pos_emb2": jax.random.normal(keys[13], (16, L_OUT), jnp.float32),
        "tire_emb": jax.random.normal(keys[14], (14, 4), jnp.float32),
        "modif_emb": jax.random.normal(keys[15], (6, 4), jnp.float32),
    }


# ----------------------------------------------------------------------------
# Forward pass
# ----------------------------------------------------------------------------
def forward(params, locs, controls, meta, training=True):
    """locs: (B,14,125) f32, controls: (B,3,500) f32, meta: (B,3) int32."""
    front = params["tire_emb"][meta[:, 0] % 14]
    rear = params["tire_emb"][meta[:, 1] % 14]
    modif = params["modif_emb"][meta[:, 2]]       # same as PyTorch: no modulo on meta[:,2]
    meta_e = jnp.concatenate([front, rear, modif], axis=-1)[:, :, None]   # (B, 12, 1)

    out = _run_net(params, locs, controls, meta_e)        # (B, 2, 500): tanh-scaled head
    pred_v_abs_v = out[:, 0:1, :]
    pred_v_yaw = out[:, 1:2, :]

    # Trajectory integration (plain JAX; cumsum/trig kept outside the kernel).
    pred_abs_v = locs[:, -3:-2, -1:] + jnp.cumsum(pred_v_abs_v[:, :, 125:], axis=-1)
    if not training:
        pred_abs_v = jnp.clip(pred_abs_v, 0.0, 1.05)
    pred_yaw = locs[:, 5:6, -1:] + jnp.cumsum(pred_v_yaw[:, :, 125:], axis=-1)

    pred_v_x = pred_abs_v * jnp.cos(pred_yaw)
    pred_v_y = pred_abs_v * jnp.sin(pred_yaw)
    pred_x = locs[:, 0:1, -1:] + jnp.cumsum(pred_v_x, axis=-1)
    pred_y = locs[:, 1:2, -1:] + jnp.cumsum(pred_v_y, axis=-1)

    x = jnp.concatenate([locs[:, 0:1, :], pred_x], axis=-1)       # (B,1,500)
    y = jnp.concatenate([locs[:, 1:2, :], pred_y], axis=-1)       # (B,1,500)
    yaw = jnp.concatenate([locs[:, 5:6, :], pred_yaw], axis=-1)   # (B,1,500)
    return x[:, 0, :], y[:, 0, :], yaw[:, 0, :]


# ----------------------------------------------------------------------------
if __name__ == "__main__":
    key = jax.random.PRNGKey(0)
    kp, k1, k2, k3 = jax.random.split(key, 4)
    params = init_params(kp)

    B = 2
    locs = jax.random.normal(k1, (B, 14, 125), jnp.float32)
    controls = jax.random.normal(k2, (B, 3, 500), jnp.float32)
    meta = jax.random.randint(k3, (B, 3), 0, 6, dtype=jnp.int32)

    fwd = jax.jit(functools.partial(forward, training=True))
    x, y, yaw = fwd(params, locs, controls, meta)
    jax.block_until_ready((x, y, yaw))
    assert x.shape == (B, 500) and y.shape == (B, 500) and yaw.shape == (B, 500)
    print("KERNEL_OK")
</pallas_src>

<mosaic_0001>
module attributes {stable_mosaic.version = 11 : i64} {
  func.func @_net_kernel(%arg0: i32, %arg1: memref<1x14x125xf32, #tpu.memory_space<vmem>>, %arg2: memref<1x3x500xf32, #tpu.memory_space<vmem>>, %arg3: memref<1x12x1xf32, #tpu.memory_space<vmem>>, %arg4: memref<14x1xf32, #tpu.memory_space<vmem>>, %arg5: memref<16x125xf32, #tpu.memory_space<vmem>>, %arg6: memref<16x500xf32, #tpu.memory_space<vmem>>, %arg7: memref<6x64x192xf32, #tpu.memory_space<vmem>>, %arg8: memref<6x64x1xf32, #tpu.memory_space<vmem>>, %arg9: memref<6x64x192xf32, #tpu.memory_space<vmem>>, %arg10: memref<6x64x1xf32, #tpu.memory_space<vmem>>, %arg11: memref<1x2x500xf32, #tpu.memory_space<vmem>>, %arg12: memref<64x512xf32, #tpu.memory_space<vmem>>, %arg13: memref<192x512xf32, #tpu.memory_space<vmem>>) attributes {dimension_semantics = [#tpu.dimension_semantics<parallel>], iteration_bounds = array<i64: 2>, scalar_prefetch = 0 : i64, scratch_operands = 2 : i64, tpu.core_type = #tpu.core_type<tc>, window_params = [{transform_indices = @transform_0, window_bounds = array<i64: 1, 14, 125>}, {transform_indices = @transform_1, window_bounds = array<i64: 1, 3, 500>}, {transform_indices = @transform_2, window_bounds = array<i64: 1, 12, 1>}, {pipeline_mode = #tpu.pipeline_mode<synchronous>, transform_indices = @transform_3, window_bounds = array<i64: 14, 1>}, {pipeline_mode = #tpu.pipeline_mode<synchronous>, transform_indices = @transform_4, window_bounds = array<i64: 16, 125>}, {pipeline_mode = #tpu.pipeline_mode<synchronous>, transform_indices = @transform_5, window_bounds = array<i64: 16, 500>}, {pipeline_mode = #tpu.pipeline_mode<synchronous>, transform_indices = @transform_6, window_bounds = array<i64: 6, 64, 192>}, {pipeline_mode = #tpu.pipeline_mode<synchronous>, transform_indices = @transform_7, window_bounds = array<i64: 6, 64, 1>}, {pipeline_mode = #tpu.pipeline_mode<synchronous>, transform_indices = @transform_8, window_bounds = array<i64: 6, 64, 192>}, {pipeline_mode = #tpu.pipeline_mode<synchronous>, transform_indices = @transform_9, window_bounds = array<i64: 6, 64, 1>}, {transform_indices = @transform_10, window_bounds = array<i64: 1, 2, 500>}]} {
    %cst = arith.constant 0.000000e+00 : f32
    %0 = vector.broadcast %cst : f32 to vector<64x512xf32>
    %c0 = arith.constant 0 : index
    %c0_0 = arith.constant 0 : index
    %1 = vector.load %arg12[%c0, %c0_0] : memref<64x512xf32, #tpu.memory_space<vmem>>, vector<64x512xf32>
    tpu.vector_store %arg12[%c0, %c0_0], %0 {strides = array<i32>} : memref<64x512xf32, #tpu.memory_space<vmem>>, vector<64x512xf32>,
    %c0_1 = arith.constant 0 : index
    %c0_2 = arith.constant 0 : index
    %c0_3 = arith.constant 0 : index
    %2 = vector.load %arg1[%c0_1, %c0_2, %c0_3] : memref<1x14x125xf32, #tpu.memory_space<vmem>>, vector<1x14x125xf32>
    %3 = vector.shape_cast %2 : vector<1x14x125xf32> to vector<14x125xf32>
    %c0_4 = arith.constant 0 : index
    %c0_5 = arith.constant 0 : index
    %4 = vector.load %arg4[%c0_4, %c0_5] : memref<14x1xf32, #tpu.memory_space<vmem>>, vector<14x1xf32>
    %5 = vector.extract_strided_slice %3 {offsets = [0, 0], sizes = [3, 125], strides = [1, 1]} : vector<14x125xf32> to vector<3x125xf32>
    %cst_6 = arith.constant dense<0.000000e+00> : vector<3xf32>
    %6 = vector.multi_reduction <add>, %5, %cst_6 [1] : vector<3x125xf32> to vector<3xf32>
    %7 = vector.shape_cast %6 : vector<3xf32> to vector<3x1xf32>
    %cst_7 = arith.constant 1.250000e+02 : f32
    %8 = vector.broadcast %cst_7 : f32 to vector<3x1xf32>
    %9 = arith.divf %7, %8 : vector<3x1xf32>
    %10 = vector.broadcast %9 : vector<3x1xf32> to vector<3x125xf32>
    %11 = arith.subf %5, %10 : vector<3x125xf32>
    %12 = vector.extract_strided_slice %4 {offsets = [0, 0], sizes = [3, 1], strides = [1, 1]} : vector<14x1xf32> to vector<3x1xf32>
    %13 = vector.broadcast %12 : vector<3x1xf32> to vector<3x125xf32>
    %14 = arith.mulf %11, %13 : vector<3x125xf32>
    %c0_8 = arith.constant 0 : index
    %c0_9 = arith.constant 0 : index
    %15 = vector.load %arg12[%c0_8, %c0_9] : memref<64x512xf32, #tpu.memory_space<vmem>>, vector<3x125xf32>
    tpu.vector_store %arg12[%c0_8, %c0_9], %14 {strides = array<i32>} : memref<64x512xf32, #tpu.memory_space<vmem>>, vector<3x125xf32>,
    %16 = vector.extract_strided_slice %3 {offsets = [3, 0], sizes = [11, 125], strides = [1, 1]} : vector<14x125xf32> to vector<11x125xf32>
    %17 = vector.extract_strided_slice %4 {offsets = [3, 0], sizes = [11, 1], strides = [1, 1]} : vector<14x1xf32> to vector<11x1xf32>
    %18 = vector.broadcast %17 : vector<11x1xf32> to vector<11x125xf32>
    %19 = arith.mulf %16, %18 : vector<11x125xf32>
    %c3 = arith.constant 3 : index
    %c0_10 = arith.constant 0 : index
    %20 = vector.load %arg12[%c3, %c0_10] : memref<64x512xf32, #tpu.memory_space<vmem>>, vector<11x125xf32>
    tpu.vector_store %arg12[%c3, %c0_10], %19 {strides = array<i32>} : memref<64x512xf32, #tpu.memory_space<vmem>>, vector<11x125xf32>,
    %c0_11 = arith.constant 0 : index
    %c0_12 = arith.constant 0 : index
    %21 = vector.load %arg5[%c0_11, %c0_12] : memref<16x125xf32, #tpu.memory_space<vmem>>, vector<16x125xf32>
    %c14 = arith.constant 14 : index
    %c0_13 = arith.constant 0 : index
    %22 = vector.load %arg12[%c14, %c0_13] : memref<64x512xf32, #tpu.memory_space<vmem>>, vector<16x125xf32>
    tpu.vector_store %arg12[%c14, %c0_13], %21 {strides = array<i32>} : memref<64x512xf32, #tpu.memory_space<vmem>>, vector<16x125xf32>,
    %c0_14 = arith.constant 0 : index
    %c0_15 = arith.constant 0 : index
    %c0_16 = arith.constant 0 : index
    %23 = vector.load %arg3[%c0_14, %c0_15, %c0_16] : memref<1x12x1xf32, #tpu.memory_space<vmem>>, vector<1x12x1xf32>
    %24 = vector.shape_cast %23 : vector<1x12x1xf32> to vector<12x1xf32>
    %25 = vector.shape_cast %24 : vector<12x1xf32> to vector<12x1xf32>
    %26 = vector.broadcast %25 : vector<12x1xf32> to vector<12x125xf32>
    %c30 = arith.constant 30 : index
    %c0_17 = arith.constant 0 : index
    %27 = vector.load %arg12[%c30, %c0_17] : memref<64x512xf32, #tpu.memory_space<vmem>>, vector<12x125xf32>
    tpu.vector_store %arg12[%c30, %c0_17], %26 {strides = array<i32>} : memref<64x512xf32, #tpu.memory_space<vmem>>, vector<12x125xf32>,
    %c0_18 = arith.constant 0 : index
    %c0_19 = arith.constant 0 : index
    %28 = vector.load %arg12[%c0_18, %c0_19] : memref<64x512xf32, #tpu.memory_space<vmem>>, vector<64x125xf32>
    %c0_20 = arith.constant 0 : index
    %c0_21 = arith.constant 0 : index
    %c0_22 = arith.constant 0 : index
    %29 = vector.load %arg7[%c0_20, %c0_21, %c0_22] : memref<6x64x192xf32, #tpu.memory_space<vmem>>, vector<1x64x192xf32>
    %30 = vector.shape_cast %29 : vector<1x64x192xf32> to vector<64x192xf32>
    %c0_23 = arith.constant 0 : index
    %c0_24 = arith.constant 0 : index
    %c0_25 = arith.constant 0 : index
    %31 = vector.load %arg8[%c0_23, %c0_24, %c0_25] : memref<6x64x1xf32, #tpu.memory_space<vmem>>, vector<1x64x1xf32>
    %32 = vector.shape_cast %31 : vector<1x64x1xf32> to vector<64x1xf32>
    %cst_26 = arith.constant 0.000000e+00 : f32
    %33 = vector.broadcast %cst_26 : f32 to vector<64x1xf32>
    %c0_27 = arith.constant 0 : index
    %c0_28 = arith.constant 0 : index
    %34 = vector.load %arg13[%c0_27, %c0_28] : memref<192x512xf32, #tpu.memory_space<vmem>>, vector<64x1xf32>
    tpu.vector_store %arg13[%c0_27, %c0_28], %33 {strides = array<i32>} : memref<192x512xf32, #tpu.memory_space<vmem>>, vector<64x1xf32>,
    %35 = vector.extract_strided_slice %28 {offsets = [0, 0], sizes = [64, 124], strides = [1, 1]} : vector<64x125xf32> to vector<64x124xf32>
    %c0_29 = arith.constant 0 : index
    %c1 = arith.constant 1 : index
    %36 = vector.load %arg13[%c0_29, %c1] : memref<192x512xf32, #tpu.memory_space<vmem>>, vector<64x124xf32>
    tpu.vector_store %arg13[%c0_29, %c1], %35 {strides = array<i32>} : memref<192x512xf32, #tpu.memory_space<vmem>>, vector<64x124xf32>,
    %c64 = arith.constant 64 : index
    %c0_30 = arith.constant 0 : index
    %37 = vector.load %arg13[%c64, %c0_30] : memref<192x512xf32, #tpu.memory_space<vmem>>, vector<64x125xf32>
    tpu.vector_store %arg13[%c64, %c0_30], %28 {strides = array<i32>} : memref<192x512xf32, #tpu.memory_space<vmem>>, vector<64x125xf32>,
    %38 = vector.extract_strided_slice %28 {offsets = [0, 1], sizes = [64, 124], strides = [1, 1]} : vector<64x125xf32> to vector<64x124xf32>
    %c128 = arith.constant 128 : index
    %c0_31 = arith.constant 0 : index
    %39 = vector.load %arg13[%c128, %c0_31] : memref<192x512xf32, #tpu.memory_space<vmem>>, vector<64x124xf32>
    tpu.vector_store %arg13[%c128, %c0_31], %38 {strides = array<i32>} : memref<192x512xf32, #tpu.memory_space<vmem>>, vector<64x124xf32>,
    %c128_32 = arith.constant 128 : index
    %c124 = arith.constant 124 : index
    %40 = vector.load %arg13[%c128_32, %c124] : memref<192x512xf32, #tpu.memory_space<vmem>>, vector<64x1xf32>
    tpu.vector_store %arg13[%c128_32, %c124], %33 {strides = array<i32>} : memref<192x512xf32, #tpu.memory_space<vmem>>, vector<64x1xf32>,
    %c0_33 = arith.constant 0 : index
    %c0_34 = arith.constant 0 : index
    %41 = vector.load %arg13[%c0_33, %c0_34] : memref<192x512xf32, #tpu.memory_space<vmem>>, vector<192x125xf32>
    %cst_35 = arith.constant dense<0.000000e+00> : vector<64x125xf32>
    %42 = tpu.matmul %30, %41, %cst_35 {dimension_numbers = #tpu.dot_dimension_numbers<[1], [0], [0], [1], [0, 0, 1, 1], [], []>} : vector<64x192xf32>, vector<192x125xf32>, vector<64x125xf32> -> vector<64x125xf32>
    %43 = vector.broadcast %32 : vector<64x1xf32> to vector<64x125xf32>
    %44 = arith.addf %42, %43 : vector<64x125xf32>
    %cst_36 = arith.constant 0.000000e+00 : f32
    %45 = vector.broadcast %cst_36 : f32 to vector<64x125xf32>
    %46 = arith.maximumf %44, %45 : vector<64x125xf32>
    %47 = tpu.iota {dimensions = array<i32: 0>} : vector<125x62xi32>
    %48 = tpu.iota {dimensions = array<i32: 1>} : vector<125x62xi32>
    %c2_i32 = arith.constant 2 : i32
    %49 = vector.broadcast %c2_i32 : i32 to vector<125x62xi32>
    %50 = arith.muli %49, %48 : vector<125x62xi32>
    %51 = arith.cmpi eq, %47, %50 : vector<125x62xi32>
    %cst_37 = arith.constant 1.000000e+00 : f32
    %cst_38 = arith.constant 0.000000e+00 : f32
    %52 = vector.broadcast %cst_37 : f32 to vector<125x62xf32>
    %53 = vector.broadcast %cst_38 : f32 to vector<125x62xf32>
    %54 = arith.select %51, %52, %53 : vector<125x62xi1>, vector<125x62xf32>
    %c2_i32_39 = arith.constant 2 : i32
    %55 = vector.broadcast %c2_i32_39 : i32 to vector<125x62xi32>
    %56 = arith.muli %55, %48 : vector<125x62xi32>
    %c1_i32 = arith.constant 1 : i32
    %57 = vector.broadcast %c1_i32 : i32 to vector<125x62xi32>
    %58 = arith.addi %56, %57 : vector<125x62xi32>
    %59 = arith.cmpi eq, %47, %58 : vector<125x62xi32>
    %cst_40 = arith.constant 1.000000e+00 : f32
    %cst_41 = arith.constant 0.000000e+00 : f32
    %60 = vector.broadcast %cst_40 : f32 to vector<125x62xf32>
    %61 = vector.broadcast %cst_41 : f32 to vector<125x62xf32>
    %62 = arith.select %59, %60, %61 : vector<125x62xi1>, vector<125x62xf32>
    %cst_42 = arith.constant dense<0.000000e+00> : vector<64x62xf32>
    %63 = tpu.matmul %46, %54, %cst_42 {dimension_numbers = #tpu.dot_dimension_numbers<[1], [0], [0], [1], [0, 0, 1, 1], [], []>} : vector<64x125xf32>, vector<125x62xf32>, vector<64x62xf32> -> vector<64x62xf32>
    %cst_43 = arith.constant dense<0.000000e+00> : vector<64x62xf32>
    %64 = tpu.matmul %46, %62, %cst_43 {dimension_numbers = #tpu.dot_dimension_numbers<[1], [0], [0], [1], [0, 0, 1, 1], [], []>} : vector<64x125xf32>, vector<125x62xf32>, vector<64x62xf32> -> vector<64x62xf32>
    %65 = arith.maximumf %63, %64 : vector<64x62xf32>
    %c1_44 = arith.constant 1 : index
    %c0_45 = arith.constant 0 : index
    %c0_46 = arith.constant 0 : index
    %66 = vector.load %arg7[%c1_44, %c0_45, %c0_46] : memref<6x64x192xf32, #tpu.memory_space<vmem>>, vector<1x64x192xf32>
    %67 = vector.shape_cast %66 : vector<1x64x192xf32> to vector<64x192xf32>
    %c1_47 = arith.constant 1 : index
    %c0_48 = arith.constant 0 : index
    %c0_49 = arith.constant 0 : index
    %68 = vector.load %arg8[%c1_47, %c0_48, %c0_49] : memref<6x64x1xf32, #tpu.memory_space<vmem>>, vector<1x64x1xf32>
    %69 = vector.shape_cast %68 : vector<1x64x1xf32> to vector<64x1xf32>
    %cst_50 = arith.constant 0.000000e+00 : f32
    %70 = vector.broadcast %cst_50 : f32 to vector<64x1xf32>
    %c0_51 = arith.constant 0 : index
    %c0_52 = arith.constant 0 : index
    %71 = vector.load %arg13[%c0_51, %c0_52] : memref<192x512xf32, #tpu.memory_space<vmem>>, vector<64x1xf32>
    tpu.vector_store %arg13[%c0_51, %c0_52], %70 {strides = array<i32>} : memref<192x512xf32, #tpu.memory_space<vmem>>, vector<64x1xf32>,
    %72 = vector.extract_strided_slice %65 {offsets = [0, 0], sizes = [64, 61], strides = [1, 1]} : vector<64x62xf32> to vector<64x61xf32>
    %c0_53 = arith.constant 0 : index
    %c1_54 = arith.constant 1 : index
    %73 = vector.load %arg13[%c0_53, %c1_54] : memref<192x512xf32, #tpu.memory_space<vmem>>, vector<64x61xf32>
    tpu.vector_store %arg13[%c0_53, %c1_54], %72 {strides = array<i32>} : memref<192x512xf32, #tpu.memory_space<vmem>>, vector<64x61xf32>,
    %c64_55 = arith.constant 64 : index
    %c0_56 = arith.constant 0 : index
    %74 = vector.load %arg13[%c64_55, %c0_56] : memref<192x512xf32, #tpu.memory_space<vmem>>, vector<64x62xf32>
    tpu.vector_store %arg13[%c64_55, %c0_56], %65 {strides = array<i32>} : memref<192x512xf32, #tpu.memory_space<vmem>>, vector<64x62xf32>,
    %75 = vector.extract_strided_slice %65 {offsets = [0, 1], sizes = [64, 61], strides = [1, 1]} : vector<64x62xf32> to vector<64x61xf32>
    %c128_57 = arith.constant 128 : index
    %c0_58 = arith.constant 0 : index
    %76 = vector.load %arg13[%c128_57, %c0_58] : memref<192x512xf32, #tpu.memory_space<vmem>>, vector<64x61xf32>
    tpu.vector_store %arg13[%c128_57, %c0_58], %75 {strides = array<i32>} : memref<192x512xf32, #tpu.memory_space<vmem>>, vector<64x61xf32>,
    %c128_59 = arith.constant 128 : index
    %c61 = arith.constant 61 : index
    %77 = vector.load %arg13[%c128_59, %c61] : memref<192x512xf32, #tpu.memory_space<vmem>>, vector<64x1xf32>
    tpu.vector_store %arg13[%c128_59, %c61], %70 {strides = array<i32>} : memref<192x512xf32, #tpu.memory_space<vmem>>, vector<64x1xf32>,
    %c0_60 = arith.constant 0 : index
    %c0_61 = arith.constant 0 : index
    %78 = vector.load %arg13[%c0_60, %c0_61] : memref<192x512xf32, #tpu.memory_space<vmem>>, vector<192x62xf32>
    %cst_62 = arith.constant dense<0.000000e+00> : vector<64x62xf32>
    %79 = tpu.matmul %67, %78, %cst_62 {dimension_numbers = #tpu.dot_dimension_numbers<[1], [0], [0], [1], [0, 0, 1, 1], [], []>} : vector<64x192xf32>, vector<192x62xf32>, vector<64x62xf32> -> vector<64x62xf32>
    %80 = vector.broadcast %69 : vector<64x1xf32> to vector<64x62xf32>
    %81 = arith.addf %79, %80 : vector<64x62xf32>
    %cst_63 = arith.constant 0.000000e+00 : f32
    %82 = vector.broadcast %cst_63 : f32 to vector<64x62xf32>
    %83 = arith.maximumf %81, %82 : vector<64x62xf32>
    %84 = tpu.iota {dimensions = array<i32: 0>} : vector<62x31xi32>
    %85 = tpu.iota {dimensions = array<i32: 1>} : vector<62x31xi32>
    %c2_i32_64 = arith.constant 2 : i32
    %86 = vector.broadcast %c2_i32_64 : i32 to vector<62x31xi32>
    %87 = arith.muli %86, %85 : vector<62x31xi32>
    %88 = arith.cmpi eq, %84, %87 : vector<62x31xi32>
    %cst_65 = arith.constant 1.000000e+00 : f32
    %cst_66 = arith.constant 0.000000e+00 : f32
    %89 = vector.broadcast %cst_65 : f32 to vector<62x31xf32>
    %90 = vector.broadcast %cst_66 : f32 to vector<62x31xf32>
    %91 = arith.select %88, %89, %90 : vector<62x31xi1>, vector<62x31xf32>
    %c2_i32_67 = arith.constant 2 : i32
    %92 = vector.broadcast %c2_i32_67 : i32 to vector<62x31xi32>
    %93 = arith.muli %92, %85 : vector<62x31xi32>
    %c1_i32_68 = arith.constant 1 : i32
    %94 = vector.broadcast %c1_i32_68 : i32 to vector<62x31xi32>
    %95 = arith.addi %93, %94 : vector<62x31xi32>
    %96 = arith.cmpi eq, %84, %95 : vector<62x31xi32>
    %cst_69 = arith.constant 1.000000e+00 : f32
    %cst_70 = arith.constant 0.000000e+00 : f32
    %97 = vector.broadcast %cst_69 : f32 to vector<62x31xf32>
    %98 = vector.broadcast %cst_70 : f32 to vector<62x31xf32>
    %99 = arith.select %96, %97, %98 : vector<62x31xi1>, vector<62x31xf32>
    %cst_71 = arith.constant dense<0.000000e+00> : vector<64x31xf32>
    %100 = tpu.matmul %83, %91, %cst_71 {dimension_numbers = #tpu.dot_dimension_numbers<[1], [0], [0], [1], [0, 0, 1, 1], [], []>} : vector<64x62xf32>, vector<62x31xf32>, vector<64x31xf32> -> vector<64x31xf32>
    %cst_72 = arith.constant dense<0.000000e+00> : vector<64x31xf32>
    %101 = tpu.matmul %83, %99, %cst_72 {dimension_numbers = #tpu.dot_dimension_numbers<[1], [0], [0], [1], [0, 0, 1, 1], [], []>} : vector<64x62xf32>, vector<62x31xf32>, vector<64x31xf32> -> vector<64x31xf32>
    %102 = arith.maximumf %100, %101 : vector<64x31xf32>
    %c2 = arith.constant 2 : index
    %c0_73 = arith.constant 0 : index
    %c0_74 = arith.constant 0 : index
    %103 = vector.load %arg7[%c2, %c0_73, %c0_74] : memref<6x64x192xf32, #tpu.memory_space<vmem>>, vector<1x64x192xf32>
    %104 = vector.shape_cast %103 : vector<1x64x192xf32> to vector<64x192xf32>
    %c2_75 = arith.constant 2 : index
    %c0_76 = arith.constant 0 : index
    %c0_77 = arith.constant 0 : index
    %105 = vector.load %arg8[%c2_75, %c0_76, %c0_77] : memref<6x64x1xf32, #tpu.memory_space<vmem>>, vector<1x64x1xf32>
    %106 = vector.shape_cast %105 : vector<1x64x1xf32> to vector<64x1xf32>
    %cst_78 = arith.constant 0.000000e+00 : f32
    %107 = vector.broadcast %cst_78 : f32 to vector<64x1xf32>
    %c0_79 = arith.constant 0 : index
    %c0_80 = arith.constant 0 : index
    %108 = vector.load %arg13[%c0_79, %c0_80] : memref<192x512xf32, #tpu.memory_space<vmem>>, vector<64x1xf32>
    tpu.vector_store %arg13[%c0_79, %c0_80], %107 {strides = array<i32>} : memref<192x512xf32, #tpu.memory_space<vmem>>, vector<64x1xf32>,
    %109 = vector.extract_strided_slice %102 {offsets = [0, 0], sizes = [64, 30], strides = [1, 1]} : vector<64x31xf32> to vector<64x30xf32>
    %c0_81 = arith.constant 0 : index
    %c1_82 = arith.constant 1 : index
    %110 = vector.load %arg13[%c0_81, %c1_82] : memref<192x512xf32, #tpu.memory_space<vmem>>, vector<64x30xf32>
    tpu.vector_store %arg13[%c0_81, %c1_82], %109 {strides = array<i32>} : memref<192x512xf32, #tpu.memory_space<vmem>>, vector<64x30xf32>,
    %c64_83 = arith.constant 64 : index
    %c0_84 = arith.constant 0 : index
    %111 = vector.load %arg13[%c64_83, %c0_84] : memref<192x512xf32, #tpu.memory_space<vmem>>, vector<64x31xf32>
    tpu.vector_store %arg13[%c64_83, %c0_84], %102 {strides = array<i32>} : memref<192x512xf32, #tpu.memory_space<vmem>>, vector<64x31xf32>,
    %112 = vector.extract_strided_slice %102 {offsets = [0, 1], sizes = [64, 30], strides = [1, 1]} : vector<64x31xf32> to vector<64x30xf32>
    %c128_85 = arith.constant 128 : index
    %c0_86 = arith.constant 0 : index
    %113 = vector.load %arg13[%c128_85, %c0_86] : memref<192x512xf32, #tpu.memory_space<vmem>>, vector<64x30xf32>
    tpu.vector_store %arg13[%c128_85, %c0_86], %112 {strides = array<i32>} : memref<192x512xf32, #tpu.memory_space<vmem>>, vector<64x30xf32>,
    %c128_87 = arith.constant 128 : index
    %c30_88 = arith.constant 30 : index
    %114 = vector.load %arg13[%c128_87, %c30_88] : memref<192x512xf32, #tpu.memory_space<vmem>>, vector<64x1xf32>
    tpu.vector_store %arg13[%c128_87, %c30_88], %107 {strides = array<i32>} : memref<192x512xf32, #tpu.memory_space<vmem>>, vector<64x1xf32>,
    %c0_89 = arith.constant 0 : index
    %c0_90 = arith.constant 0 : index
    %115 = vector.load %arg13[%c0_89, %c0_90] : memref<192x512xf32, #tpu.memory_space<vmem>>, vector<192x31xf32>
    %cst_91 = arith.constant dense<0.000000e+00> : vector<64x31xf32>
    %116 = tpu.matmul %104, %115, %cst_91 {dimension_numbers = #tpu.dot_dimension_numbers<[1], [0], [0], [1], [0, 0, 1, 1], [], []>} : vector<64x192xf32>, vector<192x31xf32>, vector<64x31xf32> -> vector<64x31xf32>
    %117 = vector.broadcast %106 : vector<64x1xf32> to vector<64x31xf32>
    %118 = arith.addf %116, %117 : vector<64x31xf32>
    %cst_92 = arith.constant 0.000000e+00 : f32
    %119 = vector.broadcast %cst_92 : f32 to vector<64x31xf32>
    %120 = arith.maximumf %118, %119 : vector<64x31xf32>
    %121 = tpu.iota {dimensions = array<i32: 0>} : vector<31x15xi32>
    %122 = tpu.iota {dimensions = array<i32: 1>} : vector<31x15xi32>
    %c2_i32_93 = arith.constant 2 : i32
    %123 = vector.broadcast %c2_i32_93 : i32 to vector<31x15xi32>
    %124 = arith.muli %123, %122 : vector<31x15xi32>
    %125 = arith.cmpi eq, %121, %124 : vector<31x15xi32>
    %cst_94 = arith.constant 1.000000e+00 : f32
    %cst_95 = arith.constant 0.000000e+00 : f32
    %126 = vector.broadcast %cst_94 : f32 to vector<31x15xf32>
    %127 = vector.broadcast %cst_95 : f32 to vector<31x15xf32>
    %128 = arith.select %125, %126, %127 : vector<31x15xi1>, vector<31x15xf32>
    %c2_i32_96 = arith.constant 2 : i32
    %129 = vector.broadcast %c2_i32_96 : i32 to vector<31x15xi32>
    %130 = arith.muli %129, %122 : vector<31x15xi32>
    %c1_i32_97 = arith.constant 1 : i32
    %131 = vector.broadcast %c1_i32_97 : i32 to vector<31x15xi32>
    %132 = arith.addi %130, %131 : vector<31x15xi32>
    %133 = arith.cmpi eq, %121, %132 : vector<31x15xi32>
    %cst_98 = arith.constant 1.000000e+00 : f32
    %cst_99 = arith.constant 0.000000e+00 : f32
    %134 = vector.broadcast %cst_98 : f32 to vector<31x15xf32>
    %135 = vector.broadcast %cst_99 : f32 to vector<31x15xf32>
    %136 = arith.select %133, %134, %135 : vector<31x15xi1>, vector<31x15xf32>
    %cst_100 = arith.constant dense<0.000000e+00> : vector<64x15xf32>
    %137 = tpu.matmul %120, %128, %cst_100 {dimension_numbers = #tpu.dot_dimension_numbers<[1], [0], [0], [1], [0, 0, 1, 1], [], []>} : vector<64x31xf32>, vector<31x15xf32>, vector<64x15xf32> -> vector<64x15xf32>
    %cst_101 = arith.constant dense<0.000000e+00> : vector<64x15xf32>
    %138 = tpu.matmul %120, %136, %cst_101 {dimension_numbers = #tpu.dot_dimension_numbers<[1], [0], [0], [1], [0, 0, 1, 1], [], []>} : vector<64x31xf32>, vector<31x15xf32>, vector<64x15xf32> -> vector<64x15xf32>
    %139 = arith.maximumf %137, %138 : vector<64x15xf32>
    %c3_102 = arith.constant 3 : index
    %c0_103 = arith.constant 0 : index
    %c0_104 = arith.constant 0 : index
    %140 = vector.load %arg7[%c3_102, %c0_103, %c0_104] : memref<6x64x192xf32, #tpu.memory_space<vmem>>, vector<1x64x192xf32>
    %141 = vector.shape_cast %140 : vector<1x64x192xf32> to vector<64x192xf32>
    %c3_105 = arith.constant 3 : index
    %c0_106 = arith.constant 0 : index
    %c0_107 = arith.constant 0 : index
    %142 = vector.load %arg8[%c3_105, %c0_106, %c0_107] : memref<6x64x1xf32, #tpu.memory_space<vmem>>, vector<1x64x1xf32>
    %143 = vector.shape_cast %142 : vector<1x64x1xf32> to vector<64x1xf32>
    %cst_108 = arith.constant 0.000000e+00 : f32
    %144 = vector.broadcast %cst_108 : f32 to vector<64x1xf32>
    %c0_109 = arith.constant 0 : index
    %c0_110 = arith.constant 0 : index
    %145 = vector.load %arg13[%c0_109, %c0_110] : memref<192x512xf32, #tpu.memory_space<vmem>>, vector<64x1xf32>
    tpu.vector_store %arg13[%c0_109, %c0_110], %144 {strides = array<i32>} : memref<192x512xf32, #tpu.memory_space<vmem>>, vector<64x1xf32>,
    %146 = vector.extract_strided_slice %139 {offsets = [0, 0], sizes = [64, 14], strides = [1, 1]} : vector<64x15xf32> to vector<64x14xf32>
    %c0_111 = arith.constant 0 : index
    %c1_112 = arith.constant 1 : index
    %147 = vector.load %arg13[%c0_111, %c1_112] : memref<192x512xf32, #tpu.memory_space<vmem>>, vector<64x14xf32>
    tpu.vector_store %arg13[%c0_111, %c1_112], %146 {strides = array<i32>} : memref<192x512xf32, #tpu.memory_space<vmem>>, vector<64x14xf32>,
    %c64_113 = arith.constant 64 : index
    %c0_114 = arith.constant 0 : index
    %148 = vector.load %arg13[%c64_113, %c0_114] : memref<192x512xf32, #tpu.memory_space<vmem>>, vector<64x15xf32>
    tpu.vector_store %arg13[%c64_113, %c0_114], %139 {strides = array<i32>} : memref<192x512xf32, #tpu.memory_space<vmem>>, vector<64x15xf32>,
    %149 = vector.extract_strided_slice %139 {offsets = [0, 1], sizes = [64, 14], strides = [1, 1]} : vector<64x15xf32> to vector<64x14xf32>
    %c128_115 = arith.constant 128 : index
    %c0_116 = arith.constant 0 : index
    %150 = vector.load %arg13[%c128_115, %c0_116] : memref<192x512xf32, #tpu.memory_space<vmem>>, vector<64x14xf32>
    tpu.vector_store %arg13[%c128_115, %c0_116], %149 {strides = array<i32>} : memref<192x512xf32, #tpu.memory_space<vmem>>, vector<64x14xf32>,
    %c128_117 = arith.constant 128 : index
    %c14_118 = arith.constant 14 : index
    %151 = vector.load %arg13[%c128_117, %c14_118] : memref<192x512xf32, #tpu.memory_space<vmem>>, vector<64x1xf32>
    tpu.vector_store %arg13[%c128_117, %c14_118], %144 {strides = array<i32>} : memref<192x512xf32, #tpu.memory_space<vmem>>, vector<64x1xf32>,
    %c0_119 = arith.constant 0 : index
    %c0_120 = arith.constant 0 : index
    %152 = vector.load %arg13[%c0_119, %c0_120] : memref<192x512xf32, #tpu.memory_space<vmem>>, vector<192x15xf32>
    %cst_121 = arith.constant dense<0.000000e+00> : vector<64x15xf32>
    %153 = tpu.matmul %141, %152, %cst_121 {dimension_numbers = #tpu.dot_dimension_numbers<[1], [0], [0], [1], [0, 0, 1, 1], [], []>} : vector<64x192xf32>, vector<192x15xf32>, vector<64x15xf32> -> vector<64x15xf32>
    %154 = vector.broadcast %143 : vector<64x1xf32> to vector<64x15xf32>
    %155 = arith.addf %153, %154 : vector<64x15xf32>
    %cst_122 = arith.constant 0.000000e+00 : f32
    %156 = vector.broadcast %cst_122 : f32 to vector<64x15xf32>
    %157 = arith.maximumf %155, %156 : vector<64x15xf32>
    %158 = tpu.iota {dimensions = array<i32: 0>} : vector<15x7xi32>
    %159 = tpu.iota {dimensions = array<i32: 1>} : vector<15x7xi32>
    %c2_i32_123 = arith.constant 2 : i32
    %160 = vector.broadcast %c2_i32_123 : i32 to vector<15x7xi32>
    %161 = arith.muli %160, %159 : vector<15x7xi32>
    %162 = arith.cmpi eq, %158, %161 : vector<15x7xi32>
    %cst_124 = arith.constant 1.000000e+00 : f32
    %cst_125 = arith.constant 0.000000e+00 : f32
    %163 = vector.broadcast %cst_124 : f32 to vector<15x7xf32>
    %164 = vector.broadcast %cst_125 : f32 to vector<15x7xf32>
    %165 = arith.select %162, %163, %164 : vector<15x7xi1>, vector<15x7xf32>
    %c2_i32_126 = arith.constant 2 : i32
    %166 = vector.broadcast %c2_i32_126 : i32 to vector<15x7xi32>
    %167 = arith.muli %166, %159 : vector<15x7xi32>
    %c1_i32_127 = arith.constant 1 : i32
    %168 = vector.broadcast %c1_i32_127 : i32 to vector<15x7xi32>
    %169 = arith.addi %167, %168 : vector<15x7xi32>
    %170 = arith.cmpi eq, %158, %169 : vector<15x7xi32>
    %cst_128 = arith.constant 1.000000e+00 : f32
    %cst_129 = arith.constant 0.000000e+00 : f32
    %171 = vector.broadcast %cst_128 : f32 to vector<15x7xf32>
    %172 = vector.broadcast %cst_129 : f32 to vector<15x7xf32>
    %173 = arith.select %170, %171, %172 : vector<15x7xi1>, vector<15x7xf32>
    %cst_130 = arith.constant dense<0.000000e+00> : vector<64x7xf32>
    %174 = tpu.matmul %157, %165, %cst_130 {dimension_numbers = #tpu.dot_dimension_numbers<[1], [0], [0], [1], [0, 0, 1, 1], [], []>} : vector<64x15xf32>, vector<15x7xf32>, vector<64x7xf32> -> vector<64x7xf32>
    %cst_131 = arith.constant dense<0.000000e+00> : vector<64x7xf32>
    %175 = tpu.matmul %157, %173, %cst_131 {dimension_numbers = #tpu.dot_dimension_numbers<[1], [0], [0], [1], [0, 0, 1, 1], [], []>} : vector<64x15xf32>, vector<15x7xf32>, vector<64x7xf32> -> vector<64x7xf32>
    %176 = arith.maximumf %174, %175 : vector<64x7xf32>
    %c4 = arith.constant 4 : index
    %c0_132 = arith.constant 0 : index
    %c0_133 = arith.constant 0 : index
    %177 = vector.load %arg7[%c4, %c0_132, %c0_133] : memref<6x64x192xf32, #tpu.memory_space<vmem>>, vector<1x64x192xf32>
    %178 = vector.shape_cast %177 : vector<1x64x192xf32> to vector<64x192xf32>
    %c4_134 = arith.constant 4 : index
    %c0_135 = arith.constant 0 : index
    %c0_136 = arith.constant 0 : index
    %179 = vector.load %arg8[%c4_134, %c0_135, %c0_136] : memref<6x64x1xf32, #tpu.memory_space<vmem>>, vector<1x64x1xf32>
    %180 = vector.shape_cast %179 : vector<1x64x1xf32> to vector<64x1xf32>
    %cst_137 = arith.constant 0.000000e+00 : f32
    %181 = vector.broadcast %cst_137 : f32 to vector<64x1xf32>
    %c0_138 = arith.constant 0 : index
    %c0_139 = arith.constant 0 : index
    %182 = vector.load %arg13[%c0_138, %c0_139] : memref<192x512xf32, #tpu.memory_space<vmem>>, vector<64x1xf32>
    tpu.vector_store %arg13[%c0_138, %c0_139], %181 {strides = array<i32>} : memref<192x512xf32, #tpu.memory_space<vmem>>, vector<64x1xf32>,
    %183 = vector.extract_strided_slice %176 {offsets = [0, 0], sizes = [64, 6], strides = [1, 1]} : vector<64x7xf32> to vector<64x6xf32>
    %c0_140 = arith.constant 0 : index
    %c1_141 = arith.constant 1 : index
    %184 = vector.load %arg13[%c0_140, %c1_141] : memref<192x512xf32, #tpu.memory_space<vmem>>, vector<64x6xf32>
    tpu.vector_store %arg13[%c0_140, %c1_141], %183 {strides = array<i32>} : memref<192x512xf32, #tpu.memory_space<vmem>>, vector<64x6xf32>,
    %c64_142 = arith.constant 64 : index
    %c0_143 = arith.constant 0 : index
    %185 = vector.load %arg13[%c64_142, %c0_143] : memref<192x512xf32, #tpu.memory_space<vmem>>, vector<64x7xf32>
    tpu.vector_store %arg13[%c64_142, %c0_143], %176 {strides = array<i32>} : memref<192x512xf32, #tpu.memory_space<vmem>>, vector<64x7xf32>,
    %186 = vector.extract_strided_slice %176 {offsets = [0, 1], sizes = [64, 6], strides = [1, 1]} : vector<64x7xf32> to vector<64x6xf32>
    %c128_144 = arith.constant 128 : index
    %c0_145 = arith.constant 0 : index
    %187 = vector.load %arg13[%c128_144, %c0_145] : memref<192x512xf32, #tpu.memory_space<vmem>>, vector<64x6xf32>
    tpu.vector_store %arg13[%c128_144, %c0_145], %186 {strides = array<i32>} : memref<192x512xf32, #tpu.memory_space<vmem>>, vector<64x6xf32>,
    %c128_146 = arith.constant 128 : index
    %c6 = arith.constant 6 : index
    %188 = vector.load %arg13[%c128_146, %c6] : memref<192x512xf32, #tpu.memory_space<vmem>>, vector<64x1xf32>
    tpu.vector_store %arg13[%c128_146, %c6], %181 {strides = array<i32>} : memref<192x512xf32, #tpu.memory_space<vmem>>, vector<64x1xf32>,
    %c0_147 = arith.constant 0 : index
    %c0_148 = arith.constant 0 : index
    %189 = vector.load %arg13[%c0_147, %c0_148] : memref<192x512xf32, #tpu.memory_space<vmem>>, vector<192x7xf32>
    %cst_149 = arith.constant dense<0.000000e+00> : vector<64x7xf32>
    %190 = tpu.matmul %178, %189, %cst_149 {dimension_numbers = #tpu.dot_dimension_numbers<[1], [0], [0], [1], [0, 0, 1, 1], [], []>} : vector<64x192xf32>, vector<192x7xf32>, vector<64x7xf32> -> vector<64x7xf32>
    %191 = vector.broadcast %180 : vector<64x1xf32> to vector<64x7xf32>
    %192 = arith.addf %190, %191 : vector<64x7xf32>
    %cst_150 = arith.constant 0.000000e+00 : f32
    %193 = vector.broadcast %cst_150 : f32 to vector<64x7xf32>
    %194 = arith.maximumf %192, %193 : vector<64x7xf32>
    %195 = tpu.iota {dimensions = array<i32: 0>} : vector<7x3xi32>
    %196 = tpu.iota {dimensions = array<i32: 1>} : vector<7x3xi32>
    %c2_i32_151 = arith.constant 2 : i32
    %197 = vector.broadcast %c2_i32_151 : i32 to vector<7x3xi32>
    %198 = arith.muli %197, %196 : vector<7x3xi32>
    %199 = arith.cmpi eq, %195, %198 : vector<7x3xi32>
    %cst_152 = arith.constant 1.000000e+00 : f32
    %cst_153 = arith.constant 0.000000e+00 : f32
    %200 = vector.broadcast %cst_152 : f32 to vector<7x3xf32>
    %201 = vector.broadcast %cst_153 : f32 to vector<7x3xf32>
    %202 = arith.select %199, %200, %201 : vector<7x3xi1>, vector<7x3xf32>
    %c2_i32_154 = arith.constant 2 : i32
    %203 = vector.broadcast %c2_i32_154 : i32 to vector<7x3xi32>
    %204 = arith.muli %203, %196 : vector<7x3xi32>
    %c1_i32_155 = arith.constant 1 : i32
    %205 = vector.broadcast %c1_i32_155 : i32 to vector<7x3xi32>
    %206 = arith.addi %204, %205 : vector<7x3xi32>
    %207 = arith.cmpi eq, %195, %206 : vector<7x3xi32>
    %cst_156 = arith.constant 1.000000e+00 : f32
    %cst_157 = arith.constant 0.000000e+00 : f32
    %208 = vector.broadcast %cst_156 : f32 to vector<7x3xf32>
    %209 = vector.broadcast %cst_157 : f32 to vector<7x3xf32>
    %210 = arith.select %207, %208, %209 : vector<7x3xi1>, vector<7x3xf32>
    %cst_158 = arith.constant dense<0.000000e+00> : vector<64x3xf32>
    %211 = tpu.matmul %194, %202, %cst_158 {dimension_numbers = #tpu.dot_dimension_numbers<[1], [0], [0], [1], [0, 0, 1, 1], [], []>} : vector<64x7xf32>, vector<7x3xf32>, vector<64x3xf32> -> vector<64x3xf32>
    %cst_159 = arith.constant dense<0.000000e+00> : vector<64x3xf32>
    %212 = tpu.matmul %194, %210, %cst_159 {dimension_numbers = #tpu.dot_dimension_numbers<[1], [0], [0], [1], [0, 0, 1, 1], [], []>} : vector<64x7xf32>, vector<7x3xf32>, vector<64x3xf32> -> vector<64x3xf32>
    %213 = arith.maximumf %211, %212 : vector<64x3xf32>
    %c5 = arith.constant 5 : index
    %c0_160 = arith.constant 0 : index
    %c0_161 = arith.constant 0 : index
    %214 = vector.load %arg7[%c5, %c0_160, %c0_161] : memref<6x64x192xf32, #tpu.memory_space<vmem>>, vector<1x64x192xf32>
    %215 = vector.shape_cast %214 : vector<1x64x192xf32> to vector<64x192xf32>
    %c5_162 = arith.constant 5 : index
    %c0_163 = arith.constant 0 : index
    %c0_164 = arith.constant 0 : index
    %216 = vector.load %arg8[%c5_162, %c0_163, %c0_164] : memref<6x64x1xf32, #tpu.memory_space<vmem>>, vector<1x64x1xf32>
    %217 = vector.shape_cast %216 : vector<1x64x1xf32> to vector<64x1xf32>
    %cst_165 = arith.constant 0.000000e+00 : f32
    %218 = vector.broadcast %cst_165 : f32 to vector<64x1xf32>
    %c0_166 = arith.constant 0 : index
    %c0_167 = arith.constant 0 : index
    %219 = vector.load %arg13[%c0_166, %c0_167] : memref<192x512xf32, #tpu.memory_space<vmem>>, vector<64x1xf32>
    tpu.vector_store %arg13[%c0_166, %c0_167], %218 {strides = array<i32>} : memref<192x512xf32, #tpu.memory_space<vmem>>, vector<64x1xf32>,
    %220 = vector.extract_strided_slice %213 {offsets = [0, 0], sizes = [64, 2], strides = [1, 1]} : vector<64x3xf32> to vector<64x2xf32>
    %c0_168 = arith.constant 0 : index
    %c1_169 = arith.constant 1 : index
    %221 = vector.load %arg13[%c0_168, %c1_169] : memref<192x512xf32, #tpu.memory_space<vmem>>, vector<64x2xf32>
    tpu.vector_store %arg13[%c0_168, %c1_169], %220 {strides = array<i32>} : memref<192x512xf32, #tpu.memory_space<vmem>>, vector<64x2xf32>,
    %c64_170 = arith.constant 64 : index
    %c0_171 = arith.constant 0 : index
    %222 = vector.load %arg13[%c64_170, %c0_171] : memref<192x512xf32, #tpu.memory_space<vmem>>, vector<64x3xf32>
    tpu.vector_store %arg13[%c64_170, %c0_171], %213 {strides = array<i32>} : memref<192x512xf32, #tpu.memory_space<vmem>>, vector<64x3xf32>,
    %223 = vector.extract_strided_slice %213 {offsets = [0, 1], sizes = [64, 2], strides = [1, 1]} : vector<64x3xf32> to vector<64x2xf32>
    %c128_172 = arith.constant 128 : index
    %c0_173 = arith.constant 0 : index
    %224 = vector.load %arg13[%c128_172, %c0_173] : memref<192x512xf32, #tpu.memory_space<vmem>>, vector<64x2xf32>
    tpu.vector_store %arg13[%c128_172, %c0_173], %223 {strides = array<i32>} : memref<192x512xf32, #tpu.memory_space<vmem>>, vector<64x2xf32>,
    %c128_174 = arith.constant 128 : index
    %c2_175 = arith.constant 2 : index
    %225 = vector.load %arg13[%c128_174, %c2_175] : memref<192x512xf32, #tpu.memory_space<vmem>>, vector<64x1xf32>
    tpu.vector_store %arg13[%c128_174, %c2_175], %218 {strides = array<i32>} : memref<192x512xf32, #tpu.memory_space<vmem>>, vector<64x1xf32>,
    %c0_176 = arith.constant 0 : index
    %c0_177 = arith.constant 0 : index
    %226 = vector.load %arg13[%c0_176, %c0_177] : memref<192x512xf32, #tpu.memory_space<vmem>>, vector<192x3xf32>
    %cst_178 = arith.constant dense<0.000000e+00> : vector<64x3xf32>
    %227 = tpu.matmul %215, %226, %cst_178 {dimension_numbers = #tpu.dot_dimension_numbers<[1], [0], [0], [1], [0, 0, 1, 1], [], []>} : vector<64x192xf32>, vector<192x3xf32>, vector<64x3xf32> -> vector<64x3xf32>
    %228 = vector.broadcast %217 : vector<64x1xf32> to vector<64x3xf32>
    %229 = arith.addf %227, %228 : vector<64x3xf32>
    %230 = vector.extract_strided_slice %229 {offsets = [0, 0], sizes = [16, 3], strides = [1, 1]} : vector<64x3xf32> to vector<16x3xf32>
    %cst_179 = arith.constant dense<0.000000e+00> : vector<16xf32>
    %231 = vector.multi_reduction <add>, %230, %cst_179 [1] : vector<16x3xf32> to vector<16xf32>
    %232 = vector.shape_cast %231 : vector<16xf32> to vector<16x1xf32>
    %cst_180 = arith.constant 3.000000e+00 : f32
    %233 = vector.broadcast %cst_180 : f32 to vector<16x1xf32>
    %234 = arith.divf %232, %233 : vector<16x1xf32>
    %cst_181 = arith.constant 0.000000e+00 : f32
    %235 = vector.broadcast %cst_181 : f32 to vector<64x512xf32>
    %c0_182 = arith.constant 0 : index
    %c0_183 = arith.constant 0 : index
    %236 = vector.load %arg12[%c0_182, %c0_183] : memref<64x512xf32, #tpu.memory_space<vmem>>, vector<64x512xf32>
    tpu.vector_store %arg12[%c0_182, %c0_183], %235 {strides = array<i32>} : memref<64x512xf32, #tpu.memory_space<vmem>>, vector<64x512xf32>,
    %237 = vector.shape_cast %234 : vector<16x1xf32> to vector<16x1xf32>
    %238 = vector.broadcast %237 : vector<16x1xf32> to vector<16x500xf32>
    %c0_184 = arith.constant 0 : index
    %c0_185 = arith.constant 0 : index
    %239 = vector.load %arg12[%c0_184, %c0_185] : memref<64x512xf32, #tpu.memory_space<vmem>>, vector<16x500xf32>
    tpu.vector_store %arg12[%c0_184, %c0_185], %238 {strides = array<i32>} : memref<64x512xf32, #tpu.memory_space<vmem>>, vector<16x500xf32>,
    %c0_186 = arith.constant 0 : index
    %c0_187 = arith.constant 0 : index
    %c0_188 = arith.constant 0 : index
    %240 = vector.load %arg2[%c0_186, %c0_187, %c0_188] : memref<1x3x500xf32, #tpu.memory_space<vmem>>, vector<1x3x500xf32>
    %241 = vector.shape_cast %240 : vector<1x3x500xf32> to vector<3x500xf32>
    %c16 = arith.constant 16 : index
    %c0_189 = arith.constant 0 : index
    %242 = vector.load %arg12[%c16, %c0_189] : memref<64x512xf32, #tpu.memory_space<vmem>>, vector<3x500xf32>
    tpu.vector_store %arg12[%c16, %c0_189], %241 {strides = array<i32>} : memref<64x512xf32, #tpu.memory_space<vmem>>, vector<3x500xf32>,
    %c0_190 = arith.constant 0 : index
    %c0_191 = arith.constant 0 : index
    %243 = vector.load %arg6[%c0_190, %c0_191] : memref<16x500xf32, #tpu.memory_space<vmem>>, vector<16x500xf32>
    %c19 = arith.constant 19 : index
    %c0_192 = arith.constant 0 : index
    %244 = vector.load %arg12[%c19, %c0_192] : memref<64x512xf32, #tpu.memory_space<vmem>>, vector<16x500xf32>
    tpu.vector_store %arg12[%c19, %c0_192], %243 {strides = array<i32>} : memref<64x512xf32, #tpu.memory_space<vmem>>, vector<16x500xf32>,
    %c0_193 = arith.constant 0 : index
    %c0_194 = arith.constant 0 : index
    %c0_195 = arith.constant 0 : index
    %245 = vector.load %arg3[%c0_193, %c0_194, %c0_195] : memref<1x12x1xf32, #tpu.memory_space<vmem>>, vector<1x12x1xf32>
    %246 = vector.shape_cast %245 : vector<1x12x1xf32> to vector<12x1xf32>
    %247 = vector.shape_cast %246 : vector<12x1xf32> to vector<12x1xf32>
    %248 = vector.broadcast %247 : vector<12x1xf32> to vector<12x500xf32>
    %c35 = arith.constant 35 : index
    %c0_196 = arith.constant 0 : index
    %249 = vector.load %arg12[%c35, %c0_196] : memref<64x512xf32, #tpu.memory_space<vmem>>, vector<12x500xf32>
    tpu.vector_store %arg12[%c35, %c0_196], %248 {strides = array<i32>} : memref<64x512xf32, #tpu.memory_space<vmem>>, vector<12x500xf32>,
    %c0_197 = arith.constant 0 : index
    %c0_198 = arith.constant 0 : index
    %250 = vector.load %arg12[%c0_197, %c0_198] : memref<64x512xf32, #tpu.memory_space<vmem>>, vector<64x500xf32>
    %c0_199 = arith.constant 0 : index
    %c0_200 = arith.constant 0 : index
    %c0_201 = arith.constant 0 : index
    %251 = vector.load %arg9[%c0_199, %c0_200, %c0_201] : memref<6x64x192xf32, #tpu.memory_space<vmem>>, vector<1x64x192xf32>
    %252 = vector.shape_cast %251 : vector<1x64x192xf32> to vector<64x192xf32>
    %c0_202 = arith.constant 0 : index
    %c0_203 = arith.constant 0 : index
    %c0_204 = arith.constant 0 : index
    %253 = vector.load %arg10[%c0_202, %c0_203, %c0_204] : memref<6x64x1xf32, #tpu.memory_space<vmem>>, vector<1x64x1xf32>
    %254 = vector.shape_cast %253 : vector<1x64x1xf32> to vector<64x1xf32>
    %cst_205 = arith.constant 0.000000e+00 : f32
    %255 = vector.broadcast %cst_205 : f32 to vector<64x1xf32>
    %c0_206 = arith.constant 0 : index
    %c0_207 = arith.constant 0 : index
    %256 = vector.load %arg13[%c0_206, %c0_207] : memref<192x512xf32, #tpu.memory_space<vmem>>, vector<64x1xf32>
    tpu.vector_store %arg13[%c0_206, %c0_207], %255 {strides = array<i32>} : memref<192x512xf32, #tpu.memory_space<vmem>>, vector<64x1xf32>,
    %257 = vector.extract_strided_slice %250 {offsets = [0, 0], sizes = [64, 499], strides = [1, 1]} : vector<64x500xf32> to vector<64x499xf32>
    %c0_208 = arith.constant 0 : index
    %c1_209 = arith.constant 1 : index
    %258 = vector.load %arg13[%c0_208, %c1_209] : memref<192x512xf32, #tpu.memory_space<vmem>>, vector<64x499xf32>
    tpu.vector_store %arg13[%c0_208, %c1_209], %257 {strides = array<i32>} : memref<192x512xf32, #tpu.memory_space<vmem>>, vector<64x499xf32>,
    %c64_210 = arith.constant 64 : index
    %c0_211 = arith.constant 0 : index
    %259 = vector.load %arg13[%c64_210, %c0_211] : memref<192x512xf32, #tpu.memory_space<vmem>>, vector<64x500xf32>
    tpu.vector_store %arg13[%c64_210, %c0_211], %250 {strides = array<i32>} : memref<192x512xf32, #tpu.memory_space<vmem>>, vector<64x500xf32>,
    %260 = vector.extract_strided_slice %250 {offsets = [0, 1], sizes = [64, 499], strides = [1, 1]} : vector<64x500xf32> to vector<64x499xf32>
    %c128_212 = arith.constant 128 : index
    %c0_213 = arith.constant 0 : index
    %261 = vector.load %arg13[%c128_212, %c0_213] : memref<192x512xf32, #tpu.memory_space<vmem>>, vector<64x499xf32>
    tpu.vector_store %arg13[%c128_212, %c0_213], %260 {strides = array<i32>} : memref<192x512xf32, #tpu.memory_space<vmem>>, vector<64x499xf32>,
    %c128_214 = arith.constant 128 : index
    %c499 = arith.constant 499 : index
    %262 = vector.load %arg13[%c128_214, %c499] : memref<192x512xf32, #tpu.memory_space<vmem>>, vector<64x1xf32>
    tpu.vector_store %arg13[%c128_214, %c499], %255 {strides = array<i32>} : memref<192x512xf32, #tpu.memory_space<vmem>>, vector<64x1xf32>,
    %c0_215 = arith.constant 0 : index
    %c0_216 = arith.constant 0 : index
    %263 = vector.load %arg13[%c0_215, %c0_216] : memref<192x512xf32, #tpu.memory_space<vmem>>, vector<192x500xf32>
    %cst_217 = arith.constant dense<0.000000e+00> : vector<64x500xf32>
    %264 = tpu.matmul %252, %263, %cst_217 {dimension_numbers = #tpu.dot_dimension_numbers<[1], [0], [0], [1], [0, 0, 1, 1], [], []>} : vector<64x192xf32>, vector<192x500xf32>, vector<64x500xf32> -> vector<64x500xf32>
    %265 = vector.broadcast %254 : vector<64x1xf32> to vector<64x500xf32>
    %266 = arith.addf %264, %265 : vector<64x500xf32>
    %cst_218 = arith.constant 0.000000e+00 : f32
    %267 = vector.broadcast %cst_218 : f32 to vector<64x500xf32>
    %268 = arith.maximumf %266, %267 : vector<64x500xf32>
    %c1_219 = arith.constant 1 : index
    %c0_220 = arith.constant 0 : index
    %c0_221 = arith.constant 0 : index
    %269 = vector.load %arg9[%c1_219, %c0_220, %c0_221] : memref<6x64x192xf32, #tpu.memory_space<vmem>>, vector<1x64x192xf32>
    %270 = vector.shape_cast %269 : vector<1x64x192xf32> to vector<64x192xf32>
    %c1_222 = arith.constant 1 : index
    %c0_223 = arith.constant 0 : index
    %c0_224 = arith.constant 0 : index
    %271 = vector.load %arg10[%c1_222, %c0_223, %c0_224] : memref<6x64x1xf32, #tpu.memory_space<vmem>>, vector<1x64x1xf32>
    %272 = vector.shape_cast %271 : vector<1x64x1xf32> to vector<64x1xf32>
    %cst_225 = arith.constant 0.000000e+00 : f32
    %273 = vector.broadcast %cst_225 : f32 to vector<64x1xf32>
    %c0_226 = arith.constant 0 : index
    %c0_227 = arith.constant 0 : index
    %274 = vector.load %arg13[%c0_226, %c0_227] : memref<192x512xf32, #tpu.memory_space<vmem>>, vector<64x1xf32>
    tpu.vector_store %arg13[%c0_226, %c0_227], %273 {strides = array<i32>} : memref<192x512xf32, #tpu.memory_space<vmem>>, vector<64x1xf32>,
    %275 = vector.extract_strided_slice %268 {offsets = [0, 0], sizes = [64, 499], strides = [1, 1]} : vector<64x500xf32> to vector<64x499xf32>
    %c0_228 = arith.constant 0 : index
    %c1_229 = arith.constant 1 : index
    %276 = vector.load %arg13[%c0_228, %c1_229] : memref<192x512xf32, #tpu.memory_space<vmem>>, vector<64x499xf32>
    tpu.vector_store %arg13[%c0_228, %c1_229], %275 {strides = array<i32>} : memref<192x512xf32, #tpu.memory_space<vmem>>, vector<64x499xf32>,
    %c64_230 = arith.constant 64 : index
    %c0_231 = arith.constant 0 : index
    %277 = vector.load %arg13[%c64_230, %c0_231] : memref<192x512xf32, #tpu.memory_space<vmem>>, vector<64x500xf32>
    tpu.vector_store %arg13[%c64_230, %c0_231], %268 {strides = array<i32>} : memref<192x512xf32, #tpu.memory_space<vmem>>, vector<64x500xf32>,
    %278 = vector.extract_strided_slice %268 {offsets = [0, 1], sizes = [64, 499], strides = [1, 1]} : vector<64x500xf32> to vector<64x499xf32>
    %c128_232 = arith.constant 128 : index
    %c0_233 = arith.constant 0 : index
    %279 = vector.load %arg13[%c128_232, %c0_233] : memref<192x512xf32, #tpu.memory_space<vmem>>, vector<64x499xf32>
    tpu.vector_store %arg13[%c128_232, %c0_233], %278 {strides = array<i32>} : memref<192x512xf32, #tpu.memory_space<vmem>>, vector<64x499xf32>,
    %c128_234 = arith.constant 128 : index
    %c499_235 = arith.constant 499 : index
    %280 = vector.load %arg13[%c128_234, %c499_235] : memref<192x512xf32, #tpu.memory_space<vmem>>, vector<64x1xf32>
    tpu.vector_store %arg13[%c128_234, %c499_235], %273 {strides = array<i32>} : memref<192x512xf32, #tpu.memory_space<vmem>>, vector<64x1xf32>,
    %c0_236 = arith.constant 0 : index
    %c0_237 = arith.constant 0 : index
    %281 = vector.load %arg13[%c0_236, %c0_237] : memref<192x512xf32, #tpu.memory_space<vmem>>, vector<192x500xf32>
    %cst_238 = arith.constant dense<0.000000e+00> : vector<64x500xf32>
    %282 = tpu.matmul %270, %281, %cst_238 {dimension_numbers = #tpu.dot_dimension_numbers<[1], [0], [0], [1], [0, 0, 1, 1], [], []>} : vector<64x192xf32>, vector<192x500xf32>, vector<64x500xf32> -> vector<64x500xf32>
    %283 = vector.broadcast %272 : vector<64x1xf32> to vector<64x500xf32>
    %284 = arith.addf %282, %283 : vector<64x500xf32>
    %cst_239 = arith.constant 0.000000e+00 : f32
    %285 = vector.broadcast %cst_239 : f32 to vector<64x500xf32>
    %286 = arith.maximumf %284, %285 : vector<64x500xf32>
    %c2_240 = arith.constant 2 : index
    %c0_241 = arith.constant 0 : index
    %c0_242 = arith.constant 0 : index
    %287 = vector.load %arg9[%c2_240, %c0_241, %c0_242] : memref<6x64x192xf32, #tpu.memory_space<vmem>>, vector<1x64x192xf32>
    %288 = vector.shape_cast %287 : vector<1x64x192xf32> to vector<64x192xf32>
    %c2_243 = arith.constant 2 : index
    %c0_244 = arith.constant 0 : index
    %c0_245 = arith.constant 0 : index
    %289 = vector.load %arg10[%c2_243, %c0_244, %c0_245] : memref<6x64x1xf32, #tpu.memory_space<vmem>>, vector<1x64x1xf32>
    %290 = vector.shape_cast %289 : vector<1x64x1xf32> to vector<64x1xf32>
    %cst_246 = arith.constant 0.000000e+00 : f32
    %291 = vector.broadcast %cst_246 : f32 to vector<64x1xf32>
    %c0_247 = arith.constant 0 : index
    %c0_248 = arith.constant 0 : index
    %292 = vector.load %arg13[%c0_247, %c0_248] : memref<192x512xf32, #tpu.memory_space<vmem>>, vector<64x1xf32>
    tpu.vector_store %arg13[%c0_247, %c0_248], %291 {strides = array<i32>} : memref<192x512xf32, #tpu.memory_space<vmem>>, vector<64x1xf32>,
    %293 = vector.extract_strided_slice %286 {offsets = [0, 0], sizes = [64, 499], strides = [1, 1]} : vector<64x500xf32> to vector<64x499xf32>
    %c0_249 = arith.constant 0 : index
    %c1_250 = arith.constant 1 : index
    %294 = vector.load %arg13[%c0_249, %c1_250] : memref<192x512xf32, #tpu.memory_space<vmem>>, vector<64x499xf32>
    tpu.vector_store %arg13[%c0_249, %c1_250], %293 {strides = array<i32>} : memref<192x512xf32, #tpu.memory_space<vmem>>, vector<64x499xf32>,
    %c64_251 = arith.constant 64 : index
    %c0_252 = arith.constant 0 : index
    %295 = vector.load %arg13[%c64_251, %c0_252] : memref<192x512xf32, #tpu.memory_space<vmem>>, vector<64x500xf32>
    tpu.vector_store %arg13[%c64_251, %c0_252], %286 {strides = array<i32>} : memref<192x512xf32, #tpu.memory_space<vmem>>, vector<64x500xf32>,
    %296 = vector.extract_strided_slice %286 {offsets = [0, 1], sizes = [64, 499], strides = [1, 1]} : vector<64x500xf32> to vector<64x499xf32>
    %c128_253 = arith.constant 128 : index
    %c0_254 = arith.constant 0 : index
    %297 = vector.load %arg13[%c128_253, %c0_254] : memref<192x512xf32, #tpu.memory_space<vmem>>, vector<64x499xf32>
    tpu.vector_store %arg13[%c128_253, %c0_254], %296 {strides = array<i32>} : memref<192x512xf32, #tpu.memory_space<vmem>>, vector<64x499xf32>,
    %c128_255 = arith.constant 128 : index
    %c499_256 = arith.constant 499 : index
    %298 = vector.load %arg13[%c128_255, %c499_256] : memref<192x512xf32, #tpu.memory_space<vmem>>, vector<64x1xf32>
    tpu.vector_store %arg13[%c128_255, %c499_256], %291 {strides = array<i32>} : memref<192x512xf32, #tpu.memory_space<vmem>>, vector<64x1xf32>,
    %c0_257 = arith.constant 0 : index
    %c0_258 = arith.constant 0 : index
    %299 = vector.load %arg13[%c0_257, %c0_258] : memref<192x512xf32, #tpu.memory_space<vmem>>, vector<192x500xf32>
    %cst_259 = arith.constant dense<0.000000e+00> : vector<64x500xf32>
    %300 = tpu.matmul %288, %299, %cst_259 {dimension_numbers = #tpu.dot_dimension_numbers<[1], [0], [0], [1], [0, 0, 1, 1], [], []>} : vector<64x192xf32>, vector<192x500xf32>, vector<64x500xf32> -> vector<64x500xf32>
    %301 = vector.broadcast %290 : vector<64x1xf32> to vector<64x500xf32>
    %302 = arith.addf %300, %301 : vector<64x500xf32>
    %cst_260 = arith.constant 0.000000e+00 : f32
    %303 = vector.broadcast %cst_260 : f32 to vector<64x500xf32>
    %304 = arith.maximumf %302, %303 : vector<64x500xf32>
    %c3_261 = arith.constant 3 : index
    %c0_262 = arith.constant 0 : index
    %c0_263 = arith.constant 0 : index
    %305 = vector.load %arg9[%c3_261, %c0_262, %c0_263] : memref<6x64x192xf32, #tpu.memory_space<vmem>>, vector<1x64x192xf32>
    %306 = vector.shape_cast %305 : vector<1x64x192xf32> to vector<64x192xf32>
    %c3_264 = arith.constant 3 : index
    %c0_265 = arith.constant 0 : index
    %c0_266 = arith.constant 0 : index
    %307 = vector.load %arg10[%c3_264, %c0_265, %c0_266] : memref<6x64x1xf32, #tpu.memory_space<vmem>>, vector<1x64x1xf32>
    %308 = vector.shape_cast %307 : vector<1x64x1xf32> to vector<64x1xf32>
    %cst_267 = arith.constant 0.000000e+00 : f32
    %309 = vector.broadcast %cst_267 : f32 to vector<64x1xf32>
    %c0_268 = arith.constant 0 : index
    %c0_269 = arith.constant 0 : index
    %310 = vector.load %arg13[%c0_268, %c0_269] : memref<192x512xf32, #tpu.memory_space<vmem>>, vector<64x1xf32>
    tpu.vector_store %arg13[%c0_268, %c0_269], %309 {strides = array<i32>} : memref<192x512xf32, #tpu.memory_space<vmem>>, vector<64x1xf32>,
    %311 = vector.extract_strided_slice %304 {offsets = [0, 0], sizes = [64, 499], strides = [1, 1]} : vector<64x500xf32> to vector<64x499xf32>
    %c0_270 = arith.constant 0 : index
    %c1_271 = arith.constant 1 : index
    %312 = vector.load %arg13[%c0_270, %c1_271] : memref<192x512xf32, #tpu.memory_space<vmem>>, vector<64x499xf32>
    tpu.vector_store %arg13[%c0_270, %c1_271], %311 {strides = array<i32>} : memref<192x512xf32, #tpu.memory_space<vmem>>, vector<64x499xf32>,
    %c64_272 = arith.constant 64 : index
    %c0_273 = arith.constant 0 : index
    %313 = vector.load %arg13[%c64_272, %c0_273] : memref<192x512xf32, #tpu.memory_space<vmem>>, vector<64x500xf32>
    tpu.vector_store %arg13[%c64_272, %c0_273], %304 {strides = array<i32>} : memref<192x512xf32, #tpu.memory_space<vmem>>, vector<64x500xf32>,
    %314 = vector.extract_strided_slice %304 {offsets = [0, 1], sizes = [64, 499], strides = [1, 1]} : vector<64x500xf32> to vector<64x499xf32>
    %c128_274 = arith.constant 128 : index
    %c0_275 = arith.constant 0 : index
    %315 = vector.load %arg13[%c128_274, %c0_275] : memref<192x512xf32, #tpu.memory_space<vmem>>, vector<64x499xf32>
    tpu.vector_store %arg13[%c128_274, %c0_275], %314 {strides = array<i32>} : memref<192x512xf32, #tpu.memory_space<vmem>>, vector<64x499xf32>,
    %c128_276 = arith.constant 128 : index
    %c499_277 = arith.constant 499 : index
    %316 = vector.load %arg13[%c128_276, %c499_277] : memref<192x512xf32, #tpu.memory_space<vmem>>, vector<64x1xf32>
    tpu.vector_store %arg13[%c128_276, %c499_277], %309 {strides = array<i32>} : memref<192x512xf32, #tpu.memory_space<vmem>>, vector<64x1xf32>,
    %c0_278 = arith.constant 0 : index
    %c0_279 = arith.constant 0 : index
    %317 = vector.load %arg13[%c0_278, %c0_279] : memref<192x512xf32, #tpu.memory_space<vmem>>, vector<192x500xf32>
    %cst_280 = arith.constant dense<0.000000e+00> : vector<64x500xf32>
    %318 = tpu.matmul %306, %317, %cst_280 {dimension_numbers = #tpu.dot_dimension_numbers<[1], [0], [0], [1], [0, 0, 1, 1], [], []>} : vector<64x192xf32>, vector<192x500xf32>, vector<64x500xf32> -> vector<64x500xf32>
    %319 = vector.broadcast %308 : vector<64x1xf32> to vector<64x500xf32>
    %320 = arith.addf %318, %319 : vector<64x500xf32>
    %cst_281 = arith.constant 0.000000e+00 : f32
    %321 = vector.broadcast %cst_281 : f32 to vector<64x500xf32>
    %322 = arith.maximumf %320, %321 : vector<64x500xf32>
    %c4_282 = arith.constant 4 : index
    %c0_283 = arith.constant 0 : index
    %c0_284 = arith.constant 0 : index
    %323 = vector.load %arg9[%c4_282, %c0_283, %c0_284] : memref<6x64x192xf32, #tpu.memory_space<vmem>>, vector<1x64x192xf32>
    %324 = vector.shape_cast %323 : vector<1x64x192xf32> to vector<64x192xf32>
    %c4_285 = arith.constant 4 : index
    %c0_286 = arith.constant 0 : index
    %c0_287 = arith.constant 0 : index
    %325 = vector.load %arg10[%c4_285, %c0_286, %c0_287] : memref<6x64x1xf32, #tpu.memory_space<vmem>>, vector<1x64x1xf32>
    %326 = vector.shape_cast %325 : vector<1x64x1xf32> to vector<64x1xf32>
    %cst_288 = arith.constant 0.000000e+00 : f32
    %327 = vector.broadcast %cst_288 : f32 to vector<64x1xf32>
    %c0_289 = arith.constant 0 : index
    %c0_290 = arith.constant 0 : index
    %328 = vector.load %arg13[%c0_289, %c0_290] : memref<192x512xf32, #tpu.memory_space<vmem>>, vector<64x1xf32>
    tpu.vector_store %arg13[%c0_289, %c0_290], %327 {strides = array<i32>} : memref<192x512xf32, #tpu.memory_space<vmem>>, vector<64x1xf32>,
    %329 = vector.extract_strided_slice %322 {offsets = [0, 0], sizes = [64, 499], strides = [1, 1]} : vector<64x500xf32> to vector<64x499xf32>
    %c0_291 = arith.constant 0 : index
    %c1_292 = arith.constant 1 : index
    %330 = vector.load %arg13[%c0_291, %c1_292] : memref<192x512xf32, #tpu.memory_space<vmem>>, vector<64x499xf32>
    tpu.vector_store %arg13[%c0_291, %c1_292], %329 {strides = array<i32>} : memref<192x512xf32, #tpu.memory_space<vmem>>, vector<64x499xf32>,
    %c64_293 = arith.constant 64 : index
    %c0_294 = arith.constant 0 : index
    %331 = vector.load %arg13[%c64_293, %c0_294] : memref<192x512xf32, #tpu.memory_space<vmem>>, vector<64x500xf32>
    tpu.vector_store %arg13[%c64_293, %c0_294], %322 {strides = array<i32>} : memref<192x512xf32, #tpu.memory_space<vmem>>, vector<64x500xf32>,
    %332 = vector.extract_strided_slice %322 {offsets = [0, 1], sizes = [64, 499], strides = [1, 1]} : vector<64x500xf32> to vector<64x499xf32>
    %c128_295 = arith.constant 128 : index
    %c0_296 = arith.constant 0 : index
    %333 = vector.load %arg13[%c128_295, %c0_296] : memref<192x512xf32, #tpu.memory_space<vmem>>, vector<64x499xf32>
    tpu.vector_store %arg13[%c128_295, %c0_296], %332 {strides = array<i32>} : memref<192x512xf32, #tpu.memory_space<vmem>>, vector<64x499xf32>,
    %c128_297 = arith.constant 128 : index
    %c499_298 = arith.constant 499 : index
    %334 = vector.load %arg13[%c128_297, %c499_298] : memref<192x512xf32, #tpu.memory_space<vmem>>, vector<64x1xf32>
    tpu.vector_store %arg13[%c128_297, %c499_298], %327 {strides = array<i32>} : memref<192x512xf32, #tpu.memory_space<vmem>>, vector<64x1xf32>,
    %c0_299 = arith.constant 0 : index
    %c0_300 = arith.constant 0 : index
    %335 = vector.load %arg13[%c0_299, %c0_300] : memref<192x512xf32, #tpu.memory_space<vmem>>, vector<192x500xf32>
    %cst_301 = arith.constant dense<0.000000e+00> : vector<64x500xf32>
    %336 = tpu.matmul %324, %335, %cst_301 {dimension_numbers = #tpu.dot_dimension_numbers<[1], [0], [0], [1], [0, 0, 1, 1], [], []>} : vector<64x192xf32>, vector<192x500xf32>, vector<64x500xf32> -> vector<64x500xf32>
    %337 = vector.broadcast %326 : vector<64x1xf32> to vector<64x500xf32>
    %338 = arith.addf %336, %337 : vector<64x500xf32>
    %cst_302 = arith.constant 0.000000e+00 : f32
    %339 = vector.broadcast %cst_302 : f32 to vector<64x500xf32>
    %340 = arith.maximumf %338, %339 : vector<64x500xf32>
    %c5_303 = arith.constant 5 : index
    %c0_304 = arith.constant 0 : index
    %c0_305 = arith.constant 0 : index
    %341 = vector.load %arg9[%c5_303, %c0_304, %c0_305] : memref<6x64x192xf32, #tpu.memory_space<vmem>>, vector<1x64x192xf32>
    %342 = vector.shape_cast %341 : vector<1x64x192xf32> to vector<64x192xf32>
    %c5_306 = arith.constant 5 : index
    %c0_307 = arith.constant 0 : index
    %c0_308 = arith.constant 0 : index
    %343 = vector.load %arg10[%c5_306, %c0_307, %c0_308] : memref<6x64x1xf32, #tpu.memory_space<vmem>>, vector<1x64x1xf32>
    %344 = vector.shape_cast %343 : vector<1x64x1xf32> to vector<64x1xf32>
    %cst_309 = arith.constant 0.000000e+00 : f32
    %345 = vector.broadcast %cst_309 : f32 to vector<64x1xf32>
    %c0_310 = arith.constant 0 : index
    %c0_311 = arith.constant 0 : index
    %346 = vector.load %arg13[%c0_310, %c0_311] : memref<192x512xf32, #tpu.memory_space<vmem>>, vector<64x1xf32>
    tpu.vector_store %arg13[%c0_310, %c0_311], %345 {strides = array<i32>} : memref<192x512xf32, #tpu.memory_space<vmem>>, vector<64x1xf32>,
    %347 = vector.extract_strided_slice %340 {offsets = [0, 0], sizes = [64, 499], strides = [1, 1]} : vector<64x500xf32> to vector<64x499xf32>
    %c0_312 = arith.constant 0 : index
    %c1_313 = arith.constant 1 : index
    %348 = vector.load %arg13[%c0_312, %c1_313] : memref<192x512xf32, #tpu.memory_space<vmem>>, vector<64x499xf32>
    tpu.vector_store %arg13[%c0_312, %c1_313], %347 {strides = array<i32>} : memref<192x512xf32, #tpu.memory_space<vmem>>, vector<64x499xf32>,
    %c64_314 = arith.constant 64 : index
    %c0_315 = arith.constant 0 : index
    %349 = vector.load %arg13[%c64_314, %c0_315] : memref<192x512xf32, #tpu.memory_space<vmem>>, vector<64x500xf32>
    tpu.vector_store %arg13[%c64_314, %c0_315], %340 {strides = array<i32>} : memref<192x512xf32, #tpu.memory_space<vmem>>, vector<64x500xf32>,
    %350 = vector.extract_strided_slice %340 {offsets = [0, 1], sizes = [64, 499], strides = [1, 1]} : vector<64x500xf32> to vector<64x499xf32>
    %c128_316 = arith.constant 128 : index
    %c0_317 = arith.constant 0 : index
    %351 = vector.load %arg13[%c128_316, %c0_317] : memref<192x512xf32, #tpu.memory_space<vmem>>, vector<64x499xf32>
    tpu.vector_store %arg13[%c128_316, %c0_317], %350 {strides = array<i32>} : memref<192x512xf32, #tpu.memory_space<vmem>>, vector<64x499xf32>,
    %c128_318 = arith.constant 128 : index
    %c499_319 = arith.constant 499 : index
    %352 = vector.load %arg13[%c128_318, %c499_319] : memref<192x512xf32, #tpu.memory_space<vmem>>, vector<64x1xf32>
    tpu.vector_store %arg13[%c128_318, %c499_319], %345 {strides = array<i32>} : memref<192x512xf32, #tpu.memory_space<vmem>>, vector<64x1xf32>,
    %c0_320 = arith.constant 0 : index
    %c0_321 = arith.constant 0 : index
    %353 = vector.load %arg13[%c0_320, %c0_321] : memref<192x512xf32, #tpu.memory_space<vmem>>, vector<192x500xf32>
    %cst_322 = arith.constant dense<0.000000e+00> : vector<64x500xf32>
    %354 = tpu.matmul %342, %353, %cst_322 {dimension_numbers = #tpu.dot_dimension_numbers<[1], [0], [0], [1], [0, 0, 1, 1], [], []>} : vector<64x192xf32>, vector<192x500xf32>, vector<64x500xf32> -> vector<64x500xf32>
    %355 = vector.broadcast %344 : vector<64x1xf32> to vector<64x500xf32>
    %356 = arith.addf %354, %355 : vector<64x500xf32>
    %357 = vector.extract_strided_slice %356 {offsets = [0, 0], sizes = [1, 500], strides = [1, 1]} : vector<64x500xf32> to vector<1x500xf32>
    %358 = math.tanh %357 : vector<1x500xf32>
    %cst_323 = arith.constant 9.500000e-03 : f32
    %359 = vector.broadcast %cst_323 : f32 to vector<1x500xf32>
    %360 = arith.mulf %358, %359 : vector<1x500xf32>
    %cst_324 = arith.constant 3.000000e-03 : f32
    %361 = vector.broadcast %cst_324 : f32 to vector<1x500xf32>
    %362 = arith.subf %360, %361 : vector<1x500xf32>
    %c0_325 = arith.constant 0 : index
    %c0_326 = arith.constant 0 : index
    %c0_327 = arith.constant 0 : index
    %363 = vector.load %arg11[%c0_325, %c0_326, %c0_327] : memref<1x2x500xf32, #tpu.memory_space<vmem>>, vector<1x1x500xf32>
    %364 = vector.shape_cast %363 : vector<1x1x500xf32> to vector<1x500xf32>
    %365 = vector.shape_cast %362 : vector<1x500xf32> to vector<1x1x500xf32>
    tpu.vector_store %arg11[%c0_325, %c0_326, %c0_327], %365 {strides = array<i32>} : memref<1x2x500xf32, #tpu.memory_space<vmem>>, vector<1x1x500xf32>,
    %366 = vector.extract_strided_slice %356 {offsets = [1, 0], sizes = [1, 500], strides = [1, 1]} : vector<64x500xf32> to vector<1x500xf32>
    %367 = math.tanh %366 : vector<1x500xf32>
    %cst_328 = arith.constant 3.200000e-02 : f32
    %368 = vector.broadcast %cst_328 : f32 to vector<1x500xf32>
    %369 = arith.mulf %367, %368 : vector<1x500xf32>
    %c0_329 = arith.constant 0 : index
    %c1_330 = arith.constant 1 : index
    %c0_331 = arith.constant 0 : index
    %370 = vector.load %arg11[%c0_329, %c1_330, %c0_331] : memref<1x2x500xf32, #tpu.memory_space<vmem>>, vector<1x1x500xf32>
    %371 = vector.shape_cast %370 : vector<1x1x500xf32> to vector<1x500xf32>
    %372 = vector.shape_cast %369 : vector<1x500xf32> to vector<1x1x500xf32>
    tpu.vector_store %arg11[%c0_329, %c1_330, %c0_331], %372 {strides = array<i32>} : memref<1x2x500xf32, #tpu.memory_space<vmem>>, vector<1x1x500xf32>,
    return
  }
  func.func @transform_0(%arg0: i32) -> (i32, i32, i32) {
    %c0_i32 = arith.constant 0 : i32
    %c0_i32_0 = arith.constant 0 : i32
    %c0_i32_1 = arith.constant 0 : i32
    return %arg0, %c0_i32, %c0_i32_0 : i32, i32, i32
  }
  func.func @transform_1(%arg0: i32) -> (i32, i32, i32) {
    %c0_i32 = arith.constant 0 : i32
    %c0_i32_0 = arith.constant 0 : i32
    %c0_i32_1 = arith.constant 0 : i32
    return %arg0, %c0_i32, %c0_i32_0 : i32, i32, i32
  }
  func.func @transform_2(%arg0: i32) -> (i32, i32, i32) {
    %c0_i32 = arith.constant 0 : i32
    %c0_i32_0 = arith.constant 0 : i32
    %c0_i32_1 = arith.constant 0 : i32
    return %arg0, %c0_i32, %c0_i32_0 : i32, i32, i32
  }
  func.func @transform_3(%arg0: i32) -> (i32, i32) {
    %c0_i32 = arith.constant 0 : i32
    %c0_i32_0 = arith.constant 0 : i32
    %c0_i32_1 = arith.constant 0 : i32
    return %c0_i32, %c0_i32_0 : i32, i32
  }
  func.func @transform_4(%arg0: i32) -> (i32, i32) {
    %c0_i32 = arith.constant 0 : i32
    %c0_i32_0 = arith.constant 0 : i32
    %c0_i32_1 = arith.constant 0 : i32
    return %c0_i32, %c0_i32_0 : i32, i32
  }
  func.func @transform_5(%arg0: i32) -> (i32, i32) {
    %c0_i32 = arith.constant 0 : i32
    %c0_i32_0 = arith.constant 0 : i32
    %c0_i32_1 = arith.constant 0 : i32
    return %c0_i32, %c0_i32_0 : i32, i32
  }
  func.func @transform_6(%arg0: i32) -> (i32, i32, i32) {
    %c0_i32 = arith.constant 0 : i32
    %c0_i32_0 = arith.constant 0 : i32
    %c0_i32_1 = arith.constant 0 : i32
    %c0_i32_2 = arith.constant 0 : i32
    return %c0_i32, %c0_i32_0, %c0_i32_1 : i32, i32, i32
  }
  func.func @transform_7(%arg0: i32) -> (i32, i32, i32) {
    %c0_i32 = arith.constant 0 : i32
    %c0_i32_0 = arith.constant 0 : i32
    %c0_i32_1 = arith.constant 0 : i32
    %c0_i32_2 = arith.constant 0 : i32
    return %c0_i32, %c0_i32_0, %c0_i32_1 : i32, i32, i32
  }
  func.func @transform_8(%arg0: i32) -> (i32, i32, i32) {
    %c0_i32 = arith.constant 0 : i32
    %c0_i32_0 = arith.constant 0 : i32
    %c0_i32_1 = arith.constant 0 : i32
    %c0_i32_2 = arith.constant 0 : i32
    return %c0_i32, %c0_i32_0, %c0_i32_1 : i32, i32, i32
  }
  func.func @transform_9(%arg0: i32) -> (i32, i32, i32) {
    %c0_i32 = arith.constant 0 : i32
    %c0_i32_0 = arith.constant 0 : i32
    %c0_i32_1 = arith.constant 0 : i32
    %c0_i32_2 = arith.constant 0 : i32
    return %c0_i32, %c0_i32_0, %c0_i32_1 : i32, i32, i32
  }
  func.func @transform_10(%arg0: i32) -> (i32, i32, i32) {
    %c0_i32 = arith.constant 0 : i32
    %c0_i32_0 = arith.constant 0 : i32
    %c0_i32_1 = arith.constant 0 : i32
    return %arg0, %c0_i32, %c0_i32_0 : i32, i32, i32
  }
}

</mosaic_0001>

<bundles_post_ra>
// kernel: forward.1
= control target key start
LH: loop header
LB: loop body
LE: loop exit
PB: predicated region body
PF: predicated region fallthrough
CT: control target
= control target key end

     0   :  { %15 = vsyncpa [#allocation5], 0  ;;  %s10977_s13 = smov 0   ;;  %s15597_s0 = inlined_call_operand.vmem [shape: f32[2,14,125], index: 0, kind: input, shape index: {}]   ;;  %s15598_s1 = inlined_call_operand.vmem [shape: f32[2,3,500], index: 1, kind: input, shape index: {}]   ;;  %s15599_s2 = inlined_call_operand.vmem [shape: f32[2,12,1], index: 2, kind: input, shape index: {}]   ;;  %s15600_s3 = inlined_call_operand.vmem [shape: f32[14,1], index: 3, kind: input, shape index: {}]   ;;  %s15601_s4 = inlined_call_operand.vmem [shape: f32[16,125], index: 4, kind: input, shape index: {}]   ;;  %s15602_s5 = inlined_call_operand.vmem [shape: f32[16,500], index: 5, kind: input, shape index: {}]   ;;  %s15603_s6 = inlined_call_operand.vmem [shape: f32[6,64,192], index: 6, kind: input, shape index: {}]   ;;  %s15604_s7 = inlined_call_operand.vmem [shape: f32[6,64,1], index: 7, kind: input, shape index: {}]   ;;  %s15605_s8 = inlined_call_operand.hbm [shape: f32[6,64,192], index: 8, kind: input, shape index: {}]   ;;  %s15606_s9 = inlined_call_operand.vmem [shape: f32[6,64,1], index: 9, kind: input, shape index: {}]   ;;  %s15607_s10 = inlined_call_operand.vmem [shape: f32[2,2,500], index: 10, kind: output, shape index: {}]  }
   0x1 LB: > { %s10983_s14 = sadd.s32 4294967295, %s10909_s13   ;;  %p9038_p0 = scmp.ge.s32.totalorder %s10909_s13, 1  ;;  %s10909_s13 = sphi %s10977_s13, %s21_s13  }
   0x2   : > { %p277_p1 = scmp.lt.s32.totalorder %s10909_s13, 3  ;;  %s10911_s15 = smov [#allocation4]  }
   0x3   : > { %s304_s16 = sshll.u32 %s10911_s15, 4  ;;  %p15608_p3 = scmp.eq.s32.totalorder %s10983_s14, 0  ;;  %s305_s16 = int_to_ptr.vmem [resolvable:$true] %s304_s16 }
   0x4   : > { %p10987_p2 = pnand %p9038_p0, %p277_p1  ;;  %s10871_s21 = scalar_lea.hbm %s15605_s8, 12288 }
   0x5   : > { %p10872_p6 = scmp.ne.s32.totalorder %s15605_s8, %s10871_s21  ;;  %p10878_p10 = scmp.lt.u32.totalorder %s10871_s21, %s15605_s8 }
   0x6   : > { %s15629_s17 = scalar_select %p10987_p2, 1, 0 }
   0x7   : > { %p10826_p4 = pneg %p10987_p2 }
   0x9   : > { %p10996_p5 = pnand %p15608_p3, %p10826_p4 }
   0xb   : > { %p10873_p7 = pneg %p10996_p5 }
   0xd   : > { %p10874_p8 = pnand %p10873_p7, %p10872_p6 }
   0xf   : > { %p10875_p9 = pneg %p10874_p8 }
  0x11   : > { %p10880_p11 = pnand %p10878_p10, %p10875_p9 }
  0x13   : > { %10883 = shalt.err (!%p10880_p11)
}
  0x14   : > { %s10884_s26 = scalar_lea.vmem %s305_s16, 12288  ;;  %p10892_p1 = scmp.lt.s32.totalorder %s305_s16, %s305_s16 }
  0x15   : > { %p10885_p12 = scmp.ne.s32.totalorder %s305_s16, %s10884_s26  ;;  %p10893_p4 = scmp.lt.s32.totalorder %s10884_s26, %s10884_s26 }
  0x17   : > { %p10887_p13 = pnand %p10885_p12, %p10873_p7  ;;  %p10894_p3 = por %p10893_p4, %p10892_p1 }
  0x19   : > { %p10888_p0 = pneg %p10887_p13 }
  0x1b   : > { %p10895_p2 = pnand %p10894_p3, %p10888_p0 }
  0x1d   : > { %10898 = shalt.err (!%p10895_p2)
}
  0x1e   : > { %s10912_s27 = smov 256   ;;  %s10913_s28 = smov 16  }
  0x1f   : > { %10829 = dma.hbm_to_vmem [thread:$0]  (!%p10996_p5), %s15605_s8, 12288, %s305_s16, [#allocation5], %s10912_s27, %s10912_s27, %s10913_s28  }
  0x20   : > { %p15631_p6 = scmp.ne.s32.totalorder %s15629_s17, 0 }
  0x21   : > { %p15632_p8 = scmp.eq.s32.totalorder (!%p15631_p6), %s10983_s14, 0 }
  0x22   : > { %347 = sbr.rel (%p15631_p6) target bundleno = 6683 (0x1a1b), region = 60 }
  0x29   : > { %10904 = dma.done.wait (%p15632_p8), [#allocation5], 12288   ;;  %p15633_p7 = pmov %p15632_p8 }
  0x2a   : > { %p395_p3 = scmp.lt.s32.totalorder %s10983_s14, 1  ;;  %v10914_v0 = vmov 0   ;;  %v10915_v1 = vmov 0.0   ;;  %vm451_vm0 = vcmask 1017856   ;;  %v450_v2 = vld [vmem:[%s15600_s3 + $0x8] sm:$0x3f]  ;;  %v15628_v63 = vlaneseq }
  0x2b   : > { %10906 = vsyncadd (%p15633_p7), [#allocation5], 4294955008  ;;  %10852 = vset.pattern.permute.xlu1 %v10914_v0  ;;  %3806 = vst [vmem:[#allocation2 + $0x48] sm:$0xff] %v10915_v1  ;;  %10851 = vset.pattern.permute.xlu0 %v10914_v0  ;;  %vm3849_vm1 = vcmask 944128   ;;  %v11072_v8 = vld [vmem:[%s15602_s5 + $0x8] sm:$0xff]  ;;  %v11077_v9 = vld [vmem:[%s15602_s5 + $0x10] sm:$0xff] }
  0x2c   : > { %3807 = vst [vmem:[#allocation2 + $0x50] sm:$0xff] %v10915_v1  ;;  %3808 = vst [vmem:[#allocation2 + $0x58] sm:$0xff] %v10915_v1  ;;  %s16125_s14 = smov (!%p395_p3, %s10983_s14), 1  ;;  %467 = vperm.xlu1 %10852, %v450_v2   ;;  %vm489_vm2 = vcmask 1022976   ;;  %v3854_v11 = vld [vmem:[%s15602_s5 + $0x18] sm:$0xff]  ;;  %v3869_v12 = vrot.slane %v11072_v8, 5 }
  0x2d   : > { %415 = vst [vmem:[#allocation2] sm:$0xff] %v10915_v1  ;;  %419 = vst [vmem:[#allocation2 + $0x20] sm:$0xff] %v10915_v1  ;;  %s9504_s11 = sshll.u32 %s16125_s14, 4  ;;  %v3870_v13 = vrot.slane %v11077_v9, 5  ;;  %vm15610_vm3 = vcmask 949251   ;;  %v3871_v15 = vrot.slane %v3854_v11, 5 }
  0x2e   : > { %423 = vst [vmem:[#allocation2 + $0x40] sm:$0xff] %v10915_v1  ;;  %427 = vst [vmem:[#allocation2 + $0x60] sm:$0xff] %v10915_v1  ;;  %s11051_s16 = scalar_lea.vmem %s15597_s0, %s9504_s11  ;;  %s404_s19 = scalar_lea.vmem %s15598_s1, %s9504_s11  ;;  %vm487_vm4 = vcmask 1022982   ;;  %v476_v16 = vld [vmem:[%s15601_s4] sm:$0xff]  ;;  %v477_v17 = vld [vmem:[%s15601_s4 + $0x8] sm:$0xff]  ;;  %vm15617_vm5 = vcmask 1045504  }
  0x2f   : > { %431 = vst [vmem:[#allocation2 + $0x80] sm:$0xff] %v10915_v1  ;;  %435 = vst [vmem:[#allocation2 + $0xa0] sm:$0xff] %v10915_v1  ;;  %s11059_s22 = scalar_lea.vmem %s15599_s2, %s9504_s11  ;;  %v11065_v3 = vld [vmem:[%s11051_s16] sm:$0xff]  ;;  %v3839_v6 = vld [vmem:[%s404_s19 + $0x8] sm:$0x77]  ;;  %v481_v18 = vrot.slane %v476_v16, 2 }
  0x30   : > { %3800 = vst [vmem:[#allocation2 + $0x18] sm:$0xff] %v10915_v1  ;;  %3804 = vst [vmem:[#allocation2 + $0x38] sm:$0xff] %v10915_v1  ;;  %v3838_v4 = vld [vmem:[%s404_s19] sm:$0x77]  ;;  %v452_v5 = vsel %vm451_vm0, %v11065_v3, 0.0  ;;  %v3843_v10 = vcombine.high %v3839_v6, %v3839_v6  ;;  %v482_v19 = vrot.slane %v477_v17, 2 }
  0x31   : > { %3812 = vst [vmem:[#allocation2 + $0x78] sm:$0xff] %v10915_v1  ;;  %3814 = vst [vmem:[#allocation2 + $0x88] sm:$0xff] %v10915_v1  ;;  %v3842_v7 = vcombine.high %v3838_v4, %v3838_v4  ;;  %453 = vadd.xlane.f32.xlu0 %v452_v5  ;;  %v492_v14 = vld [vmem:[%s11059_s22] sm:$0xff]  ;;  %v493_v20 = vld [vmem:[%s11059_s22 + $0x8] sm:$0xf]  ;;  %vm474_vm6 = vcmask 1020928  }
  0x32   : > { %3815 = vst [vmem:[#allocation2 + $0x90] sm:$0xff] %v10915_v1  ;;  %3816 = vst [vmem:[#allocation2 + $0x98] sm:$0xff] %v10915_v1  ;;  %496 = vperm.xlu1 %10852, %v492_v14   ;;  %v483_v21 = vsel %vm15617_vm5, %v481_v18, %v482_v19  ;;  %v3851_v22 = vld [vmem:[%s15602_s5] sm:$0xff]  ;;  %s10916_s20 = smov 1   ;;  %vm15612_vm7 = vcmask 949248   ;;  %v3858_v25 = vld [vmem:[%s15602_s5 + $0x38] sm:$0xff] }
  0x33   : > { %3818 = vst [vmem:[#allocation2 + $0xa8] sm:$0xff] %v10915_v1  ;;  %3819 = vst [vmem:[#allocation2 + $0xb0] sm:$0xff] %v10915_v1  ;;  %v3868_v23 = vrot.slane %v3851_v22, 5  ;;  %v3878_v26 = vrot.slane %v3858_v25, 5  ;;  %vm15611_vm8 = vcmask 1042432   ;;  %v449_v27 = vld [vmem:[%s15600_s3] sm:$0xff] }
  0x34   : > { %3820 = vst [vmem:[#allocation2 + $0xb8] sm:$0xff] %v10915_v1  ;;  %3822 = vst [vmem:[#allocation2 + $0xc8] sm:$0xff] %v10915_v1  ;;  %vm15624_vm9 = vcmask 7168   ;;  %v448_v29 = vld [vmem:[%s11051_s16 + $0x8] sm:$0x3f]  ;;  %v3855_v34 = vld [vmem:[%s15602_s5 + $0x20] sm:$0xff] }
  0x35   : > { %3848 = vst [vmem:[#allocation2 + $0x50] sm:$0x7] %v3839_v6  ;;  %601 = vst.msk [vmem:[#allocation3 + $0x1e0] sm:$0xff] %vm489_vm2, %v10915_v1  ;;  %v3879_v28 = vsel %vm15611_vm8, %v3871_v15, %v3878_v26  ;;  %vm510_vm10 = vcmask 1016832   ;;  %v3872_v36 = vrot.slane %v3855_v34, 5  ;;  %vm585_vm11 = vcmask 1022984  }
  0x36   : > { %600 = vst.msk [vmem:[#allocation3 + $0x1c0] sm:$0xff] %vm489_vm2, %v10915_v1  ;;  %3847 = vst [vmem:[#allocation2 + $0x48] sm:$0x7] %v3842_v7  ;;  %500 = vperm.xlu1 %10852, %v493_v20   ;;  %s10917_s16 = smov 127   ;;  %vm472_vm12 = vcmask 1022979   ;;  %v537_v52 = vld [vmem:[%s15604_s7 + $0x8] sm:$0xff] }
  0x37   : > { %3850 = vst.msk [vmem:[#allocation2 + $0x58] sm:$0x7] %vm3849_vm1, %v3843_v10  ;;  %3893 = vst [vmem:[#allocation2 + $0x48] sm:$0xf8] %v3869_v12  ;;  %v3873_v40 = vsel %vm15611_vm8, %v3868_v23, %v3872_v36  ;;  %v539_v53 = vld [vmem:[%s15604_s7 + $0x18] sm:$0xff]  ;;  %v10918_v54 = vmov 0.0|0.0  }
  0x38   : > { %3894 = vst [vmem:[#allocation2 + $0x50] sm:$0xf8] %v3870_v13  ;;  %3896 = vst.msk [vmem:[#allocation2 + $0x58] sm:$0xf8] %vm15610_vm3, %v3871_v15  ;;  %9894 = vmatprep.subr.bf16.mxu0 %v10918_v54  ;;  %v541_v55 = vld [vmem:[%s15604_s7 + $0x28] sm:$0xff]  ;;  %v543_v57 = vld [vmem:[%s15604_s7 + $0x38] sm:$0xff] }
  0x39   : > { %488 = vst.msk [vmem:[#allocation2 + $0x20] sm:$0xc0] %vm487_vm4, %v481_v18  ;;  %v536_v58 = vld [vmem:[%s15604_s7] sm:$0xff]  ;;  %v538_v59 = vld [vmem:[%s15604_s7 + $0x10] sm:$0xff]  ;;  %v521_v62 = vld [vmem:[%s15603_s6 + $0x8] sm:$0xff]  ;;  %vm15627_vm13 = vcmask 523264  }
  0x3a   : > { %491 = vst.msk [vmem:[#allocation2 + $0x60] sm:$0x3f] %vm474_vm6, %v482_v19  ;;  %v540_v60 = vld [vmem:[%s15604_s7 + $0x20] sm:$0xff]  ;;  %v542_v61 = vld [vmem:[%s15604_s7 + $0x30] sm:$0xff]  ;;  %9051 = vmatprep.mubr.msk.f32.mxu0 %vm15627_vm13, %v521_v62  ;;  %v11219_v0 = vshrl.u32 %v15628_v63, 7  ;;  %v864_v2 = vand.u32 127, %v15628_v63 }
  0x3b   : > { %490 = vst.msk [vmem:[#allocation2 + $0x40] sm:$0xff] %vm489_vm2, %v483_v21  ;;  %v10919_v14 = vmov 1.0|1.0   ;;  %v9330_v9 = vld [vmem:[%s15603_s6 + $0x288] sm:$0xff] }
  0x3c   : > { %4205 = vst.msk [vmem:[#allocation3 + $0x1d8] sm:$0xff] %vm15612_vm7, %v10915_v1  ;;  %4209 = vst.msk [vmem:[#allocation3 + $0x1f8] sm:$0xff] %vm15612_vm7, %v10915_v1  ;;  %v11228_v5 = vadd.s32 16, %v11219_v0  ;;  %v11231_v6 = vadd.s32 24, %v11219_v0  ;;  %v11234_v7 = vadd.s32 32, %v11219_v0  ;;  %v11237_v10 = vadd.s32 40, %v11219_v0 }
  0x3d   : > { %3904 = vst.msk [vmem:[#allocation2 + $0x98] sm:$0x7] %vm3849_vm1, %v3878_v26  ;;  %v11275_v16 = vadd.s32 48, %v11219_v0  ;;  %v11278_v17 = vadd.s32 56, %v11219_v0  ;;  %v11295_v19 = vadd.s32 64, %v11219_v0  ;;  %v11298_v20 = vadd.s32 72, %v11219_v0 }
  0x3e   : > { %3900 = vst.msk [vmem:[#allocation2 + $0x78] sm:$0xff] %vm15612_vm7, %v3879_v28  ;;  %v11321_v22 = vadd.s32 80, %v11219_v0 }
  0x3f   : > { %547 = vst.msk [vmem:[#allocation3 + $0x40] sm:$0xff] %vm15624_vm9, %v10915_v1  ;;  %545 = vst.msk [vmem:[#allocation3] sm:$0xff] %vm15624_vm9, %v10915_v1  ;;  %v12522_v8 = vld [vmem:[#allocation2 + $0x50] sm:$0xff] }
  0x40   : > { %546 = vst.msk [vmem:[#allocation3 + $0x20] sm:$0xff] %vm15624_vm9, %v10915_v1  ;;  %548 = vst.msk [vmem:[#allocation3 + $0x60] sm:$0xff] %vm15624_vm9, %v10915_v1 }
  0x41   : > { %549 = vst.msk [vmem:[#allocation3 + $0x80] sm:$0xff] %vm15624_vm9, %v10915_v1  ;;  %550 = vst.msk [vmem:[#allocation3 + $0xa0] sm:$0xff] %vm15624_vm9, %v10915_v1 }
  0x42   : > { %v11109_v24 = vld [vmem:[#allocation2 + $0x40] sm:$0xff]  ;;  %551 = vst.msk [vmem:[#allocation3 + $0xc0] sm:$0xff] %vm15624_vm9, %v10915_v1  ;;  %552 = vst.msk [vmem:[#allocation3 + $0xe0] sm:$0xff] %vm15624_vm9, %v10915_v1 }
  0x43   : > { %565 = vrot.lane.b32.xlu1 %v11109_v24, %s10916_s20  ;;  %596 = vst.msk [vmem:[#allocation3 + $0x140] sm:$0xff] %vm489_vm2, %v11109_v24  ;;  %3805 = vst [vmem:[#allocation2 + $0x40] sm:$0xff] %v10915_v1 }
  0x44   : > { %3846 = vst [vmem:[#allocation2 + $0x40] sm:$0x7] %v3838_v4  ;;  %3892 = vst [vmem:[#allocation2 + $0x40] sm:$0xf8] %v3868_v23  ;;  %v11225_v4 = vmul.u32 2, %v864_v2  ;;  %v11324_v23 = vadd.s32 88, %v11219_v0 }
  0x46   : > { %vm15613_vm14 = vcmp.eq.s32.totalorder %v11219_v0, %v11225_v4  ;;  %vm15616_vm1 = vcmp.eq.s32.totalorder %v11231_v6, %v11225_v4  ;;  %vm15618_vm8 = vcmp.eq.s32.totalorder %v11275_v16, %v11225_v4  ;;  %vm15623_vm7 = vcmp.eq.s32.totalorder %v11278_v17, %v11225_v4 }
  0x47   : > { %460 = vperm.xlu0 %10851, %v449_v27  }
  0xab   : > { %v468_v30 = vpop.permute.xlu1 %467 }
  0xac   : > { %v471_v31 = vmul.f32 %v468_v30, %v448_v29 }
  0xae   : > { %475 = vst.msk [vmem:[#allocation2 + $0x20] sm:$0x3f] %vm474_vm6, %v471_v31 }
  0xb1   : > { %v497_v32 = vpop.permute.xlu1 %496 }
  0xb2   : > { %v502_v33 = vrot.slane %v497_v32, 2 }
  0xb4   : > { %508 = vst.msk [vmem:[#allocation2 + $0x60] sm:$0xc0] %vm487_vm4, %v502_v33 }
  0xb5   : > { %v501_v35 = vpop.permute.xlu1 %500  ;;  %v513_v38 = vld [vmem:[#allocation2 + $0x20] sm:$0xff] }
  0xb6   : > { %v503_v37 = vrot.slane %v501_v35, 2  ;;  %604 = vrot.lane.b32.xlu0 %v513_v38, %s10917_s16  ;;  %595 = vst.msk [vmem:[#allocation3 + $0x120] sm:$0xff] %vm489_vm2, %v513_v38  ;;  %563 = vrot.lane.b32.xlu1 %v513_v38, %s10916_s20 }
  0xb8   : > { %v504_v39 = vsel %vm15617_vm5, %v502_v33, %v503_v37  ;;  %511 = vst.msk [vmem:[#allocation2 + $0xa0] sm:$0x3] %vm510_vm10, %v503_v37  ;;  %vm870_vm10 = vcmp.eq.s32.totalorder %v11234_v7, %v11225_v4  ;;  %vm876_vm5 = vcmp.eq.s32.totalorder %v11321_v22, %v11225_v4 }
  0xb9   : > { %509 = vst.msk [vmem:[#allocation2 + $0x80] sm:$0xff] %vm489_vm2, %v504_v39  ;;  %v566_v41 = vpop.permute.xlu1 %565 }
  0xba   : > { %588 = vst.msk [vmem:[#allocation3 + $0x40] sm:$0xff] %vm585_vm11, %v566_v41 }
  0xbb   : > { %v515_v42 = vld [vmem:[#allocation2 + $0x60] sm:$0xff] }
  0xbc   : > { %597 = vst.msk [vmem:[#allocation3 + $0x160] sm:$0xff] %vm489_vm2, %v515_v42  ;;  %3897 = vst [vmem:[#allocation2 + $0x60] sm:$0xff] %v3873_v40  ;;  %608 = vrot.lane.b32.xlu0 %v515_v42, %s10917_s16  ;;  %567 = vrot.lane.b32.xlu1 %v515_v42, %s10916_s20 }
  0xbe   : > { %v454_v43 = vpop.xlane.xlu0 %453 }
  0xbf   : > { %v456_v44 = vmul.f32 0.008, %v454_v43  ;;  %v517_v45 = vld [vmem:[#allocation2 + $0xa0] sm:$0xff] }
  0xc0   : > { %599 = vst.msk [vmem:[#allocation3 + $0x1a0] sm:$0xff] %vm489_vm2, %v517_v45  ;;  %3817 = vst [vmem:[#allocation2 + $0xa0] sm:$0xff] %v10915_v1  ;;  %612 = vrot.lane.b32.xlu0 %v517_v45, %s10917_s16  ;;  %v516_v46 = vld [vmem:[#allocation2 + $0x80] sm:$0xff] }
  0xc1   : > { %598 = vst.msk [vmem:[#allocation3 + $0x180] sm:$0xff] %vm489_vm2, %v516_v46  ;;  %3813 = vst [vmem:[#allocation2 + $0x80] sm:$0xff] %v10915_v1  ;;  %569 = vrot.lane.b32.xlu1 %v516_v46, %s10916_s20  ;;  %v11167_v47 = vld [vmem:[#allocation3 + $0x40] sm:$0xff]  ;;  %v457_v48 = vsub.f32 %v11065_v3, %v456_v44 }
  0xc2   : > { %3901 = vst [vmem:[#allocation2 + $0x80] sm:$0x7] %v3872_v36  ;;  %1208 = vst.msk [vmem:[#allocation3 + $0x40] sm:$0xff] %vm15624_vm9, %v10915_v1 }
  0xc4   : > { %616 = vrot.lane.b32.xlu0 %v10915_v1, %s10917_s16 }
  0xc6   : > { %v461_v49 = vpop.permute.xlu0 %460 }
  0xc7   : > { %v463_v50 = vmul.f32 %v461_v49, %v457_v48  ;;  %v470_v51 = vmul.f32 %v461_v49, %v11065_v3  ;;  %v11223_v3 = vadd.s32 8, %v11219_v0 }
  0xc8   : > { %675 = vperm.xlu0 %10851, %v537_v52   ;;  %v654_v52 = vld [vmem:[#allocation3 + $0x140] sm:$0xff] }
  0xc9   : > { %464 = vst.msk [vmem:[#allocation2] sm:$0x7] %vm451_vm0, %v463_v50  ;;  %vm15614_vm15 = vcmp.eq.s32.totalorder %v11223_v3, %v11225_v4  ;;  %vm15615_vm0 = vcmp.eq.s32.totalorder %v11228_v5, %v11225_v4  ;;  %v653_v50 = vld [vmem:[#allocation3 + $0x120] sm:$0xff] }
  0xca   : > { %473 = vst.msk [vmem:[#allocation2] sm:$0xf8] %vm472_vm12, %v470_v51  ;;  %vm11253_vm4 = vmpackc.low %vm15614_vm15, %vm15613_vm14  ;;  %vm871_vm12 = vcmp.eq.s32.totalorder %v11237_v10, %v11225_v4  ;;  %vm875_vm14 = vcmp.eq.s32.totalorder %v11298_v20, %v11225_v4  ;;  %vm626_vm15 = vcmask 1014784  }
  0xcb   : > { %9931 = vmatprep.subr.msk.bf16.mxu1 %vm11253_vm4, %v10919_v14  ;;  %vm11266_vm6 = vmpackc.low %vm15616_vm1, %vm15615_vm0  ;;  %vm635_vm0 = vcmask 1023968  }
  0xcc   : > { %685 = vperm.xlu0 %10851, %v539_v53   ;;  %9933 = vmatpush3.bf16.msk.msra.mxu1 %vm11253_vm4, %v10919_v14  ;;  %vm11286_vm3 = vmpackc.low %vm871_vm12, %vm870_vm10  ;;  %vm874_vm12 = vcmp.eq.s32.totalorder %v11295_v19, %v11225_v4  ;;  %v655_v53 = vld [vmem:[#allocation3 + $0x160] sm:$0xff] }
  0xcd   : > { %9935 = vmatprep.subr.msk.bf16.mxu1 %vm11266_vm6, %v10919_v14  ;;  %vm11312_vm10 = vmpackc.low %vm15623_vm7, %vm15618_vm8  ;;  %vm877_vm8 = vcmp.eq.s32.totalorder %v11324_v23, %v11225_v4 }
  0xce   : > { %vm9946_vm1 = vmpackc.low %vm875_vm14, %vm874_vm12 }
  0xcf   : > { %vm9950_vm14 = vmpackc.low %vm877_vm8, %vm876_vm5 }
  0xd0   : > { %695 = vperm.xlu0 %10851, %v541_v55   ;;  %9937 = vmatpush3.bf16.msk.msra.mxu1 %vm11266_vm6, %v10919_v14 }
  0xd1   : > { %v512_v56 = vld [vmem:[#allocation2] sm:$0xff]  ;;  %9939 = vmatprep.subr.msk.bf16.mxu1 %vm11286_vm3, %v10919_v14 }
  0xd2   : > { %561 = vrot.lane.b32.xlu1 %v512_v56, %s10916_s20  ;;  %594 = vst.msk [vmem:[#allocation3 + $0x100] sm:$0xff] %vm489_vm2, %v512_v56 }
  0xd4   : > { %705 = vperm.xlu0 %10851, %v543_v57   ;;  %9941 = vmatpush3.bf16.msk.msra.mxu1 %vm11286_vm3, %v10919_v14  ;;  %v656_v57 = vld [vmem:[#allocation3 + $0x180] sm:$0xff] }
  0xd5   : > { %9943 = vmatprep.subr.msk.bf16.mxu1 %vm11312_vm10, %v10919_v14 }
  0xd6   : > { %571 = vrot.lane.b32.xlu1 %v517_v45, %s10916_s20 }
  0xd8   : > { %9945 = vmatpush3.bf16.msk.msra.mxu1 %vm11312_vm10, %v10919_v14 }
  0xd9   : > { %9947 = vmatprep.subr.msk.bf16.mxu1 %vm9946_vm1, %v10919_v14  ;;  %v652_v48 = vld [vmem:[#allocation3 + $0x100] sm:$0xff] }
  0xda   : > { %573 = vrot.lane.b32.xlu1 %v10915_v1, %s10916_s20  ;;  %v9907_v51 = vpack.c.bf16 %v653_v50, %v652_v48  ;;  %v534_v48 = vld [vmem:[%s15603_s6 + $0x70] sm:$0xff]  ;;  %v860_v50 = vadd.s32 104, %v11219_v0 }
  0xdc   : > { %9949 = vmatpush3.bf16.msk.msra.mxu1 %vm9946_vm1, %v10919_v14  ;;  %vm879_vm8 = vcmp.eq.s32.totalorder %v860_v50, %v11225_v4  ;;  %vm955_vm1 = vcmask 1044480  }
  0xdd   : > { %9951 = vmatprep.subr.msk.bf16.mxu1 %vm9950_vm14, %v10919_v14 }
  0xde   : > { %575 = vrot.lane.b32.xlu1 %v10915_v1, %s10916_s20 }
  0xe0   : > { %9953 = vmatpush3.bf16.msk.msra.mxu1 %vm9950_vm14, %v10919_v14 }
  0xe2   : > { %602 = vrot.lane.b32.xlu1 %v512_v56, %s10917_s16  ;;  %v9910_v56 = vpack.c.bf16 %v655_v53, %v654_v52  ;;  %v861_v52 = vadd.s32 112, %v11219_v0 }
  0xe6   : > { %606 = vrot.lane.b32.xlu1 %v11109_v24, %s10917_s16 }
  0xea   : > { %610 = vrot.lane.b32.xlu1 %v516_v46, %s10917_s16 }
  0xee   : > { %614 = vrot.lane.b32.xlu1 %v10915_v1, %s10917_s16 }
  0xf2   : > { %670 = vperm.xlu1 %10852, %v536_v58   ;;  %v657_v58 = vld [vmem:[#allocation3 + $0x1a0] sm:$0xff] }
  0xf6   : > { %680 = vperm.xlu1 %10852, %v538_v59   ;;  %v658_v59 = vld [vmem:[#allocation3 + $0x1c0] sm:$0xff] }
  0xfa   : > { %690 = vperm.xlu1 %10852, %v540_v60   ;;  %v659_v60 = vld [vmem:[#allocation3 + $0x1e0] sm:$0xff] }
  0xfb   : > { %v9916_v62 = vpack.c.bf16 %v659_v60, %v658_v59 }
  0xfe   : > { %700 = vperm.xlu1 %10852, %v542_v61   ;;  %v9913_v61 = vpack.c.bf16 %v657_v58, %v656_v57  ;;  %v11470_v57 = vadd.s32 1, %v11225_v4 }
 0x100   : > { %vm15619_vm12 = vcmp.eq.s32.totalorder %v11219_v0, %v11470_v57  ;;  %vm15620_vm14 = vcmp.eq.s32.totalorder %v11223_v3, %v11470_v57  ;;  %vm15626_vm7 = vcmp.eq.s32.totalorder %v11278_v17, %v11470_v57 }
 0x128   : > { %v605_v24 = vpop.permute.xlu0 %604  ;;  %v564_v25 = vpop.permute.xlu1 %563 }
 0x129   : > { %628 = vst.msk [vmem:[#allocation3 + $0x220] sm:$0xff] %vm626_vm15, %v605_v24 }
 0x12a   : > { %587 = vst.msk [vmem:[#allocation3 + $0x20] sm:$0xff] %vm585_vm11, %v564_v25 }
 0x12b   : > { %637 = vst.msk [vmem:[#allocation3 + $0x220] sm:$0xff] %vm635_vm0, %v10915_v1 }
 0x12e   : > { %v609_v26 = vpop.permute.xlu0 %608  ;;  %v568_v27 = vpop.permute.xlu1 %567 }
 0x12f   : > { %630 = vst.msk [vmem:[#allocation3 + $0x260] sm:$0xff] %vm626_vm15, %v609_v26 }
 0x130   : > { %589 = vst.msk [vmem:[#allocation3 + $0x60] sm:$0xff] %vm585_vm11, %v568_v27 }
 0x131   : > { %639 = vst.msk [vmem:[#allocation3 + $0x260] sm:$0xff] %vm635_vm0, %v10915_v1  ;;  %v645_v29 = vld [vmem:[#allocation3 + $0x20] sm:$0xff] }
 0x132   : > { %v613_v28 = vpop.permute.xlu0 %612  ;;  %1207 = vst.msk [vmem:[#allocation3 + $0x20] sm:$0xff] %vm15624_vm9, %v10915_v1  ;;  %v661_v21 = vld [vmem:[#allocation3 + $0x220] sm:$0xff] }
 0x133   : > { %632 = vst.msk [vmem:[#allocation3 + $0x2a0] sm:$0xff] %vm626_vm15, %v613_v28  ;;  %v570_v30 = vpop.permute.xlu1 %569 }
 0x134   : > { %641 = vst.msk [vmem:[#allocation3 + $0x2a0] sm:$0xff] %vm635_vm0, %v10915_v1 }
 0x135   : > { %590 = vst.msk [vmem:[#allocation3 + $0x80] sm:$0xff] %vm585_vm11, %v570_v30 }
 0x136   : > { %v617_v31 = vpop.permute.xlu0 %616 }
 0x137   : > { %v647_v32 = vld [vmem:[#allocation3 + $0x60] sm:$0xff]  ;;  %634 = vst.msk [vmem:[#allocation3 + $0x2e0] sm:$0xff] %vm626_vm15, %v617_v31 }
 0x138   : > { %1209 = vst.msk [vmem:[#allocation3 + $0x60] sm:$0xff] %vm15624_vm9, %v10915_v1  ;;  %v9898_v41 = vpack.c.bf16 %v647_v32, %v11167_v47  ;;  %v663_v26 = vld [vmem:[#allocation3 + $0x260] sm:$0xff] }
 0x139   : > { %643 = vst.msk [vmem:[#allocation3 + $0x2e0] sm:$0xff] %vm635_vm0, %v10915_v1 }
 0x13c   : > { %v648_v33 = vld [vmem:[#allocation3 + $0x80] sm:$0xff] }
 0x13d   : > { %1210 = vst.msk [vmem:[#allocation3 + $0x80] sm:$0xff] %vm15624_vm9, %v10915_v1 }
 0x140   : > { %v667_v32 = vld [vmem:[#allocation3 + $0x2e0] sm:$0xff] }
 0x144   : > { %v562_v34 = vpop.permute.xlu1 %561 }
 0x145   : > { %586 = vst.msk [vmem:[#allocation3] sm:$0xff] %vm585_vm11, %v562_v34  ;;  %v520_v34 = vld [vmem:[%s15603_s6] sm:$0xff] }
 0x148   : > { %v572_v35 = vpop.permute.xlu1 %571 }
 0x149   : > { %591 = vst.msk [vmem:[#allocation3 + $0xa0] sm:$0xff] %vm585_vm11, %v572_v35  ;;  %v523_v35 = vld [vmem:[%s15603_s6 + $0x18] sm:$0xff] }
 0x14c   : > { %v574_v36 = vpop.permute.xlu1 %573  ;;  %v644_v37 = vld [vmem:[#allocation3] sm:$0xff] }
 0x14d   : > { %592 = vst.msk [vmem:[#allocation3 + $0xc0] sm:$0xff] %vm585_vm11, %v574_v36  ;;  %v9895_v38 = vpack.c.bf16 %v645_v29, %v644_v37  ;;  %v665_v29 = vld [vmem:[#allocation3 + $0x2a0] sm:$0xff]  ;;  %v522_v36 = vld [vmem:[%s15603_s6 + $0x10] sm:$0xff]  ;;  %v525_v37 = vld [vmem:[%s15603_s6 + $0x28] sm:$0xff] }
 0x14e   : > { %1206 = vst.msk [vmem:[#allocation3] sm:$0xff] %vm15624_vm9, %v10915_v1 }
 0x14f   : > { %9896 = vmatpush1.bf16.msra.mxu0 %v9895_v38  ;;  %v524_v38 = vld [vmem:[%s15603_s6 + $0x20] sm:$0xff] }
 0x150   : > { %v576_v39 = vpop.permute.xlu1 %575  ;;  %9897 = vmatprep.subr.bf16.mxu0 %v10918_v54  ;;  %v649_v40 = vld [vmem:[#allocation3 + $0xa0] sm:$0xff] }
 0x151   : > { %593 = vst.msk [vmem:[#allocation3 + $0xe0] sm:$0xff] %vm585_vm11, %v576_v39  ;;  %v9901_v44 = vpack.c.bf16 %v649_v40, %v648_v33  ;;  %v527_v39 = vld [vmem:[%s15603_s6 + $0x38] sm:$0xff]  ;;  %v526_v40 = vld [vmem:[%s15603_s6 + $0x30] sm:$0xff] }
 0x152   : > { %1211 = vst.msk [vmem:[#allocation3 + $0xa0] sm:$0xff] %vm15624_vm9, %v10915_v1 }
 0x153   : > { %9899 = vmatpush1.bf16.msra.mxu0 %v9898_v41  ;;  %v529_v41 = vld [vmem:[%s15603_s6 + $0x48] sm:$0xff] }
 0x154   : > { %v603_v42 = vpop.permute.xlu1 %602  ;;  %9900 = vmatprep.subr.bf16.mxu0 %v10918_v54  ;;  %v650_v43 = vld [vmem:[#allocation3 + $0xc0] sm:$0xff] }
 0x155   : > { %627 = vst.msk [vmem:[#allocation3 + $0x200] sm:$0xff] %vm626_vm15, %v603_v42  ;;  %v528_v42 = vld [vmem:[%s15603_s6 + $0x40] sm:$0xff] }
 0x156   : > { %1212 = vst.msk [vmem:[#allocation3 + $0xc0] sm:$0xff] %vm15624_vm9, %v10915_v1 }
 0x157   : > { %636 = vst.msk [vmem:[#allocation3 + $0x200] sm:$0xff] %vm635_vm0, %v10915_v1  ;;  %9902 = vmatpush1.bf16.msra.mxu0 %v9901_v44  ;;  %v530_v44 = vld [vmem:[%s15603_s6 + $0x50] sm:$0xff] }
 0x158   : > { %v607_v45 = vpop.permute.xlu1 %606  ;;  %9903 = vmatprep.subr.bf16.mxu0 %v10918_v54  ;;  %v651_v46 = vld [vmem:[#allocation3 + $0xe0] sm:$0xff] }
 0x159   : > { %629 = vst.msk [vmem:[#allocation3 + $0x240] sm:$0xff] %vm626_vm15, %v607_v45  ;;  %v9904_v47 = vpack.c.bf16 %v651_v46, %v650_v43  ;;  %v531_v43 = vld [vmem:[%s15603_s6 + $0x58] sm:$0xff]  ;;  %v533_v45 = vld [vmem:[%s15603_s6 + $0x68] sm:$0xff]  ;;  %v532_v46 = vld [vmem:[%s15603_s6 + $0x60] sm:$0xff] }
 0x15a   : > { %1213 = vst.msk [vmem:[#allocation3 + $0xe0] sm:$0xff] %vm15624_vm9, %v10915_v1  ;;  %vm908_vm9 = vcmp.eq.s32.totalorder %v11298_v20, %v11470_v57 }
 0x15b   : > { %638 = vst.msk [vmem:[#allocation3 + $0x240] sm:$0xff] %vm635_vm0, %v10915_v1  ;;  %9905 = vmatpush1.bf16.msra.mxu0 %v9904_v47  ;;  %v535_v47 = vld [vmem:[%s15603_s6 + $0x78] sm:$0xff] }
 0x15c   : > { %v611_v49 = vpop.permute.xlu1 %610  ;;  %9906 = vmatprep.subr.bf16.mxu0 %v10918_v54 }
 0x15d   : > { %631 = vst.msk [vmem:[#allocation3 + $0x280] sm:$0xff] %vm626_vm15, %v611_v49  ;;  %v859_v49 = vadd.s32 96, %v11219_v0 }
 0x15e   : > { %640 = vst.msk [vmem:[#allocation3 + $0x280] sm:$0xff] %vm635_vm0, %v10915_v1  ;;  %v660_v2 = vld [vmem:[#allocation3 + $0x200] sm:$0xff] }
 0x15f   : > { %9908 = vmatpush1.bf16.msra.mxu0 %v9907_v51  ;;  %v9919_v24 = vpack.c.bf16 %v661_v21, %v660_v2  ;;  %vm878_vm5 = vcmp.eq.s32.totalorder %v859_v49, %v11225_v4  ;;  %v11458_v51 = vadd.s32 120, %v11219_v0 }
 0x160   : > { %9909 = vmatprep.subr.bf16.mxu0 %v10918_v54  ;;  %v615_v55 = vpop.permute.xlu1 %614  ;;  %vm9954_vm11 = vmpackc.low %vm879_vm8, %vm878_vm5  ;;  %vm911_vm8 = vcmp.eq.s32.totalorder %v859_v49, %v11470_v57 }
 0x161   : > { %633 = vst.msk [vmem:[#allocation3 + $0x2c0] sm:$0xff] %vm626_vm15, %v615_v55  ;;  %9955 = vmatprep.subr.msk.bf16.mxu1 %vm9954_vm11, %v10919_v14  ;;  %vm881_vm15 = vcmp.eq.s32.totalorder %v11458_v51, %v11225_v4  ;;  %v10920_v55 = vmov 1.0   ;;  %vm11482_vm5 = vmpackc.low %vm15620_vm14, %vm15619_vm12  ;;  %vm904_vm14 = vcmp.eq.s32.totalorder %v11237_v10, %v11470_v57 }
 0x162   : > { %642 = vst.msk [vmem:[#allocation3 + $0x2c0] sm:$0xff] %vm635_vm0, %v10915_v1  ;;  %v662_v25 = vld [vmem:[#allocation3 + $0x240] sm:$0xff]  ;;  %9957 = vmatpush3.bf16.msk.msra.mxu1 %vm9954_vm11, %v10919_v14  ;;  %v897_v53 = vsel %vm881_vm15, 1.0, %v10915_v1  ;;  %vm880_vm0 = vcmp.eq.s32.totalorder %v861_v52, %v11225_v4  ;;  %vm912_vm11 = vcmp.eq.s32.totalorder %v860_v50, %v11470_v57 }
 0x163   : > { %9911 = vmatpush1.bf16.msra.mxu0 %v9910_v56  ;;  %v9922_v27 = vpack.c.bf16 %v663_v26, %v662_v25  ;;  %v9958_v56 = vpack.c.bf16 %v897_v53, %v10920_v55  ;;  %vm9959_vm10 = vmpackc.low %vm955_vm1, %vm880_vm0  ;;  %vm914_vm0 = vcmp.eq.s32.totalorder %v11458_v51, %v11470_v57  ;;  %v676_v25 = vpop.permute.xlu0 %675 }
 0x164   : > { %9912 = vmatprep.subr.bf16.mxu0 %v10918_v54  ;;  %vm11491_vm15 = vmpackc.low %vm912_vm11, %vm911_vm8  ;;  %vm15622_vm8 = vcmp.eq.s32.totalorder %v11231_v6, %v11470_v57 }
 0x165   : > { %v664_v28 = vld [vmem:[#allocation3 + $0x280] sm:$0xff]  ;;  %9960 = vmatprep.subr.msk.bf16.mxu1 %vm9959_vm10, %v9958_v56 }
 0x166   : > { %v9925_v30 = vpack.c.bf16 %v665_v29, %v664_v28  ;;  %9963 = vmatpush3.bf16.msk.msra.mxu1 %vm9959_vm10, %v9958_v56  ;;  %vm913_vm10 = vcmp.eq.s32.totalorder %v861_v52, %v11470_v57 }
 0x167   : > { %9914 = vmatpush1.bf16.msra.mxu0 %v9913_v61  ;;  %9965 = vmatprep.subr.msk.bf16.mxu1 %vm11482_vm5, %v10919_v14  ;;  %vm11499_vm12 = vmpackc.low %vm955_vm1, %vm913_vm10  ;;  %vm15621_vm1 = vcmp.eq.s32.totalorder %v11228_v5, %v11470_v57  ;;  %vm903_vm10 = vcmp.eq.s32.totalorder %v11234_v7, %v11470_v57 }
 0x168   : > { %9915 = vmatprep.subr.bf16.mxu0 %v10918_v54  ;;  %vm11522_vm11 = vmpackc.low %vm15622_vm8, %vm15621_vm1  ;;  %vm15625_vm8 = vcmp.eq.s32.totalorder %v11275_v16, %v11470_v57 }
 0x169   : > { %v666_v31 = vld [vmem:[#allocation3 + $0x2c0] sm:$0xff]  ;;  %vm11542_vm1 = vmpackc.low %vm904_vm14, %vm903_vm10  ;;  %vm907_vm10 = vcmp.eq.s32.totalorder %v11295_v19, %v11470_v57 }
 0x16a   : > { %v9928_v33 = vpack.c.bf16 %v667_v32, %v666_v31  ;;  %vm11563_vm14 = vmpackc.low %vm15626_vm7, %vm15625_vm8  ;;  %vm909_vm7 = vcmp.eq.s32.totalorder %v11321_v22, %v11470_v57 }
 0x16b   : > { %9917 = vmatpush1.bf16.msra.mxu0 %v9916_v62  ;;  %vm9980_vm8 = vmpackc.low %vm908_vm9, %vm907_vm10 }
 0x16c   : > { %9918 = vmatprep.subr.bf16.mxu0 %v10918_v54 }
 0x16f   : > { %9920 = vmatpush1.bf16.msra.mxu0 %v9919_v24 }
 0x170   : > { %9921 = vmatprep.subr.bf16.mxu0 %v10918_v54 }
 0x171   : > { %v671_v61 = vpop.permute.xlu1 %670 }
 0x173   : > { %9923 = vmatpush1.bf16.msra.mxu0 %v9922_v27 }
 0x174   : > { %9924 = vmatprep.subr.bf16.mxu0 %v10918_v54 }
 0x177   : > { %9926 = vmatpush1.bf16.msra.mxu0 %v9925_v30  ;;  %v681_v30 = vpop.permute.xlu1 %680 }
 0x178   : > { %9927 = vmatprep.subr.bf16.mxu0 %v10918_v54 }
 0x17b   : > { %9929 = vmatpush1.bf16.msra.mxu0 %v9928_v33 }
 0x17c   : > { %9998 = vmatprep.subr.bf16.mxu0 %v10918_v54 }
 0x17e   : > { %798 = vmatmul.mubr.f32.vlgmr.msra.gmra.mrb[0].mxu0 %v520_v34 }
 0x17f   : > { %9052 = vmatprep.mubr.msk.f32.mxu0 %vm15627_vm13, %v523_v35 }
 0x182   : > { %803 = vmatmul.mubr.f32.gmra.mrb[2].mxu0 %v522_v36  ;;  %v686_v36 = vpop.permute.xlu0 %685 }
 0x183   : > { %9053 = vmatprep.mubr.msk.f32.mxu0 %vm15627_vm13, %v525_v37 }
 0x186   : > { %808 = vmatmul.mubr.f32.gmra.mrb[4].mxu0 %v524_v38 }
 0x187   : > { %9054 = vmatprep.mubr.msk.f32.mxu0 %vm15627_vm13, %v527_v39 }
 0x18a   : > { %813 = vmatmul.mubr.f32.gmra.mrb[6].mxu0 %v526_v40  ;;  %v691_v40 = vpop.permute.xlu1 %690 }
 0x18b   : > { %9055 = vmatprep.mubr.msk.f32.mxu0 %vm15627_vm13, %v529_v41 }
 0x18e   : > { %818 = vmatmul.mubr.f32.gmra.mrb[8].mxu0 %v528_v42  ;;  %v701_v20 = vpop.permute.xlu1 %700 }
 0x18f   : > { %9056 = vmatprep.mubr.msk.f32.mxu0 %vm15627_vm13, %v531_v43 }
 0x192   : > { %823 = vmatmul.mubr.f32.gmra.mrb[10].mxu0 %v530_v44 }
 0x193   : > { %9057 = vmatprep.mubr.msk.f32.mxu0 %vm15627_vm13, %v533_v45 }
 0x196   : > { %828 = vmatmul.mubr.f32.gmra.mrb[12].mxu0 %v532_v46  ;;  %v696_v46 = vpop.permute.xlu0 %695 }
 0x197   : > { %9058 = vmatprep.mubr.msk.f32.mxu0 %vm15627_vm13, %v535_v47  ;;  %vm910_vm13 = vcmp.eq.s32.totalorder %v11324_v23, %v11470_v57 }
 0x198   : > { %vm9984_vm9 = vmpackc.low %vm910_vm13, %vm909_vm7  ;;  %vm1255_vm7 = vcmask 506880   ;;  %vm15655_vm13 = vcmask 7168  }
 0x19a   : > { %833 = vmatmul.mubr.f32.gmra.mrb[14].mxu0 %v534_v48  ;;  %v706_v23 = vpop.permute.xlu0 %705 }
 0x251   : > { %v799_v62 = vpop.f32.mrb[0].mxu0 }
 0x252   : > { %v11503_v2 = vadd.f32 %v799_v62, %v671_v61  ;;  %v801_v21 = vpop.f32.mrb[1].mxu0  ;;  %v930_v61 = vsel %vm914_vm0, 1.0, %v10915_v1  ;;  %vm1288_vm0 = vcmask 498688  }
 0x254   : > { %v838_v24 = vmax.f32 %v11503_v2, 0.0 }
 0x255   : > { %v804_v26 = vpop.f32.mrb[2].mxu0 }
 0x256   : > { %v11506_v27 = vadd.f32 %v804_v26, %v676_v25  ;;  %v806_v28 = vpop.f32.mrb[3].mxu0  ;;  %9682 = vmatprep.mubr.msk.f32.mxu1 %vm489_vm2, %v838_v24  ;;  %v9992_v26 = vpack.c.bf16 %v930_v61, %v10920_v55 }
 0x258   : > { %v839_v29 = vmax.f32 %v11506_v27, 0.0 }
 0x259   : > { %v809_v31 = vpop.f32.mrb[4].mxu0 }
 0x25a   : > { %v11526_v33 = vadd.f32 %v809_v31, %v681_v30  ;;  %9683 = vmatmul.mubr.msk.f32.vlgmr.msra.gmra.mrb[0].mxu1 %vm489_vm2, %v839_v29  ;;  %v811_v34 = vpop.f32.mrb[5].mxu0 }
 0x25b   : > { %9967 = vmatpush3.bf16.msk.msra.mxu1 %vm11482_vm5, %v10919_v14 }
 0x25c   : > { %v840_v35 = vmax.f32 %v11526_v33, 0.0  ;;  %9969 = vmatprep.subr.msk.bf16.mxu1 %vm11522_vm11, %v10919_v14 }
 0x25d   : > { %v814_v37 = vpop.f32.mrb[6].mxu0 }
 0x25e   : > { %v815_v7 = vadd.f32 %v814_v37, %v686_v36  ;;  %9685 = vmatprep.mubr.msk.f32.mxu1 %vm489_vm2, %v840_v35  ;;  %v816_v10 = vpop.f32.mrb[7].mxu0 }
 0x25f   : > { %9971 = vmatpush3.bf16.msk.msra.mxu1 %vm11522_vm11, %v10919_v14 }
 0x260   : > { %v841_v39 = vmax.f32 %v815_v7, 0.0  ;;  %9973 = vmatprep.subr.msk.bf16.mxu1 %vm11542_vm1, %v10919_v14 }
 0x261   : > { %v819_v41 = vpop.f32.mrb[8].mxu0 }
 0x262   : > { %v820_v43 = vadd.f32 %v819_v41, %v691_v40  ;;  %9686 = vmatmul.mubr.msk.f32.gmra.mrb[2].mxu1 %vm489_vm2, %v841_v39  ;;  %v821_v44 = vpop.f32.mrb[9].mxu0 }
 0x263   : > { %9975 = vmatpush3.bf16.msk.msra.mxu1 %vm11542_vm1, %v10919_v14  ;;  %v9123_v44 = vld [vmem:[%s15604_s7 + $0x40] sm:$0xff] }
 0x264   : > { %v842_v45 = vmax.f32 %v820_v43, 0.0  ;;  %9977 = vmatprep.subr.msk.bf16.mxu1 %vm11563_vm14, %v10919_v14  ;;  %v9124_v43 = vld [vmem:[%s15604_s7 + $0x48] sm:$0xff] }
 0x265   : > { %v824_v47 = vpop.f32.mrb[10].mxu0 }
 0x266   : > { %v825_v48 = vadd.f32 %v824_v47, %v696_v46  ;;  %9688 = vmatprep.mubr.msk.f32.mxu1 %vm489_vm2, %v842_v45  ;;  %v826_v49 = vpop.f32.mrb[11].mxu0  ;;  %v9125_v46 = vld [vmem:[%s15604_s7 + $0x50] sm:$0xff]  ;;  %v9128_v47 = vld [vmem:[%s15604_s7 + $0x68] sm:$0xff] }
 0x267   : > { %9979 = vmatpush3.bf16.msk.msra.mxu1 %vm11563_vm14, %v10919_v14  ;;  %v9130_v49 = vld [vmem:[%s15604_s7 + $0x78] sm:$0xff] }
 0x268   : > { %v843_v19 = vmax.f32 %v825_v48, 0.0  ;;  %9981 = vmatprep.subr.msk.bf16.mxu1 %vm9980_vm8, %v10919_v14  ;;  %v9127_v48 = vld [vmem:[%s15604_s7 + $0x60] sm:$0xff] }
 0x269   : > { %v829_v50 = vpop.f32.mrb[12].mxu0 }
 0x26a   : > { %v830_v52 = vadd.f32 %v829_v50, %v701_v20  ;;  %9689 = vmatmul.mubr.msk.f32.gmra.mrb[4].mxu1 %vm489_vm2, %v843_v19  ;;  %v831_v53 = vpop.f32.mrb[13].mxu0  ;;  %v9108_v20 = vld [vmem:[%s15603_s6 + $0x88] sm:$0xff] }
 0x26b   : > { %9983 = vmatpush3.bf16.msk.msra.mxu1 %vm9980_vm8, %v10919_v14  ;;  %vm1297_vm8 = vcmask 507368  }
 0x26c   : > { %v844_v22 = vmax.f32 %v830_v52, 0.0  ;;  %9985 = vmatprep.subr.msk.bf16.mxu1 %vm9984_vm9, %v10919_v14 }
 0x26d   : > { %v834_v56 = vpop.f32.mrb[14].mxu0 }
 0x26e   : > { %v835_v62 = vadd.f32 %v834_v56, %v706_v23  ;;  %9691 = vmatprep.mubr.msk.f32.mxu1 %vm489_vm2, %v844_v22  ;;  %v836_v21 = vpop.f32.mrb[15].mxu0 }
 0x26f   : > { %9987 = vmatpush3.bf16.msk.msra.mxu1 %vm9984_vm9, %v10919_v14  ;;  %v11695_v21 = vld [vmem:[#allocation2 + $0x18] sm:$0xff] }
 0x270   : > { %v845_v25 = vmax.f32 %v835_v62, 0.0  ;;  %9989 = vmatprep.subr.msk.bf16.mxu1 %vm11491_vm15, %v10919_v14 }
 0x272   : > { %9692 = vmatmul.mubr.msk.f32.gmra.mrb[6].mxu1 %vm489_vm2, %v845_v25 }
 0x273   : > { %9991 = vmatpush3.bf16.msk.msra.mxu1 %vm11491_vm15, %v10919_v14  ;;  %9726 = vmatprep.mubr.msk.f32.mxu1 %vm489_vm2, %v838_v24 }
 0x274   : > { %9994 = vmatprep.subr.msk.bf16.mxu1 %vm11499_vm12, %v9992_v26 }
 0x277   : > { %9997 = vmatpush3.bf16.msk.msra.mxu1 %vm11499_vm12, %v9992_v26 }
 0x278   : > { %10035 = vmatprep.subr.msk.bf16.mxu1 %vm11253_vm4, %v10919_v14 }
 0x27a   : > { %9727 = vmatmul.mubr.msk.f32.vlgmr.msra.gmra.mrb[8].mxu1 %vm489_vm2, %v839_v29 }
 0x27b   : > { %9729 = vmatprep.mubr.msk.f32.mxu1 %vm489_vm2, %v840_v35  ;;  %10037 = vmatpush3.bf16.msk.msra.mxu1 %vm11253_vm4, %v10919_v14 }
 0x27c   : > { %10039 = vmatprep.subr.msk.bf16.mxu1 %vm11266_vm6, %v10919_v14 }
 0x27e   : > { %9730 = vmatmul.mubr.msk.f32.gmra.mrb[10].mxu1 %vm489_vm2, %v841_v39 }
 0x27f   : > { %9732 = vmatprep.mubr.msk.f32.mxu1 %vm489_vm2, %v842_v45  ;;  %10041 = vmatpush3.bf16.msk.msra.mxu1 %vm11266_vm6, %v10919_v14  ;;  %v9126_v45 = vld [vmem:[%s15604_s7 + $0x58] sm:$0xff]  ;;  %vm15656_vm6 = vmmov %vm15655_vm13 }
 0x280   : > { %10043 = vmatprep.subr.msk.bf16.mxu1 %vm11286_vm3, %v10919_v14  ;;  %vm15657_vm12 = vmmov %vm15656_vm6 }
 0x281   : > { %vm15658_vm15 = vmmov %vm15656_vm6 }
 0x282   : > { %9733 = vmatmul.mubr.msk.f32.gmra.mrb[12].mxu1 %vm489_vm2, %v843_v19  ;;  %v9129_v19 = vld [vmem:[%s15604_s7 + $0x70] sm:$0xff]  ;;  %vm15659_vm14 = vmmov %vm15656_vm6 }
 0x283   : > { %9735 = vmatprep.mubr.msk.f32.mxu1 %vm489_vm2, %v844_v22  ;;  %10045 = vmatpush3.bf16.msk.msra.mxu1 %vm11286_vm3, %v10919_v14  ;;  %vm1246_vm3 = vcmask 506888   ;;  %vm15660_vm10 = vmmov %vm15656_vm6 }
 0x284   : > { %vm15661_vm9 = vmmov %vm15656_vm6 }
 0x286   : > { %9736 = vmatmul.mubr.msk.f32.gmra.mrb[14].mxu1 %vm489_vm2, %v845_v25  ;;  %vm15654_vm2 = vcmask 523264  }
 0x287   : > { %9131 = vmatprep.mubr.msk.f32.mxu0 %vm15654_vm2, %v9108_v20  ;;  %vm15662_vm2 = vmmov %vm15656_vm6 }
 0x32d   : > { %v9684_v1 = vpop.f32.mrb[0].mxu1 }
 0x32e   : > { %v1025_v51 = vpop.f32.mrb[1].mxu1 }
 0x335   : > { %v9687_v59 = vpop.f32.mrb[2].mxu1 }
 0x336   : > { %v1035_v60 = vpop.f32.mrb[3].mxu1 }
 0x33d   : > { %v9690_v15 = vpop.f32.mrb[4].mxu1 }
 0x33e   : > { %v1045_v2 = vpop.f32.mrb[5].mxu1 }
 0x345   : > { %v9693_v24 = vpop.f32.mrb[6].mxu1 }
 0x346   : > { %v1055_v27 = vpop.f32.mrb[7].mxu1 }
 0x34d   : > { %v9728_v28 = vpop.f32.mrb[8].mxu1 }
 0x34e   : > { %v1173_v29 = vmax.f32 %v9684_v1, %v9728_v28  ;;  %v1133_v30 = vpop.f32.mrb[9].mxu1 }
 0x34f   : > { %v1172_v31 = vmax.f32 %v1025_v51, %v1133_v30 }
 0x350   : > { %1257 = vst.msk [vmem:[#allocation3 + $0x120] sm:$0xff] %vm1255_vm7, %v1173_v29  ;;  %1224 = vrot.lane.b32.xlu0 %v1173_v29, %s10916_s20 }
 0x351   : > { %1256 = vst.msk [vmem:[#allocation3 + $0x100] sm:$0xff] %vm1255_vm7, %v1172_v31  ;;  %1222 = vrot.lane.b32.xlu1 %v1172_v31, %s10916_s20  ;;  %v9731_v18 = vpop.f32.mrb[10].mxu1 }
 0x352   : > { %v1175_v33 = vmax.f32 %v9687_v59, %v9731_v18  ;;  %v1143_v34 = vpop.f32.mrb[11].mxu1 }
 0x353   : > { %v1174_v35 = vmax.f32 %v1035_v60, %v1143_v34 }
 0x354   : > { %1259 = vst.msk [vmem:[#allocation3 + $0x160] sm:$0xff] %vm1255_vm7, %v1175_v33  ;;  %1228 = vrot.lane.b32.xlu0 %v1175_v33, %s10916_s20 }
 0x355   : > { %1258 = vst.msk [vmem:[#allocation3 + $0x140] sm:$0xff] %vm1255_vm7, %v1174_v35  ;;  %1226 = vrot.lane.b32.xlu1 %v1174_v35, %s10916_s20  ;;  %v9734_v36 = vpop.f32.mrb[12].mxu1 }
 0x356   : > { %v1177_v37 = vmax.f32 %v9690_v15, %v9734_v36  ;;  %v1153_v7 = vpop.f32.mrb[13].mxu1 }
 0x357   : > { %v1176_v10 = vmax.f32 %v1045_v2, %v1153_v7 }
 0x358   : > { %1261 = vst.msk [vmem:[#allocation3 + $0x1a0] sm:$0xff] %vm1255_vm7, %v1177_v37  ;;  %1232 = vrot.lane.b32.xlu0 %v1177_v37, %s10916_s20  ;;  %v1314_v34 = vld [vmem:[#allocation3 + $0x100] sm:$0xff] }
 0x359   : > { %1260 = vst.msk [vmem:[#allocation3 + $0x180] sm:$0xff] %vm1255_vm7, %v1176_v10  ;;  %1230 = vrot.lane.b32.xlu1 %v1176_v10, %s10916_s20  ;;  %v9737_v39 = vpop.f32.mrb[14].mxu1 }
 0x35a   : > { %v1179_v40 = vmax.f32 %v9693_v24, %v9737_v39  ;;  %v1163_v41 = vpop.f32.mrb[15].mxu1 }
 0x35b   : > { %v1178_v42 = vmax.f32 %v1055_v27, %v1163_v41  ;;  %v1317_v39 = vld [vmem:[#allocation3 + $0x160] sm:$0xff] }
 0x35c   : > { %1263 = vst.msk [vmem:[#allocation3 + $0x1e0] sm:$0xff] %vm1255_vm7, %v1179_v40  ;;  %1236 = vrot.lane.b32.xlu0 %v1179_v40, %s10916_s20 }
 0x35d   : > { %1262 = vst.msk [vmem:[#allocation3 + $0x1c0] sm:$0xff] %vm1255_vm7, %v1178_v42  ;;  %1234 = vrot.lane.b32.xlu1 %v1178_v42, %s10916_s20 }
 0x360   : > { %1266 = vrot.lane.b32.xlu0 %v1173_v29, %s10917_s16 }
 0x361   : > { %1264 = vrot.lane.b32.xlu1 %v1172_v31, %s10917_s16 }
 0x364   : > { %1270 = vrot.lane.b32.xlu0 %v1175_v33, %s10917_s16 }
 0x365   : > { %1268 = vrot.lane.b32.xlu1 %v1174_v35, %s10917_s16  ;;  %v1315_v35 = vld [vmem:[#allocation3 + $0x120] sm:$0xff] }
 0x366   : > { %v10011_v7 = vpack.c.bf16 %v1315_v35, %v1314_v34 }
 0x368   : > { %1274 = vrot.lane.b32.xlu0 %v1177_v37, %s10917_s16 }
 0x369   : > { %1272 = vrot.lane.b32.xlu1 %v1176_v10, %s10917_s16  ;;  %v1316_v10 = vld [vmem:[#allocation3 + $0x140] sm:$0xff] }
 0x36c   : > { %1278 = vrot.lane.b32.xlu0 %v1179_v40, %s10917_s16 }
 0x36d   : > { %1276 = vrot.lane.b32.xlu1 %v1178_v42, %s10917_s16  ;;  %v10014_v42 = vpack.c.bf16 %v1317_v39, %v1316_v10 }
 0x370   : > { %1337 = vperm.xlu0 %10851, %v9124_v43   ;;  %v1318_v43 = vld [vmem:[#allocation3 + $0x180] sm:$0xff] }
 0x371   : > { %1332 = vperm.xlu1 %10852, %v9123_v44   ;;  %v1319_v44 = vld [vmem:[#allocation3 + $0x1a0] sm:$0xff] }
 0x374   : > { %1347 = vperm.xlu0 %10851, %v9126_v45   ;;  %v10017_v45 = vpack.c.bf16 %v1319_v44, %v1318_v43 }
 0x375   : > { %1342 = vperm.xlu1 %10852, %v9125_v46   ;;  %v1320_v46 = vld [vmem:[#allocation3 + $0x1c0] sm:$0xff] }
 0x378   : > { %1357 = vperm.xlu0 %10851, %v9128_v47   ;;  %v1321_v47 = vld [vmem:[#allocation3 + $0x1e0] sm:$0xff] }
 0x379   : > { %1352 = vperm.xlu1 %10852, %v9127_v48  }
 0x37c   : > { %1367 = vperm.xlu0 %10851, %v9130_v49  }
 0x37d   : > { %1362 = vperm.xlu1 %10852, %v9129_v19   ;;  %v10020_v19 = vpack.c.bf16 %v1321_v47, %v1320_v46 }
 0x3c2   : > { %v1225_v50 = vpop.permute.xlu0 %1224 }
 0x3c3   : > { %1248 = vst.msk [vmem:[#allocation3 + $0x20] sm:$0xff] %vm1246_vm3, %v1225_v50  ;;  %v1223_v52 = vpop.permute.xlu1 %1222 }
 0x3c4   : > { %1247 = vst.msk [vmem:[#allocation3] sm:$0xff] %vm1246_vm3, %v1223_v52 }
 0x3c6   : > { %v1229_v53 = vpop.permute.xlu0 %1228 }
 0x3c7   : > { %1250 = vst.msk [vmem:[#allocation3 + $0x60] sm:$0xff] %vm1246_vm3, %v1229_v53  ;;  %v1227_v22 = vpop.permute.xlu1 %1226 }
 0x3c8   : > { %1249 = vst.msk [vmem:[#allocation3 + $0x40] sm:$0xff] %vm1246_vm3, %v1227_v22 }
 0x3ca   : > { %v1233_v23 = vpop.permute.xlu0 %1232  ;;  %v1307_v56 = vld [vmem:[#allocation3 + $0x20] sm:$0xff] }
 0x3cb   : > { %1252 = vst.msk [vmem:[#allocation3 + $0xa0] sm:$0xff] %vm1246_vm3, %v1233_v23  ;;  %v1231_v61 = vpop.permute.xlu1 %1230  ;;  %v1306_v62 = vld [vmem:[#allocation3] sm:$0xff] }
 0x3cc   : > { %1782 = vst.msk [vmem:[#allocation3 + $0x20] sm:$0xff] %vm15655_vm13, %v11695_v21  ;;  %v9999_v25 = vpack.c.bf16 %v1307_v56, %v1306_v62 }
 0x3cd   : > { %1251 = vst.msk [vmem:[#allocation3 + $0x80] sm:$0xff] %vm1246_vm3, %v1231_v61 }
 0x3ce   : > { %1781 = vst.msk [vmem:[#allocation3] sm:$0xff] %vm15656_vm6, %v11695_v21  ;;  %10000 = vmatpush1.bf16.msra.mxu0 %v9999_v25  ;;  %v1237_v26 = vpop.permute.xlu0 %1236  ;;  %v1309_v1 = vld [vmem:[#allocation3 + $0x60] sm:$0xff] }
 0x3cf   : > { %1254 = vst.msk [vmem:[#allocation3 + $0xe0] sm:$0xff] %vm1246_vm3, %v1237_v26  ;;  %v1235_v51 = vpop.permute.xlu1 %1234  ;;  %10001 = vmatprep.subr.bf16.mxu0 %v10918_v54  ;;  %v1308_v59 = vld [vmem:[#allocation3 + $0x40] sm:$0xff] }
 0x3d0   : > { %1784 = vst.msk [vmem:[#allocation3 + $0x60] sm:$0xff] %vm15657_vm12, %v11695_v21  ;;  %v10002_v60 = vpack.c.bf16 %v1309_v1, %v1308_v59  ;;  %v9107_v26 = vld [vmem:[%s15603_s6 + $0x80] sm:$0xff]  ;;  %v9110_v1 = vld [vmem:[%s15603_s6 + $0x98] sm:$0xff]  ;;  %v9112_v59 = vld [vmem:[%s15603_s6 + $0xa8] sm:$0xff] }
 0x3d1   : > { %1253 = vst.msk [vmem:[#allocation3 + $0xc0] sm:$0xff] %vm1246_vm3, %v1235_v51  ;;  %vm15663_vm3 = vcmask 523264   ;;  %v9109_v51 = vld [vmem:[%s15603_s6 + $0x90] sm:$0xff] }
 0x3d2   : > { %1783 = vst.msk [vmem:[#allocation3 + $0x40] sm:$0xff] %vm15658_vm15, %v11695_v21  ;;  %10003 = vmatpush1.bf16.msra.mxu0 %v10002_v60  ;;  %v1267_v15 = vpop.permute.xlu0 %1266  ;;  %v1311_v2 = vld [vmem:[#allocation3 + $0xa0] sm:$0xff]  ;;  %vm15664_vm13 = vmmov %vm15663_vm3 }
 0x3d3   : > { %1290 = vst.msk [vmem:[#allocation3 + $0x220] sm:$0xff] %vm1288_vm0, %v1267_v15  ;;  %v1265_v24 = vpop.permute.xlu1 %1264  ;;  %10004 = vmatprep.subr.bf16.mxu0 %v10918_v54  ;;  %v9111_v60 = vld [vmem:[%s15603_s6 + $0xa0] sm:$0xff]  ;;  %v9114_v15 = vld [vmem:[%s15603_s6 + $0xb8] sm:$0xff]  ;;  %vm15665_vm6 = vmmov %vm15663_vm3 }
 0x3d4   : > { %v1310_v27 = vld [vmem:[#allocation3 + $0x80] sm:$0xff]  ;;  %1786 = vst.msk [vmem:[#allocation3 + $0xa0] sm:$0xff] %vm15659_vm14, %v11695_v21  ;;  %vm15666_vm12 = vmmov %vm15663_vm3  ;;  %vm15670_vm14 = vcmp.eq.s32.totalorder %v11278_v17, %v11225_v4 }
 0x3d5   : > { %1299 = vst.msk [vmem:[#allocation3 + $0x220] sm:$0xff] %vm1297_vm8, %v11695_v21  ;;  %v10005_v28 = vpack.c.bf16 %v1311_v2, %v1310_v27  ;;  %v9113_v2 = vld [vmem:[%s15603_s6 + $0xb0] sm:$0xff]  ;;  %v9115_v27 = vld [vmem:[%s15603_s6 + $0xc0] sm:$0xff]  ;;  %vm15667_vm15 = vmmov %vm15663_vm3  ;;  %v889_v34 = vsel %vm15670_vm14, 1.0, %v11695_v21  ;;  %vm1863_vm14 = vcmask 244736  }
 0x3d6   : > { %1289 = vst.msk [vmem:[#allocation3 + $0x200] sm:$0xff] %vm1288_vm0, %v1265_v24  ;;  %v1271_v29 = vpop.permute.xlu0 %1270  ;;  %v1313_v30 = vld [vmem:[#allocation3 + $0xe0] sm:$0xff]  ;;  %v9116_v24 = vld [vmem:[%s15603_s6 + $0xc8] sm:$0xff]  ;;  %v10046_v35 = vpack.c.bf16 %v889_v34, %v10920_v55 }
 0x3d7   : > { %1785 = vst.msk [vmem:[#allocation3 + $0x80] sm:$0xff] %vm15660_vm10, %v11695_v21  ;;  %10006 = vmatpush1.bf16.msra.mxu0 %v10005_v28  ;;  %v1269_v31 = vpop.permute.xlu1 %1268  ;;  %v9118_v28 = vld [vmem:[%s15603_s6 + $0xd8] sm:$0xff]  ;;  %vm15671_vm10 = vcmp.eq.s32.totalorder %v11275_v16, %v11225_v4 }
 0x3d8   : > { %1298 = vst.msk [vmem:[#allocation3 + $0x200] sm:$0xff] %vm1297_vm8, %v11695_v21  ;;  %10007 = vmatprep.subr.bf16.mxu0 %v10918_v54  ;;  %v1312_v18 = vld [vmem:[#allocation3 + $0xc0] sm:$0xff] }
 0x3d9   : > { %1292 = vst.msk [vmem:[#allocation3 + $0x260] sm:$0xff] %vm1288_vm0, %v1271_v29  ;;  %1291 = vst.msk [vmem:[#allocation3 + $0x240] sm:$0xff] %vm1288_vm0, %v1269_v31  ;;  %v10008_v33 = vpack.c.bf16 %v1313_v30, %v1312_v18  ;;  %v9117_v29 = vld [vmem:[%s15603_s6 + $0xd0] sm:$0xff]  ;;  %v9120_v30 = vld [vmem:[%s15603_s6 + $0xe8] sm:$0xff] }
 0x3da   : > { %1788 = vst.msk [vmem:[#allocation3 + $0xe0] sm:$0xff] %vm15661_vm9, %v11695_v21  ;;  %v1275_v36 = vpop.permute.xlu0 %1274  ;;  %v9119_v31 = vld [vmem:[%s15603_s6 + $0xe0] sm:$0xff]  ;;  %v9122_v18 = vld [vmem:[%s15603_s6 + $0xf8] sm:$0xff]  ;;  %vm15672_vm9 = vcmask 1045504  }
 0x3db   : > { %1301 = vst.msk [vmem:[#allocation3 + $0x260] sm:$0xff] %vm1297_vm8, %v11695_v21  ;;  %1300 = vst.msk [vmem:[#allocation3 + $0x240] sm:$0xff] %vm1297_vm8, %v11695_v21  ;;  %10009 = vmatpush1.bf16.msra.mxu0 %v10008_v33  ;;  %v1273_v37 = vpop.permute.xlu1 %1272  ;;  %v9121_v33 = vld [vmem:[%s15603_s6 + $0xf0] sm:$0xff] }
 0x3dc   : > { %1787 = vst.msk [vmem:[#allocation3 + $0xc0] sm:$0xff] %vm15662_vm2, %v11695_v21  ;;  %10010 = vmatprep.subr.bf16.mxu0 %v10918_v54  ;;  %v1323_v49 = vld [vmem:[#allocation3 + $0x220] sm:$0xff]  ;;  %vm10047_vm2 = vmpackc.low %vm15672_vm9, %vm15671_vm10  ;;  %vm1872_vm10 = vcmask 253168  }
 0x3dd   : > { %1294 = vst.msk [vmem:[#allocation3 + $0x2a0] sm:$0xff] %vm1288_vm0, %v1275_v36  ;;  %1293 = vst.msk [vmem:[#allocation3 + $0x280] sm:$0xff] %vm1288_vm0, %v1273_v37  ;;  %10048 = vmatprep.subr.msk.bf16.mxu1 %vm10047_vm2, %v10046_v35 }
 0x3de   : > { %1303 = vst.msk [vmem:[#allocation3 + $0x2a0] sm:$0xff] %vm1297_vm8, %v11695_v21  ;;  %1302 = vst.msk [vmem:[#allocation3 + $0x280] sm:$0xff] %vm1297_vm8, %v11695_v21  ;;  %v1279_v40 = vpop.permute.xlu0 %1278  ;;  %10051 = vmatpush3.bf16.msk.msra.mxu1 %vm10047_vm2, %v10046_v35 }
 0x3df   : > { %10012 = vmatpush1.bf16.msra.mxu0 %v10011_v7  ;;  %1296 = vst.msk [vmem:[#allocation3 + $0x2e0] sm:$0xff] %vm1288_vm0, %v1279_v40  ;;  %v1277_v41 = vpop.permute.xlu1 %1276  ;;  %v1322_v48 = vld [vmem:[#allocation3 + $0x200] sm:$0xff]  ;;  %10053 = vmatprep.subr.msk.bf16.mxu1 %vm11482_vm5, %v10919_v14 }
 0x3e0   : > { %10013 = vmatprep.subr.bf16.mxu0 %v10918_v54  ;;  %1305 = vst.msk [vmem:[#allocation3 + $0x2e0] sm:$0xff] %vm1297_vm8, %v11695_v21  ;;  %v10023_v20 = vpack.c.bf16 %v1323_v49, %v1322_v48 }
 0x3e1   : > { %1295 = vst.msk [vmem:[#allocation3 + $0x2c0] sm:$0xff] %vm1288_vm0, %v1277_v41  ;;  %vm15668_vm0 = vmmov %vm15663_vm3 }
 0x3e2   : > { %1304 = vst.msk [vmem:[#allocation3 + $0x2c0] sm:$0xff] %vm1297_vm8, %v11695_v21  ;;  %v1324_v50 = vld [vmem:[#allocation3 + $0x240] sm:$0xff]  ;;  %vm15669_vm8 = vmmov %vm15668_vm0 }
 0x3e3   : > { %10015 = vmatpush1.bf16.msra.mxu0 %v10014_v42  ;;  %v1325_v52 = vld [vmem:[#allocation3 + $0x260] sm:$0xff] }
 0x3e4   : > { %10016 = vmatprep.subr.bf16.mxu0 %v10918_v54  ;;  %v10026_v53 = vpack.c.bf16 %v1325_v52, %v1324_v50 }
 0x3e5   : > { %v1326_v22 = vld [vmem:[#allocation3 + $0x280] sm:$0xff] }
 0x3e6   : > { %v1327_v23 = vld [vmem:[#allocation3 + $0x2a0] sm:$0xff] }
 0x3e7   : > { %10018 = vmatpush1.bf16.msra.mxu0 %v10017_v45  ;;  %v10029_v56 = vpack.c.bf16 %v1327_v23, %v1326_v22  ;;  %v1329_v62 = vld [vmem:[#allocation3 + $0x2e0] sm:$0xff] }
 0x3e8   : > { %10019 = vmatprep.subr.bf16.mxu0 %v10918_v54 }
 0x3e9   : > { %v1328_v61 = vld [vmem:[#allocation3 + $0x2c0] sm:$0xff] }
 0x3ea   : > { %v10032_v25 = vpack.c.bf16 %v1329_v62, %v1328_v61 }
 0x3eb   : > { %10021 = vmatpush1.bf16.msra.mxu0 %v10020_v19 }
 0x3ec   : > { %10022 = vmatprep.subr.bf16.mxu0 %v10918_v54 }
 0x3ef   : > { %10024 = vmatpush1.bf16.msra.mxu0 %v10023_v20  ;;  %v1338_v40 = vpop.permute.xlu0 %1337 }
 0x3f0   : > { %10025 = vmatprep.subr.bf16.mxu0 %v10918_v54  ;;  %v1333_v36 = vpop.permute.xlu1 %1332 }
 0x3f3   : > { %10027 = vmatpush1.bf16.msra.mxu0 %v10026_v53  ;;  %v1348_v20 = vpop.permute.xlu0 %1347 }
 0x3f4   : > { %10028 = vmatprep.subr.bf16.mxu0 %v10918_v54  ;;  %v1343_v45 = vpop.permute.xlu1 %1342 }
 0x3f7   : > { %10030 = vmatpush1.bf16.msra.mxu0 %v10029_v56 }
 0x3f8   : > { %10031 = vmatprep.subr.bf16.mxu0 %v10918_v54  ;;  %v1353_v56 = vpop.permute.xlu1 %1352 }
 0x3fb   : > { %10033 = vmatpush1.bf16.msra.mxu0 %v10032_v25  ;;  %v1358_v25 = vpop.permute.xlu0 %1357 }
 0x3fc   : > { %10070 = vmatprep.subr.bf16.mxu0 %v10918_v54 }
 0x3fe   : > { %1459 = vmatmul.mubr.f32.vlgmr.msra.gmra.mrb[16].mxu0 %v9107_v26 }
 0x3ff   : > { %9132 = vmatprep.mubr.msk.f32.mxu0 %vm15663_vm3, %v9110_v1  ;;  %vm15673_vm3 = vcmp.eq.s32.totalorder %v11278_v17, %v11470_v57 }
 0x400   : > { %v922_v19 = vsel %vm15673_vm3, 1.0, %v11695_v21 }
 0x401   : > { %v10064_v22 = vpack.c.bf16 %v922_v19, %v10920_v55 }
 0x402   : > { %1464 = vmatmul.mubr.f32.gmra.mrb[18].mxu0 %v9109_v51 }
 0x403   : > { %9133 = vmatprep.mubr.msk.f32.mxu0 %vm15664_vm13, %v9112_v59  ;;  %vm15674_vm13 = vcmp.eq.s32.totalorder %v11275_v16, %v11470_v57  ;;  %v1363_v59 = vpop.permute.xlu1 %1362 }
 0x406   : > { %1469 = vmatmul.mubr.f32.gmra.mrb[20].mxu0 %v9111_v60 }
 0x407   : > { %9134 = vmatprep.mubr.msk.f32.mxu0 %vm15665_vm6, %v9114_v15  ;;  %vm15675_vm6 = vmmov %vm15672_vm9 }
 0x40a   : > { %1474 = vmatmul.mubr.f32.gmra.mrb[22].mxu0 %v9113_v2 }
 0x40b   : > { %9135 = vmatprep.mubr.msk.f32.mxu0 %vm15666_vm12, %v9116_v24  ;;  %vm10065_vm12 = vmpackc.low %vm15675_vm6, %vm15674_vm13  ;;  %v1368_v24 = vpop.permute.xlu0 %1367 }
 0x40e   : > { %1479 = vmatmul.mubr.f32.gmra.mrb[24].mxu0 %v9115_v27 }
 0x40f   : > { %9136 = vmatprep.mubr.msk.f32.mxu0 %vm15667_vm15, %v9118_v28 }
 0x412   : > { %1484 = vmatmul.mubr.f32.gmra.mrb[26].mxu0 %v9117_v29 }
 0x413   : > { %9137 = vmatprep.mubr.msk.f32.mxu0 %vm15668_vm0, %v9120_v30 }
 0x416   : > { %1489 = vmatmul.mubr.f32.gmra.mrb[28].mxu0 %v9119_v31 }
 0x417   : > { %9138 = vmatprep.mubr.msk.f32.mxu0 %vm15669_vm8, %v9122_v18 }
 0x41a   : > { %1494 = vmatmul.mubr.f32.gmra.mrb[30].mxu0 %v9121_v33 }
 0x4d1   : > { %v1460_v37 = vpop.f32.mrb[16].mxu0 }
 0x4d2   : > { %v1461_v7 = vadd.f32 %v1460_v37, %v1333_v36  ;;  %v1462_v10 = vpop.f32.mrb[17].mxu0 }
 0x4d4   : > { %v1499_v39 = vmax.f32 %v1461_v7, 0.0 }
 0x4d5   : > { %v1465_v41 = vpop.f32.mrb[18].mxu0 }
 0x4d6   : > { %v1466_v42 = vadd.f32 %v1465_v41, %v1338_v40  ;;  %v1467_v43 = vpop.f32.mrb[19].mxu0  ;;  %9754 = vmatprep.mubr.msk.f32.mxu1 %vm1255_vm7, %v1499_v39 }
 0x4d8   : > { %v1500_v44 = vmax.f32 %v1466_v42, 0.0 }
 0x4d9   : > { %v1470_v46 = vpop.f32.mrb[20].mxu0 }
 0x4da   : > { %v1471_v47 = vadd.f32 %v1470_v46, %v1343_v45  ;;  %v1472_v48 = vpop.f32.mrb[21].mxu0  ;;  %9755 = vmatmul.mubr.msk.f32.vlgmr.msra.gmra.mrb[16].mxu1 %vm1255_vm7, %v1500_v44 }
 0x4db   : > { %10055 = vmatpush3.bf16.msk.msra.mxu1 %vm11482_vm5, %v10919_v14 }
 0x4dc   : > { %v1501_v49 = vmax.f32 %v1471_v47, 0.0  ;;  %10057 = vmatprep.subr.msk.bf16.mxu1 %vm11522_vm11, %v10919_v14 }
 0x4dd   : > { %v1475_v50 = vpop.f32.mrb[22].mxu0 }
 0x4de   : > { %v1476_v52 = vadd.f32 %v1475_v50, %v1348_v20  ;;  %v1477_v53 = vpop.f32.mrb[23].mxu0  ;;  %9757 = vmatprep.mubr.msk.f32.mxu1 %vm1255_vm7, %v1501_v49 }
 0x4df   : > { %10059 = vmatpush3.bf16.msk.msra.mxu1 %vm11522_vm11, %v10919_v14  ;;  %v9187_v53 = vld [vmem:[%s15604_s7 + $0x80] sm:$0xff]  ;;  %vm1821_vm11 = vcmask 252936  }
 0x4e0   : > { %v1502_v23 = vmax.f32 %v1476_v52, 0.0  ;;  %10061 = vmatprep.subr.msk.bf16.mxu1 %vm11542_vm1, %v10919_v14  ;;  %v9188_v52 = vld [vmem:[%s15604_s7 + $0x88] sm:$0xff] }
 0x4e1   : > { %v1480_v17 = vpop.f32.mrb[24].mxu0 }
 0x4e2   : > { %v1481_v61 = vadd.f32 %v1480_v17, %v1353_v56  ;;  %v1482_v62 = vpop.f32.mrb[25].mxu0  ;;  %9758 = vmatmul.mubr.msk.f32.gmra.mrb[18].mxu1 %vm1255_vm7, %v1502_v23  ;;  %v9192_v56 = vld [vmem:[%s15604_s7 + $0xa8] sm:$0xff]  ;;  %v9191_v17 = vld [vmem:[%s15604_s7 + $0xa0] sm:$0xff] }
 0x4e3   : > { %10063 = vmatpush3.bf16.msk.msra.mxu1 %vm11542_vm1, %v10919_v14  ;;  %v9193_v62 = vld [vmem:[%s15604_s7 + $0xb0] sm:$0xff]  ;;  %vm15676_vm1 = vmmov %vm15668_vm0 }
 0x4e4   : > { %v1503_v32 = vmax.f32 %v1481_v61, 0.0  ;;  %10066 = vmatprep.subr.msk.bf16.mxu1 %vm10065_vm12, %v10064_v22  ;;  %v9194_v61 = vld [vmem:[%s15604_s7 + $0xb8] sm:$0xff]  ;;  %vm15685_vm6 = vmmov %vm15676_vm1 }
 0x4e5   : > { %v1485_v26 = vpop.f32.mrb[26].mxu0 }
 0x4e6   : > { %v1486_v1 = vadd.f32 %v1485_v26, %v1358_v25  ;;  %v1487_v51 = vpop.f32.mrb[27].mxu0  ;;  %9760 = vmatprep.mubr.msk.f32.mxu1 %vm1255_vm7, %v1503_v32 }
 0x4e7   : > { %10069 = vmatpush3.bf16.msk.msra.mxu1 %vm10065_vm12, %v10064_v22  ;;  %v9190_v22 = vld [vmem:[%s15604_s7 + $0x98] sm:$0xff]  ;;  %vm15686_vm12 = vmmov %vm15676_vm1 }
 0x4e8   : > { %v1504_v16 = vmax.f32 %v1486_v1, 0.0  ;;  %10107 = vmatprep.subr.msk.bf16.mxu1 %vm11253_vm4, %v10919_v14 }
 0x4e9   : > { %v1490_v60 = vpop.f32.mrb[28].mxu0 }
 0x4ea   : > { %v1491_v15 = vadd.f32 %v1490_v60, %v1363_v59  ;;  %v1492_v2 = vpop.f32.mrb[29].mxu0  ;;  %9761 = vmatmul.mubr.msk.f32.gmra.mrb[20].mxu1 %vm1255_vm7, %v1504_v16 }
 0x4ec   : > { %v1505_v38 = vmax.f32 %v1491_v15, 0.0 }
 0x4ed   : > { %v1495_v27 = vpop.f32.mrb[30].mxu0 }
 0x4ee   : > { %v1496_v28 = vadd.f32 %v1495_v27, %v1368_v24  ;;  %v1497_v29 = vpop.f32.mrb[31].mxu0  ;;  %9763 = vmatprep.mubr.msk.f32.mxu1 %vm1255_vm7, %v1505_v38 }
 0x4f0   : > { %v1506_v30 = vmax.f32 %v1496_v28, 0.0 }
 0x4f2   : > { %9764 = vmatmul.mubr.msk.f32.gmra.mrb[22].mxu1 %vm1255_vm7, %v1506_v30 }
 0x4f3   : > { %9782 = vmatprep.mubr.msk.f32.mxu1 %vm1255_vm7, %v1499_v39 }
 0x4f6   : > { %9783 = vmatmul.mubr.msk.f32.vlgmr.msra.gmra.mrb[24].mxu1 %vm1255_vm7, %v1500_v44 }
 0x4f7   : > { %9785 = vmatprep.mubr.msk.f32.mxu1 %vm1255_vm7, %v1501_v49  ;;  %10109 = vmatpush3.bf16.msk.msra.mxu1 %vm11253_vm4, %v10919_v14  ;;  %vm1830_vm4 = vcmask 252928  }
 0x4fa   : > { %9786 = vmatmul.mubr.msk.f32.gmra.mrb[26].mxu1 %vm1255_vm7, %v1502_v23  ;;  %v9189_v23 = vld [vmem:[%s15604_s7 + $0x90] sm:$0xff] }
 0x4fb   : > { %9788 = vmatprep.mubr.msk.f32.mxu1 %vm1255_vm7, %v1503_v32  ;;  %v9172_v32 = vld [vmem:[%s15603_s6 + $0x108] sm:$0xff] }
 0x4fc   : > { %9195 = vmatprep.mubr.msk.f32.mxu0 %vm15676_vm1, %v9172_v32 }
 0x4fe   : > { %9789 = vmatmul.mubr.msk.f32.gmra.mrb[28].mxu1 %vm1255_vm7, %v1504_v16 }
 0x4ff   : > { %9791 = vmatprep.mubr.msk.f32.mxu1 %vm1255_vm7, %v1505_v38 }
 0x502   : > { %9792 = vmatmul.mubr.msk.f32.gmra.mrb[30].mxu1 %vm1255_vm7, %v1506_v30  ;;  %vm15677_vm7 = vcmask 7168  }
 0x503   : > { %vm15678_vm15 = vmmov %vm15677_vm7 }
 0x504   : > { %vm15679_vm0 = vmmov %vm15677_vm7 }
 0x505   : > { %vm15680_vm8 = vmmov %vm15679_vm0 }
 0x506   : > { %vm15681_vm9 = vmmov %vm15679_vm0 }
 0x507   : > { %vm15682_vm2 = vmmov %vm15679_vm0 }
 0x508   : > { %vm15683_vm3 = vmmov %vm15679_vm0 }
 0x509   : > { %vm15684_vm13 = vmmov %vm15679_vm0 }
 0x5ad   : > { %v9756_v31 = vpop.f32.mrb[16].mxu1 }
 0x5ae   : > { %v1600_v18 = vpop.f32.mrb[17].mxu1 }
 0x5b5   : > { %v9759_v33 = vpop.f32.mrb[18].mxu1 }
 0x5b6   : > { %v1610_v34 = vpop.f32.mrb[19].mxu1 }
 0x5bd   : > { %v9762_v35 = vpop.f32.mrb[20].mxu1 }
 0x5be   : > { %v1620_v36 = vpop.f32.mrb[21].mxu1 }
 0x5c5   : > { %v9765_v37 = vpop.f32.mrb[22].mxu1 }
 0x5c6   : > { %v1630_v7 = vpop.f32.mrb[23].mxu1 }
 0x5c9   : > { %v9784_v11 = vpop.f32.mrb[24].mxu1 }
 0x5ca   : > { %v1748_v10 = vmax.f32 %v9756_v31, %v9784_v11  ;;  %v1708_v39 = vpop.f32.mrb[25].mxu1 }
 0x5cb   : > { %v1747_v40 = vmax.f32 %v1600_v18, %v1708_v39 }
 0x5cc   : > { %1832 = vst.msk [vmem:[#allocation3 + $0x120] sm:$0xff] %vm1830_vm4, %v1748_v10  ;;  %1799 = vrot.lane.b32.xlu0 %v1748_v10, %s10916_s20 }
 0x5cd   : > { %1831 = vst.msk [vmem:[#allocation3 + $0x100] sm:$0xff] %vm1830_vm4, %v1747_v40  ;;  %1797 = vrot.lane.b32.xlu1 %v1747_v40, %s10916_s20  ;;  %v9787_v41 = vpop.f32.mrb[26].mxu1 }
 0x5ce   : > { %v1750_v42 = vmax.f32 %v9759_v33, %v9787_v41  ;;  %v1718_v43 = vpop.f32.mrb[27].mxu1 }
 0x5cf   : > { %v1749_v44 = vmax.f32 %v1610_v34, %v1718_v43 }
 0x5d0   : > { %1834 = vst.msk [vmem:[#allocation3 + $0x160] sm:$0xff] %vm1830_vm4, %v1750_v42  ;;  %1803 = vrot.lane.b32.xlu0 %v1750_v42, %s10916_s20 }
 0x5d1   : > { %1833 = vst.msk [vmem:[#allocation3 + $0x140] sm:$0xff] %vm1830_vm4, %v1749_v44  ;;  %1801 = vrot.lane.b32.xlu1 %v1749_v44, %s10916_s20  ;;  %v9790_v45 = vpop.f32.mrb[28].mxu1 }
 0x5d2   : > { %v1752_v46 = vmax.f32 %v9762_v35, %v9790_v45  ;;  %v1728_v47 = vpop.f32.mrb[29].mxu1 }
 0x5d3   : > { %v1751_v48 = vmax.f32 %v1620_v36, %v1728_v47  ;;  %v1890_v39 = vld [vmem:[#allocation3 + $0x120] sm:$0xff] }
 0x5d4   : > { %1836 = vst.msk [vmem:[#allocation3 + $0x1a0] sm:$0xff] %vm1830_vm4, %v1752_v46  ;;  %1807 = vrot.lane.b32.xlu0 %v1752_v46, %s10916_s20 }
 0x5d5   : > { %1835 = vst.msk [vmem:[#allocation3 + $0x180] sm:$0xff] %vm1830_vm4, %v1751_v48  ;;  %1805 = vrot.lane.b32.xlu1 %v1751_v48, %s10916_s20  ;;  %v9793_v49 = vpop.f32.mrb[30].mxu1 }
 0x5d6   : > { %v1754_v19 = vmax.f32 %v9765_v37, %v9793_v49  ;;  %v1738_v20 = vpop.f32.mrb[31].mxu1 }
 0x5d7   : > { %v1753_v50 = vmax.f32 %v1630_v7, %v1738_v20 }
 0x5d8   : > { %1838 = vst.msk [vmem:[#allocation3 + $0x1e0] sm:$0xff] %vm1830_vm4, %v1754_v19  ;;  %1811 = vrot.lane.b32.xlu0 %v1754_v19, %s10916_s20  ;;  %v1891_v43 = vld [vmem:[#allocation3 + $0x140] sm:$0xff] }
 0x5d9   : > { %1837 = vst.msk [vmem:[#allocation3 + $0x1c0] sm:$0xff] %vm1830_vm4, %v1753_v50  ;;  %1809 = vrot.lane.b32.xlu1 %v1753_v50, %s10916_s20 }
 0x5db   : > { %v1894_v49 = vld [vmem:[#allocation3 + $0x1a0] sm:$0xff] }
 0x5dc   : > { %1841 = vrot.lane.b32.xlu0 %v1748_v10, %s10917_s16  ;;  %v1889_v10 = vld [vmem:[#allocation3 + $0x100] sm:$0xff] }
 0x5dd   : > { %1839 = vrot.lane.b32.xlu1 %v1747_v40, %s10917_s16 }
 0x5e0   : > { %1845 = vrot.lane.b32.xlu0 %v1750_v42, %s10917_s16  ;;  %v10083_v42 = vpack.c.bf16 %v1890_v39, %v1889_v10  ;;  %v1895_v20 = vld [vmem:[#allocation3 + $0x1c0] sm:$0xff] }
 0x5e1   : > { %1843 = vrot.lane.b32.xlu1 %v1749_v44, %s10917_s16  ;;  %v1892_v44 = vld [vmem:[#allocation3 + $0x160] sm:$0xff] }
 0x5e2   : > { %v10086_v47 = vpack.c.bf16 %v1892_v44, %v1891_v43 }
 0x5e4   : > { %1849 = vrot.lane.b32.xlu0 %v1752_v46, %s10917_s16 }
 0x5e5   : > { %1847 = vrot.lane.b32.xlu1 %v1751_v48, %s10917_s16  ;;  %v1893_v48 = vld [vmem:[#allocation3 + $0x180] sm:$0xff] }
 0x5e8   : > { %1853 = vrot.lane.b32.xlu0 %v1754_v19, %s10917_s16  ;;  %v10089_v19 = vpack.c.bf16 %v1894_v49, %v1893_v48 }
 0x5e9   : > { %1851 = vrot.lane.b32.xlu1 %v1753_v50, %s10917_s16  ;;  %v1896_v50 = vld [vmem:[#allocation3 + $0x1e0] sm:$0xff] }
 0x5ec   : > { %1912 = vperm.xlu0 %10851, %v9188_v52  }
 0x5ed   : > { %1907 = vperm.xlu1 %10852, %v9187_v53  }
 0x5f0   : > { %1922 = vperm.xlu0 %10851, %v9190_v22   ;;  %v10092_v22 = vpack.c.bf16 %v1896_v50, %v1895_v20 }
 0x5f1   : > { %1917 = vperm.xlu1 %10852, %v9189_v23  }
 0x5f4   : > { %1932 = vperm.xlu0 %10851, %v9192_v56  }
 0x5f5   : > { %1927 = vperm.xlu1 %10852, %v9191_v17  }
 0x5f8   : > { %1942 = vperm.xlu0 %10851, %v9194_v61  }
 0x5f9   : > { %1937 = vperm.xlu1 %10852, %v9193_v62  }
 0x63e   : > { %v1800_v25 = vpop.permute.xlu0 %1799 }
 0x63f   : > { %1823 = vst.msk [vmem:[#allocation3 + $0x20] sm:$0xff] %vm1821_vm11, %v1800_v25  ;;  %v1798_v26 = vpop.permute.xlu1 %1797 }
 0x640   : > { %1822 = vst.msk [vmem:[#allocation3] sm:$0xff] %vm1821_vm11, %v1798_v26 }
 0x642   : > { %v1804_v1 = vpop.permute.xlu0 %1803 }
 0x643   : > { %1825 = vst.msk [vmem:[#allocation3 + $0x60] sm:$0xff] %vm1821_vm11, %v1804_v1  ;;  %v1802_v51 = vpop.permute.xlu1 %1801 }
 0x644   : > { %1824 = vst.msk [vmem:[#allocation3 + $0x40] sm:$0xff] %vm1821_vm11, %v1802_v51 }
 0x646   : > { %v1808_v16 = vpop.permute.xlu0 %1807  ;;  %v1882_v59 = vld [vmem:[#allocation3 + $0x20] sm:$0xff] }
 0x647   : > { %1827 = vst.msk [vmem:[#allocation3 + $0xa0] sm:$0xff] %vm1821_vm11, %v1808_v16  ;;  %v1806_v60 = vpop.permute.xlu1 %1805  ;;  %v1881_v15 = vld [vmem:[#allocation3] sm:$0xff] }
 0x648   : > { %2358 = vst.msk [vmem:[#allocation3 + $0x20] sm:$0xff] %vm15677_vm7, %v11695_v21  ;;  %v10071_v2 = vpack.c.bf16 %v1882_v59, %v1881_v15  ;;  %v9171_v16 = vld [vmem:[%s15603_s6 + $0x100] sm:$0xff]  ;;  %v9174_v59 = vld [vmem:[%s15603_s6 + $0x118] sm:$0xff]  ;;  %v9176_v15 = vld [vmem:[%s15603_s6 + $0x128] sm:$0xff] }
 0x649   : > { %1826 = vst.msk [vmem:[#allocation3 + $0x80] sm:$0xff] %vm1821_vm11, %v1806_v60  ;;  %v9173_v60 = vld [vmem:[%s15603_s6 + $0x110] sm:$0xff]  ;;  %vm15688_vm7 = vmmov %vm15676_vm1 }
 0x64a   : > { %2357 = vst.msk [vmem:[#allocation3] sm:$0xff] %vm15678_vm15, %v11695_v21  ;;  %10072 = vmatpush1.bf16.msra.mxu0 %v10071_v2  ;;  %v1812_v38 = vpop.permute.xlu0 %1811  ;;  %v1884_v24 = vld [vmem:[#allocation3 + $0x60] sm:$0xff]  ;;  %vm15689_vm15 = vmmov %vm15676_vm1 }
 0x64b   : > { %1829 = vst.msk [vmem:[#allocation3 + $0xe0] sm:$0xff] %vm1821_vm11, %v1812_v38  ;;  %v1810_v27 = vpop.permute.xlu1 %1809  ;;  %10073 = vmatprep.subr.bf16.mxu0 %v10918_v54  ;;  %v1883_v28 = vld [vmem:[#allocation3 + $0x40] sm:$0xff]  ;;  %v9178_v38 = vld [vmem:[%s15603_s6 + $0x138] sm:$0xff] }
 0x64c   : > { %2360 = vst.msk [vmem:[#allocation3 + $0x60] sm:$0xff] %vm15679_vm0, %v11695_v21  ;;  %v10074_v29 = vpack.c.bf16 %v1884_v24, %v1883_v28  ;;  %v9175_v2 = vld [vmem:[%s15603_s6 + $0x120] sm:$0xff]  ;;  %v9177_v24 = vld [vmem:[%s15603_s6 + $0x130] sm:$0xff]  ;;  %vm15690_vm0 = vmmov %vm15676_vm1 }
 0x64d   : > { %1828 = vst.msk [vmem:[#allocation3 + $0xc0] sm:$0xff] %vm1821_vm11, %v1810_v27  ;;  %v9180_v27 = vld [vmem:[%s15603_s6 + $0x148] sm:$0xff]  ;;  %vm15687_vm11 = vmmov %vm15676_vm1  ;;  %v9179_v28 = vld [vmem:[%s15603_s6 + $0x140] sm:$0xff] }
 0x64e   : > { %2359 = vst.msk [vmem:[#allocation3 + $0x40] sm:$0xff] %vm15680_vm8, %v11695_v21  ;;  %10075 = vmatpush1.bf16.msra.mxu0 %v10074_v29  ;;  %v1842_v30 = vpop.permute.xlu0 %1841  ;;  %v1886_v31 = vld [vmem:[#allocation3 + $0xa0] sm:$0xff]  ;;  %v9182_v29 = vld [vmem:[%s15603_s6 + $0x158] sm:$0xff]  ;;  %vm15691_vm8 = vcmp.eq.s32.totalorder %v11231_v6, %v11225_v4 }
 0x64f   : > { %1865 = vst.msk [vmem:[#allocation3 + $0x220] sm:$0xff] %vm1863_vm14, %v1842_v30  ;;  %v1840_v18 = vpop.permute.xlu1 %1839  ;;  %10076 = vmatprep.subr.bf16.mxu0 %v10918_v54  ;;  %v9181_v30 = vld [vmem:[%s15603_s6 + $0x150] sm:$0xff] }
 0x650   : > { %v1885_v33 = vld [vmem:[#allocation3 + $0x80] sm:$0xff]  ;;  %2362 = vst.msk [vmem:[#allocation3 + $0xa0] sm:$0xff] %vm15681_vm9, %v11695_v21 }
 0x651   : > { %1874 = vst.msk [vmem:[#allocation3 + $0x220] sm:$0xff] %vm1872_vm10, %v11695_v21  ;;  %v10077_v34 = vpack.c.bf16 %v1886_v31, %v1885_v33  ;;  %v9184_v31 = vld [vmem:[%s15603_s6 + $0x168] sm:$0xff]  ;;  %v9186_v33 = vld [vmem:[%s15603_s6 + $0x178] sm:$0xff] }
 0x652   : > { %1864 = vst.msk [vmem:[#allocation3 + $0x200] sm:$0xff] %vm1863_vm14, %v1840_v18  ;;  %v1846_v35 = vpop.permute.xlu0 %1845  ;;  %v1888_v36 = vld [vmem:[#allocation3 + $0xe0] sm:$0xff] }
 0x653   : > { %2361 = vst.msk [vmem:[#allocation3 + $0x80] sm:$0xff] %vm15682_vm2, %v11695_v21  ;;  %10078 = vmatpush1.bf16.msra.mxu0 %v10077_v34  ;;  %v1844_v37 = vpop.permute.xlu1 %1843  ;;  %v9183_v18 = vld [vmem:[%s15603_s6 + $0x160] sm:$0xff]  ;;  %v9185_v34 = vld [vmem:[%s15603_s6 + $0x170] sm:$0xff]  ;;  %vm15693_vm2 = vcmp.eq.s32.totalorder %v11231_v6, %v11470_v57 }
 0x654   : > { %1873 = vst.msk [vmem:[#allocation3 + $0x200] sm:$0xff] %vm1872_vm10, %v11695_v21  ;;  %10079 = vmatprep.subr.bf16.mxu0 %v10918_v54  ;;  %v1887_v7 = vld [vmem:[#allocation3 + $0xc0] sm:$0xff] }
 0x655   : > { %1867 = vst.msk [vmem:[#allocation3 + $0x260] sm:$0xff] %vm1863_vm14, %v1846_v35  ;;  %1866 = vst.msk [vmem:[#allocation3 + $0x240] sm:$0xff] %vm1863_vm14, %v1844_v37  ;;  %v10080_v11 = vpack.c.bf16 %v1888_v36, %v1887_v7  ;;  %v885_v35 = vsel %vm15691_vm8, 1.0, %v11695_v21 }
 0x656   : > { %2364 = vst.msk [vmem:[#allocation3 + $0xe0] sm:$0xff] %vm15683_vm3, %v11695_v21  ;;  %v1850_v40 = vpop.permute.xlu0 %1849  ;;  %v10110_v36 = vpack.c.bf16 %v885_v35, %v10920_v55  ;;  %vm15694_vm3 = vcmp.eq.s32.totalorder %v11228_v5, %v11470_v57 }
 0x657   : > { %1876 = vst.msk [vmem:[#allocation3 + $0x260] sm:$0xff] %vm1872_vm10, %v11695_v21  ;;  %1875 = vst.msk [vmem:[#allocation3 + $0x240] sm:$0xff] %vm1872_vm10, %v11695_v21  ;;  %10081 = vmatpush1.bf16.msra.mxu0 %v10080_v11  ;;  %v1848_v41 = vpop.permute.xlu1 %1847 }
 0x658   : > { %2363 = vst.msk [vmem:[#allocation3 + $0xc0] sm:$0xff] %vm15684_vm13, %v11695_v21  ;;  %10082 = vmatprep.subr.bf16.mxu0 %v10918_v54  ;;  %v1898_v53 = vld [vmem:[#allocation3 + $0x220] sm:$0xff] }
 0x659   : > { %1869 = vst.msk [vmem:[#allocation3 + $0x2a0] sm:$0xff] %vm1863_vm14, %v1850_v40  ;;  %1868 = vst.msk [vmem:[#allocation3 + $0x280] sm:$0xff] %vm1863_vm14, %v1848_v41  ;;  %v918_v40 = vsel %vm15693_vm2, 1.0, %v11695_v21 }
 0x65a   : > { %1878 = vst.msk [vmem:[#allocation3 + $0x2a0] sm:$0xff] %vm1872_vm10, %v11695_v21  ;;  %1877 = vst.msk [vmem:[#allocation3 + $0x280] sm:$0xff] %vm1872_vm10, %v11695_v21  ;;  %v1854_v45 = vpop.permute.xlu0 %1853 }
 0x65b   : > { %10084 = vmatpush1.bf16.msra.mxu0 %v10083_v42  ;;  %1871 = vst.msk [vmem:[#allocation3 + $0x2e0] sm:$0xff] %vm1863_vm14, %v1854_v45  ;;  %v1852_v46 = vpop.permute.xlu1 %1851  ;;  %v1897_v52 = vld [vmem:[#allocation3 + $0x200] sm:$0xff]  ;;  %v10120_v45 = vpack.c.bf16 %v918_v40, %v10920_v55 }
 0x65c   : > { %10085 = vmatprep.subr.bf16.mxu0 %v10918_v54  ;;  %1880 = vst.msk [vmem:[#allocation3 + $0x2e0] sm:$0xff] %vm1872_vm10, %v11695_v21  ;;  %v10095_v23 = vpack.c.bf16 %v1898_v53, %v1897_v52 }
 0x65d   : > { %1870 = vst.msk [vmem:[#allocation3 + $0x2c0] sm:$0xff] %vm1863_vm14, %v1852_v46  ;;  %vm2106_vm14 = vcmask 1046528  }
 0x65e   : > { %1879 = vst.msk [vmem:[#allocation3 + $0x2c0] sm:$0xff] %vm1872_vm10, %v11695_v21  ;;  %v1899_v56 = vld [vmem:[#allocation3 + $0x240] sm:$0xff]  ;;  %vm15692_vm10 = vcmp.eq.s32.totalorder %v11228_v5, %v11225_v4  ;;  %vm10121_vm13 = vmpackc.low %vm2106_vm14, %vm15694_vm3 }
 0x65f   : > { %10087 = vmatpush1.bf16.msra.mxu0 %v10086_v47  ;;  %v1900_v17 = vld [vmem:[#allocation3 + $0x260] sm:$0xff]  ;;  %vm10111_vm9 = vmpackc.low %vm2106_vm14, %vm15692_vm10  ;;  %vm2439_vm10 = vcmask 113664  }
 0x660   : > { %10088 = vmatprep.subr.bf16.mxu0 %v10918_v54  ;;  %v10098_v61 = vpack.c.bf16 %v1900_v17, %v1899_v56  ;;  %10112 = vmatprep.subr.msk.bf16.mxu1 %vm10111_vm9, %v10110_v36 }
 0x661   : > { %v1901_v62 = vld [vmem:[#allocation3 + $0x280] sm:$0xff]  ;;  %10115 = vmatpush3.bf16.msk.msra.mxu1 %vm10111_vm9, %v10110_v36  ;;  %vm2448_vm9 = vcmask 121968  }
 0x662   : > { %v1902_v32 = vld [vmem:[#allocation3 + $0x2a0] sm:$0xff]  ;;  %10117 = vmatprep.subr.msk.bf16.mxu1 %vm11482_vm5, %v10919_v14 }
 0x663   : > { %10090 = vmatpush1.bf16.msra.mxu0 %v10089_v19  ;;  %v10101_v25 = vpack.c.bf16 %v1902_v32, %v1901_v62  ;;  %v1904_v1 = vld [vmem:[#allocation3 + $0x2e0] sm:$0xff] }
 0x664   : > { %10091 = vmatprep.subr.bf16.mxu0 %v10918_v54 }
 0x665   : > { %v1903_v26 = vld [vmem:[#allocation3 + $0x2c0] sm:$0xff] }
 0x666   : > { %v10104_v51 = vpack.c.bf16 %v1904_v1, %v1903_v26 }
 0x667   : > { %10093 = vmatpush1.bf16.msra.mxu0 %v10092_v22 }
 0x668   : > { %10094 = vmatprep.subr.bf16.mxu0 %v10918_v54 }
 0x66b   : > { %10096 = vmatpush1.bf16.msra.mxu0 %v10095_v23  ;;  %v1913_v41 = vpop.permute.xlu0 %1912 }
 0x66c   : > { %10097 = vmatprep.subr.bf16.mxu0 %v10918_v54  ;;  %v1908_v37 = vpop.permute.xlu1 %1907 }
 0x66f   : > { %10099 = vmatpush1.bf16.msra.mxu0 %v10098_v61  ;;  %v1923_v21 = vpop.permute.xlu0 %1922 }
 0x670   : > { %10100 = vmatprep.subr.bf16.mxu0 %v10918_v54  ;;  %v1918_v47 = vpop.permute.xlu1 %1917 }
 0x673   : > { %10102 = vmatpush1.bf16.msra.mxu0 %v10101_v25 }
 0x674   : > { %10103 = vmatprep.subr.bf16.mxu0 %v10918_v54  ;;  %v1928_v53 = vpop.permute.xlu1 %1927 }
 0x677   : > { %10105 = vmatpush1.bf16.msra.mxu0 %v10104_v51 }
 0x678   : > { %v1938_v25 = vpop.permute.xlu1 %1937 }
 0x67a   : > { %2034 = vmatmul.mubr.f32.vlgmr.msra.gmra.mrb[32].mxu0 %v9171_v16 }
 0x67b   : > { %9196 = vmatprep.mubr.msk.f32.mxu0 %vm15685_vm6, %v9174_v59  ;;  %vm15696_vm6 = vcmp.eq.s32.totalorder %v11223_v3, %v11470_v57 }
 0x67e   : > { %2039 = vmatmul.mubr.f32.gmra.mrb[34].mxu0 %v9173_v60 }
 0x67f   : > { %9197 = vmatprep.mubr.msk.f32.mxu0 %vm15686_vm12, %v9176_v15  ;;  %vm15697_vm12 = vcmp.eq.s32.totalorder %v11219_v0, %v11470_v57 }
 0x682   : > { %2044 = vmatmul.mubr.f32.gmra.mrb[36].mxu0 %v9175_v2 }
 0x683   : > { %9198 = vmatprep.mubr.msk.f32.mxu0 %vm15676_vm1, %v9178_v38  ;;  %vm10169_vm1 = vmpackc.low %vm2106_vm14, %vm15697_vm12  ;;  %vm15707_vm12 = vcmp.eq.s32.totalorder %v11219_v0, %v11225_v4 }
 0x686   : > { %2049 = vmatmul.mubr.f32.gmra.mrb[38].mxu0 %v9177_v24 }
 0x687   : > { %9199 = vmatprep.mubr.msk.f32.mxu0 %vm15687_vm11, %v9180_v27  ;;  %vm2397_vm11 = vcmask 121864  }
 0x68a   : > { %2054 = vmatmul.mubr.f32.gmra.mrb[40].mxu0 %v9179_v28 }
 0x68b   : > { %9200 = vmatprep.mubr.msk.f32.mxu0 %vm15688_vm7, %v9182_v29  ;;  %vm15698_vm7 = vcmask 7168  }
 0x68e   : > { %2059 = vmatmul.mubr.f32.gmra.mrb[42].mxu0 %v9181_v30 }
 0x68f   : > { %9201 = vmatprep.mubr.msk.f32.mxu0 %vm15689_vm15, %v9184_v31  ;;  %vm15699_vm15 = vmmov %vm15698_vm7 }
 0x692   : > { %2064 = vmatmul.mubr.f32.gmra.mrb[44].mxu0 %v9183_v18 }
 0x693   : > { %9202 = vmatprep.mubr.msk.f32.mxu0 %vm15690_vm0, %v9186_v33 }
 0x696   : > { %2069 = vmatmul.mubr.f32.gmra.mrb[46].mxu0 %v9185_v34 }
 0x74d   : > { %v2035_v7 = vpop.f32.mrb[32].mxu0 }
 0x74e   : > { %v2036_v11 = vadd.f32 %v2035_v7, %v1908_v37  ;;  %v2037_v10 = vpop.f32.mrb[33].mxu0 }
 0x750   : > { %v2074_v39 = vmax.f32 %v2036_v11, 0.0 }
 0x751   : > { %v2040_v42 = vpop.f32.mrb[34].mxu0 }
 0x752   : > { %v2041_v43 = vadd.f32 %v2040_v42, %v1913_v41  ;;  %v2042_v44 = vpop.f32.mrb[35].mxu0  ;;  %9802 = vmatprep.mubr.msk.f32.mxu1 %vm1830_vm4, %v2074_v39 }
 0x754   : > { %v2075_v46 = vmax.f32 %v2041_v43, 0.0 }
 0x755   : > { %v2045_v48 = vpop.f32.mrb[36].mxu0 }
 0x756   : > { %v2046_v49 = vadd.f32 %v2045_v48, %v1918_v47  ;;  %v2047_v19 = vpop.f32.mrb[37].mxu0  ;;  %9803 = vmatmul.mubr.msk.f32.vlgmr.msra.gmra.mrb[32].mxu1 %vm1830_vm4, %v2075_v46  ;;  %v9244_v48 = vld [vmem:[%s15604_s7 + $0xc8] sm:$0xff] }
 0x757   : > { %10119 = vmatpush3.bf16.msk.msra.mxu1 %vm11482_vm5, %v10919_v14  ;;  %v1933_v14 = vpop.permute.xlu0 %1932  ;;  %vm2406_vm5 = vcmask 121856   ;;  %v9246_v19 = vld [vmem:[%s15604_s7 + $0xd8] sm:$0xff] }
 0x758   : > { %v2076_v6 = vmax.f32 %v2046_v49, 0.0  ;;  %10122 = vmatprep.subr.msk.bf16.mxu1 %vm10121_vm13, %v10120_v45  ;;  %v9243_v49 = vld [vmem:[%s15604_s7 + $0xc0] sm:$0xff] }
 0x759   : > { %v2050_v20 = vpop.f32.mrb[38].mxu0 }
 0x75a   : > { %v2051_v50 = vadd.f32 %v2050_v20, %v1923_v21  ;;  %v2052_v52 = vpop.f32.mrb[39].mxu0  ;;  %9805 = vmatprep.mubr.msk.f32.mxu1 %vm1830_vm4, %v2076_v6  ;;  %v9248_v21 = vld [vmem:[%s15604_s7 + $0xe8] sm:$0xff]  ;;  %v9247_v20 = vld [vmem:[%s15604_s7 + $0xe0] sm:$0xff] }
 0x75b   : > { %10125 = vmatpush3.bf16.msk.msra.mxu1 %vm10121_vm13, %v10120_v45  ;;  %v1943_v59 = vpop.permute.xlu0 %1942  ;;  %v9249_v52 = vld [vmem:[%s15604_s7 + $0xf0] sm:$0xff] }
 0x75c   : > { %v2077_v5 = vmax.f32 %v2051_v50, 0.0  ;;  %10126 = vmatprep.subr.bf16.mxu1 %v10918_v54  ;;  %v9250_v50 = vld [vmem:[%s15604_s7 + $0xf8] sm:$0xff] }
 0x75d   : > { %v2055_v22 = vpop.f32.mrb[40].mxu0 }
 0x75e   : > { %v2056_v23 = vadd.f32 %v2055_v22, %v1928_v53  ;;  %v2057_v56 = vpop.f32.mrb[41].mxu0  ;;  %9806 = vmatmul.mubr.msk.f32.gmra.mrb[34].mxu1 %vm1830_vm4, %v2077_v5  ;;  %v12118_v53 = vld [vmem:[#allocation2 + $0x18] sm:$0xff] }
 0x75f   : > { %v916_v22 = vsel %vm15696_vm6, 1.0, %v12118_v53  ;;  %vm15706_vm6 = vcmp.eq.s32.totalorder %v11223_v3, %v11225_v4  ;;  %v9230_v3 = vld [vmem:[%s15603_s6 + $0x198] sm:$0xff] }
 0x760   : > { %v2078_v58 = vmax.f32 %v2056_v23, 0.0  ;;  %v10168_v23 = vpack.c.bf16 %v916_v22, %v10920_v55 }
 0x761   : > { %v2060_v17 = vpop.f32.mrb[42].mxu0 }
 0x762   : > { %v2061_v61 = vadd.f32 %v2060_v17, %v1933_v14  ;;  %v2062_v62 = vpop.f32.mrb[43].mxu0  ;;  %9808 = vmatprep.mubr.msk.f32.mxu1 %vm1830_vm4, %v2078_v58  ;;  %10170 = vmatprep.subr.msk.bf16.mxu0 %vm10169_vm1, %v10168_v23 }
 0x763   : > { %10173 = vmatpush3.bf16.msk.msra.mxu0 %vm10169_vm1, %v10168_v23  ;;  %v883_v23 = vsel %vm15706_vm6, 1.0, %v12118_v53  ;;  %vm10163_vm1 = vmpackc.low %vm2106_vm14, %vm15707_vm12 }
 0x764   : > { %v2079_v32 = vmax.f32 %v2061_v61, 0.0 }
 0x765   : > { %v2065_v26 = vpop.f32.mrb[44].mxu0 }
 0x766   : > { %v2066_v1 = vadd.f32 %v2065_v26, %v1938_v25  ;;  %v2067_v51 = vpop.f32.mrb[45].mxu0  ;;  %9809 = vmatmul.mubr.msk.f32.gmra.mrb[36].mxu1 %vm1830_vm4, %v2079_v32 }
 0x768   : > { %v2080_v16 = vmax.f32 %v2066_v1, 0.0 }
 0x769   : > { %v2070_v60 = vpop.f32.mrb[46].mxu0 }
 0x76a   : > { %v2071_v15 = vadd.f32 %v2070_v60, %v1943_v59  ;;  %v2072_v2 = vpop.f32.mrb[47].mxu0  ;;  %9811 = vmatprep.mubr.msk.f32.mxu1 %vm1830_vm4, %v2080_v16 }
 0x76c   : > { %v2081_v38 = vmax.f32 %v2071_v15, 0.0 }
 0x76e   : > { %9812 = vmatmul.mubr.msk.f32.gmra.mrb[38].mxu1 %vm1830_vm4, %v2081_v38 }
 0x76f   : > { %9822 = vmatprep.mubr.msk.f32.mxu1 %vm1830_vm4, %v2074_v39 }
 0x772   : > { %9823 = vmatmul.mubr.msk.f32.vlgmr.msra.gmra.mrb[40].mxu1 %vm1830_vm4, %v2075_v46 }
 0x773   : > { %9825 = vmatprep.mubr.msk.f32.mxu1 %vm1830_vm4, %v2076_v6  ;;  %v9245_v6 = vld [vmem:[%s15604_s7 + $0xd0] sm:$0xff] }
 0x776   : > { %9826 = vmatmul.mubr.msk.f32.gmra.mrb[42].mxu1 %vm1830_vm4, %v2077_v5  ;;  %v9228_v5 = vld [vmem:[%s15603_s6 + $0x188] sm:$0xff] }
 0x777   : > { %9828 = vmatprep.mubr.msk.f32.mxu1 %vm1830_vm4, %v2078_v58 }
 0x77a   : > { %9829 = vmatmul.mubr.msk.f32.gmra.mrb[44].mxu1 %vm1830_vm4, %v2079_v32 }
 0x77b   : > { %9831 = vmatprep.mubr.msk.f32.mxu1 %vm1830_vm4, %v2080_v16 }
 0x77e   : > { %9832 = vmatmul.mubr.msk.f32.gmra.mrb[46].mxu1 %vm1830_vm4, %v2081_v38  ;;  %vm15695_vm4 = vmmov %vm15690_vm0 }
 0x77f   : > { %9251 = vmatprep.mubr.msk.f32.mxu1 %vm15695_vm4, %v9228_v5  ;;  %vm15700_vm0 = vmmov %vm15698_vm7 }
 0x780   : > { %vm15701_vm8 = vmmov %vm15700_vm0 }
 0x781   : > { %vm15702_vm2 = vmmov %vm15700_vm0 }
 0x782   : > { %vm15703_vm3 = vmmov %vm15700_vm0 }
 0x783   : > { %vm15704_vm13 = vmmov %vm15700_vm0 }
 0x784   : > { %vm15705_vm4 = vmmov %vm15700_vm0 }
 0x785   : > { %vm15717_vm6 = vmmov %vm15705_vm4 }
 0x786   : > { %vm15718_vm12 = vmmov %vm15705_vm4 }
 0x829   : > { %v9804_v24 = vpop.f32.mrb[32].mxu1 }
 0x82a   : > { %v2176_v27 = vpop.f32.mrb[33].mxu1 }
 0x831   : > { %v9807_v28 = vpop.f32.mrb[34].mxu1 }
 0x832   : > { %v2186_v29 = vpop.f32.mrb[35].mxu1 }
 0x839   : > { %v9810_v30 = vpop.f32.mrb[36].mxu1 }
 0x83a   : > { %v2196_v31 = vpop.f32.mrb[37].mxu1 }
 0x841   : > { %v9813_v18 = vpop.f32.mrb[38].mxu1 }
 0x842   : > { %v2206_v33 = vpop.f32.mrb[39].mxu1 }
 0x845   : > { %v9824_v34 = vpop.f32.mrb[40].mxu1 }
 0x846   : > { %v2324_v35 = vmax.f32 %v9804_v24, %v9824_v34  ;;  %v2284_v36 = vpop.f32.mrb[41].mxu1 }
 0x847   : > { %v2323_v37 = vmax.f32 %v2176_v27, %v2284_v36 }
 0x848   : > { %2408 = vst.msk [vmem:[#allocation3 + $0x120] sm:$0xff] %vm2406_vm5, %v2324_v35  ;;  %2375 = vrot.lane.b32.xlu0 %v2324_v35, %s10916_s20 }
 0x849   : > { %2407 = vst.msk [vmem:[#allocation3 + $0x100] sm:$0xff] %vm2406_vm5, %v2323_v37  ;;  %2373 = vrot.lane.b32.xlu1 %v2323_v37, %s10916_s20  ;;  %v9827_v7 = vpop.f32.mrb[42].mxu1 }
 0x84a   : > { %v2326_v11 = vmax.f32 %v9807_v28, %v9827_v7  ;;  %v2294_v10 = vpop.f32.mrb[43].mxu1 }
 0x84b   : > { %v2325_v39 = vmax.f32 %v2186_v29, %v2294_v10 }
 0x84c   : > { %2410 = vst.msk [vmem:[#allocation3 + $0x160] sm:$0xff] %vm2406_vm5, %v2326_v11  ;;  %2379 = vrot.lane.b32.xlu0 %v2326_v11, %s10916_s20 }
 0x84d   : > { %2409 = vst.msk [vmem:[#allocation3 + $0x140] sm:$0xff] %vm2406_vm5, %v2325_v39  ;;  %2377 = vrot.lane.b32.xlu1 %v2325_v39, %s10916_s20  ;;  %v9830_v40 = vpop.f32.mrb[44].mxu1 }
 0x84e   : > { %v2328_v41 = vmax.f32 %v9810_v30, %v9830_v40  ;;  %v2304_v42 = vpop.f32.mrb[45].mxu1 }
 0x84f   : > { %v2327_v43 = vmax.f32 %v2196_v31, %v2304_v42  ;;  %v2466_v34 = vld [vmem:[#allocation3 + $0x120] sm:$0xff] }
 0x850   : > { %2412 = vst.msk [vmem:[#allocation3 + $0x1a0] sm:$0xff] %vm2406_vm5, %v2328_v41  ;;  %2383 = vrot.lane.b32.xlu0 %v2328_v41, %s10916_s20 }
 0x851   : > { %2411 = vst.msk [vmem:[#allocation3 + $0x180] sm:$0xff] %vm2406_vm5, %v2327_v43  ;;  %2381 = vrot.lane.b32.xlu1 %v2327_v43, %s10916_s20  ;;  %v9833_v44 = vpop.f32.mrb[46].mxu1 }
 0x852   : > { %v2330_v45 = vmax.f32 %v9813_v18, %v9833_v44  ;;  %v2314_v46 = vpop.f32.mrb[47].mxu1 }
 0x853   : > { %v2329_v47 = vmax.f32 %v2206_v33, %v2314_v46  ;;  %v2465_v33 = vld [vmem:[#allocation3 + $0x100] sm:$0xff] }
 0x854   : > { %2414 = vst.msk [vmem:[#allocation3 + $0x1e0] sm:$0xff] %vm2406_vm5, %v2330_v45  ;;  %2387 = vrot.lane.b32.xlu0 %v2330_v45, %s10916_s20  ;;  %v2467_v7 = vld [vmem:[#allocation3 + $0x140] sm:$0xff] }
 0x855   : > { %2413 = vst.msk [vmem:[#allocation3 + $0x1c0] sm:$0xff] %vm2406_vm5, %v2329_v47  ;;  %2385 = vrot.lane.b32.xlu1 %v2329_v47, %s10916_s20 }
 0x857   : > { %v2470_v42 = vld [vmem:[#allocation3 + $0x1a0] sm:$0xff] }
 0x858   : > { %2417 = vrot.lane.b32.xlu0 %v2324_v35, %s10917_s16 }
 0x859   : > { %2415 = vrot.lane.b32.xlu1 %v2323_v37, %s10917_s16  ;;  %v10139_v37 = vpack.c.bf16 %v2466_v34, %v2465_v33 }
 0x85c   : > { %2421 = vrot.lane.b32.xlu0 %v2326_v11, %s10917_s16  ;;  %v2468_v11 = vld [vmem:[#allocation3 + $0x160] sm:$0xff] }
 0x85d   : > { %2419 = vrot.lane.b32.xlu1 %v2325_v39, %s10917_s16  ;;  %v10142_v40 = vpack.c.bf16 %v2468_v11, %v2467_v7  ;;  %v2471_v44 = vld [vmem:[#allocation3 + $0x1c0] sm:$0xff] }
 0x860   : > { %2425 = vrot.lane.b32.xlu0 %v2328_v41, %s10917_s16  ;;  %v2469_v41 = vld [vmem:[#allocation3 + $0x180] sm:$0xff] }
 0x861   : > { %2423 = vrot.lane.b32.xlu1 %v2327_v43, %s10917_s16  ;;  %v10145_v43 = vpack.c.bf16 %v2470_v42, %v2469_v41 }
 0x864   : > { %2429 = vrot.lane.b32.xlu0 %v2330_v45, %s10917_s16  ;;  %v2472_v45 = vld [vmem:[#allocation3 + $0x1e0] sm:$0xff] }
 0x865   : > { %2427 = vrot.lane.b32.xlu1 %v2329_v47, %s10917_s16 }
 0x868   : > { %2488 = vperm.xlu0 %10851, %v9244_v48   ;;  %v10148_v48 = vpack.c.bf16 %v2472_v45, %v2471_v44 }
 0x869   : > { %2483 = vperm.xlu1 %10852, %v9243_v49  }
 0x86c   : > { %2498 = vperm.xlu0 %10851, %v9246_v19  }
 0x86d   : > { %2493 = vperm.xlu1 %10852, %v9245_v6  }
 0x870   : > { %2508 = vperm.xlu0 %10851, %v9248_v21  }
 0x871   : > { %2503 = vperm.xlu1 %10852, %v9247_v20  }
 0x874   : > { %2518 = vperm.xlu0 %10851, %v9250_v50  }
 0x875   : > { %2513 = vperm.xlu1 %10852, %v9249_v52  }
 0x8ba   : > { %v2376_v56 = vpop.permute.xlu0 %2375 }
 0x8bb   : > { %2399 = vst.msk [vmem:[#allocation3 + $0x20] sm:$0xff] %vm2397_vm11, %v2376_v56  ;;  %v2374_v58 = vpop.permute.xlu1 %2373 }
 0x8bc   : > { %2398 = vst.msk [vmem:[#allocation3] sm:$0xff] %vm2397_vm11, %v2374_v58  ;;  %v10162_v58 = vpack.c.bf16 %v883_v23, %v10920_v55  ;;  %v9229_v55 = vld [vmem:[%s15603_s6 + $0x190] sm:$0xff] }
 0x8be   : > { %v2380_v14 = vpop.permute.xlu0 %2379 }
 0x8bf   : > { %2401 = vst.msk [vmem:[#allocation3 + $0x60] sm:$0xff] %vm2397_vm11, %v2380_v14  ;;  %v2378_v17 = vpop.permute.xlu1 %2377  ;;  %v9227_v14 = vld [vmem:[%s15603_s6 + $0x180] sm:$0xff] }
 0x8c0   : > { %2400 = vst.msk [vmem:[#allocation3 + $0x40] sm:$0xff] %vm2397_vm11, %v2378_v17  ;;  %v9232_v17 = vld [vmem:[%s15603_s6 + $0x1a8] sm:$0xff] }
 0x8c2   : > { %v2384_v61 = vpop.permute.xlu0 %2383  ;;  %v2458_v62 = vld [vmem:[#allocation3 + $0x20] sm:$0xff] }
 0x8c3   : > { %2403 = vst.msk [vmem:[#allocation3 + $0xa0] sm:$0xff] %vm2397_vm11, %v2384_v61  ;;  %v2382_v32 = vpop.permute.xlu1 %2381  ;;  %v2457_v25 = vld [vmem:[#allocation3] sm:$0xff] }
 0x8c4   : > { %2933 = vst.msk [vmem:[#allocation3 + $0x20] sm:$0xff] %vm15698_vm7, %v12118_v53  ;;  %v10127_v26 = vpack.c.bf16 %v2458_v62, %v2457_v25  ;;  %v9231_v61 = vld [vmem:[%s15603_s6 + $0x1a0] sm:$0xff]  ;;  %v9234_v62 = vld [vmem:[%s15603_s6 + $0x1b8] sm:$0xff]  ;;  %v9236_v25 = vld [vmem:[%s15603_s6 + $0x1c8] sm:$0xff] }
 0x8c5   : > { %2402 = vst.msk [vmem:[#allocation3 + $0x80] sm:$0xff] %vm2397_vm11, %v2382_v32  ;;  %v9233_v32 = vld [vmem:[%s15603_s6 + $0x1b0] sm:$0xff] }
 0x8c6   : > { %2932 = vst.msk [vmem:[#allocation3] sm:$0xff] %vm15699_vm15, %v12118_v53  ;;  %10128 = vmatpush1.bf16.msra.mxu1 %v10127_v26  ;;  %v2388_v1 = vpop.permute.xlu0 %2387  ;;  %v2460_v51 = vld [vmem:[#allocation3 + $0x60] sm:$0xff] }
 0x8c7   : > { %2405 = vst.msk [vmem:[#allocation3 + $0xe0] sm:$0xff] %vm2397_vm11, %v2388_v1  ;;  %v2386_v16 = vpop.permute.xlu1 %2385  ;;  %10129 = vmatprep.subr.bf16.mxu1 %v10918_v54  ;;  %v2459_v59 = vld [vmem:[#allocation3 + $0x40] sm:$0xff]  ;;  %v9238_v1 = vld [vmem:[%s15603_s6 + $0x1d8] sm:$0xff] }
 0x8c8   : > { %2935 = vst.msk [vmem:[#allocation3 + $0x60] sm:$0xff] %vm15700_vm0, %v12118_v53  ;;  %v10130_v60 = vpack.c.bf16 %v2460_v51, %v2459_v59  ;;  %v9235_v26 = vld [vmem:[%s15603_s6 + $0x1c0] sm:$0xff]  ;;  %v9237_v51 = vld [vmem:[%s15603_s6 + $0x1d0] sm:$0xff] }
 0x8c9   : > { %2404 = vst.msk [vmem:[#allocation3 + $0xc0] sm:$0xff] %vm2397_vm11, %v2386_v16  ;;  %vm15708_vm11 = vcmask 523264   ;;  %v9240_v16 = vld [vmem:[%s15603_s6 + $0x1e8] sm:$0xff]  ;;  %v9239_v59 = vld [vmem:[%s15603_s6 + $0x1e0] sm:$0xff] }
 0x8ca   : > { %2934 = vst.msk [vmem:[#allocation3 + $0x40] sm:$0xff] %vm15701_vm8, %v12118_v53  ;;  %10131 = vmatpush1.bf16.msra.mxu1 %v10130_v60  ;;  %v2418_v15 = vpop.permute.xlu0 %2417  ;;  %v2462_v2 = vld [vmem:[#allocation3 + $0xa0] sm:$0xff]  ;;  %vm15709_vm7 = vmmov %vm15708_vm11  ;;  %v9242_v60 = vld [vmem:[%s15603_s6 + $0x1f8] sm:$0xff] }
 0x8cb   : > { %2441 = vst.msk [vmem:[#allocation3 + $0x220] sm:$0xff] %vm2439_vm10, %v2418_v15  ;;  %v2416_v38 = vpop.permute.xlu1 %2415  ;;  %10132 = vmatprep.subr.bf16.mxu1 %v10918_v54  ;;  %vm15710_vm15 = vmmov %vm15709_vm7  ;;  %v9241_v15 = vld [vmem:[%s15603_s6 + $0x1f0] sm:$0xff] }
 0x8cc   : > { %v2461_v24 = vld [vmem:[#allocation3 + $0x80] sm:$0xff]  ;;  %2937 = vst.msk [vmem:[#allocation3 + $0xa0] sm:$0xff] %vm15702_vm2, %v12118_v53  ;;  %vm15711_vm0 = vmmov %vm15709_vm7  ;;  %vm2981_vm2 = vcmask 56320  }
 0x8cd   : > { %2450 = vst.msk [vmem:[#allocation3 + $0x220] sm:$0xff] %vm2448_vm9, %v12118_v53  ;;  %v10133_v27 = vpack.c.bf16 %v2462_v2, %v2461_v24  ;;  %vm15712_vm8 = vmmov %vm15711_vm0 }
 0x8ce   : > { %2440 = vst.msk [vmem:[#allocation3 + $0x200] sm:$0xff] %vm2439_vm10, %v2416_v38  ;;  %v2422_v28 = vpop.permute.xlu0 %2421  ;;  %v2464_v29 = vld [vmem:[#allocation3 + $0xe0] sm:$0xff] }
 0x8cf   : > { %2936 = vst.msk [vmem:[#allocation3 + $0x80] sm:$0xff] %vm15703_vm3, %v12118_v53  ;;  %10134 = vmatpush1.bf16.msra.mxu1 %v10133_v27  ;;  %v2420_v30 = vpop.permute.xlu1 %2419  ;;  %vm2972_vm3 = vcmask 56328  }
 0x8d0   : > { %2449 = vst.msk [vmem:[#allocation3 + $0x200] sm:$0xff] %vm2448_vm9, %v12118_v53  ;;  %10135 = vmatprep.subr.bf16.mxu1 %v10918_v54  ;;  %v2463_v31 = vld [vmem:[#allocation3 + $0xc0] sm:$0xff] }
 0x8d1   : > { %2443 = vst.msk [vmem:[#allocation3 + $0x260] sm:$0xff] %vm2439_vm10, %v2422_v28  ;;  %2442 = vst.msk [vmem:[#allocation3 + $0x240] sm:$0xff] %vm2439_vm10, %v2420_v30  ;;  %v10136_v18 = vpack.c.bf16 %v2464_v29, %v2463_v31 }
 0x8d2   : > { %2939 = vst.msk [vmem:[#allocation3 + $0xe0] sm:$0xff] %vm15704_vm13, %v12118_v53  ;;  %v2426_v35 = vpop.permute.xlu0 %2425  ;;  %vm15716_vm13 = vmmov %vm15705_vm4 }
 0x8d3   : > { %2452 = vst.msk [vmem:[#allocation3 + $0x260] sm:$0xff] %vm2448_vm9, %v12118_v53  ;;  %2451 = vst.msk [vmem:[#allocation3 + $0x240] sm:$0xff] %vm2448_vm9, %v12118_v53  ;;  %10137 = vmatpush1.bf16.msra.mxu1 %v10136_v18  ;;  %v2424_v36 = vpop.permute.xlu1 %2423 }
 0x8d4   : > { %2938 = vst.msk [vmem:[#allocation3 + $0xc0] sm:$0xff] %vm15705_vm4, %v12118_v53  ;;  %10138 = vmatprep.subr.bf16.mxu1 %v10918_v54  ;;  %v2474_v47 = vld [vmem:[#allocation3 + $0x220] sm:$0xff] }
 0x8d5   : > { %2445 = vst.msk [vmem:[#allocation3 + $0x2a0] sm:$0xff] %vm2439_vm10, %v2426_v35  ;;  %2444 = vst.msk [vmem:[#allocation3 + $0x280] sm:$0xff] %vm2439_vm10, %v2424_v36 }
 0x8d6   : > { %2454 = vst.msk [vmem:[#allocation3 + $0x2a0] sm:$0xff] %vm2448_vm9, %v12118_v53  ;;  %2453 = vst.msk [vmem:[#allocation3 + $0x280] sm:$0xff] %vm2448_vm9, %v12118_v53  ;;  %v2430_v10 = vpop.permute.xlu0 %2429 }
 0x8d7   : > { %10140 = vmatpush1.bf16.msra.mxu1 %v10139_v37  ;;  %2447 = vst.msk [vmem:[#allocation3 + $0x2e0] sm:$0xff] %vm2439_vm10, %v2430_v10  ;;  %v2428_v39 = vpop.permute.xlu1 %2427  ;;  %v2473_v46 = vld [vmem:[#allocation3 + $0x200] sm:$0xff] }
 0x8d8   : > { %10141 = vmatprep.subr.bf16.mxu1 %v10918_v54  ;;  %2456 = vst.msk [vmem:[#allocation3 + $0x2e0] sm:$0xff] %vm2448_vm9, %v12118_v53  ;;  %v10151_v49 = vpack.c.bf16 %v2474_v47, %v2473_v46 }
 0x8d9   : > { %2446 = vst.msk [vmem:[#allocation3 + $0x2c0] sm:$0xff] %vm2439_vm10, %v2428_v39  ;;  %vm15713_vm10 = vmmov %vm15711_vm0 }
 0x8da   : > { %2455 = vst.msk [vmem:[#allocation3 + $0x2c0] sm:$0xff] %vm2448_vm9, %v12118_v53  ;;  %v2475_v19 = vld [vmem:[#allocation3 + $0x240] sm:$0xff]  ;;  %vm15714_vm9 = vmmov %vm15711_vm0 }
 0x8db   : > { %10143 = vmatpush1.bf16.msra.mxu1 %v10142_v40  ;;  %v2476_v6 = vld [vmem:[#allocation3 + $0x260] sm:$0xff] }
 0x8dc   : > { %10144 = vmatprep.subr.bf16.mxu1 %v10918_v54  ;;  %v10154_v21 = vpack.c.bf16 %v2476_v6, %v2475_v19 }
 0x8dd   : > { %v2477_v20 = vld [vmem:[#allocation3 + $0x280] sm:$0xff] }
 0x8de   : > { %v2478_v50 = vld [vmem:[#allocation3 + $0x2a0] sm:$0xff] }
 0x8df   : > { %10146 = vmatpush1.bf16.msra.mxu1 %v10145_v43  ;;  %v10157_v52 = vpack.c.bf16 %v2478_v50, %v2477_v20  ;;  %v2480_v22 = vld [vmem:[#allocation3 + $0x2e0] sm:$0xff] }
 0x8e0   : > { %10147 = vmatprep.subr.bf16.mxu1 %v10918_v54 }
 0x8e1   : > { %v2479_v5 = vld [vmem:[#allocation3 + $0x2c0] sm:$0xff] }
 0x8e2   : > { %v10160_v56 = vpack.c.bf16 %v2480_v22, %v2479_v5 }
 0x8e3   : > { %10149 = vmatpush1.bf16.msra.mxu1 %v10148_v48 }
 0x8e4   : > { %10150 = vmatprep.subr.bf16.mxu1 %v10918_v54 }
 0x8e7   : > { %10152 = vmatpush1.bf16.msra.mxu1 %v10151_v49  ;;  %v2489_v29 = vpop.permute.xlu0 %2488 }
 0x8e8   : > { %10153 = vmatprep.subr.bf16.mxu1 %v10918_v54  ;;  %v2484_v2 = vpop.permute.xlu1 %2483 }
 0x8eb   : > { %10155 = vmatpush1.bf16.msra.mxu1 %v10154_v21  ;;  %v2499_v11 = vpop.permute.xlu0 %2498 }
 0x8ec   : > { %10156 = vmatprep.subr.bf16.mxu1 %v10918_v54  ;;  %v2494_v34 = vpop.permute.xlu1 %2493 }
 0x8ef   : > { %10158 = vmatpush1.bf16.msra.mxu1 %v10157_v52  ;;  %v2509_v47 = vpop.permute.xlu0 %2508 }
 0x8f0   : > { %10159 = vmatprep.subr.bf16.mxu1 %v10918_v54  ;;  %v2504_v42 = vpop.permute.xlu1 %2503 }
 0x8f3   : > { %10161 = vmatpush1.bf16.msra.mxu1 %v10160_v56  ;;  %v2519_v22 = vpop.permute.xlu0 %2518 }
 0x8f4   : > { %10164 = vmatprep.subr.msk.bf16.mxu1 %vm10163_vm1, %v10162_v58  ;;  %v2514_v21 = vpop.permute.xlu1 %2513 }
 0x8f6   : > { %2610 = vmatmul.mubr.f32.vlgmr.msra.gmra.mrb[48].mxu1 %v9227_v14 }
 0x8f7   : > { %9252 = vmatprep.mubr.msk.f32.mxu1 %vm15708_vm11, %v9230_v3  ;;  %10167 = vmatpush3.bf16.msk.msra.mxu1 %vm10163_vm1, %v10162_v58  ;;  %vm15719_vm1 = vmmov %vm15705_vm4 }
 0x8f8   : > { %10174 = vmatprep.subr.bf16.mxu1 %v10918_v54  ;;  %vm15720_vm11 = vmmov %vm15719_vm1 }
 0x8fa   : > { %2615 = vmatmul.mubr.f32.gmra.mrb[50].mxu1 %v9229_v55 }
 0x8fb   : > { %9253 = vmatprep.mubr.msk.f32.mxu1 %vm15709_vm7, %v9232_v17  ;;  %vm3014_vm7 = vcmask 48128  }
 0x8fe   : > { %2620 = vmatmul.mubr.f32.gmra.mrb[52].mxu1 %v9231_v61 }
 0x8ff   : > { %9254 = vmatprep.mubr.msk.f32.mxu1 %vm15710_vm15, %v9234_v62  ;;  %vm3023_vm15 = vcmask 56368  }
 0x902   : > { %2625 = vmatmul.mubr.f32.gmra.mrb[54].mxu1 %v9233_v32 }
 0x903   : > { %9255 = vmatprep.mubr.msk.f32.mxu1 %vm15711_vm0, %v9236_v25 }
 0x906   : > { %2630 = vmatmul.mubr.f32.gmra.mrb[56].mxu1 %v9235_v26 }
 0x907   : > { %9256 = vmatprep.mubr.msk.f32.mxu1 %vm15712_vm8, %v9238_v1 }
 0x90a   : > { %2635 = vmatmul.mubr.f32.gmra.mrb[58].mxu1 %v9237_v51 }
 0x90b   : > { %9257 = vmatprep.mubr.msk.f32.mxu1 %vm15713_vm10, %v9240_v16 }
 0x90e   : > { %2640 = vmatmul.mubr.f32.gmra.mrb[60].mxu1 %v9239_v59 }
 0x90f   : > { %9258 = vmatprep.mubr.msk.f32.mxu1 %vm15714_vm9, %v9242_v60 }
 0x912   : > { %2645 = vmatmul.mubr.f32.gmra.mrb[62].mxu1 %v9241_v15 }
 0x9c9   : > { %v2611_v38 = vpop.f32.mrb[48].mxu1 }
 0x9ca   : > { %v2612_v24 = vadd.f32 %v2611_v38, %v2484_v2  ;;  %v2613_v27 = vpop.f32.mrb[49].mxu1 }
 0x9cc   : > { %v2650_v28 = vmax.f32 %v2612_v24, 0.0 }
 0x9cd   : > { %v2616_v30 = vpop.f32.mrb[50].mxu1 }
 0x9ce   : > { %v2617_v31 = vadd.f32 %v2616_v30, %v2489_v29  ;;  %v2618_v18 = vpop.f32.mrb[51].mxu1  ;;  %9838 = vmatprep.mubr.msk.f32.mxu1 %vm2406_vm5, %v2650_v28  ;;  %9854 = vmatprep.mubr.msk.f32.mxu0 %vm2406_vm5, %v2650_v28 }
 0x9d0   : > { %v2651_v33 = vmax.f32 %v2617_v31, 0.0 }
 0x9d1   : > { %v2621_v35 = vpop.f32.mrb[52].mxu1 }
 0x9d2   : > { %v2622_v36 = vadd.f32 %v2621_v35, %v2494_v34  ;;  %v2623_v37 = vpop.f32.mrb[53].mxu1  ;;  %9839 = vmatmul.mubr.msk.f32.vlgmr.msra.gmra.mrb[64].mxu1 %vm2406_vm5, %v2651_v33  ;;  %9855 = vmatmul.mubr.msk.f32.vlgmr.msra.gmra.mrb[48].mxu0 %vm2406_vm5, %v2651_v33  ;;  %v9296_v34 = vld [vmem:[%s15604_s7 + $0x108] sm:$0xff]  ;;  %v9295_v35 = vld [vmem:[%s15604_s7 + $0x100] sm:$0xff] }
 0x9d3   : > { %v9297_v37 = vld [vmem:[%s15604_s7 + $0x110] sm:$0xff] }
 0x9d4   : > { %v2652_v7 = vmax.f32 %v2622_v36, 0.0  ;;  %v9298_v36 = vld [vmem:[%s15604_s7 + $0x118] sm:$0xff] }
 0x9d5   : > { %v2626_v10 = vpop.f32.mrb[54].mxu1 }
 0x9d6   : > { %v2627_v39 = vadd.f32 %v2626_v10, %v2499_v11  ;;  %v2628_v40 = vpop.f32.mrb[55].mxu1  ;;  %9841 = vmatprep.mubr.msk.f32.mxu1 %vm2406_vm5, %v2652_v7  ;;  %9857 = vmatprep.mubr.msk.f32.mxu0 %vm2406_vm5, %v2652_v7  ;;  %v9300_v7 = vld [vmem:[%s15604_s7 + $0x128] sm:$0xff]  ;;  %v9299_v11 = vld [vmem:[%s15604_s7 + $0x120] sm:$0xff]  ;;  %v9302_v10 = vld [vmem:[%s15604_s7 + $0x138] sm:$0xff] }
 0x9d7   : > { %v9280_v40 = vld [vmem:[%s15603_s6 + $0x208] sm:$0xff] }
 0x9d8   : > { %v2653_v41 = vmax.f32 %v2627_v39, 0.0  ;;  %v9301_v39 = vld [vmem:[%s15604_s7 + $0x130] sm:$0xff] }
 0x9d9   : > { %v2631_v43 = vpop.f32.mrb[56].mxu1 }
 0x9da   : > { %v2632_v44 = vadd.f32 %v2631_v43, %v2504_v42  ;;  %v2633_v45 = vpop.f32.mrb[57].mxu1  ;;  %9842 = vmatmul.mubr.msk.f32.gmra.mrb[66].mxu1 %vm2406_vm5, %v2653_v41  ;;  %9858 = vmatmul.mubr.msk.f32.gmra.mrb[50].mxu0 %vm2406_vm5, %v2653_v41 }
 0x9dc   : > { %v2654_v46 = vmax.f32 %v2632_v44, 0.0 }
 0x9dd   : > { %v2636_v48 = vpop.f32.mrb[58].mxu1 }
 0x9de   : > { %v2637_v49 = vadd.f32 %v2636_v48, %v2509_v47  ;;  %v2638_v19 = vpop.f32.mrb[59].mxu1  ;;  %9844 = vmatprep.mubr.msk.f32.mxu1 %vm2406_vm5, %v2654_v46  ;;  %9860 = vmatprep.mubr.msk.f32.mxu0 %vm2406_vm5, %v2654_v46 }
 0x9e0   : > { %v2655_v6 = vmax.f32 %v2637_v49, 0.0 }
 0x9e1   : > { %v2641_v20 = vpop.f32.mrb[60].mxu1 }
 0x9e2   : > { %v2642_v50 = vadd.f32 %v2641_v20, %v2514_v21  ;;  %v2643_v52 = vpop.f32.mrb[61].mxu1  ;;  %9845 = vmatmul.mubr.msk.f32.gmra.mrb[68].mxu1 %vm2406_vm5, %v2655_v6  ;;  %9861 = vmatmul.mubr.msk.f32.gmra.mrb[52].mxu0 %vm2406_vm5, %v2655_v6 }
 0x9e4   : > { %v2656_v5 = vmax.f32 %v2642_v50, 0.0 }
 0x9e5   : > { %v2646_v23 = vpop.f32.mrb[62].mxu1 }
 0x9e6   : > { %v2647_v56 = vadd.f32 %v2646_v23, %v2519_v22  ;;  %v2648_v58 = vpop.f32.mrb[63].mxu1  ;;  %9847 = vmatprep.mubr.msk.f32.mxu1 %vm2406_vm5, %v2656_v5  ;;  %9863 = vmatprep.mubr.msk.f32.mxu0 %vm2406_vm5, %v2656_v5 }
 0x9e8   : > { %v2657_v14 = vmax.f32 %v2647_v56, 0.0 }
 0x9ea   : > { %9848 = vmatmul.mubr.msk.f32.gmra.mrb[70].mxu1 %vm2406_vm5, %v2657_v14  ;;  %9864 = vmatmul.mubr.msk.f32.gmra.mrb[54].mxu0 %vm2406_vm5, %v2657_v14  ;;  %vm15715_vm5 = vmmov %vm15711_vm0 }
 0x9eb   : > { %9303 = vmatprep.mubr.msk.f32.mxu1 %vm15715_vm5, %v9280_v40  ;;  %vm15721_vm0 = vmmov %vm15719_vm1  ;;  %v9282_v40 = vld [vmem:[%s15603_s6 + $0x218] sm:$0xff] }
 0x9ec   : > { %vm15722_vm8 = vmmov %vm15721_vm0 }
 0x9ed   : > { %vm15723_vm10 = vmmov %vm15715_vm5 }
 0x9ee   : > { %vm15724_vm9 = vmmov %vm15715_vm5 }
 0xaa5   : > { %v9840_v3 = vpop.f32.mrb[64].mxu1  ;;  %v9856_v55 = vpop.f32.mrb[48].mxu0 }
 0xaa6   : > { %v2899_v17 = vmax.f32 %v9840_v3, %v9856_v55  ;;  %v2751_v61 = vpop.f32.mrb[65].mxu1  ;;  %v2859_v62 = vpop.f32.mrb[49].mxu0 }
 0xaa7   : > { %v2898_v32 = vmax.f32 %v2751_v61, %v2859_v62 }
 0xaa8   : > { %2983 = vst.msk [vmem:[#allocation3 + $0x120] sm:$0xff] %vm2981_vm2, %v2899_v17  ;;  %2950 = vrot.lane.b32.xlu0 %v2899_v17, %s10916_s20 }
 0xaa9   : > { %2982 = vst.msk [vmem:[#allocation3 + $0x100] sm:$0xff] %vm2981_vm2, %v2898_v32  ;;  %2948 = vrot.lane.b32.xlu1 %v2898_v32, %s10916_s20 }
 0xaad   : > { %v9843_v25 = vpop.f32.mrb[66].mxu1  ;;  %v9859_v26 = vpop.f32.mrb[50].mxu0 }
 0xaae   : > { %v2901_v1 = vmax.f32 %v9843_v25, %v9859_v26  ;;  %v2761_v51 = vpop.f32.mrb[67].mxu1  ;;  %v2869_v16 = vpop.f32.mrb[51].mxu0 }
 0xaaf   : > { %v2900_v59 = vmax.f32 %v2761_v51, %v2869_v16  ;;  %v3041_v62 = vld [vmem:[#allocation3 + $0x120] sm:$0xff] }
 0xab0   : > { %2985 = vst.msk [vmem:[#allocation3 + $0x160] sm:$0xff] %vm2981_vm2, %v2901_v1  ;;  %2954 = vrot.lane.b32.xlu0 %v2901_v1, %s10916_s20  ;;  %v3040_v61 = vld [vmem:[#allocation3 + $0x100] sm:$0xff] }
 0xab1   : > { %2984 = vst.msk [vmem:[#allocation3 + $0x140] sm:$0xff] %vm2981_vm2, %v2900_v59  ;;  %2952 = vrot.lane.b32.xlu1 %v2900_v59, %s10916_s20  ;;  %v10187_v26 = vpack.c.bf16 %v3041_v62, %v3040_v61 }
 0xab5   : > { %v9846_v60 = vpop.f32.mrb[68].mxu1  ;;  %v9862_v15 = vpop.f32.mrb[52].mxu0 }
 0xab6   : > { %v2903_v2 = vmax.f32 %v9846_v60, %v9862_v15  ;;  %v2771_v38 = vpop.f32.mrb[69].mxu1  ;;  %v2879_v24 = vpop.f32.mrb[53].mxu0 }
 0xab7   : > { %v2902_v27 = vmax.f32 %v2771_v38, %v2879_v24  ;;  %v3043_v51 = vld [vmem:[#allocation3 + $0x160] sm:$0xff] }
 0xab8   : > { %2987 = vst.msk [vmem:[#allocation3 + $0x1a0] sm:$0xff] %vm2981_vm2, %v2903_v2  ;;  %2958 = vrot.lane.b32.xlu0 %v2903_v2, %s10916_s20 }
 0xab9   : > { %2986 = vst.msk [vmem:[#allocation3 + $0x180] sm:$0xff] %vm2981_vm2, %v2902_v27  ;;  %2956 = vrot.lane.b32.xlu1 %v2902_v27, %s10916_s20 }
 0xabd   : > { %v9849_v28 = vpop.f32.mrb[70].mxu1  ;;  %v9865_v29 = vpop.f32.mrb[54].mxu0 }
 0xabe   : > { %v2905_v30 = vmax.f32 %v9849_v28, %v9865_v29  ;;  %v2781_v31 = vpop.f32.mrb[71].mxu1  ;;  %v2889_v18 = vpop.f32.mrb[55].mxu0 }
 0xabf   : > { %v2904_v33 = vmax.f32 %v2781_v31, %v2889_v18 }
 0xac0   : > { %2989 = vst.msk [vmem:[#allocation3 + $0x1e0] sm:$0xff] %vm2981_vm2, %v2905_v30  ;;  %2962 = vrot.lane.b32.xlu0 %v2905_v30, %s10916_s20  ;;  %v3044_v15 = vld [vmem:[#allocation3 + $0x180] sm:$0xff] }
 0xac1   : > { %2988 = vst.msk [vmem:[#allocation3 + $0x1c0] sm:$0xff] %vm2981_vm2, %v2904_v33  ;;  %2960 = vrot.lane.b32.xlu1 %v2904_v33, %s10916_s20 }
 0xac4   : > { %2992 = vrot.lane.b32.xlu0 %v2899_v17, %s10917_s16 }
 0xac5   : > { %2990 = vrot.lane.b32.xlu1 %v2898_v32, %s10917_s16 }
 0xac8   : > { %2996 = vrot.lane.b32.xlu0 %v2901_v1, %s10917_s16  ;;  %v3042_v1 = vld [vmem:[#allocation3 + $0x140] sm:$0xff] }
 0xac9   : > { %2994 = vrot.lane.b32.xlu1 %v2900_v59, %s10917_s16  ;;  %v10190_v60 = vpack.c.bf16 %v3043_v51, %v3042_v1  ;;  %v3046_v24 = vld [vmem:[#allocation3 + $0x1c0] sm:$0xff] }
 0xacc   : > { %3000 = vrot.lane.b32.xlu0 %v2903_v2, %s10917_s16  ;;  %v3045_v2 = vld [vmem:[#allocation3 + $0x1a0] sm:$0xff] }
 0xacd   : > { %2998 = vrot.lane.b32.xlu1 %v2902_v27, %s10917_s16  ;;  %v10193_v38 = vpack.c.bf16 %v3045_v2, %v3044_v15  ;;  %v3047_v27 = vld [vmem:[#allocation3 + $0x1e0] sm:$0xff] }
 0xad0   : > { %3004 = vrot.lane.b32.xlu0 %v2905_v30, %s10917_s16  ;;  %v10196_v30 = vpack.c.bf16 %v3047_v27, %v3046_v24 }
 0xad1   : > { %3002 = vrot.lane.b32.xlu1 %v2904_v33, %s10917_s16 }
 0xad4   : > { %3063 = vperm.xlu0 %10851, %v9296_v34  }
 0xad5   : > { %3058 = vperm.xlu1 %10852, %v9295_v35  }
 0xad8   : > { %3073 = vperm.xlu0 %10851, %v9298_v36  }
 0xad9   : > { %3068 = vperm.xlu1 %10852, %v9297_v37  }
 0xadc   : > { %3083 = vperm.xlu0 %10851, %v9300_v7  }
 0xadd   : > { %3078 = vperm.xlu1 %10852, %v9299_v11  }
 0xae0   : > { %3093 = vperm.xlu0 %10851, %v9302_v10  }
 0xae1   : > { %3088 = vperm.xlu1 %10852, %v9301_v39   ;;  %v9279_v39 = vld [vmem:[%s15603_s6 + $0x200] sm:$0xff] }
 0xb1a   : > { %v2951_v41 = vpop.permute.xlu0 %2950 }
 0xb1b   : > { %2974 = vst.msk [vmem:[#allocation3 + $0x20] sm:$0xff] %vm2972_vm3, %v2951_v41  ;;  %v2949_v42 = vpop.permute.xlu1 %2948  ;;  %v9281_v41 = vld [vmem:[%s15603_s6 + $0x210] sm:$0xff] }
 0xb1c   : > { %2973 = vst.msk [vmem:[#allocation3] sm:$0xff] %vm2972_vm3, %v2949_v42  ;;  %v9284_v42 = vld [vmem:[%s15603_s6 + $0x228] sm:$0xff] }
 0xb22   : > { %v2955_v43 = vpop.permute.xlu0 %2954  ;;  %v3033_v44 = vld [vmem:[#allocation3 + $0x20] sm:$0xff] }
 0xb23   : > { %2976 = vst.msk [vmem:[#allocation3 + $0x60] sm:$0xff] %vm2972_vm3, %v2955_v43  ;;  %v2953_v45 = vpop.permute.xlu1 %2952  ;;  %v3032_v46 = vld [vmem:[#allocation3] sm:$0xff] }
 0xb24   : > { %3508 = vst.msk [vmem:[#allocation3 + $0x20] sm:$0xff] %vm15716_vm13, %v12118_v53  ;;  %v10175_v47 = vpack.c.bf16 %v3033_v44, %v3032_v46  ;;  %v9283_v43 = vld [vmem:[%s15603_s6 + $0x220] sm:$0xff]  ;;  %v9286_v44 = vld [vmem:[%s15603_s6 + $0x238] sm:$0xff]  ;;  %v9288_v46 = vld [vmem:[%s15603_s6 + $0x248] sm:$0xff] }
 0xb25   : > { %2975 = vst.msk [vmem:[#allocation3 + $0x40] sm:$0xff] %vm2972_vm3, %v2953_v45  ;;  %v9285_v45 = vld [vmem:[%s15603_s6 + $0x230] sm:$0xff] }
 0xb26   : > { %3507 = vst.msk [vmem:[#allocation3] sm:$0xff] %vm15705_vm4, %v12118_v53  ;;  %10176 = vmatpush1.bf16.msra.mxu1 %v10175_v47  ;;  %v9287_v47 = vld [vmem:[%s15603_s6 + $0x240] sm:$0xff] }
 0xb27   : > { %10177 = vmatprep.subr.bf16.mxu1 %v10918_v54 }
 0xb2a   : > { %v2959_v48 = vpop.permute.xlu0 %2958  ;;  %v3035_v49 = vld [vmem:[#allocation3 + $0x60] sm:$0xff] }
 0xb2b   : > { %2978 = vst.msk [vmem:[#allocation3 + $0xa0] sm:$0xff] %vm2972_vm3, %v2959_v48  ;;  %v2957_v19 = vpop.permute.xlu1 %2956  ;;  %v9290_v48 = vld [vmem:[%s15603_s6 + $0x258] sm:$0xff] }
 0xb2c   : > { %v3034_v6 = vld [vmem:[#allocation3 + $0x40] sm:$0xff]  ;;  %3510 = vst.msk [vmem:[#allocation3 + $0x60] sm:$0xff] %vm15717_vm6, %v12118_v53 }
 0xb2d   : > { %2977 = vst.msk [vmem:[#allocation3 + $0x80] sm:$0xff] %vm2972_vm3, %v2957_v19  ;;  %v10178_v21 = vpack.c.bf16 %v3035_v49, %v3034_v6  ;;  %v9289_v49 = vld [vmem:[%s15603_s6 + $0x250] sm:$0xff]  ;;  %v9292_v19 = vld [vmem:[%s15603_s6 + $0x268] sm:$0xff]  ;;  %v9291_v6 = vld [vmem:[%s15603_s6 + $0x260] sm:$0xff] }
 0xb2e   : > { %3509 = vst.msk [vmem:[#allocation3 + $0x40] sm:$0xff] %vm15718_vm12, %v12118_v53  ;;  %vm15729_vm12 = vcmp.eq.s32.totalorder %v11219_v0, %v11225_v4 }
 0xb2f   : > { %10179 = vmatpush1.bf16.msra.mxu1 %v10178_v21  ;;  %v9294_v21 = vld [vmem:[%s15603_s6 + $0x278] sm:$0xff] }
 0xb30   : > { %10180 = vmatprep.subr.bf16.mxu1 %v10918_v54 }
 0xb32   : > { %v2963_v20 = vpop.permute.xlu0 %2962  ;;  %v3037_v50 = vld [vmem:[#allocation3 + $0xa0] sm:$0xff] }
 0xb33   : > { %2980 = vst.msk [vmem:[#allocation3 + $0xe0] sm:$0xff] %vm2972_vm3, %v2963_v20  ;;  %v2961_v52 = vpop.permute.xlu1 %2960  ;;  %v9293_v20 = vld [vmem:[%s15603_s6 + $0x270] sm:$0xff] }
 0xb34   : > { %v3036_v5 = vld [vmem:[#allocation3 + $0x80] sm:$0xff]  ;;  %3512 = vst.msk [vmem:[#allocation3 + $0xa0] sm:$0xff] %vm15719_vm1, %v12118_v53  ;;  %vm15730_vm1 = vcmp.eq.s32.totalorder %v11219_v0, %v11470_v57 }
 0xb35   : > { %2979 = vst.msk [vmem:[#allocation3 + $0xc0] sm:$0xff] %vm2972_vm3, %v2961_v52  ;;  %v10181_v22 = vpack.c.bf16 %v3037_v50, %v3036_v5  ;;  %vm15725_vm3 = vmmov %vm15715_vm5  ;;  %v882_v50 = vsel %vm15729_vm12, 1.0, %v12118_v53  ;;  %v915_v52 = vsel %vm15730_vm1, 1.0, %v12118_v53 }
 0xb36   : > { %3511 = vst.msk [vmem:[#allocation3 + $0x80] sm:$0xff] %vm15720_vm11, %v12118_v53  ;;  %v2993_v23 = vpop.permute.xlu0 %2992  ;;  %vm15726_vm13 = vmmov %vm15725_vm3  ;;  %9866 = vmatprep.subr.msk.mxu0 %vm2106_vm14, %v882_v50  ;;  %vm15732_vm11 = vcmask 1042432  }
 0xb37   : > { %10182 = vmatpush1.bf16.msra.mxu1 %v10181_v22  ;;  %3016 = vst.msk [vmem:[#allocation3 + $0x220] sm:$0xff] %vm3014_vm7, %v2993_v23  ;;  %v2991_v56 = vpop.permute.xlu1 %2990  ;;  %vm15727_vm4 = vmmov %vm15725_vm3  ;;  %9867 = vmatpush3.msk.msra.mxu0 %vm2106_vm14, %v882_v50 }
 0xb38   : > { %10183 = vmatprep.subr.bf16.mxu1 %v10918_v54  ;;  %3025 = vst.msk [vmem:[#allocation3 + $0x220] sm:$0xff] %vm3023_vm15, %v12118_v53  ;;  %vm15728_vm6 = vmmov %vm15725_vm3  ;;  %9880 = vmatprep.subr.msk.mxu0 %vm2106_vm14, %v915_v52 }
 0xb39   : > { %3015 = vst.msk [vmem:[#allocation3 + $0x200] sm:$0xff] %vm3014_vm7, %v2991_v56 }
 0xb3a   : > { %3024 = vst.msk [vmem:[#allocation3 + $0x200] sm:$0xff] %vm3023_vm15, %v12118_v53  ;;  %v2997_v58 = vpop.permute.xlu0 %2996  ;;  %v3039_v14 = vld [vmem:[#allocation3 + $0xe0] sm:$0xff] }
 0xb3b   : > { %3018 = vst.msk [vmem:[#allocation3 + $0x260] sm:$0xff] %vm3014_vm7, %v2997_v58  ;;  %v2995_v3 = vpop.permute.xlu1 %2994 }
 0xb3c   : > { %v3038_v55 = vld [vmem:[#allocation3 + $0xc0] sm:$0xff]  ;;  %3514 = vst.msk [vmem:[#allocation3 + $0xe0] sm:$0xff] %vm15721_vm0, %v12118_v53  ;;  %vm15735_vm0 = vmmov %vm15725_vm3 }
 0xb3d   : > { %3027 = vst.msk [vmem:[#allocation3 + $0x260] sm:$0xff] %vm3023_vm15, %v12118_v53  ;;  %v10184_v17 = vpack.c.bf16 %v3039_v14, %v3038_v55 }
 0xb3e   : > { %3017 = vst.msk [vmem:[#allocation3 + $0x240] sm:$0xff] %vm3014_vm7, %v2995_v3  ;;  %v3001_v32 = vpop.permute.xlu0 %3000 }
 0xb3f   : > { %3513 = vst.msk [vmem:[#allocation3 + $0xc0] sm:$0xff] %vm15722_vm8, %v12118_v53  ;;  %10185 = vmatpush1.bf16.msra.mxu1 %v10184_v17  ;;  %v2999_v25 = vpop.permute.xlu1 %2998  ;;  %v3049_v29 = vld [vmem:[#allocation3 + $0x220] sm:$0xff]  ;;  %vm3547_vm8 = vcmask 23560  }
 0xb40   : > { %3026 = vst.msk [vmem:[#allocation3 + $0x240] sm:$0xff] %vm3023_vm15, %v12118_v53  ;;  %10186 = vmatprep.subr.bf16.mxu1 %v10918_v54 }
 0xb41   : > { %3020 = vst.msk [vmem:[#allocation3 + $0x2a0] sm:$0xff] %vm3014_vm7, %v3001_v32  ;;  %3019 = vst.msk [vmem:[#allocation3 + $0x280] sm:$0xff] %vm3014_vm7, %v2999_v25  ;;  %v3048_v28 = vld [vmem:[#allocation3 + $0x200] sm:$0xff] }
 0xb42   : > { %3029 = vst.msk [vmem:[#allocation3 + $0x2a0] sm:$0xff] %vm3023_vm15, %v12118_v53  ;;  %3028 = vst.msk [vmem:[#allocation3 + $0x280] sm:$0xff] %vm3023_vm15, %v12118_v53  ;;  %v3005_v16 = vpop.permute.xlu0 %3004  ;;  %v10199_v31 = vpack.c.bf16 %v3049_v29, %v3048_v28 }
 0xb43   : > { %10188 = vmatpush1.bf16.msra.mxu1 %v10187_v26  ;;  %3022 = vst.msk [vmem:[#allocation3 + $0x2e0] sm:$0xff] %vm3014_vm7, %v3005_v16  ;;  %v3003_v59 = vpop.permute.xlu1 %3002 }
 0xb44   : > { %10189 = vmatprep.subr.bf16.mxu1 %v10918_v54  ;;  %3031 = vst.msk [vmem:[#allocation3 + $0x2e0] sm:$0xff] %vm3023_vm15, %v12118_v53  ;;  %v3051_v33 = vld [vmem:[#allocation3 + $0x260] sm:$0xff] }
 0xb45   : > { %3021 = vst.msk [vmem:[#allocation3 + $0x2c0] sm:$0xff] %vm3014_vm7, %v3003_v59  ;;  %vm15733_vm7 = vmmov %vm15732_vm11 }
 0xb46   : > { %3030 = vst.msk [vmem:[#allocation3 + $0x2c0] sm:$0xff] %vm3023_vm15, %v12118_v53 }
 0xb47   : > { %10191 = vmatpush1.bf16.msra.mxu1 %v10190_v60  ;;  %v3050_v18 = vld [vmem:[#allocation3 + $0x240] sm:$0xff] }
 0xb48   : > { %10192 = vmatprep.subr.bf16.mxu1 %v10918_v54  ;;  %v10202_v34 = vpack.c.bf16 %v3051_v33, %v3050_v18 }
 0xb49   : > { %v3052_v35 = vld [vmem:[#allocation3 + $0x280] sm:$0xff] }
 0xb4a   : > { %v3053_v36 = vld [vmem:[#allocation3 + $0x2a0] sm:$0xff] }
 0xb4b   : > { %10194 = vmatpush1.bf16.msra.mxu1 %v10193_v38  ;;  %v10205_v37 = vpack.c.bf16 %v3053_v36, %v3052_v35  ;;  %v3055_v11 = vld [vmem:[#allocation3 + $0x2e0] sm:$0xff] }
 0xb4c   : > { %10195 = vmatprep.subr.bf16.mxu1 %v10918_v54 }
 0xb4d   : > { %v3054_v7 = vld [vmem:[#allocation3 + $0x2c0] sm:$0xff] }
 0xb4e   : > { %v10208_v10 = vpack.c.bf16 %v3055_v11, %v3054_v7 }
 0xb4f   : > { %10197 = vmatpush1.bf16.msra.mxu1 %v10196_v30 }
 0xb50   : > { %10198 = vmatprep.subr.bf16.mxu1 %v10918_v54 }
 0xb53   : > { %10200 = vmatpush1.bf16.msra.mxu1 %v10199_v31  ;;  %v3064_v14 = vpop.permute.xlu0 %3063 }
 0xb54   : > { %10201 = vmatprep.subr.bf16.mxu1 %v10918_v54  ;;  %v3059_v5 = vpop.permute.xlu1 %3058 }
 0xb57   : > { %10203 = vmatpush1.bf16.msra.mxu1 %v10202_v34  ;;  %v3074_v53 = vpop.permute.xlu0 %3073 }
 0xb58   : > { %10204 = vmatprep.subr.bf16.mxu1 %v10918_v54  ;;  %v3069_v61 = vpop.permute.xlu1 %3068 }
 0xb5b   : > { %10206 = vmatpush1.bf16.msra.mxu1 %v10205_v37  ;;  %v3084_v24 = vpop.permute.xlu0 %3083 }
 0xb5c   : > { %10207 = vmatprep.subr.bf16.mxu1 %v10918_v54  ;;  %v3079_v59 = vpop.permute.xlu1 %3078 }
 0xb5f   : > { %10209 = vmatpush1.bf16.msra.mxu1 %v10208_v10  ;;  %v3094_v36 = vpop.permute.xlu0 %3093 }
 0xb60   : > { %v3089_v31 = vpop.permute.xlu1 %3088 }
 0xb62   : > { %3185 = vmatmul.mubr.f32.vlgmr.msra.gmra.mrb[72].mxu1 %v9279_v39 }
 0xb63   : > { %9304 = vmatprep.mubr.msk.f32.mxu1 %vm15723_vm10, %v9282_v40  ;;  %vm15736_vm10 = vcmask 7168  }
 0xb66   : > { %3190 = vmatmul.mubr.f32.gmra.mrb[74].mxu1 %v9281_v41 }
 0xb67   : > { %9305 = vmatprep.mubr.msk.f32.mxu1 %vm15724_vm9, %v9284_v42  ;;  %vm15737_vm9 = vmmov %vm15736_vm10 }
 0xb6a   : > { %3195 = vmatmul.mubr.f32.gmra.mrb[76].mxu1 %v9283_v43 }
 0xb6b   : > { %9306 = vmatprep.mubr.msk.f32.mxu1 %vm15715_vm5, %v9286_v44  ;;  %vm15738_vm5 = vmmov %vm15737_vm9 }
 0xb6e   : > { %3200 = vmatmul.mubr.f32.gmra.mrb[78].mxu1 %v9285_v45 }
 0xb6f   : > { %9307 = vmatprep.mubr.msk.f32.mxu1 %vm15725_vm3, %v9288_v46  ;;  %vm15739_vm3 = vmmov %vm15738_vm5 }
 0xb70   : > { %vm15741_vm12 = vmmov %vm15739_vm3 }
 0xb71   : > { %vm15742_vm1 = vmmov %vm15739_vm3 }
 0xb72   : > { %3205 = vmatmul.mubr.f32.gmra.mrb[80].mxu1 %v9287_v47 }
 0xb73   : > { %9308 = vmatprep.mubr.msk.f32.mxu1 %vm15726_vm13, %v9290_v48  ;;  %vm3589_vm13 = vcmask 15360  }
 0xb76   : > { %3210 = vmatmul.mubr.f32.gmra.mrb[82].mxu1 %v9289_v49 }
 0xb77   : > { %9309 = vmatprep.mubr.msk.f32.mxu1 %vm15727_vm4, %v9292_v19  ;;  %vm3598_vm4 = vcmask 23568  }
 0xb7a   : > { %3215 = vmatmul.mubr.f32.gmra.mrb[84].mxu1 %v9291_v6 }
 0xb7b   : > { %9310 = vmatprep.mubr.msk.f32.mxu1 %vm15728_vm6, %v9294_v21  ;;  %vm15740_vm6 = vmmov %vm15739_vm3 }
 0xb7e   : > { %3220 = vmatmul.mubr.f32.gmra.mrb[86].mxu1 %v9293_v20 }
 0xc35   : > { %v3186_v22 = vpop.f32.mrb[72].mxu1 }
 0xc36   : > { %v3187_v23 = vadd.f32 %v3186_v22, %v3059_v5  ;;  %v3188_v56 = vpop.f32.mrb[73].mxu1 }
 0xc38   : > { %v3225_v58 = vmax.f32 %v3187_v23, 0.0 }
 0xc39   : > { %v3191_v3 = vpop.f32.mrb[74].mxu1 }
 0xc3a   : > { %v3192_v4 = vadd.f32 %v3191_v3, %v3064_v14  ;;  %v3193_v55 = vpop.f32.mrb[75].mxu1  ;;  %9868 = vmatprep.mubr.msk.f32.mxu0 %vm2981_vm2, %v3225_v58 }
 0xc3b   : > { %v9345_v55 = vld [vmem:[%s15604_s7 + $0x140] sm:$0xff] }
 0xc3c   : > { %v3226_v17 = vmax.f32 %v3192_v4, 0.0  ;;  %v9346_v4 = vld [vmem:[%s15604_s7 + $0x148] sm:$0xff] }
 0xc3d   : > { %v3196_v62 = vpop.f32.mrb[76].mxu1 }
 0xc3e   : > { %v3197_v32 = vadd.f32 %v3196_v62, %v3069_v61  ;;  %v3198_v25 = vpop.f32.mrb[77].mxu1  ;;  %9869 = vmatmul.mubr.msk.f32.vlgmr.msra.gmra.mrb[56].mxu0 %vm2981_vm2, %v3226_v17  ;;  %v3905_v61 = vld [vmem:[%s11059_s22] sm:$0xff]  ;;  %v3906_v62 = vld [vmem:[%s11059_s22 + $0x8] sm:$0xf] }
 0xc3f   : > { %9881 = vmatpush3.msk.msra.mxu0 %vm2106_vm14, %v915_v52  ;;  %vm3556_vm14 = vcmask 23552   ;;  %v3857_v25 = vld [vmem:[%s15602_s5 + $0x30] sm:$0xff] }
 0xc40   : > { %v3227_v57 = vmax.f32 %v3197_v32, 0.0  ;;  %10210 = vmatprep.subr.bf16.mxu0 %v10918_v54  ;;  %v3856_v32 = vld [vmem:[%s15602_s5 + $0x28] sm:$0xff] }
 0xc41   : > { %v3201_v26 = vpop.f32.mrb[78].mxu1 }
 0xc42   : > { %v3202_v1 = vadd.f32 %v3201_v26, %v3074_v53  ;;  %v3203_v51 = vpop.f32.mrb[79].mxu1  ;;  %9871 = vmatprep.mubr.msk.f32.mxu0 %vm2981_vm2, %v3227_v57  ;;  %v3876_v53 = vrot.slane %v3857_v25, 5  ;;  %v12500_v26 = vld [vmem:[#allocation2 + $0x48] sm:$0xff] }
 0xc44   : > { %v3228_v16 = vmax.f32 %v3202_v1, 0.0  ;;  %v12510_v51 = vsel %vm15733_vm7, %v3870_v13, %v3876_v53  ;;  %3903 = vst [vmem:[#allocation2 + $0x90] sm:$0x7] %v3876_v53  ;;  %vm15744_vm7 = vcmask 949251  }
 0xc45   : > { %v3206_v60 = vpop.f32.mrb[80].mxu1 }
 0xc46   : > { %v3207_v15 = vadd.f32 %v3206_v60, %v3079_v59  ;;  %v3208_v2 = vpop.f32.mrb[81].mxu1  ;;  %9872 = vmatmul.mubr.msk.f32.gmra.mrb[58].mxu0 %vm2981_vm2, %v3228_v16  ;;  %v12516_v59 = vld [vmem:[#allocation2 + $0x78] sm:$0xff] }
 0xc48   : > { %v3229_v38 = vmax.f32 %v3207_v15, 0.0 }
 0xc49   : > { %v3211_v27 = vpop.f32.mrb[82].mxu1 }
 0xc4a   : > { %v3212_v28 = vadd.f32 %v3211_v27, %v3084_v24  ;;  %v3213_v29 = vpop.f32.mrb[83].mxu1  ;;  %9874 = vmatprep.mubr.msk.f32.mxu0 %vm2981_vm2, %v3229_v38 }
 0xc4b   : > { %v12547_v29 = vld [vmem:[#allocation2 + $0x18] sm:$0xff] }
 0xc4c   : > { %v3230_v30 = vmax.f32 %v3212_v28, 0.0 }
 0xc4d   : > { %v3216_v18 = vpop.f32.mrb[84].mxu1 }
 0xc4e   : > { %v3217_v33 = vadd.f32 %v3216_v18, %v3089_v31  ;;  %v3218_v34 = vpop.f32.mrb[85].mxu1  ;;  %9875 = vmatmul.mubr.msk.f32.gmra.mrb[60].mxu0 %vm2981_vm2, %v3230_v30 }
 0xc50   : > { %v3231_v35 = vmax.f32 %v3217_v33, 0.0 }
 0xc51   : > { %v3221_v37 = vpop.f32.mrb[86].mxu1 }
 0xc52   : > { %v3222_v7 = vadd.f32 %v3221_v37, %v3094_v36  ;;  %v3223_v11 = vpop.f32.mrb[87].mxu1  ;;  %9877 = vmatprep.mubr.msk.f32.mxu0 %vm2981_vm2, %v3231_v35 }
 0xc54   : > { %v3232_v10 = vmax.f32 %v3222_v7, 0.0 }
 0xc56   : > { %9878 = vmatmul.mubr.msk.f32.gmra.mrb[62].mxu0 %vm2981_vm2, %v3232_v10 }
 0xc57   : > { %9882 = vmatprep.mubr.msk.f32.mxu0 %vm2981_vm2, %v3225_v58 }
 0xc5a   : > { %9883 = vmatmul.mubr.msk.f32.vlgmr.msra.gmra.mrb[64].mxu0 %vm2981_vm2, %v3226_v17  ;;  %v12488_v17 = vld [vmem:[#allocation2 + $0x58] sm:$0xff] }
 0xc5b   : > { %9885 = vmatprep.mubr.msk.f32.mxu0 %vm2981_vm2, %v3227_v57  ;;  %v3874_v57 = vrot.slane %v3856_v32, 5 }
 0xc5d   : > { %v12505_v1 = vsel %vm15732_vm11, %v3869_v12, %v3874_v57  ;;  %3902 = vst [vmem:[#allocation2 + $0x88] sm:$0x7] %v3874_v57  ;;  %v12532_v12 = vld [vmem:[#allocation2 + $0x60] sm:$0xff]  ;;  %vm3927_vm11 = vcmask 948224  }
 0xc5e   : > { %9886 = vmatmul.mubr.msk.f32.gmra.mrb[66].mxu0 %vm2981_vm2, %v3228_v16  ;;  %v12512_v16 = vld [vmem:[#allocation2 + $0x40] sm:$0xff] }
 0xc5f   : > { %9888 = vmatprep.mubr.msk.f32.mxu0 %vm2981_vm2, %v3229_v38 }
 0xc62   : > { %9889 = vmatmul.mubr.msk.f32.gmra.mrb[68].mxu0 %vm2981_vm2, %v3230_v30 }
 0xc63   : > { %9891 = vmatprep.mubr.msk.f32.mxu0 %vm2981_vm2, %v3231_v35 }
 0xc66   : > { %9892 = vmatmul.mubr.msk.f32.gmra.mrb[70].mxu0 %vm2981_vm2, %v3232_v10  ;;  %vm15731_vm2 = vcmask 949248  }
 0xc67   : > { %4189 = vst.msk [vmem:[#allocation3 + $0x158] sm:$0xff] %vm15731_vm2, %v12488_v17  ;;  %vm15734_vm15 = vmmov %vm15731_vm2  ;;  %9353 = vmatprep.mubr.msk.f32.mxu0 %vm15735_vm0, %v9330_v9  ;;  %vm4145_vm0 = vcmask 1047560  }
 0xc68   : > { %4193 = vst.msk [vmem:[#allocation3 + $0x178] sm:$0xff] %vm15734_vm15, %v12516_v59  ;;  %vm15743_vm2 = vmmov %vm15742_vm1  ;;  %vm15745_vm15 = vcmask 1042432  }
 0xd11   : > { %v9870_v39 = vpop.f32.mrb[56].mxu0 }
 0xd12   : > { %v3326_v40 = vpop.f32.mrb[57].mxu0 }
 0xd19   : > { %v9873_v41 = vpop.f32.mrb[58].mxu0 }
 0xd1a   : > { %v3336_v42 = vpop.f32.mrb[59].mxu0 }
 0xd21   : > { %v9876_v43 = vpop.f32.mrb[60].mxu0 }
 0xd22   : > { %v3346_v44 = vpop.f32.mrb[61].mxu0 }
 0xd29   : > { %v9879_v45 = vpop.f32.mrb[62].mxu0 }
 0xd2a   : > { %v3356_v46 = vpop.f32.mrb[63].mxu0 }
 0xd2d   : > { %v9884_v47 = vpop.f32.mrb[64].mxu0 }
 0xd2e   : > { %v3474_v48 = vmax.f32 %v9870_v39, %v9884_v47  ;;  %v3434_v49 = vpop.f32.mrb[65].mxu0 }
 0xd2f   : > { %v3473_v19 = vmax.f32 %v3326_v40, %v3434_v49 }
 0xd30   : > { %3558 = vst.msk [vmem:[#allocation3 + $0x120] sm:$0xff] %vm3556_vm14, %v3474_v48  ;;  %3525 = vrot.lane.b32.xlu0 %v3474_v48, %s10916_s20 }
 0xd31   : > { %3557 = vst.msk [vmem:[#allocation3 + $0x100] sm:$0xff] %vm3556_vm14, %v3473_v19  ;;  %3523 = vrot.lane.b32.xlu1 %v3473_v19, %s10916_s20  ;;  %v9887_v6 = vpop.f32.mrb[66].mxu0 }
 0xd32   : > { %v3476_v21 = vmax.f32 %v9873_v41, %v9887_v6  ;;  %v3444_v20 = vpop.f32.mrb[67].mxu0 }
 0xd33   : > { %v3475_v50 = vmax.f32 %v3336_v42, %v3444_v20 }
 0xd34   : > { %3560 = vst.msk [vmem:[#allocation3 + $0x160] sm:$0xff] %vm3556_vm14, %v3476_v21  ;;  %3529 = vrot.lane.b32.xlu0 %v3476_v21, %s10916_s20 }
 0xd35   : > { %3559 = vst.msk [vmem:[#allocation3 + $0x140] sm:$0xff] %vm3556_vm14, %v3475_v50  ;;  %3527 = vrot.lane.b32.xlu1 %v3475_v50, %s10916_s20  ;;  %v9890_v52 = vpop.f32.mrb[68].mxu0 }
 0xd36   : > { %v3478_v5 = vmax.f32 %v9876_v43, %v9890_v52  ;;  %v3454_v22 = vpop.f32.mrb[69].mxu0 }
 0xd37   : > { %v3477_v23 = vmax.f32 %v3346_v44, %v3454_v22 }
 0xd38   : > { %3562 = vst.msk [vmem:[#allocation3 + $0x1a0] sm:$0xff] %vm3556_vm14, %v3478_v5  ;;  %3533 = vrot.lane.b32.xlu0 %v3478_v5, %s10916_s20  ;;  %v3615_v44 = vld [vmem:[#allocation3 + $0x100] sm:$0xff] }
 0xd39   : > { %3561 = vst.msk [vmem:[#allocation3 + $0x180] sm:$0xff] %vm3556_vm14, %v3477_v23  ;;  %3531 = vrot.lane.b32.xlu1 %v3477_v23, %s10916_s20  ;;  %v9893_v56 = vpop.f32.mrb[70].mxu0 }
 0xd3a   : > { %v3480_v58 = vmax.f32 %v9879_v45, %v9893_v56  ;;  %v3464_v14 = vpop.f32.mrb[71].mxu0  ;;  %v3616_v45 = vld [vmem:[#allocation3 + $0x120] sm:$0xff] }
 0xd3b   : > { %v3479_v3 = vmax.f32 %v3356_v46, %v3464_v14 }
 0xd3c   : > { %3564 = vst.msk [vmem:[#allocation3 + $0x1e0] sm:$0xff] %vm3556_vm14, %v3480_v58  ;;  %3537 = vrot.lane.b32.xlu0 %v3480_v58, %s10916_s20  ;;  %v3617_v49 = vld [vmem:[#allocation3 + $0x140] sm:$0xff] }
 0xd3d   : > { %3563 = vst.msk [vmem:[#allocation3 + $0x1c0] sm:$0xff] %vm3556_vm14, %v3479_v3  ;;  %3535 = vrot.lane.b32.xlu1 %v3479_v3, %s10916_s20 }
 0xd3f   : > { %v3620_v52 = vld [vmem:[#allocation3 + $0x1a0] sm:$0xff] }
 0xd40   : > { %3567 = vrot.lane.b32.xlu0 %v3474_v48, %s10917_s16  ;;  %v10223_v48 = vpack.c.bf16 %v3616_v45, %v3615_v44 }
 0xd41   : > { %3565 = vrot.lane.b32.xlu1 %v3473_v19, %s10917_s16  ;;  %v3618_v19 = vld [vmem:[#allocation3 + $0x160] sm:$0xff] }
 0xd42   : > { %v10226_v20 = vpack.c.bf16 %v3618_v19, %v3617_v49 }
 0xd44   : > { %3571 = vrot.lane.b32.xlu0 %v3476_v21, %s10917_s16  ;;  %v3621_v22 = vld [vmem:[#allocation3 + $0x1c0] sm:$0xff] }
 0xd45   : > { %3569 = vrot.lane.b32.xlu1 %v3475_v50, %s10917_s16  ;;  %v3619_v50 = vld [vmem:[#allocation3 + $0x180] sm:$0xff] }
 0xd48   : > { %3575 = vrot.lane.b32.xlu0 %v3478_v5, %s10917_s16  ;;  %v10229_v5 = vpack.c.bf16 %v3620_v52, %v3619_v50 }
 0xd49   : > { %3573 = vrot.lane.b32.xlu1 %v3477_v23, %s10917_s16  ;;  %v3622_v23 = vld [vmem:[#allocation3 + $0x1e0] sm:$0xff] }
 0xd4a   : > { %v10232_v14 = vpack.c.bf16 %v3622_v23, %v3621_v22 }
 0xd4c   : > { %3579 = vrot.lane.b32.xlu0 %v3480_v58, %s10917_s16 }
 0xd4d   : > { %3577 = vrot.lane.b32.xlu1 %v3479_v3, %s10917_s16 }
 0xd50   : > { %3638 = vperm.xlu0 %10851, %v9346_v4  }
 0xd51   : > { %3633 = vperm.xlu1 %10852, %v9345_v55  }
 0xd54   : > { %3909 = vperm.xlu0 %10851, %v3905_v61  }
 0xd55   : > { %3913 = vperm.xlu1 %10852, %v3906_v62  }
 0xd58   : > { %4043 = vrot.lane.b32.xlu0 %v12500_v26, %s10916_s20 }
 0xd59   : > { %4041 = vrot.lane.b32.xlu1 %v12512_v16, %s10916_s20 }
 0xd5c   : > { %4047 = vrot.lane.b32.xlu0 %v12488_v17, %s10916_s20 }
 0xd5d   : > { %4045 = vrot.lane.b32.xlu1 %v12522_v8, %s10916_s20 }
 0xd60   : > { %4051 = vrot.lane.b32.xlu0 %v12505_v1, %s10916_s20 }
 0xd61   : > { %4049 = vrot.lane.b32.xlu1 %v12532_v12, %s10916_s20 }
 0xd64   : > { %4055 = vrot.lane.b32.xlu0 %v12516_v59, %s10916_s20 }
 0xd65   : > { %4053 = vrot.lane.b32.xlu1 %v12510_v51, %s10916_s20 }
 0xda2   : > { %v3526_v13 = vpop.permute.xlu0 %3525 }
 0xda3   : > { %3549 = vst.msk [vmem:[#allocation3 + $0x20] sm:$0xff] %vm3547_vm8, %v3526_v13  ;;  %v3524_v60 = vpop.permute.xlu1 %3523 }
 0xda4   : > { %3548 = vst.msk [vmem:[#allocation3] sm:$0xff] %vm3547_vm8, %v3524_v60 }
 0xda6   : > { %v3530_v15 = vpop.permute.xlu0 %3529 }
 0xda7   : > { %3551 = vst.msk [vmem:[#allocation3 + $0x60] sm:$0xff] %vm3547_vm8, %v3530_v15  ;;  %v3528_v2 = vpop.permute.xlu1 %3527 }
 0xda8   : > { %3550 = vst.msk [vmem:[#allocation3 + $0x40] sm:$0xff] %vm3547_vm8, %v3528_v2 }
 0xdaa   : > { %v3534_v38 = vpop.permute.xlu0 %3533  ;;  %v3608_v24 = vld [vmem:[#allocation3 + $0x20] sm:$0xff] }
 0xdab   : > { %3553 = vst.msk [vmem:[#allocation3 + $0xa0] sm:$0xff] %vm3547_vm8, %v3534_v38  ;;  %v3532_v27 = vpop.permute.xlu1 %3531  ;;  %v3607_v28 = vld [vmem:[#allocation3] sm:$0xff] }
 0xdac   : > { %3986 = vst.msk [vmem:[#allocation3 + $0x20] sm:$0xff] %vm15736_vm10, %v12547_v29  ;;  %v10211_v30 = vpack.c.bf16 %v3608_v24, %v3607_v28  ;;  %vm15747_vm10 = vcmask 949248  }
 0xdad   : > { %3552 = vst.msk [vmem:[#allocation3 + $0x80] sm:$0xff] %vm3547_vm8, %v3532_v27 }
 0xdae   : > { %3985 = vst.msk [vmem:[#allocation3] sm:$0xff] %vm15737_vm9, %v12547_v29  ;;  %10212 = vmatpush1.bf16.msra.mxu0 %v10211_v30  ;;  %v3538_v31 = vpop.permute.xlu0 %3537  ;;  %v3610_v18 = vld [vmem:[#allocation3 + $0x60] sm:$0xff]  ;;  %vm15748_vm9 = vmmov %vm15747_vm10 }
 0xdaf   : > { %3555 = vst.msk [vmem:[#allocation3 + $0xe0] sm:$0xff] %vm3547_vm8, %v3538_v31  ;;  %v3536_v33 = vpop.permute.xlu1 %3535  ;;  %10213 = vmatprep.subr.bf16.mxu0 %v10918_v54  ;;  %v3609_v34 = vld [vmem:[#allocation3 + $0x40] sm:$0xff] }
 0xdb0   : > { %3988 = vst.msk [vmem:[#allocation3 + $0x60] sm:$0xff] %vm15738_vm5, %v12547_v29  ;;  %v10214_v35 = vpack.c.bf16 %v3610_v18, %v3609_v34  ;;  %v9329_v31 = vld [vmem:[%s15603_s6 + $0x280] sm:$0xff]  ;;  %vm15749_vm5 = vcmask 523264  }
 0xdb1   : > { %3554 = vst.msk [vmem:[#allocation3 + $0xc0] sm:$0xff] %vm3547_vm8, %v3536_v33  ;;  %vm15746_vm8 = vmmov %vm15742_vm1 }
 0xdb2   : > { %3987 = vst.msk [vmem:[#allocation3 + $0x40] sm:$0xff] %vm15739_vm3, %v12547_v29  ;;  %10215 = vmatpush1.bf16.msra.mxu0 %v10214_v35  ;;  %v3568_v36 = vpop.permute.xlu0 %3567  ;;  %v3612_v37 = vld [vmem:[#allocation3 + $0xa0] sm:$0xff]  ;;  %vm15750_vm3 = vmmov %vm15748_vm9 }
 0xdb3   : > { %3591 = vst.msk [vmem:[#allocation3 + $0x220] sm:$0xff] %vm3589_vm13, %v3568_v36  ;;  %v3566_v7 = vpop.permute.xlu1 %3565  ;;  %10216 = vmatprep.subr.bf16.mxu0 %v10918_v54 }
 0xdb4   : > { %v3611_v11 = vld [vmem:[#allocation3 + $0x80] sm:$0xff]  ;;  %3990 = vst.msk [vmem:[#allocation3 + $0xa0] sm:$0xff] %vm15740_vm6, %v12547_v29  ;;  %vm15753_vm6 = vmmov %vm15742_vm1 }
 0xdb5   : > { %3600 = vst.msk [vmem:[#allocation3 + $0x220] sm:$0xff] %vm3598_vm4, %v12547_v29  ;;  %v10217_v10 = vpack.c.bf16 %v3612_v37, %v3611_v11 }
 0xdb6   : > { %3590 = vst.msk [vmem:[#allocation3 + $0x200] sm:$0xff] %vm3589_vm13, %v3566_v7  ;;  %v3572_v39 = vpop.permute.xlu0 %3571  ;;  %v3614_v40 = vld [vmem:[#allocation3 + $0xe0] sm:$0xff]  ;;  %v9331_v7 = vld [vmem:[%s15603_s6 + $0x290] sm:$0xff] }
 0xdb7   : > { %3989 = vst.msk [vmem:[#allocation3 + $0x80] sm:$0xff] %vm15741_vm12, %v12547_v29  ;;  %10218 = vmatpush1.bf16.msra.mxu0 %v10217_v10  ;;  %v3570_v41 = vpop.permute.xlu1 %3569  ;;  %vm15754_vm12 = vmmov %vm15750_vm3 }
 0xdb8   : > { %3599 = vst.msk [vmem:[#allocation3 + $0x200] sm:$0xff] %vm3598_vm4, %v12547_v29  ;;  %10219 = vmatprep.subr.bf16.mxu0 %v10918_v54  ;;  %v3613_v42 = vld [vmem:[#allocation3 + $0xc0] sm:$0xff] }
 0xdb9   : > { %3593 = vst.msk [vmem:[#allocation3 + $0x260] sm:$0xff] %vm3589_vm13, %v3572_v39  ;;  %3592 = vst.msk [vmem:[#allocation3 + $0x240] sm:$0xff] %vm3589_vm13, %v3570_v41  ;;  %v10220_v43 = vpack.c.bf16 %v3614_v40, %v3613_v42 }
 0xdba   : > { %3992 = vst.msk [vmem:[#allocation3 + $0xe0] sm:$0xff] %vm15742_vm1, %v12547_v29  ;;  %v3576_v46 = vpop.permute.xlu0 %3575 }
 0xdbb   : > { %3602 = vst.msk [vmem:[#allocation3 + $0x260] sm:$0xff] %vm3598_vm4, %v12547_v29  ;;  %3601 = vst.msk [vmem:[#allocation3 + $0x240] sm:$0xff] %vm3598_vm4, %v12547_v29  ;;  %10221 = vmatpush1.bf16.msra.mxu0 %v10220_v43  ;;  %v3574_v47 = vpop.permute.xlu1 %3573 }
 0xdbc   : > { %3991 = vst.msk [vmem:[#allocation3 + $0xc0] sm:$0xff] %vm15743_vm2, %v12547_v29  ;;  %10222 = vmatprep.subr.bf16.mxu0 %v10918_v54  ;;  %v3624_v58 = vld [vmem:[#allocation3 + $0x220] sm:$0xff]  ;;  %vm15755_vm2 = vmmov %vm15742_vm1 }
 0xdbd   : > { %3595 = vst.msk [vmem:[#allocation3 + $0x2a0] sm:$0xff] %vm3589_vm13, %v3576_v46  ;;  %3594 = vst.msk [vmem:[#allocation3 + $0x280] sm:$0xff] %vm3589_vm13, %v3574_v47 }
 0xdbe   : > { %3604 = vst.msk [vmem:[#allocation3 + $0x2a0] sm:$0xff] %vm3598_vm4, %v12547_v29  ;;  %3603 = vst.msk [vmem:[#allocation3 + $0x280] sm:$0xff] %vm3598_vm4, %v12547_v29  ;;  %v3580_v6 = vpop.permute.xlu0 %3579 }
 0xdbf   : > { %10224 = vmatpush1.bf16.msra.mxu0 %v10223_v48  ;;  %3597 = vst.msk [vmem:[#allocation3 + $0x2e0] sm:$0xff] %vm3589_vm13, %v3580_v6  ;;  %v3578_v21 = vpop.permute.xlu1 %3577  ;;  %v3623_v56 = vld [vmem:[#allocation3 + $0x200] sm:$0xff] }
 0xdc0   : > { %10225 = vmatprep.subr.bf16.mxu0 %v10918_v54  ;;  %3606 = vst.msk [vmem:[#allocation3 + $0x2e0] sm:$0xff] %vm3598_vm4, %v12547_v29  ;;  %v10235_v3 = vpack.c.bf16 %v3624_v58, %v3623_v56 }
 0xdc1   : > { %3596 = vst.msk [vmem:[#allocation3 + $0x2c0] sm:$0xff] %vm3589_vm13, %v3578_v21  ;;  %vm15751_vm13 = vmmov %vm15742_vm1 }
 0xdc2   : > { %3605 = vst.msk [vmem:[#allocation3 + $0x2c0] sm:$0xff] %vm3598_vm4, %v12547_v29  ;;  %v3625_v4 = vld [vmem:[#allocation3 + $0x240] sm:$0xff]  ;;  %vm15752_vm4 = vmmov %vm15750_vm3 }
 0xdc3   : > { %10227 = vmatpush1.bf16.msra.mxu0 %v10226_v20  ;;  %v3626_v55 = vld [vmem:[#allocation3 + $0x260] sm:$0xff] }
 0xdc4   : > { %10228 = vmatprep.subr.bf16.mxu0 %v10918_v54  ;;  %v10238_v61 = vpack.c.bf16 %v3626_v55, %v3625_v4 }
 0xdc5   : > { %v3627_v32 = vld [vmem:[#allocation3 + $0x280] sm:$0xff] }
 0xdc6   : > { %v3628_v25 = vld [vmem:[#allocation3 + $0x2a0] sm:$0xff] }
 0xdc7   : > { %10230 = vmatpush1.bf16.msra.mxu0 %v10229_v5  ;;  %v10241_v53 = vpack.c.bf16 %v3628_v25, %v3627_v32  ;;  %v3630_v60 = vld [vmem:[#allocation3 + $0x2e0] sm:$0xff] }
 0xdc8   : > { %10231 = vmatprep.subr.bf16.mxu0 %v10918_v54 }
 0xdc9   : > { %v3629_v13 = vld [vmem:[#allocation3 + $0x2c0] sm:$0xff] }
 0xdca   : > { %v10244_v24 = vpack.c.bf16 %v3630_v60, %v3629_v13 }
 0xdcb   : > { %10233 = vmatpush1.bf16.msra.mxu0 %v10232_v14 }
 0xdcc   : > { %10234 = vmatprep.subr.bf16.mxu0 %v10918_v54 }
 0xdcf   : > { %10236 = vmatpush1.bf16.msra.mxu0 %v10235_v3  ;;  %v12600_v62 = vpop.permute.xlu0 %3638 }
 0xdd0   : > { %10237 = vmatprep.subr.bf16.mxu0 %v10918_v54  ;;  %v12603_v57 = vpop.permute.xlu1 %3633 }
 0xdd3   : > { %10239 = vmatpush1.bf16.msra.mxu0 %v10238_v61  ;;  %v3910_v9 = vpop.permute.xlu0 %3909 }
 0xdd4   : > { %10240 = vmatprep.subr.bf16.mxu0 %v10918_v54  ;;  %v3915_v15 = vrot.slane %v3910_v9, 5  ;;  %v3914_v2 = vpop.permute.xlu1 %3913 }
 0xdd5   : > { %v3916_v38 = vrot.slane %v3914_v2, 5 }
 0xdd6   : > { %3920 = vst [vmem:[#allocation2 + $0x80] sm:$0xf8] %v3915_v15  ;;  %3921 = vst [vmem:[#allocation2 + $0x88] sm:$0xf8] %v3915_v15 }
 0xdd7   : > { %3922 = vst [vmem:[#allocation2 + $0x90] sm:$0xf8] %v3915_v15  ;;  %3923 = vst.msk [vmem:[#allocation2 + $0x98] sm:$0xf8] %vm15744_vm7, %v3915_v15  ;;  %10242 = vmatpush1.bf16.msra.mxu0 %v10241_v53  ;;  %v3917_v27 = vsel %vm15745_vm15, %v3915_v15, %v3916_v38  ;;  %v12609_v28 = vpop.permute.xlu0 %4043 }
 0xdd8   : > { %10243 = vmatprep.subr.bf16.mxu0 %v10918_v54  ;;  %3924 = vst [vmem:[#allocation2 + $0xa0] sm:$0x7f] %v3917_v27  ;;  %3925 = vst [vmem:[#allocation2 + $0xa8] sm:$0x7f] %v3917_v27  ;;  %v12611_v30 = vpop.permute.xlu1 %4041  ;;  %v9332_v54 = vld [vmem:[%s15603_s6 + $0x298] sm:$0xff] }
 0xdd9   : > { %3926 = vst [vmem:[#allocation2 + $0xb0] sm:$0x7f] %v3917_v27  ;;  %3928 = vst.msk [vmem:[#allocation2 + $0xb8] sm:$0x7f] %vm3927_vm11, %v3917_v27 }
 0xdda   : > { %4154 = vst.msk [vmem:[#allocation3 + $0x40] sm:$0xff] %vm4145_vm0, %v12611_v30  ;;  %vm15756_vm11 = vmmov %vm15742_vm1 }
 0xddb   : > { %10245 = vmatpush1.bf16.msra.mxu0 %v10244_v24  ;;  %v4048_v18 = vpop.permute.xlu0 %4047  ;;  %vm15757_vm7 = vmmov %vm15742_vm1 }
 0xddc   : > { %v12621_v33 = vpop.permute.xlu1 %4045  ;;  %vm15759_vm15 = vmmov %vm15750_vm3 }
 0xddd   : > { %v12623_v34 = vld [vmem:[#allocation2 + $0x88] sm:$0xff]  ;;  %v12625_v35 = vld [vmem:[#allocation2 + $0x80] sm:$0xff]  ;;  %v4097_v37 = vsel %vm15746_vm8, %v12621_v33, %v4048_v18  ;;  %vm15760_vm8 = vmmov %vm15742_vm1 }
 0xdde   : > { %3754 = vmatmul.mubr.f32.vlgmr.msra.gmra.mrb[72].mxu0 %v9329_v31  ;;  %v12627_v36 = vld [vmem:[#allocation2 + $0x98] sm:$0xff]  ;;  %4059 = vrot.lane.b32.xlu0 %v12623_v34, %s10916_s20  ;;  %4157 = vst.msk [vmem:[#allocation3 + $0x58] sm:$0xff] %vm15748_vm9, %v4097_v37  ;;  %v12648_v40 = vld [vmem:[#allocation2 + $0x90] sm:$0xff]  ;;  %vm15762_vm9 = vmmov %vm15750_vm3 }
 0xddf   : > { %4057 = vrot.lane.b32.xlu1 %v12625_v35, %s10916_s20  ;;  %4197 = vst.msk [vmem:[#allocation3 + $0x198] sm:$0xff] %vm15747_vm10, %v12627_v36  ;;  %9354 = vmatprep.mubr.msk.f32.mxu0 %vm15749_vm5, %v9332_v54  ;;  %v12642_v11 = vpop.permute.xlu0 %4051  ;;  %v12660_v43 = vld [vmem:[#allocation2 + $0xa8] sm:$0xff]  ;;  %v12662_v44 = vld [vmem:[#allocation2 + $0xa0] sm:$0xff]  ;;  %vm15761_vm10 = vmmov %vm15750_vm3 }
 0xde0   : > { %v12644_v10 = vpop.permute.xlu1 %4049  ;;  %v12646_v39 = vld [vmem:[#allocation2 + $0xb8] sm:$0xff]  ;;  %v12671_v46 = vld [vmem:[#allocation2 + $0xb0] sm:$0xff]  ;;  %vm15763_vm5 = vmmov %vm15742_vm1 }
 0xde1   : > { %4158 = vst.msk [vmem:[#allocation3 + $0x60] sm:$0xff] %vm4145_vm0, %v12644_v10  ;;  %v12700_v5 = vld [vmem:[#allocation3 + $0x40] sm:$0xff] }
 0xde2   : > { %3759 = vmatmul.mubr.f32.gmra.mrb[74].mxu0 %v9331_v7  ;;  %4201 = vst.msk [vmem:[#allocation3 + $0x1b8] sm:$0xff] %vm15750_vm3, %v12646_v39  ;;  %4063 = vrot.lane.b32.xlu0 %v12627_v36, %s10916_s20 }
 0xde3   : > { %4061 = vrot.lane.b32.xlu1 %v12648_v40, %s10916_s20  ;;  %v4056_v41 = vpop.permute.xlu0 %4055  ;;  %4819 = vst.msk [vmem:[#allocation3 + $0x40] sm:$0xff] %vm15756_vm11, %v12547_v29 }
 0xde4   : > { %v12658_v42 = vpop.permute.xlu1 %4053 }
 0xde5   : > { %v4100_v45 = vsel %vm15751_vm13, %v12658_v42, %v4056_v41  ;;  %vm15764_vm13 = vmmov %vm15742_vm1 }
 0xde6   : > { %4067 = vrot.lane.b32.xlu0 %v12660_v43, %s10916_s20  ;;  %4161 = vst.msk [vmem:[#allocation3 + $0x78] sm:$0xff] %vm15752_vm4, %v4100_v45  ;;  %vm15765_vm4 = vmmov %vm15750_vm3 }
 0xde7   : > { %4065 = vrot.lane.b32.xlu1 %v12662_v44, %s10916_s20 }
 0xde8   : > { %v12702_v22 = vld [vmem:[#allocation3 + $0x60] sm:$0xff] }
 0xde9   : > { %v10252_v23 = vpack.c.bf16 %v12702_v22, %v12700_v5  ;;  %4820 = vst.msk [vmem:[#allocation3 + $0x60] sm:$0xff] %vm15757_vm7, %v12547_v29 }
 0xdeb   : > { %4069 = vrot.lane.b32.xlu1 %v12671_v46, %s10916_s20 }
 0xe50   : > { %v12675_v47 = vpop.permute.xlu0 %4059 }
 0xe51   : > { %v12677_v48 = vpop.permute.xlu1 %4057 }
 0xe52   : > { %4162 = vst.msk [vmem:[#allocation3 + $0x80] sm:$0xff] %vm4145_vm0, %v12677_v48 }
 0xe54   : > { %v4064_v49 = vpop.permute.xlu0 %4063 }
 0xe55   : > { %v12681_v19 = vpop.permute.xlu1 %4061 }
 0xe56   : > { %v4103_v6 = vsel %vm15753_vm6, %v12681_v19, %v4064_v49  ;;  %vm15766_vm6 = vmmov %vm15742_vm1 }
 0xe57   : > { %4165 = vst.msk [vmem:[#allocation3 + $0x98] sm:$0xff] %vm15754_vm12, %v4103_v6  ;;  %vm15767_vm12 = vmmov %vm15742_vm1 }
 0xe58   : > { %v12738_v25 = vpop.permute.xlu0 %4067 }
 0xe59   : > { %v12686_v21 = vpop.permute.xlu1 %4065  ;;  %v12688_v20 = vld [vmem:[#allocation3 + $0x80] sm:$0xff] }
 0xe5a   : > { %4166 = vst.msk [vmem:[#allocation3 + $0xa0] sm:$0xff] %vm4145_vm0, %v12686_v21 }
 0xe5b   : > { %4821 = vst.msk [vmem:[#allocation3 + $0x80] sm:$0xff] %vm15742_vm1, %v12547_v29  ;;  %vm15768_vm1 = vmmov %vm15750_vm3 }
 0xe61   : > { %v12694_v50 = vld [vmem:[#allocation3 + $0xa0] sm:$0xff] }
 0xe62   : > { %v10256_v52 = vpack.c.bf16 %v12694_v50, %v12688_v20  ;;  %4822 = vst.msk [vmem:[#allocation3 + $0xa0] sm:$0xff] %vm15755_vm2, %v12547_v29  ;;  %vm15769_vm2 = vcmask 523264   ;;  %v4392_v50 = vld [vmem:[#allocation3 + $0x98] sm:$0xff] }
 0xe63   : > { %vm15770_vm11 = vmmov %vm15769_vm2 }
 0xe64   : > { %vm15771_vm7 = vmmov %vm15769_vm2 }
 0xeb1   : > { %v3755_v56 = vpop.f32.mrb[72].mxu0 }
 0xeb2   : > { %v3756_v58 = vadd.f32 %v3755_v56, %v12603_v57  ;;  %v3757_v14 = vpop.f32.mrb[73].mxu0 }
 0xeb4   : > { %v3788_v3 = vsel %vm3556_vm14, %v3756_v58, 0.0 }
 0xeb5   : > { %v3760_v4 = vpop.f32.mrb[74].mxu0  ;;  %3789 = vadd.xlane.f32.xlu1 %v3788_v3  ;;  %v9338_v3 = vld [vmem:[%s15603_s6 + $0x2c8] sm:$0xff] }
 0xeb6   : > { %v3761_v55 = vadd.f32 %v3760_v4, %v12600_v62  ;;  %v3762_v61 = vpop.f32.mrb[75].mxu0  ;;  %v12736_v62 = vpop.permute.xlu1 %4069  ;;  %v9337_v4 = vld [vmem:[%s15603_s6 + $0x2c0] sm:$0xff] }
 0xeb7   : > { %v9339_v61 = vld [vmem:[%s15603_s6 + $0x2d0] sm:$0xff] }
 0xeb8   : > { %v3791_v32 = vsel %vm3556_vm14, %v3761_v55, 0.0  ;;  %vm15758_vm14 = vmmov %vm15750_vm3  ;;  %v9340_v55 = vld [vmem:[%s15603_s6 + $0x2d8] sm:$0xff] }
 0xeb9   : > { %3792 = vadd.xlane.f32.xlu0 %v3791_v32  ;;  %v9342_v32 = vld [vmem:[%s15603_s6 + $0x2e8] sm:$0xff] }
 0xec6   : > { %4073 = vrot.lane.b32.xlu1 %v12547_v29, %s10916_s20 }
 0xeca   : > { %4077 = vrot.lane.b32.xlu1 %v12547_v29, %s10916_s20 }
 0xece   : > { %4081 = vrot.lane.b32.xlu1 %v12547_v29, %s10916_s20 }
 0xecf   : > { %4071 = vrot.lane.b32.xlu0 %v12646_v39, %s10916_s20 }
 0xed2   : > { %4085 = vrot.lane.b32.xlu1 %v12547_v29, %s10916_s20 }
 0xed3   : > { %4075 = vrot.lane.b32.xlu0 %v12547_v29, %s10916_s20 }
 0xed6   : > { %4228 = vrot.lane.b32.xlu1 %v12500_v26, %s10917_s16 }
 0xed7   : > { %4079 = vrot.lane.b32.xlu0 %v12547_v29, %s10916_s20 }
 0xedb   : > { %4083 = vrot.lane.b32.xlu0 %v12547_v29, %s10916_s20 }
 0xedf   : > { %4087 = vrot.lane.b32.xlu0 %v12547_v29, %s10916_s20 }
 0xee3   : > { %4230 = vrot.lane.b32.xlu0 %v12522_v8, %s10917_s16 }
 0xf42   : > { %v3790_v57 = vpop.xlane.xlu1 %3789 }
 0xf43   : > { %v3795_v53 = vmul.f32 0.33333334, %v3790_v57  ;;  %v9341_v57 = vld [vmem:[%s15603_s6 + $0x2e0] sm:$0xff] }
 0xf45   : > { %3829 = vst [vmem:[#allocation2] sm:$0xff] %v3795_v53  ;;  %3833 = vst.msk [vmem:[#allocation2 + $0x18] sm:$0xff] %vm15758_vm14, %v3795_v53  ;;  %4027 = vrot.lane.b32.xlu0 %v3795_v53, %s10916_s20  ;;  %4025 = vrot.lane.b32.xlu1 %v3795_v53, %s10916_s20 }
 0xf46   : > { %v3793_v9 = vpop.xlane.xlu0 %3792  ;;  %v12743_v13 = vpop.permute.xlu1 %4073  ;;  %vm15772_vm14 = vmmov %vm15769_vm2 }
 0xf47   : > { %v12745_v60 = vmul.f32 0.33333334, %v3793_v9  ;;  %4170 = vst.msk [vmem:[#allocation3 + $0xc0] sm:$0xff] %vm4145_vm0, %v12743_v13  ;;  %v9343_v9 = vld [vmem:[%s15603_s6 + $0x2f0] sm:$0xff] }
 0xf49   : > { %3834 = vst [vmem:[#allocation2 + $0x20] sm:$0xff] %v12745_v60  ;;  %3837 = vst.msk [vmem:[#allocation2 + $0x38] sm:$0xff] %vm15759_vm15, %v12745_v60  ;;  %4029 = vrot.lane.b32.xlu1 %v3795_v53, %s10916_s20  ;;  %v12754_v15 = vpack.c.bf16 %v12745_v60, %v3795_v53 }
 0xf4a   : > { %v4072_v2 = vpop.permute.xlu0 %4071  ;;  %v12756_v38 = vpop.permute.xlu1 %4077  ;;  %vm15773_vm15 = vmmov %vm15769_vm2 }
 0xf4b   : > { %v4106_v24 = vsel %vm15760_vm8, %v12736_v62, %v4072_v2  ;;  %vm15774_vm8 = vmmov %vm15769_vm2  ;;  %v3977_v2 = vld [vmem:[%s15606_s9] sm:$0xff] }
 0xf4c   : > { %4169 = vst.msk [vmem:[#allocation3 + $0xb8] sm:$0xff] %vm15761_vm10, %v4106_v24  ;;  %v3932_v27 = vld [vmem:[#allocation2 + $0x18] sm:$0xff]  ;;  %vm15775_vm10 = vmmov %vm15769_vm2  ;;  %v3978_v24 = vld [vmem:[%s15606_s9 + $0x8] sm:$0xff] }
 0xf4d   : > { %4181 = vst.msk [vmem:[#allocation3 + $0x118] sm:$0xff] %vm15762_vm9, %v3932_v27  ;;  %4031 = vrot.lane.b32.xlu0 %v3932_v27, %s10916_s20  ;;  %4212 = vrot.lane.b32.xlu1 %v3795_v53, %s10917_s16  ;;  %vm15776_vm9 = vmmov %vm15769_vm2 }
 0xf4e   : > { %v12764_v31 = vpop.permute.xlu0 %4075  ;;  %v12766_v18 = vpop.permute.xlu1 %4081  ;;  %v12768_v54 = vld [vmem:[#allocation3 + $0xc0] sm:$0xff] }
 0xf4f   : > { %4174 = vst.msk [vmem:[#allocation3 + $0xe0] sm:$0xff] %vm4145_vm0, %v12766_v18 }
 0xf50   : > { %4823 = vst.msk [vmem:[#allocation3 + $0xc0] sm:$0xff] %vm15763_vm5, %v12547_v29  ;;  %v3936_v37 = vld [vmem:[#allocation2 + $0x38] sm:$0xff] }
 0xf51   : > { %4214 = vrot.lane.b32.xlu0 %v3795_v53, %s10917_s16  ;;  %4216 = vrot.lane.b32.xlu1 %v3932_v27, %s10917_s16  ;;  %4185 = vst.msk [vmem:[#allocation3 + $0x138] sm:$0xff] %vm15750_vm3, %v3936_v37  ;;  %v3979_v27 = vld [vmem:[%s15606_s9 + $0x10] sm:$0xff]  ;;  %vm15777_vm3 = vmmov %vm15763_vm5 }
 0xf52   : > { %v4080_v7 = vpop.permute.xlu0 %4079  ;;  %v12795_v56 = vpop.permute.xlu1 %4085 }
 0xf53   : > { %v4109_v41 = vsel %vm15764_vm13, %v12756_v38, %v4080_v7  ;;  %v3981_v7 = vld [vmem:[%s15606_s9 + $0x20] sm:$0xff]  ;;  %vm15778_vm13 = vmmov %vm15768_vm1 }
 0xf54   : > { %4173 = vst.msk [vmem:[#allocation3 + $0xd8] sm:$0xff] %vm15765_vm4, %v4109_v41  ;;  %v3982_v41 = vld [vmem:[%s15606_s9 + $0x28] sm:$0xff]  ;;  %vm4334_vm4 = vcmask 941056  }
 0xf55   : > { %4035 = vrot.lane.b32.xlu0 %v12745_v60, %s10916_s20  ;;  %4210 = vrot.lane.b32.xlu1 %v3795_v53, %s10917_s16  ;;  %v9344_v53 = vld [vmem:[%s15603_s6 + $0x2f8] sm:$0xff] }
 0xf56   : > { %v12783_v45 = vpop.permute.xlu0 %4083  ;;  %v12785_v49 = vld [vmem:[#allocation3 + $0xe0] sm:$0xff] }
 0xf57   : > { %4824 = vst.msk [vmem:[#allocation3 + $0xe0] sm:$0xff] %vm15766_vm6, %v12547_v29  ;;  %vm4364_vm6 = vcmask 950168  }
 0xf59   : > { %4236 = vrot.lane.b32.xlu0 %v12505_v1, %s10917_s16  ;;  %4033 = vrot.lane.b32.xlu1 %v12745_v60, %s10916_s20 }
 0xf5a   : > { %v4088_v58 = vpop.permute.xlu0 %4087 }
 0xf5b   : > { %v4112_v14 = vsel %vm15767_vm12, %v12795_v56, %v4088_v58  ;;  %v3983_v58 = vld [vmem:[%s15606_s9 + $0x30] sm:$0xff]  ;;  %vm15779_vm12 = vmmov %vm15777_vm3 }
 0xf5c   : > { %4177 = vst.msk [vmem:[#allocation3 + $0xf8] sm:$0xff] %vm15768_vm1, %v4112_v14  ;;  %v3984_v14 = vld [vmem:[%s15606_s9 + $0x38] sm:$0xff]  ;;  %vm15780_vm1 = vmmov %vm15777_vm3 }
 0xf5d   : > { %4240 = vrot.lane.b32.xlu0 %v12516_v59, %s10917_s16  ;;  %4037 = vrot.lane.b32.xlu1 %v12745_v60, %s10916_s20  ;;  %v9333_v59 = vld [vmem:[%s15603_s6 + $0x2a0] sm:$0xff]  ;;  %v4099_v22 = vsel %vm15780_vm1, %v12642_v11, %v12658_v42  ;;  %v10266_v42 = vpack.c.bf16 %v12505_v1, %v12500_v26  ;;  %v10268_v1 = vpack.c.bf16 %v12532_v12, %v12512_v16 }
 0xf61   : > { %4039 = vrot.lane.b32.xlu0 %v3936_v37, %s10916_s20  ;;  %4232 = vrot.lane.b32.xlu1 %v12488_v17, %s10917_s16  ;;  %v9334_v17 = vld [vmem:[%s15603_s6 + $0x2a8] sm:$0xff] }
 0xf62   : > { %9355 = vmatprep.mubr.msk.f32.mxu0 %vm15769_vm2, %v9334_v17  ;;  %v12920_v17 = vpop.permute.xlu1 %4228  ;;  %vm15781_vm2 = vmmov %vm15780_vm1 }
 0xf63   : > { %3764 = vmatmul.mubr.f32.gmra.mrb[76].mxu0 %v9333_v59  ;;  %v12922_v59 = vpop.permute.xlu0 %4230 }
 0xf65   : > { %4234 = vrot.lane.b32.xlu0 %v12532_v12, %s10917_s16  ;;  %4238 = vrot.lane.b32.xlu1 %v12510_v51, %s10917_s16 }
 0xf69   : > { %4246 = vrot.lane.b32.xlu0 %v12648_v40, %s10917_s16  ;;  %4226 = vrot.lane.b32.xlu1 %v12512_v16, %s10917_s16  ;;  %v10270_v16 = vpack.c.bf16 %v12660_v43, %v12623_v34 }
 0xf6d   : > { %4252 = vrot.lane.b32.xlu0 %v12660_v43, %s10917_s16  ;;  %4244 = vrot.lane.b32.xlu1 %v12623_v34, %s10917_s16 }
 0xf71   : > { %4256 = vrot.lane.b32.xlu0 %v12646_v39, %s10917_s16  ;;  %4248 = vrot.lane.b32.xlu1 %v12627_v36, %s10917_s16  ;;  %v9336_v36 = vld [vmem:[%s15603_s6 + $0x2b8] sm:$0xff]  ;;  %v9335_v39 = vld [vmem:[%s15603_s6 + $0x2b0] sm:$0xff] }
 0xf72   : > { %9356 = vmatprep.mubr.msk.f32.mxu0 %vm15770_vm11, %v9336_v36  ;;  %vm15782_vm11 = vmmov %vm15780_vm1 }
 0xf73   : > { %3768 = vmatmul.mubr.f32.gmra.mrb[78].mxu0 %v9335_v39 }
 0xf74   : > { %9357 = vmatprep.mubr.msk.f32.mxu0 %vm15771_vm7, %v9338_v3  ;;  %vm15783_vm7 = vmmov %vm15780_vm1 }
 0xf75   : > { %4250 = vrot.lane.b32.xlu0 %v12662_v44, %s10917_s16  ;;  %4254 = vrot.lane.b32.xlu1 %v12671_v46, %s10917_s16 }
 0xf77   : > { %3772 = vmatmul.mubr.f32.gmra.mrb[80].mxu0 %v9337_v4 }
 0xf78   : > { %9358 = vmatprep.mubr.msk.f32.mxu0 %vm15772_vm14, %v9340_v55  ;;  %vm15784_vm14 = vmmov %vm15780_vm1 }
 0xf79   : > { %4220 = vrot.lane.b32.xlu0 %v12745_v60, %s10917_s16  ;;  %4242 = vrot.lane.b32.xlu1 %v12625_v35, %s10917_s16 }
 0xf7b   : > { %3776 = vmatmul.mubr.f32.gmra.mrb[82].mxu0 %v9339_v61 }
 0xf7c   : > { %9359 = vmatprep.mubr.msk.f32.mxu0 %vm15773_vm15, %v9342_v32  ;;  %vm15785_vm15 = vmmov %vm15778_vm13 }
 0xf7d   : > { %4262 = vrot.lane.b32.xlu0 %v12547_v29, %s10917_s16  ;;  %4222 = vrot.lane.b32.xlu1 %v12745_v60, %s10917_s16 }
 0xf7f   : > { %3780 = vmatmul.mubr.f32.gmra.mrb[84].mxu0 %v9341_v57 }
 0xf80   : > { %9360 = vmatprep.mubr.msk.f32.mxu0 %vm15774_vm8, %v9344_v53  ;;  %vm15786_vm8 = vmmov %vm15780_vm1 }
 0xf81   : > { %4224 = vrot.lane.b32.xlu0 %v3936_v37, %s10917_s16  ;;  %4260 = vrot.lane.b32.xlu1 %v12547_v29, %s10917_s16  ;;  %v3980_v37 = vld [vmem:[%s15606_s9 + $0x18] sm:$0xff] }
 0xf83   : > { %3784 = vmatmul.mubr.f32.gmra.mrb[86].mxu0 %v9343_v9 }
 0xf85   : > { %4218 = vrot.lane.b32.xlu0 %v12745_v60, %s10917_s16  ;;  %4264 = vrot.lane.b32.xlu1 %v12547_v29, %s10917_s16  ;;  %v3962_v60 = vld [vmem:[#allocation4 + $0x8] sm:$0xff] }
 0xf86   : > { %9361 = vmatprep.mubr.msk.f32.mxu1 %vm15775_vm10, %v3962_v60  ;;  %9369 = vmatprep.mubr.msk.f32.mxu0 %vm15776_vm9, %v3962_v60  ;;  %vm15787_vm10 = vmmov %vm15780_vm1 }
 0xf87   : > { %vm15788_vm9 = vmmov %vm15780_vm1 }
 0xf89   : > { %4268 = vrot.lane.b32.xlu0 %v12547_v29, %s10917_s16  ;;  %4270 = vrot.lane.b32.xlu1 %v12547_v29, %s10917_s16 }
 0xf8d   : > { %4272 = vrot.lane.b32.xlu0 %v12547_v29, %s10917_s16  ;;  %4258 = vrot.lane.b32.xlu1 %v12547_v29, %s10917_s16 }
 0xf91   : > { %4266 = vrot.lane.b32.xlu0 %v12547_v29, %s10917_s16  ;;  %4471 = vperm.xlu1 %10852, %v3977_v2  }
 0xf95   : > { %4476 = vperm.xlu0 %10851, %v3978_v24   ;;  %4481 = vperm.xlu1 %10852, %v3979_v27  }
 0xf99   : > { %4486 = vperm.xlu0 %10851, %v3980_v37   ;;  %4491 = vperm.xlu1 %10852, %v3981_v7  }
 0xf9d   : > { %4496 = vperm.xlu0 %10851, %v3982_v41   ;;  %4501 = vperm.xlu1 %10852, %v3983_v58  }
 0xfa1   : > { %4506 = vperm.xlu0 %10851, %v3984_v14   ;;  %v4095_v14 = vsel %vm15781_vm2, %v12611_v30, %v12609_v28  ;;  %vm15794_vm2 = vmmov %vm15780_vm1 }
 0xfb7   : > { %v4026_v36 = vpop.permute.xlu1 %4025  ;;  %v4028_v39 = vpop.permute.xlu0 %4027 }
 0xfb8   : > { %4146 = vst.msk [vmem:[#allocation3] sm:$0xff] %vm4145_vm0, %v4026_v36  ;;  %v4089_v27 = vsel %vm15779_vm12, %v4026_v36, %v4028_v39  ;;  %v4098_v36 = vsel %vm15782_vm11, %v12644_v10, %v12642_v11  ;;  %v4104_v10 = vsel %vm15786_vm8, %v12686_v21, %v12738_v25  ;;  %vm15792_vm12 = vmmov %vm15780_vm1  ;;  %vm15798_vm8 = vcmask 523264  }
 0xfb9   : > { %v10250_v30 = vpack.c.bf16 %v4098_v36, %v4095_v14  ;;  %v4096_v5 = vsel %vm15792_vm12, %v12609_v28, %v12621_v33  ;;  %v4105_v28 = vsel %vm15794_vm2, %v12738_v25, %v12736_v62  ;;  %vm15795_vm11 = vmmov %vm15780_vm1 }
 0xfba   : > { %v10300_v20 = vpack.c.bf16 %v4099_v22, %v4096_v5  ;;  %v4102_v62 = vsel %vm15795_vm11, %v12675_v47, %v12681_v19  ;;  %v4432_v5 = vld [vmem:[#allocation3 + $0x1d8] sm:$0xff] }
 0xfbb   : > { %v4030_v3 = vpop.permute.xlu1 %4029  ;;  %v10304_v26 = vpack.c.bf16 %v4105_v28, %v4102_v62  ;;  %v4436_v22 = vld [vmem:[#allocation3 + $0x1f8] sm:$0xff] }
 0xfbf   : > { %v4032_v4 = vpop.permute.xlu0 %4031  ;;  %v12925_v55 = vpop.permute.xlu1 %4212  ;;  %v4373_v61 = vld [vmem:[#allocation3] sm:$0xff] }
 0xfc0   : > { %v4091_v32 = vsel %vm15763_vm5, %v4030_v3, %v4032_v4  ;;  %4817 = vst.msk [vmem:[#allocation3] sm:$0xff] %vm15777_vm3, %v12547_v29  ;;  %vm15789_vm5 = vmmov %vm15780_vm1 }
 0xfc1   : > { %4149 = vst.msk [vmem:[#allocation3 + $0x18] sm:$0xff] %vm15778_vm13, %v4091_v32  ;;  %v4110_v14 = vsel %vm15789_vm5, %v12766_v18, %v12783_v45  ;;  %vm15790_vm3 = vmmov %vm15780_vm1 }
 0xfc2   : > { %vm15791_vm13 = vmmov %vm15780_vm1 }
 0xfc3   : > { %v12931_v57 = vpop.permute.xlu0 %4214  ;;  %v12933_v53 = vpop.permute.xlu1 %4216  ;;  %vm15801_vm5 = vmmov %vm15798_vm8 }
 0xfc4   : > { %4335 = vst.msk [vmem:[#allocation3 + $0x218] sm:$0xff] %vm4334_vm4, %v12933_v53 }
 0xfc5   : > { %4365 = vst.msk [vmem:[#allocation3 + $0x218] sm:$0xff] %vm4364_vm6, %v12547_v29 }
 0xfc7   : > { %v4036_v9 = vpop.permute.xlu0 %4035  ;;  %v12939_v60 = vpop.permute.xlu1 %4210 }
 0xfcb   : > { %v12941_v2 = vpop.permute.xlu0 %4236  ;;  %v4034_v24 = vpop.permute.xlu1 %4033 }
 0xfcc   : > { %v4092_v37 = vsel %vm15780_vm1, %v4034_v24, %v4036_v9  ;;  %4150 = vst.msk [vmem:[#allocation3 + $0x20] sm:$0xff] %vm4145_vm0, %v4034_v24 }
 0xfcd   : > { %v10246_v7 = vpack.c.bf16 %v4092_v37, %v4089_v27 }
 0xfcf   : > { %v12946_v41 = vpop.permute.xlu0 %4240  ;;  %v4038_v58 = vpop.permute.xlu1 %4037  ;;  %10247 = vmatprep.subr.bf16.mxu1 %v10246_v7 }
 0xfd0   : > { %4347 = vst.msk [vmem:[#allocation3 + $0x278] sm:$0xff] %vm4334_vm4, %v12946_v41  ;;  %v4093_v21 = vsel %vm15790_vm3, %v4036_v9, %v4038_v58  ;;  %vm15802_vm3 = vmmov %vm15801_vm5 }
 0xfd1   : > { %4368 = vst.msk [vmem:[#allocation3 + $0x278] sm:$0xff] %vm4364_vm6, %v12547_v29  ;;  %vm15804_vm12 = vmmov %vm15802_vm3 }
 0xfd3   : > { %v4040_v4 = vpop.permute.xlu0 %4039  ;;  %v12958_v32 = vpop.permute.xlu1 %4232  ;;  %v4377_v24 = vld [vmem:[#allocation3 + $0x20] sm:$0xff] }
 0xfd4   : > { %v4094_v27 = vsel %vm15783_vm7, %v4038_v58, %v4040_v4  ;;  %4343 = vst.msk [vmem:[#allocation3 + $0x258] sm:$0xff] %vm4334_vm4, %v12958_v32  ;;  %v10248_v37 = vpack.c.bf16 %v4377_v24, %v4373_v61  ;;  %v4101_v61 = vsel %vm15787_vm10, %v12677_v48, %v12675_v47  ;;  %v4384_v48 = vld [vmem:[#allocation3 + $0x58] sm:$0xff]  ;;  %vm15796_vm7 = vmmov %vm15780_vm1 }
 0xfd5   : > { %4818 = vst.msk [vmem:[#allocation3 + $0x20] sm:$0xff] %vm15784_vm14, %v12547_v29  ;;  %v10254_v24 = vpack.c.bf16 %v4104_v10, %v4101_v61  ;;  %v4388_v61 = vld [vmem:[#allocation3 + $0x78] sm:$0xff]  ;;  %v4108_v25 = vsel %vm15796_vm7, %v12764_v31, %v12756_v38  ;;  %vm15797_vm14 = vmmov %vm15780_vm1 }
 0xfd6   : > { %4153 = vst.msk [vmem:[#allocation3 + $0x38] sm:$0xff] %vm15785_vm15, %v4094_v27  ;;  %10249 = vmatpush1.bf16.msra.mxu1 %v10248_v37  ;;  %v4107_v27 = vsel %vm15788_vm9, %v12743_v13, %v12764_v31  ;;  %v4090_v13 = vsel %vm15791_vm13, %v4028_v39, %v4030_v3  ;;  %v10298_v9 = vpack.c.bf16 %v4388_v61, %v4384_v48  ;;  %v4396_v3 = vld [vmem:[#allocation3 + $0xb8] sm:$0xff]  ;;  %vm4274_vm15 = vcmask 1039360   ;;  %vm15799_vm10 = vmmov %vm15798_vm8 }
 0xfd7   : > { %4367 = vst.msk [vmem:[#allocation3 + $0x258] sm:$0xff] %vm4364_vm6, %v12547_v29  ;;  %v12971_v7 = vpop.permute.xlu0 %4234  ;;  %v12973_v4 = vpop.permute.xlu1 %4238  ;;  %10251 = vmatprep.subr.bf16.mxu1 %v10250_v30  ;;  %v4376_v30 = vld [vmem:[#allocation3 + $0x18] sm:$0xff]  ;;  %v10258_v6 = vpack.c.bf16 %v4110_v14, %v4107_v27  ;;  %v10296_v18 = vpack.c.bf16 %v4093_v21, %v4090_v13  ;;  %v4111_v47 = vsel %vm15797_vm14, %v12783_v45, %v12795_v56  ;;  %vm15800_vm9 = vmmov %vm15798_vm8 }
 0xfd8   : > { %v10308_v12 = vpack.c.bf16 %v4111_v47, %v4108_v25  ;;  %v4408_v27 = vld [vmem:[#allocation3 + $0x118] sm:$0xff]  ;;  %v10324_v56 = vpack.c.bf16 %v12547_v29, %v12547_v29  ;;  %v10272_v48 = vpack.c.bf16 %v12662_v44, %v12625_v35  ;;  %v10316_v13 = vpack.c.bf16 %v12510_v51, %v12522_v8  ;;  %vm15803_vm13 = vmmov %vm15802_vm3 }
 0xfd9   : > { %v4416_v38 = vld [vmem:[#allocation3 + $0x158] sm:$0xff]  ;;  %v10322_v51 = vpack.c.bf16 %v4436_v22, %v4432_v5  ;;  %v10320_v8 = vpack.c.bf16 %v12671_v46, %v12648_v40  ;;  %v4275_v28 = vsel %vm4274_vm15, %v12939_v60, %v12925_v55  ;;  %v4282_v40 = vsel %vm4274_vm15, %v12920_v17, %v12922_v59  ;;  %v3965_v22 = vld [vmem:[#allocation4 + $0x20] sm:$0xff]  ;;  %vm15805_vm1 = vmmov %vm15802_vm3 }
 0xfda   : > { %10253 = vmatpush1.bf16.msra.mxu1 %v10252_v23  ;;  %v4420_v31 = vld [vmem:[#allocation3 + $0x178] sm:$0xff]  ;;  %v4277_v47 = vsel %vm4274_vm15, %v12931_v57, %v12933_v53  ;;  %vm15806_vm2 = vmmov %vm15805_vm1 }
 0xfdb   : > { %v12988_v36 = vpop.permute.xlu0 %4246  ;;  %v12990_v37 = vpop.permute.xlu1 %4226  ;;  %10255 = vmatprep.subr.bf16.mxu1 %v10254_v24  ;;  %v4412_v24 = vld [vmem:[#allocation3 + $0x138] sm:$0xff]  ;;  %vm15807_vm11 = vmmov %vm15805_vm1 }
 0xfdc   : > { %v10310_v21 = vpack.c.bf16 %v4412_v24, %v4408_v27  ;;  %v4428_v35 = vld [vmem:[#allocation3 + $0x1b8] sm:$0xff]  ;;  %vm15808_vm7 = vmmov %vm15805_vm1 }
 0xfdd   : > { %v4380_v10 = vld [vmem:[#allocation3 + $0x38] sm:$0xff]  ;;  %vm15809_vm14 = vmmov %vm15805_vm1 }
 0xfde   : > { %v10294_v63 = vpack.c.bf16 %v4380_v10, %v4376_v30  ;;  %10257 = vmatpush1.bf16.msra.mxu1 %v10256_v52  ;;  %v15793_v52 = vpack.c.bf16 %v12785_v49, %v12768_v54  ;;  %v4400_v54 = vld [vmem:[#allocation3 + $0xd8] sm:$0xff]  ;;  %v10314_v30 = vpack.c.bf16 %v4420_v31, %v4416_v38  ;;  %v4276_v10 = vsel %vm4274_vm15, %v12925_v55, %v12931_v57 }
 0xfdf   : > { %v13002_v23 = vpop.permute.xlu0 %4252  ;;  %v13004_v39 = vpop.permute.xlu1 %4244  ;;  %10259 = vmatprep.subr.bf16.mxu1 %v10258_v6  ;;  %v4404_v49 = vld [vmem:[#allocation3 + $0xf8] sm:$0xff] }
 0xfe0   : > { %10295 = vmatprep.subr.bf16.mxu0 %v10294_v63  ;;  %v10302_v63 = vpack.c.bf16 %v4396_v3, %v4392_v50  ;;  %v10306_v6 = vpack.c.bf16 %v4404_v49, %v4400_v54  ;;  %v4440_v55 = vld [vmem:[#allocation3 + $0x218] sm:$0xff] }
 0xfe1   : > { %10297 = vmatpush1.bf16.msra.mxu0 %v10296_v18  ;;  %v4424_v18 = vld [vmem:[#allocation3 + $0x198] sm:$0xff] }
 0xfe2   : > { %10299 = vmatprep.subr.bf16.mxu0 %v10298_v9  ;;  %10261 = vmatpush1.bf16.msra.mxu1 %v15793_v52  ;;  %v10318_v3 = vpack.c.bf16 %v4428_v35, %v4424_v18  ;;  %v4448_v60 = vld [vmem:[#allocation3 + $0x258] sm:$0xff] }
 0xfe3   : > { %v13012_v33 = vpop.permute.xlu0 %4256  ;;  %v13014_v11 = vpop.permute.xlu1 %4248  ;;  %10263 = vmatprep.subr.bf16.mxu1 %v12754_v15  ;;  %v4452_v54 = vld [vmem:[#allocation3 + $0x278] sm:$0xff] }
 0xfe4   : > { %4355 = vst.msk [vmem:[#allocation3 + $0x2b8] sm:$0xff] %vm4334_vm4, %v13012_v33  ;;  %4351 = vst.msk [vmem:[#allocation3 + $0x298] sm:$0xff] %vm4334_vm4, %v13014_v11  ;;  %v3964_v35 = vld [vmem:[#allocation4 + $0x18] sm:$0xff] }
 0xfe5   : > { %10301 = vmatpush1.bf16.msra.mxu0 %v10300_v20  ;;  %4370 = vst.msk [vmem:[#allocation3 + $0x2b8] sm:$0xff] %vm4364_vm6, %v12547_v29  ;;  %4369 = vst.msk [vmem:[#allocation3 + $0x298] sm:$0xff] %vm4364_vm6, %v12547_v29 }
 0xfe6   : > { %10303 = vmatprep.subr.bf16.mxu0 %v10302_v63  ;;  %10265 = vmatpush1.bf16.msra.mxu1 %v12754_v15 }
 0xfe7   : > { %v13039_v19 = vpop.permute.xlu0 %4250  ;;  %v13041_v58 = vpop.permute.xlu1 %4254  ;;  %10267 = vmatprep.subr.bf16.mxu1 %v10266_v42  ;;  %v4281_v42 = vsel %vm4274_vm15, %v12990_v37, %v12920_v17  ;;  %v4284_v17 = vsel %vm4274_vm15, %v12971_v7, %v12941_v2 }
 0xfe8   : > { %v4291_v62 = vsel %vm4274_vm15, %v13002_v23, %v13041_v58 }
 0xfe9   : > { %10305 = vmatpush1.bf16.msra.mxu0 %v10304_v26 }
 0xfea   : > { %10307 = vmatprep.subr.bf16.mxu0 %v10306_v6  ;;  %10269 = vmatpush1.bf16.msra.mxu1 %v10268_v1  ;;  %v4288_v6 = vsel %vm4274_vm15, %v13004_v39, %v12988_v36 }
 0xfeb   : > { %v4221_v14 = vpop.permute.xlu0 %4220  ;;  %v13045_v45 = vpop.permute.xlu1 %4242  ;;  %10271 = vmatprep.subr.bf16.mxu1 %v10270_v16  ;;  %v10330_v16 = vpack.c.bf16 %v4452_v54, %v4448_v60  ;;  %v10286_v31 = vpack.c.bf16 %v4291_v62, %v4288_v6 }
 0xfec   : > { %v4287_v27 = vsel %vm4274_vm15, %v13045_v45, %v13004_v39  ;;  %v4456_v57 = vld [vmem:[#allocation3 + $0x298] sm:$0xff]  ;;  %v4283_v39 = vsel %vm4274_vm15, %v12922_v59, %v12958_v32 }
 0xfed   : > { %10309 = vmatpush1.bf16.msra.mxu0 %v10308_v12  ;;  %v10284_v12 = vpack.c.bf16 %v4284_v17, %v4281_v42  ;;  %v4460_v53 = vld [vmem:[#allocation3 + $0x2b8] sm:$0xff] }
 0xfee   : > { %10311 = vmatprep.subr.bf16.mxu0 %v10310_v21  ;;  %10273 = vmatpush1.bf16.msra.mxu1 %v10272_v48  ;;  %v4290_v21 = vsel %vm4274_vm15, %v13039_v19, %v13002_v23  ;;  %v10334_v45 = vpack.c.bf16 %v4460_v53, %v4456_v57  ;;  %v4292_v48 = vsel %vm4274_vm15, %v13041_v58, %v13012_v33  ;;  %v3961_v33 = vld [vmem:[#allocation4] sm:$0xff] }
 0xfef   : > { %v13051_v34 = vpop.permute.xlu0 %4262  ;;  %v4223_v43 = vpop.permute.xlu1 %4222  ;;  %10275 = vmatprep.subr.bf16.mxu1 %v10324_v56 }
 0xff0   : > { %v4279_v61 = vsel %vm4274_vm15, %v4221_v14, %v4223_v43 }
 0xff1   : > { %10313 = vmatpush1.bf16.msra.mxu0 %v12754_v15  ;;  %v10278_v44 = vpack.c.bf16 %v4279_v61, %v4276_v10  ;;  %v4285_v15 = vsel %vm4274_vm15, %v12941_v2, %v12973_v4  ;;  %v4286_v2 = vsel %vm4274_vm15, %v12973_v4, %v12946_v41 }
 0xff2   : > { %10315 = vmatprep.subr.bf16.mxu0 %v10314_v30  ;;  %10277 = vmatpush1.bf16.msra.mxu1 %v10324_v56  ;;  %v10282_v49 = vpack.c.bf16 %v4285_v15, %v4282_v40  ;;  %v10332_v23 = vpack.c.bf16 %v4286_v2, %v4283_v39  ;;  %v3974_v15 = vld [vmem:[#allocation4 + $0x68] sm:$0xff] }
 0xff3   : > { %v4225_v9 = vpop.permute.xlu0 %4224  ;;  %v13060_v20 = vpop.permute.xlu1 %4260  ;;  %10279 = vmatprep.subr.bf16.mxu1 %v10278_v44 }
 0xff4   : > { %4339 = vst.msk [vmem:[#allocation3 + $0x238] sm:$0xff] %vm4334_vm4, %v4225_v9  ;;  %v4280_v26 = vsel %vm4274_vm15, %v4223_v43, %v4225_v9  ;;  %v4294_v41 = vsel %vm4274_vm15, %v13060_v20, %v13051_v34  ;;  %v3968_v9 = vld [vmem:[#allocation4 + $0x38] sm:$0xff] }
 0xff5   : > { %10317 = vmatpush1.bf16.msra.mxu0 %v10316_v13  ;;  %4366 = vst.msk [vmem:[#allocation3 + $0x238] sm:$0xff] %vm4364_vm6, %v12547_v29  ;;  %v10328_v38 = vpack.c.bf16 %v4280_v26, %v4277_v47 }
 0xff6   : > { %10319 = vmatprep.subr.bf16.mxu0 %v10318_v3  ;;  %v3970_v3 = vld [vmem:[#allocation4 + $0x48] sm:$0xff] }
 0xff7   : > { %v4219_v50 = vpop.permute.xlu0 %4218  ;;  %v13070_v52 = vpop.permute.xlu1 %4264 }
 0xff8   : > { %v4278_v63 = vsel %vm4274_vm15, %v4219_v50, %v4221_v14  ;;  %4359 = vst.msk [vmem:[#allocation3 + $0x2d8] sm:$0xff] %vm4334_vm4, %v13070_v52  ;;  %v4295_v44 = vsel %vm4274_vm15, %v13051_v34, %v13070_v52  ;;  %v3967_v34 = vld [vmem:[#allocation4 + $0x30] sm:$0xff]  ;;  %v3973_v50 = vld [vmem:[#allocation4 + $0x60] sm:$0xff]  ;;  %v3976_v52 = vld [vmem:[#allocation4 + $0x78] sm:$0xff] }
 0xff9   : > { %10321 = vmatpush1.bf16.msra.mxu0 %v10320_v8  ;;  %4371 = vst.msk [vmem:[#allocation3 + $0x2d8] sm:$0xff] %vm4364_vm6, %v12547_v29  ;;  %v10280_v46 = vpack.c.bf16 %v4278_v63, %v4275_v28  ;;  %v3971_v8 = vld [vmem:[#allocation4 + $0x50] sm:$0xff] }
 0xffa   : > { %10323 = vmatprep.subr.bf16.mxu0 %v10322_v51  ;;  %v3972_v51 = vld [vmem:[#allocation4 + $0x58] sm:$0xff]  ;;  %v3975_v28 = vld [vmem:[#allocation4 + $0x70] sm:$0xff] }
 0xffb   : > { %v4269_v1 = vpop.permute.xlu0 %4268  ;;  %v4271_v25 = vpop.permute.xlu1 %4270  ;;  %10281 = vmatpush1.bf16.msra.mxu1 %v10280_v46 }
 0xffc   : > { %v4444_v37 = vld [vmem:[#allocation3 + $0x238] sm:$0xff]  ;;  %10283 = vmatprep.subr.bf16.mxu1 %v10282_v49  ;;  %v4297_v14 = vsel %vm4274_vm15, %v4269_v1, %v4271_v25 }
 0xffd   : > { %10325 = vmatpush1.bf16.msra.mxu0 %v10324_v56  ;;  %v10326_v24 = vpack.c.bf16 %v4444_v37, %v4440_v55  ;;  %v10288_v56 = vpack.c.bf16 %v4290_v21, %v4287_v27  ;;  %v10290_v19 = vpack.c.bf16 %v4297_v14, %v4294_v41 }
 0xfff   : > { %v4273_v7 = vpop.permute.xlu0 %4272  ;;  %10327 = vmatprep.subr.bf16.mxu0 %v10326_v24  ;;  %10285 = vmatpush1.bf16.msra.mxu1 %v10284_v12  ;;  %v4259_v4 = vpop.permute.xlu1 %4258 }
0x1000   : > { %4363 = vst.msk [vmem:[#allocation3 + $0x2f8] sm:$0xff] %vm4334_vm4, %v4273_v7  ;;  %10287 = vmatprep.subr.bf16.mxu1 %v10286_v31  ;;  %v4293_v32 = vsel %vm4274_vm15, %v4259_v4, %v13060_v20  ;;  %v4464_v61 = vld [vmem:[#allocation3 + $0x2d8] sm:$0xff]  ;;  %v4298_v13 = vsel %vm4274_vm15, %v4271_v25, %v4273_v7  ;;  %v3969_v20 = vld [vmem:[#allocation4 + $0x40] sm:$0xff] }
0x1001   : > { %10329 = vmatpush1.bf16.msra.mxu0 %v10328_v38  ;;  %4372 = vst.msk [vmem:[#allocation3 + $0x2f8] sm:$0xff] %vm4364_vm6, %v12547_v29  ;;  %v4289_v29 = vsel %vm4274_vm15, %v12988_v36, %v13014_v11  ;;  %v10340_v5 = vpack.c.bf16 %v4298_v13, %v4295_v44  ;;  %v3963_v36 = vld [vmem:[#allocation4 + $0x10] sm:$0xff]  ;;  %v3966_v11 = vld [vmem:[#allocation4 + $0x28] sm:$0xff] }
0x1002   : > { %10331 = vmatprep.subr.bf16.mxu0 %v10330_v16  ;;  %v10336_v10 = vpack.c.bf16 %v4292_v48, %v4289_v29 }
0x1003   : > { %v4267_v30 = vpop.permute.xlu0 %4266  ;;  %10289 = vmatpush1.bf16.msra.mxu1 %v10288_v56 }
0x1004   : > { %v4296_v59 = vsel %vm4274_vm15, %v4267_v30, %v4269_v1  ;;  %10291 = vmatprep.subr.bf16.mxu1 %v10290_v19 }
0x1005   : > { %10333 = vmatpush1.bf16.msra.mxu0 %v10332_v23  ;;  %v10292_v43 = vpack.c.bf16 %v4296_v59, %v4293_v32 }
0x1006   : > { %10335 = vmatprep.subr.bf16.mxu0 %v10334_v45 }
0x1007   : > { %10293 = vmatpush1.bf16.msra.mxu1 %v10292_v43 }
0x1008   : > { %v4468_v58 = vld [vmem:[#allocation3 + $0x2f8] sm:$0xff] }
0x1009   : > { %10337 = vmatpush1.bf16.msra.mxu0 %v10336_v10  ;;  %v10338_v18 = vpack.c.bf16 %v4468_v58, %v4464_v61 }
0x100a   : > { %4598 = vmatmul.mubr.f32.vlgmr.msra.gmra.mrb[88].mxu1 %v3961_v33 }
0x100b   : > { %10339 = vmatprep.subr.bf16.mxu0 %v10338_v18  ;;  %9362 = vmatprep.mubr.msk.f32.mxu1 %vm15798_vm8, %v3964_v35  ;;  %vm15810_vm8 = vmmov %vm15805_vm1 }
0x100d   : > { %10341 = vmatpush1.bf16.msra.mxu0 %v10340_v5 }
0x100e   : > { %4604 = vmatmul.mubr.f32.gmra.mrb[90].mxu1 %v3963_v36 }
0x100f   : > { %9363 = vmatprep.mubr.msk.f32.mxu1 %vm15799_vm10, %v3966_v11  ;;  %vm15811_vm10 = vmmov %vm15805_vm1 }
0x1010   : > { %4711 = vmatmul.mubr.f32.vlgmr.msra.gmra.mrb[88].mxu0 %v3961_v33  ;;  %v4472_v47 = vpop.permute.xlu1 %4471 }
0x1011   : > { %9370 = vmatprep.mubr.msk.f32.mxu0 %vm15800_vm9, %v3964_v35  ;;  %vm15812_vm9 = vcmask 949248  }
0x1012   : > { %4610 = vmatmul.mubr.f32.gmra.mrb[92].mxu1 %v3965_v22 }
0x1013   : > { %9364 = vmatprep.mubr.msk.f32.mxu1 %vm15801_vm5, %v3968_v9  ;;  %vm15813_vm5 = vmmov %vm15812_vm9 }
0x1014   : > { %4717 = vmatmul.mubr.f32.gmra.mrb[90].mxu0 %v3963_v36  ;;  %v4477_v16 = vpop.permute.xlu0 %4476  ;;  %v13167_v29 = vpop.permute.xlu1 %4481 }
0x1015   : > { %9371 = vmatprep.mubr.msk.f32.mxu0 %vm15802_vm3, %v3966_v11  ;;  %vm15814_vm3 = vmmov %vm15813_vm5 }
0x1016   : > { %4616 = vmatmul.mubr.f32.gmra.mrb[94].mxu1 %v3967_v34 }
0x1017   : > { %9365 = vmatprep.mubr.msk.f32.mxu1 %vm15803_vm13, %v3970_v3  ;;  %vm15815_vm13 = vmmov %vm15814_vm3 }
0x1018   : > { %4723 = vmatmul.mubr.f32.gmra.mrb[92].mxu0 %v3965_v22  ;;  %v13170_v10 = vpop.permute.xlu0 %4486 }
0x1019   : > { %9372 = vmatprep.mubr.msk.f32.mxu0 %vm15804_vm12, %v3968_v9  ;;  %vm15816_vm12 = vmmov %vm15814_vm3 }
0x101a   : > { %4622 = vmatmul.mubr.f32.gmra.mrb[96].mxu1 %v3969_v20 }
0x101b   : > { %9366 = vmatprep.mubr.msk.f32.mxu1 %vm15805_vm1, %v3972_v51  ;;  %vm15817_vm1 = vmmov %vm15814_vm3 }
0x101c   : > { %4729 = vmatmul.mubr.f32.gmra.mrb[94].mxu0 %v3967_v34 }
0x101d   : > { %9373 = vmatprep.mubr.msk.f32.mxu0 %vm15806_vm2, %v3970_v3  ;;  %vm15818_vm2 = vmmov %vm15817_vm1 }
0x101e   : > { %4628 = vmatmul.mubr.f32.gmra.mrb[98].mxu1 %v3971_v8 }
0x101f   : > { %9367 = vmatprep.mubr.msk.f32.mxu1 %vm15807_vm11, %v3974_v15  ;;  %vm15819_vm11 = vmmov %vm15817_vm1 }
0x1020   : > { %4735 = vmatmul.mubr.f32.gmra.mrb[96].mxu0 %v3969_v20 }
0x1021   : > { %9374 = vmatprep.mubr.msk.f32.mxu0 %vm15808_vm7, %v3972_v51 }
0x1022   : > { %4634 = vmatmul.mubr.f32.gmra.mrb[100].mxu1 %v3973_v50 }
0x1023   : > { %9368 = vmatprep.mubr.msk.f32.mxu1 %vm15809_vm14, %v3976_v52  ;;  %vm15820_vm14 = vmmov %vm15808_vm7 }
0x1024   : > { %4741 = vmatmul.mubr.f32.gmra.mrb[98].mxu0 %v3971_v8 }
0x1025   : > { %9375 = vmatprep.mubr.msk.f32.mxu0 %vm15810_vm8, %v3974_v15  ;;  %vm15821_vm8 = vcmask 7168  }
0x1026   : > { %4640 = vmatmul.mubr.f32.gmra.mrb[102].mxu1 %v3975_v28 }
0x1028   : > { %4747 = vmatmul.mubr.f32.gmra.mrb[100].mxu0 %v3973_v50 }
0x1029   : > { %9376 = vmatprep.mubr.msk.f32.mxu0 %vm15811_vm10, %v3976_v52  ;;  %vm15822_vm10 = vmmov %vm15821_vm8 }
0x102c   : > { %4753 = vmatmul.mubr.f32.gmra.mrb[102].mxu0 %v3975_v28 }
0x1036   : > { %v3765_v63 = vpop.f32.mrb[76].mxu0 }
0x1037   : > { %v3766_v40 = vpop.f32.mrb[77].mxu0 }
0x1046   : > { %v3769_v46 = vpop.f32.mrb[78].mxu0 }
0x1047   : > { %v3770_v42 = vpop.f32.mrb[79].mxu0 }
0x104a   : > { %v3773_v55 = vpop.f32.mrb[80].mxu0 }
0x104b   : > { %v3774_v60 = vpop.f32.mrb[81].mxu0 }
0x104e   : > { %v3777_v54 = vpop.f32.mrb[82].mxu0 }
0x104f   : > { %v3778_v49 = vpop.f32.mrb[83].mxu0  ;;  %v4492_v54 = vpop.permute.xlu1 %4491 }
0x1052   : > { %v3781_v62 = vpop.f32.mrb[84].mxu0 }
0x1053   : > { %v3782_v26 = vpop.f32.mrb[85].mxu0 }
0x1056   : > { %v3785_v1 = vpop.f32.mrb[86].mxu0 }
0x1057   : > { %v3786_v25 = vpop.f32.mrb[87].mxu0 }
0x10dd   : > { %v4599_v17 = vpop.f32.mrb[88].mxu1 }
0x10de   : > { %v4600_v37 = vadd.f32 %v4599_v17, %v4472_v47  ;;  %v4601_v6 = vpop.f32.mrb[89].mxu1 }
0x10df   : > { %v4602_v12 = vadd.f32 %v4601_v6, %v4472_v47 }
0x10e0   : > { %v13145_v24 = vmax.f32 %v4600_v37, 0.0  ;;  %v4497_v37 = vpop.permute.xlu0 %4496 }
0x10e1   : > { %v4605_v27 = vpop.f32.mrb[90].mxu1  ;;  %v13153_v41 = vmax.f32 %v4602_v12, 0.0 }
0x10e2   : > { %v4606_v57 = vadd.f32 %v4605_v27, %v4477_v16  ;;  %v4607_v53 = vpop.f32.mrb[91].mxu1  ;;  %4857 = vrot.lane.b32.xlu1 %v13145_v24, %s10916_s20 }
0x10e3   : > { %v4712_v38 = vpop.f32.mrb[88].mxu0  ;;  %v4608_v7 = vadd.f32 %v4607_v53, %v4477_v16  ;;  %v4502_v53 = vpop.permute.xlu1 %4501 }
0x10e4   : > { %v4713_v31 = vadd.f32 %v4712_v38, %v4472_v47  ;;  %v4714_v2 = vpop.f32.mrb[89].mxu0  ;;  %v13149_v21 = vmax.f32 %v4606_v57, 0.0 }
0x10e5   : > { %v4715_v14 = vadd.f32 %v4714_v2, %v4472_v47  ;;  %v13155_v4 = vmax.f32 %v4608_v7, 0.0  ;;  %v13157_v45 = vpop.f32.mrb[92].mxu1 }
0x10e6   : > { %v13151_v39 = vmax.f32 %v4713_v31, 0.0  ;;  %v4613_v19 = vpop.f32.mrb[93].mxu1  ;;  %v10360_v48 = vpack.c.bf16 %v13149_v21, %v13145_v24  ;;  %v4612_v7 = vadd.f32 %v13157_v45, %v13167_v29 }
0x10e7   : > { %v4762_v56 = vmax.f32 %v4715_v14, 0.0  ;;  %v4718_v23 = vpop.f32.mrb[90].mxu0  ;;  %v10358_v32 = vpack.c.bf16 %v13155_v4, %v13153_v41  ;;  %v4614_v13 = vadd.f32 %v4613_v19, %v13167_v29 }
0x10e8   : > { %v4719_v30 = vadd.f32 %v4718_v23, %v4477_v16  ;;  %v4720_v59 = vpop.f32.mrb[91].mxu0  ;;  %5045 = vrot.lane.b32.xlu0 %v13151_v39, %s10917_s16  ;;  %4861 = vrot.lane.b32.xlu1 %v13151_v39, %s10916_s20  ;;  %v4507_v23 = vpop.permute.xlu0 %4506 }
0x10e9   : > { %5012 = vst.msk [vmem:[#allocation3 + $0x118] sm:$0xff] %vm15812_vm9, %v4762_v56  ;;  %v4721_v43 = vadd.f32 %v4720_v59, %v4477_v16  ;;  %v13175_v33 = vpop.f32.mrb[94].mxu1  ;;  %v13190_v9 = vmax.f32 %v4614_v13, 0.0  ;;  %v13254_v59 = vmax.f32 %v4612_v7, 0.0  ;;  %vm15823_vm9 = vmmov %vm15817_vm1 }
0x10ea   : > { %v13172_v61 = vmax.f32 %v4719_v30, 0.0  ;;  %v4619_v44 = vpop.f32.mrb[95].mxu1  ;;  %v4618_v45 = vadd.f32 %v13175_v33, %v13170_v10 }
0x10eb   : > { %v13177_v58 = vmax.f32 %v4721_v43, 0.0  ;;  %v4724_v35 = vpop.f32.mrb[92].mxu0  ;;  %v4620_v5 = vadd.f32 %v4619_v44, %v13170_v10 }
0x10ec   : > { %v4726_v18 = vpop.f32.mrb[93].mxu0  ;;  %4859 = vrot.lane.b32.xlu0 %v13153_v41, %s10916_s20  ;;  %5041 = vrot.lane.b32.xlu1 %v13145_v24, %s10917_s16  ;;  %v4725_v22 = vadd.f32 %v4724_v35, %v13167_v29 }
0x10ed   : > { %5016 = vst.msk [vmem:[#allocation3 + $0x138] sm:$0xff] %vm15813_vm5, %v13177_v58  ;;  %v4727_v11 = vadd.f32 %v4726_v18, %v13167_v29  ;;  %v13192_v34 = vmax.f32 %v4620_v5, 0.0  ;;  %v13194_v3 = vpop.f32.mrb[96].mxu1  ;;  %v13276_v29 = vmax.f32 %v4618_v45, 0.0  ;;  %vm15824_vm5 = vmmov %vm15821_vm8 }
0x10ee   : > { %v13196_v8 = vpop.f32.mrb[97].mxu1  ;;  %v13206_v63 = vmax.f32 %v4725_v22, 0.0  ;;  %v4624_v13 = vadd.f32 %v13194_v3, %v4492_v54 }
0x10ef   : > { %v4770_v20 = vmax.f32 %v4727_v11, 0.0  ;;  %v4730_v51 = vpop.f32.mrb[94].mxu0  ;;  %v10364_v24 = vpack.c.bf16 %v13276_v29, %v13254_v59 }
0x10f0   : > { %v4731_v15 = vadd.f32 %v4730_v51, %v13170_v10  ;;  %v4732_v50 = vpop.f32.mrb[95].mxu0  ;;  %4863 = vrot.lane.b32.xlu0 %v4762_v56, %s10916_s20  ;;  %5043 = vrot.lane.b32.xlu1 %v13153_v41, %s10917_s16  ;;  %v13290_v33 = vmax.f32 %v4624_v13, 0.0 }
0x10f1   : > { %5020 = vst.msk [vmem:[#allocation3 + $0x158] sm:$0xff] %vm15814_vm3, %v4770_v20  ;;  %v4733_v28 = vadd.f32 %v4732_v50, %v13170_v10  ;;  %v13210_v46 = vpop.f32.mrb[98].mxu1  ;;  %vm15825_vm3 = vmmov %vm15824_vm5 }
0x10f2   : > { %v13208_v40 = vmax.f32 %v4731_v15, 0.0  ;;  %v13212_v60 = vpop.f32.mrb[99].mxu1  ;;  %v4630_v18 = vadd.f32 %v13210_v46, %v4497_v37 }
0x10f3   : > { %v4774_v42 = vmax.f32 %v4733_v28, 0.0  ;;  %v4736_v55 = vpop.f32.mrb[96].mxu0  ;;  %v4632_v22 = vadd.f32 %v13212_v60, %v4497_v37 }
0x10f4   : > { %v4738_v49 = vpop.f32.mrb[97].mxu0  ;;  %5049 = vrot.lane.b32.xlu0 %v13149_v21, %s10917_s16  ;;  %5047 = vrot.lane.b32.xlu1 %v4762_v56, %s10917_s16  ;;  %v4737_v10 = vadd.f32 %v4736_v55, %v4492_v54  ;;  %v13305_v11 = vmax.f32 %v4630_v18, 0.0  ;;  %v5240_v41 = vld [vmem:[#allocation3 + $0x138] sm:$0xff] }
0x10f5   : > { %5024 = vst.msk [vmem:[#allocation3 + $0x178] sm:$0xff] %vm15815_vm13, %v4774_v42  ;;  %v4739_v26 = vadd.f32 %v4738_v49, %v4492_v54  ;;  %v13220_v1 = vpop.f32.mrb[100].mxu1  ;;  %vm15826_vm13 = vmmov %vm15825_vm3 }
0x10f6   : > { %v13224_v17 = vpop.f32.mrb[101].mxu1  ;;  %v13296_v35 = vmax.f32 %v4737_v10, 0.0  ;;  %v4636_v51 = vadd.f32 %v13220_v1, %v4502_v53  ;;  %v9382_v10 = vld [vmem:[%s15606_s9 + $0x68] sm:$0xff] }
0x10f7   : > { %v13222_v25 = vmax.f32 %v4739_v26, 0.0  ;;  %v4742_v47 = vpop.f32.mrb[98].mxu0  ;;  %v4638_v50 = vadd.f32 %v13224_v17, %v4502_v53  ;;  %v4793_v17 = vld [vmem:[#allocation4 + $0x88] sm:$0xff] }
0x10f8   : > { %v4744_v6 = vpop.f32.mrb[99].mxu0  ;;  %4867 = vrot.lane.b32.xlu0 %v13155_v4, %s10916_s20  ;;  %4865 = vrot.lane.b32.xlu1 %v13149_v21, %s10916_s20  ;;  %v4743_v5 = vadd.f32 %v4742_v47, %v4497_v37  ;;  %v13321_v15 = vmax.f32 %v4636_v51, 0.0  ;;  %v9384_v51 = vld [vmem:[%s15606_s9 + $0x78] sm:$0xff] }
0x10f9   : > { %5028 = vst.msk [vmem:[#allocation3 + $0x198] sm:$0xff] %vm15816_vm12, %v13222_v25  ;;  %v4745_v16 = vadd.f32 %v4744_v6, %v4497_v37  ;;  %v13232_v12 = vpop.f32.mrb[102].mxu1  ;;  %v13330_v46 = vmax.f32 %v4638_v50, 0.0  ;;  %9393 = vmatprep.mubr.msk.f32.mxu0 %vm15808_vm7, %v4793_v17  ;;  %9385 = vmatprep.mubr.msk.f32.mxu1 %vm15820_vm14, %v4793_v17  ;;  %vm15827_vm12 = vmmov %vm15817_vm1 }
0x10fa   : > { %v13236_v57 = vpop.f32.mrb[103].mxu1  ;;  %v13312_v3 = vmax.f32 %v4743_v5, 0.0 }
0x10fb   : > { %v13234_v27 = vmax.f32 %v4745_v16, 0.0  ;;  %v4748_v38 = vpop.f32.mrb[100].mxu0 }
0x10fc   : > { %v4750_v31 = vpop.f32.mrb[101].mxu0  ;;  %4871 = vrot.lane.b32.xlu0 %v13177_v58, %s10916_s20  ;;  %4869 = vrot.lane.b32.xlu1 %v13172_v61, %s10916_s20 }
0x10fd   : > { %5032 = vst.msk [vmem:[#allocation3 + $0x1b8] sm:$0xff] %vm15817_vm1, %v13234_v27  ;;  %v4751_v2 = vadd.f32 %v4750_v31, %v4502_v53  ;;  %v9378_v31 = vld [vmem:[%s15606_s9 + $0x48] sm:$0xff]  ;;  %vm15828_vm1 = vmmov %vm15825_vm3 }
0x10fe   : > { %vm15831_vm7 = vmmov %vm15828_vm1 }
0x10ff   : > { %v13246_v14 = vmax.f32 %v4751_v2, 0.0  ;;  %v4754_v56 = vpop.f32.mrb[102].mxu0  ;;  %v9379_v2 = vld [vmem:[%s15606_s9 + $0x50] sm:$0xff]  ;;  %vm15832_vm14 = vmmov %vm15828_vm1 }
0x1100   : > { %v4756_v19 = vpop.f32.mrb[103].mxu0  ;;  %5051 = vrot.lane.b32.xlu0 %v13155_v4, %s10917_s16  ;;  %5053 = vrot.lane.b32.xlu1 %v13172_v61, %s10917_s16  ;;  %v4755_v55 = vadd.f32 %v4754_v56, %v4507_v23  ;;  %v9380_v56 = vld [vmem:[%s15606_s9 + $0x58] sm:$0xff] }
0x1101   : > { %5036 = vst.msk [vmem:[#allocation3 + $0x1d8] sm:$0xff] %vm15818_vm2, %v13246_v14  ;;  %v4757_v30 = vadd.f32 %v4756_v19, %v4507_v23  ;;  %vm15829_vm2 = vmmov %vm15828_vm1 }
0x1102   : > { %v13344_v49 = vmax.f32 %v4755_v55, 0.0 }
0x1103   : > { %v13256_v43 = vmax.f32 %v4757_v30, 0.0 }
0x1104   : > { %5055 = vrot.lane.b32.xlu0 %v13177_v58, %s10917_s16  ;;  %4873 = vrot.lane.b32.xlu1 %v13254_v59, %s10916_s20  ;;  %v4626_v58 = vadd.f32 %v13196_v8, %v4492_v54  ;;  %v4749_v8 = vadd.f32 %v4748_v38, %v4502_v53  ;;  %v4644_v54 = vadd.f32 %v13236_v57, %v4507_v23 }
0x1105   : > { %5040 = vst.msk [vmem:[#allocation3 + $0x1f8] sm:$0xff] %vm15819_vm11, %v13256_v43  ;;  %vm15830_vm11 = vmmov %vm15828_vm1 }
0x1106   : > { %v13298_v44 = vmax.f32 %v4626_v58, 0.0  ;;  %v13328_v28 = vmax.f32 %v4749_v8, 0.0  ;;  %v13346_v26 = vmax.f32 %v4644_v54, 0.0  ;;  %v9383_v58 = vld [vmem:[%s15606_s9 + $0x70] sm:$0xff] }
0x1108   : > { %5061 = vrot.lane.b32.xlu0 %v13206_v63, %s10917_s16  ;;  %4877 = vrot.lane.b32.xlu1 %v13206_v63, %s10916_s20 }
0x110c   : > { %4875 = vrot.lane.b32.xlu0 %v13190_v9, %s10916_s20  ;;  %5059 = vrot.lane.b32.xlu1 %v13190_v9, %s10917_s16 }
0x1110   : > { %4879 = vrot.lane.b32.xlu0 %v4770_v20, %s10916_s20  ;;  %5063 = vrot.lane.b32.xlu1 %v4770_v20, %s10917_s16  ;;  %v13314_v20 = vmax.f32 %v4632_v22, 0.0 }
0x1114   : > { %4883 = vrot.lane.b32.xlu0 %v13192_v34, %s10916_s20  ;;  %4881 = vrot.lane.b32.xlu1 %v13276_v29, %s10916_s20 }
0x1118   : > { %4887 = vrot.lane.b32.xlu0 %v4774_v42, %s10916_s20  ;;  %4885 = vrot.lane.b32.xlu1 %v13208_v40, %s10916_s20 }
0x111c   : > { %5067 = vrot.lane.b32.xlu0 %v13192_v34, %s10917_s16  ;;  %5069 = vrot.lane.b32.xlu1 %v13208_v40, %s10917_s16 }
0x1120   : > { %5071 = vrot.lane.b32.xlu0 %v4774_v42, %s10917_s16  ;;  %4889 = vrot.lane.b32.xlu1 %v13290_v33, %s10916_s20  ;;  %v4642_v42 = vadd.f32 %v13232_v12, %v4507_v23  ;;  %v13393_v12 = vld [vmem:[#allocation2 + $0xc8] sm:$0xff]  ;;  %v9381_v23 = vld [vmem:[%s15606_s9 + $0x60] sm:$0xff] }
0x1122   : > { %v13337_v60 = vmax.f32 %v4642_v42, 0.0 }
0x1124   : > { %4891 = vrot.lane.b32.xlu0 %v13298_v44, %s10916_s20  ;;  %4893 = vrot.lane.b32.xlu1 %v13296_v35, %s10916_s20 }
0x1128   : > { %4895 = vrot.lane.b32.xlu0 %v13222_v25, %s10916_s20  ;;  %4897 = vrot.lane.b32.xlu1 %v13305_v11, %s10916_s20 }
0x112c   : > { %4899 = vrot.lane.b32.xlu0 %v13314_v20, %s10916_s20  ;;  %4901 = vrot.lane.b32.xlu1 %v13312_v3, %s10916_s20 }
0x1130   : > { %4903 = vrot.lane.b32.xlu0 %v13234_v27, %s10916_s20  ;;  %4905 = vrot.lane.b32.xlu1 %v13321_v15, %s10916_s20 }
0x1134   : > { %4907 = vrot.lane.b32.xlu0 %v13330_v46, %s10916_s20  ;;  %4909 = vrot.lane.b32.xlu1 %v13328_v28, %s10916_s20 }
0x1138   : > { %4911 = vrot.lane.b32.xlu0 %v13246_v14, %s10916_s20  ;;  %4913 = vrot.lane.b32.xlu1 %v13337_v60, %s10916_s20 }
0x113c   : > { %4915 = vrot.lane.b32.xlu0 %v13346_v26, %s10916_s20  ;;  %4917 = vrot.lane.b32.xlu1 %v13344_v49, %s10916_s20 }
0x1140   : > { %4919 = vrot.lane.b32.xlu0 %v13256_v43, %s10916_s20  ;;  %5057 = vrot.lane.b32.xlu1 %v13254_v59, %s10917_s16  ;;  %v5248_v59 = vld [vmem:[#allocation3 + $0x178] sm:$0xff] }
0x1144   : > { %5065 = vrot.lane.b32.xlu0 %v13276_v29, %s10917_s16  ;;  %5075 = vrot.lane.b32.xlu1 %v13298_v44, %s10917_s16  ;;  %v10368_v29 = vpack.c.bf16 %v13305_v11, %v13290_v33 }
0x1148   : > { %5077 = vrot.lane.b32.xlu0 %v13296_v35, %s10917_s16  ;;  %5079 = vrot.lane.b32.xlu1 %v13222_v25, %s10917_s16 }
0x114c   : > { %5083 = vrot.lane.b32.xlu0 %v13314_v20, %s10917_s16  ;;  %5085 = vrot.lane.b32.xlu1 %v13312_v3, %s10917_s16 }
0x1150   : > { %5087 = vrot.lane.b32.xlu0 %v13234_v27, %s10917_s16  ;;  %5073 = vrot.lane.b32.xlu1 %v13290_v33, %s10917_s16  ;;  %v9377_v27 = vld [vmem:[%s15606_s9 + $0x40] sm:$0xff]  ;;  %v15860_v33 = vpack.c.bf16 %v13172_v61, %v13151_v39 }
0x1154   : > { %5081 = vrot.lane.b32.xlu0 %v13305_v11, %s10917_s16  ;;  %5091 = vrot.lane.b32.xlu1 %v13330_v46, %s10917_s16  ;;  %v4858_v1 = vpop.permute.xlu1 %4857  ;;  %v5256_v11 = vld [vmem:[#allocation3 + $0x1b8] sm:$0xff] }
0x1155   : > { %4977 = vst.msk [vmem:[#allocation3] sm:$0xff] %vm4145_vm0, %v4858_v1 }
0x1158   : > { %5093 = vrot.lane.b32.xlu0 %v13328_v28, %s10917_s16  ;;  %5095 = vrot.lane.b32.xlu1 %v13246_v14, %s10917_s16 }
0x115a   : > { %v13381_v25 = vpop.permute.xlu0 %5045  ;;  %v13383_v47 = vpop.permute.xlu1 %4861 }
0x115c   : > { %5099 = vrot.lane.b32.xlu0 %v13346_v26, %s10917_s16  ;;  %5101 = vrot.lane.b32.xlu1 %v13344_v49, %s10917_s16  ;;  %v5201_v37 = vld [vmem:[#allocation3] sm:$0xff] }
0x115d   : > { %5645 = vst.msk [vmem:[#allocation3] sm:$0xff] %vm15821_vm8, %v13393_v12  ;;  %vm15833_vm8 = vmmov %vm15823_vm9 }
0x115e   : > { %v4860_v6 = vpop.permute.xlu0 %4859  ;;  %v13391_v16 = vpop.permute.xlu1 %5041 }
0x1160   : > { %5103 = vrot.lane.b32.xlu0 %v13256_v43, %s10917_s16  ;;  %5089 = vrot.lane.b32.xlu1 %v13321_v15, %s10917_s16  ;;  %v4921_v43 = vsel %vm15824_vm5, %v4858_v1, %v4860_v6  ;;  %vm15836_vm5 = vmmov %vm15828_vm1 }
0x1162   : > { %v4864_v38 = vpop.permute.xlu0 %4863  ;;  %v13404_v57 = vpop.permute.xlu1 %5043 }
0x1163   : > { %v4923_v53 = vsel %vm15822_vm10, %v13383_v47, %v4864_v38  ;;  %vm15834_vm10 = vmmov %vm15828_vm1  ;;  %v5105_v39 = vsel %vm4274_vm15, %v13391_v16, %v13404_v57 }
0x1164   : > { %4980 = vst.msk [vmem:[#allocation3 + $0x18] sm:$0xff] %vm15823_vm9, %v4923_v53  ;;  %5097 = vrot.lane.b32.xlu0 %v13337_v60, %s10917_s16  ;;  %5299 = vperm.xlu1 %10852, %v9377_v27   ;;  %vm15835_vm9 = vmmov %vm15828_vm1 }
0x1166   : > { %v13417_v7 = vpop.permute.xlu0 %5049  ;;  %v13419_v14 = vpop.permute.xlu1 %5047 }
0x1167   : > { %5164 = vst.msk [vmem:[#allocation3 + $0x218] sm:$0xff] %vm4334_vm4, %v13419_v14 }
0x1168   : > { %5304 = vperm.xlu0 %10851, %v9378_v31   ;;  %5193 = vst.msk [vmem:[#allocation3 + $0x218] sm:$0xff] %vm4364_vm6, %v13393_v12  ;;  %5309 = vperm.xlu1 %10852, %v9379_v2  }
0x116a   : > { %v4868_v19 = vpop.permute.xlu0 %4867  ;;  %v4866_v30 = vpop.permute.xlu1 %4865 }
0x116b   : > { %v4924_v45 = vsel %vm15825_vm3, %v4866_v30, %v4868_v19  ;;  %4981 = vst.msk [vmem:[#allocation3 + $0x20] sm:$0xff] %vm4145_vm0, %v4866_v30  ;;  %v5204_v27 = vld [vmem:[#allocation3 + $0x18] sm:$0xff]  ;;  %vm15837_vm3 = vmmov %vm15833_vm8 }
0x116c   : > { %5314 = vperm.xlu0 %10851, %v9380_v56   ;;  %5319 = vperm.xlu1 %10852, %v9381_v23   ;;  %v10342_v13 = vpack.c.bf16 %v4924_v45, %v4921_v43 }
0x116e   : > { %v4872_v18 = vpop.permute.xlu0 %4871  ;;  %v4870_v5 = vpop.permute.xlu1 %4869  ;;  %10343 = vmatprep.subr.bf16.mxu1 %v10342_v13 }
0x116f   : > { %v4926_v22 = vsel %vm15826_vm13, %v4870_v5, %v4872_v18  ;;  %v4925_v54 = vsel %vm15829_vm2, %v4868_v19, %v4870_v5  ;;  %vm15838_vm13 = vmmov %vm15828_vm1 }
0x1170   : > { %5324 = vperm.xlu0 %10851, %v9382_v10   ;;  %4984 = vst.msk [vmem:[#allocation3 + $0x38] sm:$0xff] %vm15827_vm12, %v4926_v22  ;;  %5329 = vperm.xlu1 %10852, %v9383_v58   ;;  %vm15839_vm12 = vmmov %vm15828_vm1 }
0x1171   : > { %vm15840_vm2 = vmmov %vm15828_vm1 }
0x1172   : > { %v13445_v8 = vpop.permute.xlu0 %5051  ;;  %v13447_v50 = vpop.permute.xlu1 %5053  ;;  %v5205_v42 = vld [vmem:[#allocation3 + $0x20] sm:$0xff] }
0x1173   : > { %v10344_v55 = vpack.c.bf16 %v5205_v42, %v5201_v37  ;;  %5646 = vst.msk [vmem:[#allocation3 + $0x20] sm:$0xff] %vm15828_vm1, %v13393_v12  ;;  %v4922_v37 = vsel %vm15830_vm11, %v4860_v6, %v13383_v47  ;;  %vm15841_vm11 = vmmov %vm15828_vm1 }
0x1174   : > { %5334 = vperm.xlu0 %10851, %v9384_v51   ;;  %v10392_v31 = vpack.c.bf16 %v4925_v54, %v4922_v37 }
0x1175   : > { %10345 = vmatpush1.bf16.msra.mxu1 %v10344_v55 }
0x1176   : > { %v13452_v1 = vpop.permute.xlu0 %5055  ;;  %v4874_v17 = vpop.permute.xlu1 %4873 }
0x1177   : > { %5168 = vst.msk [vmem:[#allocation3 + $0x238] sm:$0xff] %vm4334_vm4, %v13452_v1  ;;  %v5208_v38 = vld [vmem:[#allocation3 + $0x38] sm:$0xff] }
0x1178   : > { %4985 = vst.msk [vmem:[#allocation3 + $0x40] sm:$0xff] %vm4145_vm0, %v4874_v17  ;;  %v10390_v53 = vpack.c.bf16 %v5208_v38, %v5204_v27 }
0x1179   : > { %5194 = vst.msk [vmem:[#allocation3 + $0x238] sm:$0xff] %vm4364_vm6, %v13393_v12 }
0x117a   : > { %v13461_v2 = vpop.permute.xlu0 %5061  ;;  %10391 = vmatprep.subr.bf16.mxu0 %v10390_v53  ;;  %v4878_v56 = vpop.permute.xlu1 %4877 }
0x117b   : > { %10393 = vmatpush1.bf16.msra.mxu0 %v10392_v31 }
0x117e   : > { %v4876_v23 = vpop.permute.xlu0 %4875  ;;  %v13463_v19 = vpop.permute.xlu1 %5059 }
0x117f   : > { %v5209_v30 = vld [vmem:[#allocation3 + $0x40] sm:$0xff]  ;;  %v4927_v10 = vsel %vm15834_vm10, %v4874_v17, %v4876_v23  ;;  %vm15845_vm10 = vmmov %vm15828_vm1 }
0x1180   : > { %5647 = vst.msk [vmem:[#allocation3 + $0x40] sm:$0xff] %vm15831_vm7, %v13393_v12  ;;  %vm15842_vm7 = vmmov %vm15837_vm3 }
0x1182   : > { %v4880_v43 = vpop.permute.xlu0 %4879  ;;  %v13467_v45 = vpop.permute.xlu1 %5063 }
0x1183   : > { %v4929_v47 = vsel %vm15832_vm14, %v4878_v56, %v4880_v43  ;;  %5172 = vst.msk [vmem:[#allocation3 + $0x258] sm:$0xff] %vm4334_vm4, %v13467_v45  ;;  %v4928_v43 = vsel %vm15828_vm1, %v4876_v23, %v4878_v56  ;;  %vm15843_vm14 = vmmov %vm15828_vm1 }
0x1184   : > { %4988 = vst.msk [vmem:[#allocation3 + $0x58] sm:$0xff] %vm15833_vm8, %v4929_v47  ;;  %vm15844_vm8 = vmmov %vm15828_vm1 }
0x1185   : > { %5195 = vst.msk [vmem:[#allocation3 + $0x258] sm:$0xff] %vm4364_vm6, %v13393_v12 }
0x1186   : > { %v4884_v6 = vpop.permute.xlu0 %4883  ;;  %v4882_v13 = vpop.permute.xlu1 %4881 }
0x1187   : > { %v4930_v58 = vsel %vm15835_vm9, %v4882_v13, %v4884_v6  ;;  %4989 = vst.msk [vmem:[#allocation3 + $0x60] sm:$0xff] %vm4145_vm0, %v4882_v13  ;;  %vm15846_vm9 = vmmov %vm15828_vm1 }
0x1188   : > { %v10346_v18 = vpack.c.bf16 %v4930_v58, %v4927_v10 }
0x118a   : > { %v4888_v5 = vpop.permute.xlu0 %4887  ;;  %v4886_v22 = vpop.permute.xlu1 %4885  ;;  %10347 = vmatprep.subr.bf16.mxu1 %v10346_v18 }
0x118b   : > { %v4932_v51 = vsel %vm15836_vm5, %v4886_v22, %v4888_v5  ;;  %v4931_v17 = vsel %vm15839_vm12, %v4884_v6, %v4886_v22  ;;  %v5212_v53 = vld [vmem:[#allocation3 + $0x58] sm:$0xff]  ;;  %vm15847_vm5 = vmmov %vm15837_vm3 }
0x118c   : > { %4992 = vst.msk [vmem:[#allocation3 + $0x78] sm:$0xff] %vm15837_vm3, %v4932_v51  ;;  %v10396_v47 = vpack.c.bf16 %v4931_v17, %v4928_v43  ;;  %vm15848_vm3 = vmmov %vm15828_vm1 }
0x118d   : > { %vm15850_vm12 = vmmov %vm15828_vm1 }
0x118e   : > { %v13480_v42 = vpop.permute.xlu0 %5067  ;;  %v13482_v55 = vpop.permute.xlu1 %5069  ;;  %v5213_v54 = vld [vmem:[#allocation3 + $0x60] sm:$0xff] }
0x118f   : > { %v10348_v27 = vpack.c.bf16 %v5213_v54, %v5209_v30  ;;  %5648 = vst.msk [vmem:[#allocation3 + $0x60] sm:$0xff] %vm15838_vm13, %v13393_v12  ;;  %vm15849_vm13 = vmmov %vm15828_vm1 }
0x1191   : > { %10349 = vmatpush1.bf16.msra.mxu1 %v10348_v27 }
0x1192   : > { %v13487_v38 = vpop.permute.xlu0 %5071  ;;  %v4890_v37 = vpop.permute.xlu1 %4889 }
0x1193   : > { %5176 = vst.msk [vmem:[#allocation3 + $0x278] sm:$0xff] %vm4334_vm4, %v13487_v38  ;;  %v5216_v31 = vld [vmem:[#allocation3 + $0x78] sm:$0xff] }
0x1194   : > { %4993 = vst.msk [vmem:[#allocation3 + $0x80] sm:$0xff] %vm4145_vm0, %v4890_v37  ;;  %v10394_v30 = vpack.c.bf16 %v5216_v31, %v5212_v53 }
0x1195   : > { %5196 = vst.msk [vmem:[#allocation3 + $0x278] sm:$0xff] %vm4364_vm6, %v13393_v12 }
0x1196   : > { %v4892_v13 = vpop.permute.xlu0 %4891  ;;  %10395 = vmatprep.subr.bf16.mxu0 %v10394_v30  ;;  %v4894_v6 = vpop.permute.xlu1 %4893 }
0x1197   : > { %10397 = vmatpush1.bf16.msra.mxu0 %v10396_v47  ;;  %v4933_v22 = vsel %vm15843_vm14, %v4890_v37, %v4892_v13  ;;  %vm15854_vm14 = vmmov %vm15828_vm1 }
0x119a   : > { %v4896_v10 = vpop.permute.xlu0 %4895  ;;  %v4898_v58 = vpop.permute.xlu1 %4897 }
0x119b   : > { %v5217_v18 = vld [vmem:[#allocation3 + $0x80] sm:$0xff]  ;;  %v4935_v5 = vsel %vm15840_vm2, %v4894_v6, %v4896_v10  ;;  %4997 = vst.msk [vmem:[#allocation3 + $0xa0] sm:$0xff] %vm4145_vm0, %v4898_v58  ;;  %vm15851_vm2 = vmmov %vm15847_vm5 }
0x119c   : > { %5649 = vst.msk [vmem:[#allocation3 + $0x80] sm:$0xff] %vm15841_vm11, %v13393_v12  ;;  %vm15852_vm11 = vmmov %vm15828_vm1 }
0x119d   : > { %4996 = vst.msk [vmem:[#allocation3 + $0x98] sm:$0xff] %vm15842_vm7, %v4935_v5  ;;  %vm15853_vm7 = vmmov %vm15828_vm1 }
0x119e   : > { %v4900_v56 = vpop.permute.xlu0 %4899  ;;  %v4902_v23 = vpop.permute.xlu1 %4901 }
0x119f   : > { %v4936_v51 = vsel %vm15844_vm8, %v4898_v58, %v4900_v56  ;;  %v4937_v47 = vsel %vm15848_vm3, %v4900_v56, %v4902_v23  ;;  %vm15855_vm8 = vmmov %vm15828_vm1  ;;  %vm15862_vm3 = vcmask 523264  }
0x11a0   : > { %v10350_v54 = vpack.c.bf16 %v4936_v51, %v4933_v22 }
0x11a2   : > { %v4904_v27 = vpop.permute.xlu0 %4903  ;;  %v4906_v17 = vpop.permute.xlu1 %4905  ;;  %10351 = vmatprep.subr.bf16.mxu1 %v10350_v54  ;;  %v5221_v53 = vld [vmem:[#allocation3 + $0xa0] sm:$0xff] }
0x11a3   : > { %v4938_v31 = vsel %vm15845_vm10, %v4902_v23, %v4904_v27  ;;  %5001 = vst.msk [vmem:[#allocation3 + $0xc0] sm:$0xff] %vm4145_vm0, %v4906_v17  ;;  %v10352_v43 = vpack.c.bf16 %v5221_v53, %v5217_v18  ;;  %v4934_v18 = vsel %vm15828_vm1, %v4892_v13, %v4894_v6  ;;  %vm15856_vm10 = vmmov %vm15851_vm2 }
0x11a4   : > { %5650 = vst.msk [vmem:[#allocation3 + $0xa0] sm:$0xff] %vm15846_vm9, %v13393_v12  ;;  %v5220_v51 = vld [vmem:[#allocation3 + $0x98] sm:$0xff]  ;;  %v10400_v53 = vpack.c.bf16 %v4937_v47, %v4934_v18  ;;  %vm15857_vm9 = vmmov %vm15828_vm1 }
0x11a5   : > { %5000 = vst.msk [vmem:[#allocation3 + $0xb8] sm:$0xff] %vm15847_vm5, %v4938_v31  ;;  %10353 = vmatpush1.bf16.msra.mxu1 %v10352_v43  ;;  %vm15859_vm5 = vmmov %vm15828_vm1 }
0x11a6   : > { %v4908_v30 = vpop.permute.xlu0 %4907  ;;  %v4910_v37 = vpop.permute.xlu1 %4909  ;;  %vm15865_vm1 = vmmov %vm15862_vm3 }
0x11a7   : > { %v4939_v23 = vsel %vm15852_vm11, %v4906_v17, %v4908_v30  ;;  %v4940_v21 = vsel %vm15859_vm5, %v4908_v30, %v4910_v37  ;;  %v10370_v30 = vpack.c.bf16 %v13346_v26, %v13330_v46  ;;  %v10372_v46 = vpack.c.bf16 %v13337_v60, %v13321_v15  ;;  %vm15867_vm11 = vmmov %vm15865_vm1 }
0x11a8   : > { %v5108_v26 = vsel %vm4274_vm15, %v13417_v7, %v13445_v8  ;;  %v5112_v7 = vsel %vm4274_vm15, %v13463_v19, %v13461_v2  ;;  %vm15873_vm5 = vmmov %vm15865_vm1 }
0x11aa   : > { %v4912_v10 = vpop.permute.xlu0 %4911  ;;  %v4914_v58 = vpop.permute.xlu1 %4913  ;;  %v5225_v5 = vld [vmem:[#allocation3 + $0xc0] sm:$0xff] }
0x11ab   : > { %v4941_v22 = vsel %vm15849_vm13, %v4910_v37, %v4912_v10  ;;  %5005 = vst.msk [vmem:[#allocation3 + $0xe0] sm:$0xff] %vm4145_vm0, %v4914_v58  ;;  %vm15863_vm13 = vmmov %vm15862_vm3 }
0x11ac   : > { %v5224_v54 = vld [vmem:[#allocation3 + $0xb8] sm:$0xff]  ;;  %5651 = vst.msk [vmem:[#allocation3 + $0xc0] sm:$0xff] %vm15850_vm12, %v13393_v12  ;;  %vm15864_vm12 = vmmov %vm15862_vm3 }
0x11ad   : > { %5004 = vst.msk [vmem:[#allocation3 + $0xd8] sm:$0xff] %vm15851_vm2, %v4941_v22  ;;  %v10398_v27 = vpack.c.bf16 %v5224_v54, %v5220_v51  ;;  %vm15866_vm2 = vmmov %vm15865_vm1 }
0x11ae   : > { %v4916_v31 = vpop.permute.xlu0 %4915  ;;  %v4918_v56 = vpop.permute.xlu1 %4917 }
0x11af   : > { %10399 = vmatprep.subr.bf16.mxu0 %v10398_v27  ;;  %v4942_v43 = vsel %vm15853_vm7, %v4914_v58, %v4916_v31  ;;  %vm15868_vm7 = vmmov %vm15865_vm1 }
0x11b0   : > { %10401 = vmatpush1.bf16.msra.mxu0 %v10400_v53  ;;  %v10354_v10 = vpack.c.bf16 %v4942_v43, %v4939_v23  ;;  %v5115_v23 = vsel %vm4274_vm15, %v13480_v42, %v13482_v55  ;;  %v5252_v43 = vld [vmem:[#allocation3 + $0x198] sm:$0xff] }
0x11b1   : > { %v10414_v15 = vpack.c.bf16 %v5256_v11, %v5252_v43  ;;  %v10378_v16 = vpack.c.bf16 %v5115_v23, %v5112_v7  ;;  %v4800_v7 = vld [vmem:[#allocation4 + $0xc0] sm:$0xff] }
0x11b2   : > { %v4920_v62 = vpop.permute.xlu0 %4919  ;;  %v13516_v36 = vpop.permute.xlu1 %5057  ;;  %10355 = vmatprep.subr.bf16.mxu1 %v10354_v10  ;;  %v5229_v52 = vld [vmem:[#allocation3 + $0xe0] sm:$0xff]  ;;  %v5264_v10 = vld [vmem:[#allocation3 + $0x1f8] sm:$0xff] }
0x11b3   : > { %v4944_v13 = vsel %vm15854_vm14, %v4918_v56, %v4920_v62  ;;  %v10356_v6 = vpack.c.bf16 %v5229_v52, %v5225_v5  ;;  %5652 = vst.msk [vmem:[#allocation3 + $0xe0] sm:$0xff] %vm15855_vm8, %v13393_v12  ;;  %v4943_v62 = vsel %vm15857_vm9, %v4916_v31, %v4918_v56  ;;  %v15858_v5 = vpack.c.bf16 %v13192_v34, %v13190_v9  ;;  %v5236_v9 = vld [vmem:[#allocation3 + $0x118] sm:$0xff]  ;;  %vm15869_vm14 = vmmov %vm15865_vm1 }
0x11b4   : > { %5008 = vst.msk [vmem:[#allocation3 + $0xf8] sm:$0xff] %vm15856_vm10, %v4944_v13  ;;  %v5228_v22 = vld [vmem:[#allocation3 + $0xd8] sm:$0xff]  ;;  %v10406_v54 = vpack.c.bf16 %v5240_v41, %v5236_v9  ;;  %v5106_v31 = vsel %vm4274_vm15, %v13404_v57, %v13381_v25  ;;  %v10376_v13 = vpack.c.bf16 %v5108_v26, %v5105_v39  ;;  %v4792_v26 = vld [vmem:[#allocation4 + $0x80] sm:$0xff]  ;;  %v4794_v39 = vld [vmem:[#allocation4 + $0x90] sm:$0xff] }
0x11b5   : > { %10357 = vmatpush1.bf16.msra.mxu1 %v10356_v6  ;;  %vm15870_vm8 = vmmov %vm15865_vm1 }
0x11b6   : > { %v5066_v47 = vpop.permute.xlu0 %5065  ;;  %v13522_v17 = vpop.permute.xlu1 %5075  ;;  %10359 = vmatprep.subr.bf16.mxu1 %v10358_v32  ;;  %v10404_v32 = vpack.c.bf16 %v4943_v62, %v4940_v21  ;;  %v10416_v62 = vpack.c.bf16 %v13312_v3, %v13296_v35  ;;  %v5276_v21 = vld [vmem:[#allocation3 + $0x258] sm:$0xff]  ;;  %vm15871_vm10 = vmmov %vm15865_vm1 }
0x11b7   : > { %v5114_v6 = vsel %vm4274_vm15, %v5066_v47, %v13480_v42  ;;  %vm15872_vm9 = vmmov %vm15865_vm1 }
0x11b9   : > { %10361 = vmatpush1.bf16.msra.mxu1 %v10360_v48  ;;  %v10366_v48 = vpack.c.bf16 %v13314_v20, %v13298_v44  ;;  %v5109_v44 = vsel %vm4274_vm15, %v13445_v8, %v13447_v50  ;;  %v5244_v20 = vld [vmem:[#allocation3 + $0x158] sm:$0xff]  ;;  %v15861_v8 = vpack.c.bf16 %v13208_v40, %v13206_v63  ;;  %v5111_v63 = vsel %vm4274_vm15, %v13516_v36, %v13463_v19 }
0x11ba   : > { %v13531_v52 = vpop.permute.xlu0 %5077  ;;  %v13533_v58 = vpop.permute.xlu1 %5079  ;;  %10363 = vmatprep.subr.bf16.mxu1 %v15858_v5  ;;  %v10410_v27 = vpack.c.bf16 %v5248_v59, %v5244_v20  ;;  %v10374_v56 = vpack.c.bf16 %v5109_v44, %v5106_v31  ;;  %v5260_v5 = vld [vmem:[#allocation3 + $0x1d8] sm:$0xff]  ;;  %v10380_v35 = vpack.c.bf16 %v5114_v6, %v5111_v63  ;;  %v10420_v19 = vpack.c.bf16 %v13344_v49, %v13328_v28  ;;  %v4804_v6 = vld [vmem:[#allocation4 + $0xe0] sm:$0xff] }
0x11bb   : > { %v5232_v51 = vld [vmem:[#allocation3 + $0xf8] sm:$0xff]  ;;  %5180 = vst.msk [vmem:[#allocation3 + $0x298] sm:$0xff] %vm4334_vm4, %v13533_v58  ;;  %v10418_v41 = vpack.c.bf16 %v5264_v10, %v5260_v5  ;;  %v5118_v42 = vsel %vm4274_vm15, %v13522_v17, %v13531_v52  ;;  %v5107_v49 = vsel %vm4274_vm15, %v13381_v25, %v13419_v14  ;;  %v5116_v44 = vsel %vm4274_vm15, %v13482_v55, %v13487_v38  ;;  %v4802_v10 = vld [vmem:[#allocation4 + $0xd0] sm:$0xff] }
0x11bc   : > { %v10402_v4 = vpack.c.bf16 %v5232_v51, %v5228_v22  ;;  %5197 = vst.msk [vmem:[#allocation3 + $0x298] sm:$0xff] %vm4364_vm6, %v13393_v12  ;;  %v5268_v22 = vld [vmem:[#allocation3 + $0x218] sm:$0xff]  ;;  %v5113_v25 = vsel %vm4274_vm15, %v13461_v2, %v13467_v45  ;;  %v5119_v2 = vsel %vm4274_vm15, %v13531_v52, %v13533_v58  ;;  %v4797_v52 = vld [vmem:[#allocation4 + $0xa8] sm:$0xff]  ;;  %v4796_v58 = vld [vmem:[#allocation4 + $0xa0] sm:$0xff] }
0x11bd   : > { %10365 = vmatpush1.bf16.msra.mxu1 %v10364_v24  ;;  %v5272_v51 = vld [vmem:[#allocation3 + $0x238] sm:$0xff] }
0x11be   : > { %v5084_v34 = vpop.permute.xlu0 %5083  ;;  %10403 = vmatprep.subr.bf16.mxu0 %v10402_v4  ;;  %v13547_v18 = vpop.permute.xlu1 %5085  ;;  %10367 = vmatprep.subr.bf16.mxu1 %v10366_v48  ;;  %v10422_v47 = vpack.c.bf16 %v5272_v51, %v5268_v22  ;;  %v5280_v4 = vld [vmem:[#allocation3 + $0x278] sm:$0xff]  ;;  %v5110_v48 = vsel %vm4274_vm15, %v13447_v50, %v13452_v1 }
0x11bf   : > { %10405 = vmatpush1.bf16.msra.mxu0 %v10404_v32  ;;  %v5121_v57 = vsel %vm4274_vm15, %v5084_v34, %v13547_v18  ;;  %v10424_v1 = vpack.c.bf16 %v5110_v48, %v5107_v49 }
0x11c0   : > { %10407 = vmatprep.subr.bf16.mxu0 %v10406_v54  ;;  %v10382_v36 = vpack.c.bf16 %v5121_v57, %v5118_v42  ;;  %v4806_v57 = vld [vmem:[#allocation4 + $0xf0] sm:$0xff] }
0x11c1   : > { %10369 = vmatpush1.bf16.msra.mxu1 %v10368_v29  ;;  %v10426_v29 = vpack.c.bf16 %v5280_v4, %v5276_v21 }
0x11c2   : > { %v13556_v37 = vpop.permute.xlu0 %5087  ;;  %v5074_v53 = vpop.permute.xlu1 %5073  ;;  %10371 = vmatprep.subr.bf16.mxu1 %v10370_v30 }
0x11c3   : > { %5184 = vst.msk [vmem:[#allocation3 + $0x2b8] sm:$0xff] %vm4334_vm4, %v13556_v37  ;;  %10409 = vmatpush1.bf16.msra.mxu0 %v15860_v33  ;;  %v5117_v32 = vsel %vm4274_vm15, %v5074_v53, %v13522_v17  ;;  %v5284_v17 = vld [vmem:[#allocation3 + $0x298] sm:$0xff]  ;;  %v10428_v53 = vpack.c.bf16 %v5116_v44, %v5113_v25  ;;  %v5122_v55 = vsel %vm4274_vm15, %v13547_v18, %v13556_v37 }
0x11c4   : > { %5198 = vst.msk [vmem:[#allocation3 + $0x2b8] sm:$0xff] %vm4364_vm6, %v13393_v12  ;;  %10411 = vmatprep.subr.bf16.mxu0 %v10410_v27  ;;  %v10432_v45 = vpack.c.bf16 %v5122_v55, %v5119_v2  ;;  %v4795_v37 = vld [vmem:[#allocation4 + $0x98] sm:$0xff] }
0x11c5   : > { %10373 = vmatpush1.bf16.msra.mxu1 %v10372_v46 }
0x11c6   : > { %v5082_v61 = vpop.permute.xlu0 %5081  ;;  %v13579_v60 = vpop.permute.xlu1 %5091  ;;  %10375 = vmatprep.subr.bf16.mxu1 %v10374_v56 }
0x11c7   : > { %10413 = vmatpush1.bf16.msra.mxu0 %v15861_v8  ;;  %v5120_v3 = vsel %vm4274_vm15, %v5082_v61, %v5084_v34  ;;  %v4799_v61 = vld [vmem:[#allocation4 + $0xb8] sm:$0xff] }
0x11c8   : > { %10415 = vmatprep.subr.bf16.mxu0 %v10414_v15  ;;  %v10384_v28 = vpack.c.bf16 %v5120_v3, %v5117_v32  ;;  %v4798_v15 = vld [vmem:[#allocation4 + $0xb0] sm:$0xff]  ;;  %v4803_v8 = vld [vmem:[#allocation4 + $0xd8] sm:$0xff] }
0x11c9   : > { %10377 = vmatpush1.bf16.msra.mxu1 %v10376_v13  ;;  %v4805_v13 = vld [vmem:[#allocation4 + $0xe8] sm:$0xff] }
0x11ca   : > { %v5094_v40 = vpop.permute.xlu0 %5093  ;;  %v5096_v24 = vpop.permute.xlu1 %5095  ;;  %10379 = vmatprep.subr.bf16.mxu1 %v10378_v16  ;;  %v4807_v16 = vld [vmem:[#allocation4 + $0xf8] sm:$0xff] }
0x11cb   : > { %10417 = vmatpush1.bf16.msra.mxu0 %v10416_v62  ;;  %5188 = vst.msk [vmem:[#allocation3 + $0x2d8] sm:$0xff] %vm4334_vm4, %v5096_v24  ;;  %v5124_v54 = vsel %vm4274_vm15, %v13579_v60, %v5094_v40  ;;  %v5288_v30 = vld [vmem:[#allocation3 + $0x2b8] sm:$0xff]  ;;  %v5125_v56 = vsel %vm4274_vm15, %v5094_v40, %v5096_v24 }
0x11cc   : > { %10419 = vmatprep.subr.bf16.mxu0 %v10418_v41  ;;  %5199 = vst.msk [vmem:[#allocation3 + $0x2d8] sm:$0xff] %vm4364_vm6, %v13393_v12  ;;  %v10430_v27 = vpack.c.bf16 %v5288_v30, %v5284_v17 }
0x11cd   : > { %10381 = vmatpush1.bf16.msra.mxu1 %v10380_v35 }
0x11ce   : > { %v5100_v9 = vpop.permute.xlu0 %5099  ;;  %v5102_v34 = vpop.permute.xlu1 %5101  ;;  %10383 = vmatprep.subr.bf16.mxu1 %v10382_v36 }
0x11cf   : > { %10421 = vmatpush1.bf16.msra.mxu0 %v10420_v19  ;;  %v5127_v59 = vsel %vm4274_vm15, %v5100_v9, %v5102_v34 }
0x11d0   : > { %10423 = vmatprep.subr.bf16.mxu0 %v10422_v47  ;;  %v10386_v50 = vpack.c.bf16 %v5127_v59, %v5124_v54 }
0x11d1   : > { %10385 = vmatpush1.bf16.msra.mxu1 %v10384_v28 }
0x11d2   : > { %v5104_v20 = vpop.permute.xlu0 %5103  ;;  %10387 = vmatprep.subr.bf16.mxu1 %v10386_v50  ;;  %v5090_v14 = vpop.permute.xlu1 %5089 }
0x11d3   : > { %5192 = vst.msk [vmem:[#allocation3 + $0x2f8] sm:$0xff] %vm4334_vm4, %v5104_v20  ;;  %10425 = vmatpush1.bf16.msra.mxu0 %v10424_v1  ;;  %v5123_v33 = vsel %vm4274_vm15, %v5090_v14, %v13579_v60  ;;  %v5292_v11 = vld [vmem:[#allocation3 + $0x2d8] sm:$0xff]  ;;  %v5128_v46 = vsel %vm4274_vm15, %v5102_v34, %v5104_v20  ;;  %v4801_v60 = vld [vmem:[#allocation4 + $0xc8] sm:$0xff] }
0x11d4   : > { %5200 = vst.msk [vmem:[#allocation3 + $0x2f8] sm:$0xff] %vm4364_vm6, %v13393_v12  ;;  %10427 = vmatprep.subr.bf16.mxu0 %v10426_v29  ;;  %v10436_v43 = vpack.c.bf16 %v5128_v46, %v5125_v56 }
0x11d6   : > { %v5098_v38 = vpop.permute.xlu0 %5097 }
0x11d7   : > { %v5126_v31 = vsel %vm4274_vm15, %v5098_v38, %v5100_v9  ;;  %10429 = vmatpush1.bf16.msra.mxu0 %v10428_v53 }
0x11d8   : > { %10431 = vmatprep.subr.bf16.mxu0 %v10430_v27  ;;  %v10388_v12 = vpack.c.bf16 %v5126_v31, %v5123_v33 }
0x11da   : > { %10389 = vmatpush1.bf16.msra.mxu1 %v10388_v12 }
0x11db   : > { %10433 = vmatpush1.bf16.msra.mxu0 %v10432_v45  ;;  %v5296_v18 = vld [vmem:[#allocation3 + $0x2f8] sm:$0xff] }
0x11dc   : > { %v10434_v23 = vpack.c.bf16 %v5296_v18, %v5292_v11 }
0x11dd   : > { %5426 = vmatmul.mubr.f32.vlgmr.msra.gmra.mrb[104].mxu1 %v4792_v26 }
0x11de   : > { %10435 = vmatprep.subr.bf16.mxu0 %v10434_v23  ;;  %9386 = vmatprep.mubr.msk.f32.mxu1 %vm15862_vm3, %v4795_v37  ;;  %vm15874_vm3 = vmmov %vm15865_vm1 }
0x11df   : > { %10437 = vmatpush1.bf16.msra.mxu0 %v10436_v43 }
0x11e1   : > { %5432 = vmatmul.mubr.f32.gmra.mrb[106].mxu1 %v4794_v39 }
0x11e2   : > { %5539 = vmatmul.mubr.f32.vlgmr.msra.gmra.mrb[104].mxu0 %v4792_v26  ;;  %9387 = vmatprep.mubr.msk.f32.mxu1 %vm15863_vm13, %v4797_v52  ;;  %vm15875_vm13 = vmmov %vm15865_vm1 }
0x11e3   : > { %9394 = vmatprep.mubr.msk.f32.mxu0 %vm15864_vm12, %v4795_v37  ;;  %v5300_v62 = vpop.permute.xlu1 %5299  ;;  %vm15876_vm12 = vcmask 949248  }
0x11e5   : > { %5438 = vmatmul.mubr.f32.gmra.mrb[108].mxu1 %v4796_v58 }
0x11e6   : > { %5545 = vmatmul.mubr.f32.gmra.mrb[106].mxu0 %v4794_v39  ;;  %9388 = vmatprep.mubr.msk.f32.mxu1 %vm15865_vm1, %v4799_v61  ;;  %vm15877_vm1 = vmmov %vm15876_vm12 }
0x11e7   : > { %9395 = vmatprep.mubr.msk.f32.mxu0 %vm15866_vm2, %v4797_v52  ;;  %v5305_v40 = vpop.permute.xlu0 %5304  ;;  %v13672_v17 = vpop.permute.xlu1 %5309  ;;  %vm15878_vm2 = vmmov %vm15877_vm1 }
0x11e9   : > { %5444 = vmatmul.mubr.f32.gmra.mrb[110].mxu1 %v4798_v15 }
0x11ea   : > { %5551 = vmatmul.mubr.f32.gmra.mrb[108].mxu0 %v4796_v58  ;;  %9389 = vmatprep.mubr.msk.f32.mxu1 %vm15867_vm11, %v4801_v60  ;;  %vm15879_vm11 = vmmov %vm15877_vm1 }
0x11eb   : > { %9396 = vmatprep.mubr.msk.f32.mxu0 %vm15868_vm7, %v4799_v61  ;;  %v13675_v44 = vpop.permute.xlu0 %5314  ;;  %vm15880_vm7 = vmmov %vm15877_vm1 }
0x11ed   : > { %5450 = vmatmul.mubr.f32.gmra.mrb[112].mxu1 %v4800_v7 }
0x11ee   : > { %5557 = vmatmul.mubr.f32.gmra.mrb[110].mxu0 %v4798_v15  ;;  %9390 = vmatprep.mubr.msk.f32.mxu1 %vm15869_vm14, %v4803_v8  ;;  %vm15881_vm14 = vmmov %vm15877_vm1 }
0x11ef   : > { %9397 = vmatprep.mubr.msk.f32.mxu0 %vm15870_vm8, %v4801_v60  ;;  %vm15882_vm8 = vmmov %vm15877_vm1 }
0x11f1   : > { %5456 = vmatmul.mubr.f32.gmra.mrb[114].mxu1 %v4802_v10 }
0x11f2   : > { %5563 = vmatmul.mubr.f32.gmra.mrb[112].mxu0 %v4800_v7  ;;  %9391 = vmatprep.mubr.msk.f32.mxu1 %vm15871_vm10, %v4805_v13  ;;  %vm15883_vm10 = vmmov %vm15877_vm1 }
0x11f3   : > { %9398 = vmatprep.mubr.msk.f32.mxu0 %vm15872_vm9, %v4803_v8  ;;  %v5320_v8 = vpop.permute.xlu1 %5319  ;;  %vm15884_vm9 = vmmov %vm15874_vm3 }
0x11f5   : > { %5462 = vmatmul.mubr.f32.gmra.mrb[116].mxu1 %v4804_v6 }
0x11f6   : > { %5569 = vmatmul.mubr.f32.gmra.mrb[114].mxu0 %v4802_v10  ;;  %9392 = vmatprep.mubr.msk.f32.mxu1 %vm15873_vm5, %v4807_v16  ;;  %vm15885_vm5 = vmmov %vm15874_vm3 }
0x11f7   : > { %9399 = vmatprep.mubr.msk.f32.mxu0 %vm15874_vm3, %v4805_v13  ;;  %vm15886_vm3 = vcmask 7168  }
0x11f9   : > { %5468 = vmatmul.mubr.f32.gmra.mrb[118].mxu1 %v4806_v57 }
0x11fa   : > { %5575 = vmatmul.mubr.f32.gmra.mrb[116].mxu0 %v4804_v6 }
0x11fb   : > { %9400 = vmatprep.mubr.msk.f32.mxu0 %vm15875_vm13, %v4807_v16  ;;  %vm15887_vm13 = vmmov %vm15886_vm3 }
0x11fe   : > { %5581 = vmatmul.mubr.f32.gmra.mrb[118].mxu0 %v4806_v57 }
0x12b0   : > { %v5427_v5 = vpop.f32.mrb[104].mxu1 }
0x12b1   : > { %v5428_v22 = vadd.f32 %v5427_v5, %v5300_v62  ;;  %v5429_v51 = vpop.f32.mrb[105].mxu1 }
0x12b2   : > { %v5430_v41 = vadd.f32 %v5429_v51, %v5300_v62 }
0x12b3   : > { %v13650_v63 = vmax.f32 %v5428_v22, 0.0  ;;  %v5325_v22 = vpop.permute.xlu0 %5324 }
0x12b4   : > { %v5433_v24 = vpop.f32.mrb[106].mxu1  ;;  %v13658_v32 = vmax.f32 %v5430_v41, 0.0 }
0x12b5   : > { %v5540_v42 = vpop.f32.mrb[104].mxu0  ;;  %v5434_v35 = vadd.f32 %v5433_v24, %v5305_v40  ;;  %v5435_v3 = vpop.f32.mrb[107].mxu1  ;;  %5685 = vrot.lane.b32.xlu1 %v13650_v63, %s10916_s20 }
0x12b6   : > { %v5541_v47 = vadd.f32 %v5540_v42, %v5300_v62  ;;  %v5542_v36 = vpop.f32.mrb[105].mxu0  ;;  %v5436_v19 = vadd.f32 %v5435_v3, %v5305_v40  ;;  %v5330_v3 = vpop.permute.xlu1 %5329 }
0x12b7   : > { %v5543_v21 = vadd.f32 %v5542_v36, %v5300_v62  ;;  %v13654_v4 = vmax.f32 %v5434_v35, 0.0 }
0x12b8   : > { %v13656_v48 = vmax.f32 %v5541_v47, 0.0  ;;  %v13660_v9 = vmax.f32 %v5436_v19, 0.0  ;;  %v13662_v34 = vpop.f32.mrb[108].mxu1 }
0x12b9   : > { %v5590_v54 = vmax.f32 %v5543_v21, 0.0  ;;  %v5546_v59 = vpop.f32.mrb[106].mxu0  ;;  %v5441_v28 = vpop.f32.mrb[109].mxu1  ;;  %v10456_v49 = vpack.c.bf16 %v13654_v4, %v13650_v63  ;;  %v5440_v19 = vadd.f32 %v13662_v34, %v13672_v17 }
0x12ba   : > { %v5547_v29 = vadd.f32 %v5546_v59, %v5305_v40  ;;  %v5548_v50 = vpop.f32.mrb[107].mxu0  ;;  %5873 = vrot.lane.b32.xlu0 %v13656_v48, %s10917_s16  ;;  %5689 = vrot.lane.b32.xlu1 %v13656_v48, %s10916_s20  ;;  %v10454_v1 = vpack.c.bf16 %v13660_v9, %v13658_v32  ;;  %v5442_v25 = vadd.f32 %v5441_v28, %v13672_v17  ;;  %v5335_v59 = vpop.permute.xlu0 %5334 }
0x12bb   : > { %5840 = vst.msk [vmem:[#allocation3 + $0x118] sm:$0xff] %vm15876_vm12, %v5590_v54  ;;  %v5549_v30 = vadd.f32 %v5548_v50, %v5305_v40  ;;  %v13759_v50 = vmax.f32 %v5440_v19, 0.0  ;;  %vm15888_vm12 = vmmov %vm15877_vm1 }
0x12bc   : > { %v13677_v20 = vmax.f32 %v5547_v29, 0.0  ;;  %v13680_v14 = vpop.f32.mrb[110].mxu1  ;;  %v13695_v45 = vmax.f32 %v5442_v25, 0.0 }
0x12bd   : > { %v13682_v27 = vmax.f32 %v5549_v30, 0.0  ;;  %v5552_v53 = vpop.f32.mrb[108].mxu0  ;;  %v5447_v55 = vpop.f32.mrb[111].mxu1  ;;  %v5446_v34 = vadd.f32 %v13680_v14, %v13675_v44 }
0x12be   : > { %v5554_v38 = vpop.f32.mrb[109].mxu0  ;;  %5687 = vrot.lane.b32.xlu0 %v13658_v32, %s10916_s20  ;;  %v5448_v31 = vadd.f32 %v5447_v55, %v13675_v44  ;;  %5869 = vrot.lane.b32.xlu1 %v13650_v63, %s10917_s16  ;;  %v5553_v12 = vadd.f32 %v5552_v53, %v13672_v17 }
0x12bf   : > { %5844 = vst.msk [vmem:[#allocation3 + $0x138] sm:$0xff] %vm15877_vm1, %v13682_v27  ;;  %v5555_v2 = vadd.f32 %v5554_v38, %v13672_v17  ;;  %v13781_v17 = vmax.f32 %v5446_v34, 0.0  ;;  %vm15889_vm1 = vmmov %vm15886_vm3 }
0x12c0   : > { %v13697_v11 = vmax.f32 %v5448_v31, 0.0  ;;  %v13699_v46 = vpop.f32.mrb[112].mxu1  ;;  %v13711_v52 = vmax.f32 %v5553_v12, 0.0 }
0x12c1   : > { %v5598_v26 = vmax.f32 %v5555_v2, 0.0  ;;  %v5558_v18 = vpop.f32.mrb[110].mxu0  ;;  %v13701_v37 = vpop.f32.mrb[113].mxu1  ;;  %v5452_v25 = vadd.f32 %v13699_v46, %v5320_v8  ;;  %v10460_v63 = vpack.c.bf16 %v13781_v17, %v13759_v50 }
0x12c2   : > { %v5559_v56 = vadd.f32 %v5558_v18, %v13675_v44  ;;  %v5560_v23 = vpop.f32.mrb[111].mxu0  ;;  %5691 = vrot.lane.b32.xlu0 %v5590_v54, %s10916_s20  ;;  %5871 = vrot.lane.b32.xlu1 %v13658_v32, %s10917_s16 }
0x12c3   : > { %5848 = vst.msk [vmem:[#allocation3 + $0x158] sm:$0xff] %vm15878_vm2, %v5598_v26  ;;  %v5561_v39 = vadd.f32 %v5560_v23, %v13675_v44  ;;  %v13795_v14 = vmax.f32 %v5452_v25, 0.0  ;;  %vm15890_vm2 = vmmov %vm15889_vm1 }
0x12c4   : > { %v13713_v58 = vmax.f32 %v5559_v56, 0.0  ;;  %v13715_v61 = vpop.f32.mrb[114].mxu1 }
0x12c5   : > { %v5602_v15 = vmax.f32 %v5561_v39, 0.0  ;;  %v5564_v60 = vpop.f32.mrb[112].mxu0  ;;  %v13717_v7 = vpop.f32.mrb[115].mxu1  ;;  %v5458_v38 = vadd.f32 %v13715_v61, %v5325_v22 }
0x12c6   : > { %v5566_v10 = vpop.f32.mrb[113].mxu0  ;;  %5877 = vrot.lane.b32.xlu0 %v13654_v4, %s10917_s16  ;;  %5875 = vrot.lane.b32.xlu1 %v5590_v54, %s10917_s16  ;;  %v5565_v44 = vadd.f32 %v5564_v60, %v5320_v8  ;;  %v5460_v12 = vadd.f32 %v13717_v7, %v5325_v22  ;;  %v6068_v32 = vld [vmem:[#allocation3 + $0x138] sm:$0xff] }
0x12c7   : > { %5852 = vst.msk [vmem:[#allocation3 + $0x178] sm:$0xff] %vm15879_vm11, %v5602_v15  ;;  %v5567_v6 = vadd.f32 %v5566_v10, %v5320_v8  ;;  %v13810_v2 = vmax.f32 %v5458_v38, 0.0  ;;  %vm15891_vm11 = vmmov %vm15889_vm1 }
0x12c8   : > { %v13725_v16 = vpop.f32.mrb[116].mxu1  ;;  %v13801_v53 = vmax.f32 %v5565_v44, 0.0  ;;  %v9406_v44 = vld [vmem:[%s15606_s9 + $0xa8] sm:$0xff] }
0x12c9   : > { %v13727_v57 = vmax.f32 %v5567_v6, 0.0  ;;  %v5570_v62 = vpop.f32.mrb[114].mxu0  ;;  %v13729_v5 = vpop.f32.mrb[117].mxu1  ;;  %v5464_v18 = vadd.f32 %v13725_v16, %v5330_v3 }
0x12ca   : > { %v5572_v51 = vpop.f32.mrb[115].mxu0  ;;  %5695 = vrot.lane.b32.xlu0 %v13660_v9, %s10916_s20  ;;  %5693 = vrot.lane.b32.xlu1 %v13654_v4, %s10916_s20  ;;  %v5571_v31 = vadd.f32 %v5570_v62, %v5325_v22  ;;  %v5466_v23 = vadd.f32 %v13729_v5, %v5330_v3  ;;  %v5621_v5 = vld [vmem:[#allocation4 + $0x108] sm:$0xff] }
0x12cb   : > { %5856 = vst.msk [vmem:[#allocation3 + $0x198] sm:$0xff] %vm15880_vm7, %v13727_v57  ;;  %v5573_v40 = vadd.f32 %v5572_v51, %v5325_v22  ;;  %v13826_v56 = vmax.f32 %v5464_v18, 0.0  ;;  %9417 = vmatprep.mubr.msk.f32.mxu0 %vm15884_vm9, %v5621_v5  ;;  %9409 = vmatprep.mubr.msk.f32.mxu1 %vm15885_vm5, %v5621_v5  ;;  %v9408_v18 = vld [vmem:[%s15606_s9 + $0xb8] sm:$0xff]  ;;  %vm15895_vm9 = vmmov %vm15889_vm1 }
0x12cc   : > { %v13737_v41 = vpop.f32.mrb[118].mxu1  ;;  %v13817_v46 = vmax.f32 %v5571_v31, 0.0  ;;  %v13835_v61 = vmax.f32 %v5466_v23, 0.0  ;;  %vm15896_vm5 = vmmov %vm15889_vm1 }
0x12cd   : > { %v13739_v24 = vmax.f32 %v5573_v40, 0.0  ;;  %v5576_v42 = vpop.f32.mrb[116].mxu0  ;;  %v13741_v35 = vpop.f32.mrb[119].mxu1 }
0x12ce   : > { %v5578_v47 = vpop.f32.mrb[117].mxu0  ;;  %5699 = vrot.lane.b32.xlu0 %v13682_v27, %s10916_s20  ;;  %5697 = vrot.lane.b32.xlu1 %v13677_v20, %s10916_s20 }
0x12cf   : > { %5860 = vst.msk [vmem:[#allocation3 + $0x1b8] sm:$0xff] %vm15881_vm14, %v13739_v24  ;;  %v5579_v36 = vadd.f32 %v5578_v47, %v5330_v3  ;;  %v9402_v47 = vld [vmem:[%s15606_s9 + $0x88] sm:$0xff]  ;;  %vm15892_vm14 = vmmov %vm15889_vm1 }
0x12d1   : > { %v13751_v21 = vmax.f32 %v5579_v36, 0.0  ;;  %v5582_v54 = vpop.f32.mrb[118].mxu0  ;;  %v9403_v36 = vld [vmem:[%s15606_s9 + $0x90] sm:$0xff] }
0x12d2   : > { %v5584_v28 = vpop.f32.mrb[119].mxu0  ;;  %5879 = vrot.lane.b32.xlu0 %v13660_v9, %s10917_s16  ;;  %5881 = vrot.lane.b32.xlu1 %v13677_v20, %s10917_s16  ;;  %v5583_v60 = vadd.f32 %v5582_v54, %v5335_v59  ;;  %v9404_v54 = vld [vmem:[%s15606_s9 + $0x98] sm:$0xff] }
0x12d3   : > { %5864 = vst.msk [vmem:[#allocation3 + $0x1d8] sm:$0xff] %vm15882_vm8, %v13751_v21  ;;  %v5585_v29 = vadd.f32 %v5584_v28, %v5335_v59  ;;  %vm15893_vm8 = vmmov %vm15889_vm1 }
0x12d4   : > { %v13849_v10 = vmax.f32 %v5583_v60, 0.0 }
0x12d5   : > { %v13761_v30 = vmax.f32 %v5585_v29, 0.0 }
0x12d6   : > { %5883 = vrot.lane.b32.xlu0 %v13682_v27, %s10917_s16  ;;  %5701 = vrot.lane.b32.xlu1 %v13759_v50, %s10916_s20  ;;  %v5454_v27 = vadd.f32 %v13701_v37, %v5320_v8  ;;  %v5577_v37 = vadd.f32 %v5576_v42, %v5330_v3  ;;  %v5472_v8 = vadd.f32 %v13741_v35, %v5335_v59 }
0x12d7   : > { %5868 = vst.msk [vmem:[#allocation3 + $0x1f8] sm:$0xff] %vm15883_vm10, %v13761_v30  ;;  %vm15894_vm10 = vmmov %vm15889_vm1 }
0x12d8   : > { %v13803_v55 = vmax.f32 %v5454_v27, 0.0  ;;  %v13833_v39 = vmax.f32 %v5577_v37, 0.0  ;;  %v13851_v6 = vmax.f32 %v5472_v8, 0.0  ;;  %v9407_v27 = vld [vmem:[%s15606_s9 + $0xb0] sm:$0xff] }
0x12da   : > { %5889 = vrot.lane.b32.xlu0 %v13711_v52, %s10917_s16  ;;  %5705 = vrot.lane.b32.xlu1 %v13711_v52, %s10916_s20 }
0x12de   : > { %5703 = vrot.lane.b32.xlu0 %v13695_v45, %s10916_s20  ;;  %5887 = vrot.lane.b32.xlu1 %v13695_v45, %s10917_s16 }
0x12e2   : > { %5707 = vrot.lane.b32.xlu0 %v5598_v26, %s10916_s20  ;;  %5891 = vrot.lane.b32.xlu1 %v5598_v26, %s10917_s16  ;;  %v13819_v26 = vmax.f32 %v5460_v12, 0.0 }
0x12e6   : > { %5711 = vrot.lane.b32.xlu0 %v13697_v11, %s10916_s20  ;;  %5709 = vrot.lane.b32.xlu1 %v13781_v17, %s10916_s20 }
0x12ea   : > { %5715 = vrot.lane.b32.xlu0 %v5602_v15, %s10916_s20  ;;  %5713 = vrot.lane.b32.xlu1 %v13713_v58, %s10916_s20 }
0x12ee   : > { %5895 = vrot.lane.b32.xlu0 %v13697_v11, %s10917_s16  ;;  %5897 = vrot.lane.b32.xlu1 %v13713_v58, %s10917_s16 }
0x12f2   : > { %5899 = vrot.lane.b32.xlu0 %v5602_v15, %s10917_s16  ;;  %5717 = vrot.lane.b32.xlu1 %v13795_v14, %s10916_s20  ;;  %v5470_v15 = vadd.f32 %v13737_v41, %v5335_v59  ;;  %v13898_v41 = vld [vmem:[#allocation2 + $0xc8] sm:$0xff]  ;;  %v9405_v59 = vld [vmem:[%s15606_s9 + $0xa0] sm:$0xff] }
0x12f4   : > { %v13842_v7 = vmax.f32 %v5470_v15, 0.0 }
0x12f6   : > { %5719 = vrot.lane.b32.xlu0 %v13803_v55, %s10916_s20  ;;  %5721 = vrot.lane.b32.xlu1 %v13801_v53, %s10916_s20 }
0x12fa   : > { %5723 = vrot.lane.b32.xlu0 %v13727_v57, %s10916_s20  ;;  %5725 = vrot.lane.b32.xlu1 %v13810_v2, %s10916_s20 }
0x12fe   : > { %5727 = vrot.lane.b32.xlu0 %v13819_v26, %s10916_s20  ;;  %5729 = vrot.lane.b32.xlu1 %v13817_v46, %s10916_s20 }
0x1302   : > { %5731 = vrot.lane.b32.xlu0 %v13739_v24, %s10916_s20  ;;  %5733 = vrot.lane.b32.xlu1 %v13826_v56, %s10916_s20 }
0x1306   : > { %5735 = vrot.lane.b32.xlu0 %v13835_v61, %s10916_s20  ;;  %5737 = vrot.lane.b32.xlu1 %v13833_v39, %s10916_s20 }
0x130a   : > { %5739 = vrot.lane.b32.xlu0 %v13751_v21, %s10916_s20  ;;  %5741 = vrot.lane.b32.xlu1 %v13842_v7, %s10916_s20 }
0x130e   : > { %5743 = vrot.lane.b32.xlu0 %v13851_v6, %s10916_s20  ;;  %5745 = vrot.lane.b32.xlu1 %v13849_v10, %s10916_s20 }
0x1312   : > { %5747 = vrot.lane.b32.xlu0 %v13761_v30, %s10916_s20  ;;  %5885 = vrot.lane.b32.xlu1 %v13759_v50, %s10917_s16  ;;  %v6076_v50 = vld [vmem:[#allocation3 + $0x178] sm:$0xff] }
0x1316   : > { %5893 = vrot.lane.b32.xlu0 %v13781_v17, %s10917_s16  ;;  %5903 = vrot.lane.b32.xlu1 %v13803_v55, %s10917_s16  ;;  %v10464_v17 = vpack.c.bf16 %v13810_v2, %v13795_v14 }
0x131a   : > { %5905 = vrot.lane.b32.xlu0 %v13801_v53, %s10917_s16  ;;  %5907 = vrot.lane.b32.xlu1 %v13727_v57, %s10917_s16 }
0x131e   : > { %5911 = vrot.lane.b32.xlu0 %v13819_v26, %s10917_s16  ;;  %5913 = vrot.lane.b32.xlu1 %v13817_v46, %s10917_s16 }
0x1322   : > { %5915 = vrot.lane.b32.xlu0 %v13739_v24, %s10917_s16  ;;  %5901 = vrot.lane.b32.xlu1 %v13795_v14, %s10917_s16  ;;  %v9401_v24 = vld [vmem:[%s15606_s9 + $0x80] sm:$0xff]  ;;  %v15925_v14 = vpack.c.bf16 %v13677_v20, %v13656_v48 }
0x1326   : > { %5909 = vrot.lane.b32.xlu0 %v13810_v2, %s10917_s16  ;;  %5919 = vrot.lane.b32.xlu1 %v13835_v61, %s10917_s16  ;;  %v6084_v2 = vld [vmem:[#allocation3 + $0x1b8] sm:$0xff] }
0x1327   : > { %v5686_v16 = vpop.permute.xlu1 %5685 }
0x1328   : > { %5805 = vst.msk [vmem:[#allocation3] sm:$0xff] %vm4145_vm0, %v5686_v16 }
0x132a   : > { %5921 = vrot.lane.b32.xlu0 %v13833_v39, %s10917_s16  ;;  %5923 = vrot.lane.b32.xlu1 %v13751_v21, %s10917_s16 }
0x132c   : > { %v13886_v57 = vpop.permute.xlu0 %5873  ;;  %v13888_v62 = vpop.permute.xlu1 %5689 }
0x132e   : > { %5927 = vrot.lane.b32.xlu0 %v13851_v6, %s10917_s16  ;;  %5929 = vrot.lane.b32.xlu1 %v13849_v10, %s10917_s16 }
0x132f   : > { %v6029_v22 = vld [vmem:[#allocation3] sm:$0xff] }
0x1330   : > { %v5688_v51 = vpop.permute.xlu0 %5687  ;;  %v13896_v40 = vpop.permute.xlu1 %5869  ;;  %6473 = vst.msk [vmem:[#allocation3] sm:$0xff] %vm15886_vm3, %v13898_v41  ;;  %vm15897_vm3 = vmmov %vm15880_vm7 }
0x1332   : > { %5931 = vrot.lane.b32.xlu0 %v13761_v30, %s10917_s16  ;;  %5917 = vrot.lane.b32.xlu1 %v13826_v56, %s10917_s16  ;;  %v5749_v30 = vsel %vm15889_vm1, %v5686_v16, %v5688_v51 }
0x1334   : > { %v5692_v42 = vpop.permute.xlu0 %5691  ;;  %v13909_v35 = vpop.permute.xlu1 %5871 }
0x1335   : > { %v5751_v3 = vsel %vm15887_vm13, %v13888_v62, %v5692_v42  ;;  %vm15898_vm13 = vmmov %vm15889_vm1  ;;  %v5933_v48 = vsel %vm4274_vm15, %v13896_v40, %v13909_v35 }
0x1336   : > { %5808 = vst.msk [vmem:[#allocation3 + $0x18] sm:$0xff] %vm15888_vm12, %v5751_v3  ;;  %5925 = vrot.lane.b32.xlu0 %v13842_v7, %s10917_s16  ;;  %6127 = vperm.xlu1 %10852, %v9401_v24   ;;  %vm15899_vm12 = vmmov %vm15889_vm1 }
0x1338   : > { %v13922_v19 = vpop.permute.xlu0 %5877  ;;  %v13924_v21 = vpop.permute.xlu1 %5875 }
0x1339   : > { %5992 = vst.msk [vmem:[#allocation3 + $0x218] sm:$0xff] %vm4334_vm4, %v13924_v21 }
0x133a   : > { %6132 = vperm.xlu0 %10851, %v9402_v47   ;;  %6021 = vst.msk [vmem:[#allocation3 + $0x218] sm:$0xff] %vm4364_vm6, %v13898_v41  ;;  %6137 = vperm.xlu1 %10852, %v9403_v36  }
0x133c   : > { %v5696_v28 = vpop.permute.xlu0 %5695  ;;  %v5694_v29 = vpop.permute.xlu1 %5693 }
0x133d   : > { %v5752_v34 = vsel %vm15890_vm2, %v5694_v29, %v5696_v28  ;;  %5809 = vst.msk [vmem:[#allocation3 + $0x20] sm:$0xff] %vm4145_vm0, %v5694_v29  ;;  %v6032_v24 = vld [vmem:[#allocation3 + $0x18] sm:$0xff]  ;;  %vm15900_vm2 = vmmov %vm15897_vm3 }
0x133e   : > { %6142 = vperm.xlu0 %10851, %v9404_v54   ;;  %6147 = vperm.xlu1 %10852, %v9405_v59   ;;  %v10438_v25 = vpack.c.bf16 %v5752_v34, %v5749_v30 }
0x1340   : > { %v5700_v38 = vpop.permute.xlu0 %5699  ;;  %v5698_v31 = vpop.permute.xlu1 %5697  ;;  %10439 = vmatprep.subr.bf16.mxu1 %v10438_v25 }
0x1341   : > { %v5754_v12 = vsel %vm15891_vm11, %v5698_v31, %v5700_v38  ;;  %v5753_v8 = vsel %vm15893_vm8, %v5696_v28, %v5698_v31  ;;  %vm15901_vm11 = vmmov %vm15889_vm1 }
0x1342   : > { %6152 = vperm.xlu0 %10851, %v9406_v44   ;;  %5812 = vst.msk [vmem:[#allocation3 + $0x38] sm:$0xff] %vm15880_vm7, %v5754_v12  ;;  %6157 = vperm.xlu1 %10852, %v9407_v27   ;;  %vm15902_vm7 = vmmov %vm15889_vm1 }
0x1343   : > { %vm15904_vm8 = vmmov %vm15889_vm1 }
0x1344   : > { %v13950_v37 = vpop.permute.xlu0 %5879  ;;  %v13952_v23 = vpop.permute.xlu1 %5881  ;;  %v6033_v15 = vld [vmem:[#allocation3 + $0x20] sm:$0xff] }
0x1345   : > { %v10440_v60 = vpack.c.bf16 %v6033_v15, %v6029_v22  ;;  %6474 = vst.msk [vmem:[#allocation3 + $0x20] sm:$0xff] %vm15892_vm14, %v13898_v41  ;;  %v5750_v22 = vsel %vm15894_vm10, %v5688_v51, %v13888_v62  ;;  %vm15903_vm14 = vmmov %vm15889_vm1 }
0x1346   : > { %6162 = vperm.xlu0 %10851, %v9408_v18   ;;  %v10488_v47 = vpack.c.bf16 %v5753_v8, %v5750_v22  ;;  %vm15905_vm10 = vmmov %vm15889_vm1 }
0x1347   : > { %10441 = vmatpush1.bf16.msra.mxu1 %v10440_v60 }
0x1348   : > { %v13957_v16 = vpop.permute.xlu0 %5883  ;;  %v5702_v5 = vpop.permute.xlu1 %5701 }
0x1349   : > { %5996 = vst.msk [vmem:[#allocation3 + $0x238] sm:$0xff] %vm4334_vm4, %v13957_v16  ;;  %v6036_v42 = vld [vmem:[#allocation3 + $0x38] sm:$0xff] }
0x134a   : > { %5813 = vst.msk [vmem:[#allocation3 + $0x40] sm:$0xff] %vm4145_vm0, %v5702_v5  ;;  %v10486_v3 = vpack.c.bf16 %v6036_v42, %v6032_v24 }
0x134b   : > { %6022 = vst.msk [vmem:[#allocation3 + $0x238] sm:$0xff] %vm4364_vm6, %v13898_v41 }
0x134c   : > { %v13966_v36 = vpop.permute.xlu0 %5889  ;;  %10487 = vmatprep.subr.bf16.mxu0 %v10486_v3  ;;  %v5706_v54 = vpop.permute.xlu1 %5705 }
0x134d   : > { %10489 = vmatpush1.bf16.msra.mxu0 %v10488_v47 }
0x1350   : > { %v5704_v59 = vpop.permute.xlu0 %5703  ;;  %v13968_v28 = vpop.permute.xlu1 %5887 }
0x1351   : > { %v6037_v29 = vld [vmem:[#allocation3 + $0x40] sm:$0xff]  ;;  %v5755_v44 = vsel %vm15898_vm13, %v5702_v5, %v5704_v59  ;;  %vm15909_vm13 = vmmov %vm15889_vm1 }
0x1352   : > { %6475 = vst.msk [vmem:[#allocation3 + $0x40] sm:$0xff] %vm15895_vm9, %v13898_v41  ;;  %vm15906_vm9 = vmmov %vm15900_vm2 }
0x1354   : > { %v5708_v30 = vpop.permute.xlu0 %5707  ;;  %v13972_v34 = vpop.permute.xlu1 %5891 }
0x1355   : > { %v5757_v62 = vsel %vm15896_vm5, %v5706_v54, %v5708_v30  ;;  %6000 = vst.msk [vmem:[#allocation3 + $0x258] sm:$0xff] %vm4334_vm4, %v13972_v34  ;;  %v5756_v30 = vsel %vm15903_vm14, %v5704_v59, %v5706_v54  ;;  %vm15907_vm5 = vmmov %vm15889_vm1 }
0x1356   : > { %5816 = vst.msk [vmem:[#allocation3 + $0x58] sm:$0xff] %vm15897_vm3, %v5757_v62  ;;  %vm15908_vm3 = vmmov %vm15889_vm1 }
0x1357   : > { %6023 = vst.msk [vmem:[#allocation3 + $0x258] sm:$0xff] %vm4364_vm6, %v13898_v41 }
0x1358   : > { %v5712_v51 = vpop.permute.xlu0 %5711  ;;  %v5710_v25 = vpop.permute.xlu1 %5709 }
0x1359   : > { %v5758_v27 = vsel %vm15899_vm12, %v5710_v25, %v5712_v51  ;;  %5817 = vst.msk [vmem:[#allocation3 + $0x60] sm:$0xff] %vm4145_vm0, %v5710_v25  ;;  %vm15910_vm12 = vmmov %vm15889_vm1 }
0x135a   : > { %v10442_v38 = vpack.c.bf16 %v5758_v27, %v5755_v44 }
0x135c   : > { %v5716_v31 = vpop.permute.xlu0 %5715  ;;  %v5714_v12 = vpop.permute.xlu1 %5713  ;;  %10443 = vmatprep.subr.bf16.mxu1 %v10442_v38 }
0x135d   : > { %v5760_v18 = vsel %vm15889_vm1, %v5714_v12, %v5716_v31  ;;  %v5759_v5 = vsel %vm15902_vm7, %v5712_v51, %v5714_v12  ;;  %v6040_v3 = vld [vmem:[#allocation3 + $0x58] sm:$0xff]  ;;  %vm15911_vm1 = vmmov %vm15900_vm2 }
0x135e   : > { %5820 = vst.msk [vmem:[#allocation3 + $0x78] sm:$0xff] %vm15900_vm2, %v5760_v18  ;;  %v10492_v62 = vpack.c.bf16 %v5759_v5, %v5756_v30  ;;  %vm15912_vm2 = vmmov %vm15908_vm3 }
0x135f   : > { %vm15914_vm7 = vmmov %vm15912_vm2 }
0x1360   : > { %v13985_v15 = vpop.permute.xlu0 %5895  ;;  %v13987_v60 = vpop.permute.xlu1 %5897  ;;  %v6041_v8 = vld [vmem:[#allocation3 + $0x60] sm:$0xff]  ;;  %vm15915_vm14 = vmmov %vm15912_vm2 }
0x1361   : > { %v10444_v24 = vpack.c.bf16 %v6041_v8, %v6037_v29  ;;  %6476 = vst.msk [vmem:[#allocation3 + $0x60] sm:$0xff] %vm15901_vm11, %v13898_v41  ;;  %vm15913_vm11 = vmmov %vm15912_vm2 }
0x1363   : > { %10445 = vmatpush1.bf16.msra.mxu1 %v10444_v24 }
0x1364   : > { %v13992_v42 = vpop.permute.xlu0 %5899  ;;  %v5718_v22 = vpop.permute.xlu1 %5717 }
0x1365   : > { %6004 = vst.msk [vmem:[#allocation3 + $0x278] sm:$0xff] %vm4334_vm4, %v13992_v42  ;;  %v6044_v47 = vld [vmem:[#allocation3 + $0x78] sm:$0xff] }
0x1366   : > { %5821 = vst.msk [vmem:[#allocation3 + $0x80] sm:$0xff] %vm4145_vm0, %v5718_v22  ;;  %v10490_v29 = vpack.c.bf16 %v6044_v47, %v6040_v3 }
0x1367   : > { %6024 = vst.msk [vmem:[#allocation3 + $0x278] sm:$0xff] %vm4364_vm6, %v13898_v41 }
0x1368   : > { %v5720_v25 = vpop.permute.xlu0 %5719  ;;  %10491 = vmatprep.subr.bf16.mxu0 %v10490_v29  ;;  %v5722_v51 = vpop.permute.xlu1 %5721 }
0x1369   : > { %10493 = vmatpush1.bf16.msra.mxu0 %v10492_v62  ;;  %v5761_v12 = vsel %vm15907_vm5, %v5718_v22, %v5720_v25  ;;  %vm15919_vm5 = vmmov %vm15912_vm2 }
0x136c   : > { %v5724_v44 = vpop.permute.xlu0 %5723  ;;  %v5726_v27 = vpop.permute.xlu1 %5725 }
0x136d   : > { %v6045_v38 = vld [vmem:[#allocation3 + $0x80] sm:$0xff]  ;;  %v5763_v31 = vsel %vm15904_vm8, %v5722_v51, %v5724_v44  ;;  %5825 = vst.msk [vmem:[#allocation3 + $0xa0] sm:$0xff] %vm4145_vm0, %v5726_v27  ;;  %vm15916_vm8 = vmmov %vm15911_vm1 }
0x136e   : > { %6477 = vst.msk [vmem:[#allocation3 + $0x80] sm:$0xff] %vm15905_vm10, %v13898_v41  ;;  %vm15917_vm10 = vmmov %vm15912_vm2 }
0x136f   : > { %5824 = vst.msk [vmem:[#allocation3 + $0x98] sm:$0xff] %vm15906_vm9, %v5763_v31  ;;  %vm15918_vm9 = vmmov %vm15912_vm2 }
0x1370   : > { %v5728_v54 = vpop.permute.xlu0 %5727  ;;  %v5730_v59 = vpop.permute.xlu1 %5729 }
0x1371   : > { %v5764_v18 = vsel %vm15908_vm3, %v5726_v27, %v5728_v54  ;;  %v5765_v62 = vsel %vm15912_vm2, %v5728_v54, %v5730_v59  ;;  %vm15920_vm3 = vmmov %vm15912_vm2 }
0x1372   : > { %v10446_v8 = vpack.c.bf16 %v5764_v18, %v5761_v12 }
0x1374   : > { %v5732_v24 = vpop.permute.xlu0 %5731  ;;  %v5734_v5 = vpop.permute.xlu1 %5733  ;;  %10447 = vmatprep.subr.bf16.mxu1 %v10446_v8  ;;  %v6049_v3 = vld [vmem:[#allocation3 + $0xa0] sm:$0xff] }
0x1375   : > { %v5766_v47 = vsel %vm15909_vm13, %v5730_v59, %v5732_v24  ;;  %5829 = vst.msk [vmem:[#allocation3 + $0xc0] sm:$0xff] %vm4145_vm0, %v5734_v5  ;;  %v10448_v30 = vpack.c.bf16 %v6049_v3, %v6045_v38  ;;  %v5762_v38 = vsel %vm15915_vm14, %v5720_v25, %v5722_v51  ;;  %vm15921_vm13 = vmmov %vm15911_vm1 }
0x1376   : > { %6478 = vst.msk [vmem:[#allocation3 + $0xa0] sm:$0xff] %vm15910_vm12, %v13898_v41  ;;  %v6048_v18 = vld [vmem:[#allocation3 + $0x98] sm:$0xff]  ;;  %v10496_v3 = vpack.c.bf16 %v5765_v62, %v5762_v38  ;;  %vm15922_vm12 = vmmov %vm15912_vm2 }
0x1377   : > { %5828 = vst.msk [vmem:[#allocation3 + $0xb8] sm:$0xff] %vm15911_vm1, %v5766_v47  ;;  %10449 = vmatpush1.bf16.msra.mxu1 %v10448_v30  ;;  %vm15924_vm1 = vmmov %vm15912_vm2  ;;  %vm15927_vm2 = vcmask 523264  }
0x1378   : > { %v5736_v29 = vpop.permute.xlu0 %5735  ;;  %v5738_v22 = vpop.permute.xlu1 %5737  ;;  %vm15930_vm14 = vmmov %vm15927_vm2 }
0x1379   : > { %v5767_v59 = vsel %vm15917_vm10, %v5734_v5, %v5736_v29  ;;  %v5768_v4 = vsel %vm15924_vm1, %v5736_v29, %v5738_v22  ;;  %v10466_v29 = vpack.c.bf16 %v13851_v6, %v13835_v61  ;;  %v10468_v61 = vpack.c.bf16 %v13842_v7, %v13826_v56  ;;  %vm15932_vm10 = vmmov %vm15927_vm2 }
0x137a   : > { %v5936_v6 = vsel %vm4274_vm15, %v13922_v19, %v13950_v37  ;;  %v5940_v19 = vsel %vm4274_vm15, %v13968_v28, %v13966_v36  ;;  %vm15938_vm1 = vmmov %vm15927_vm2 }
0x137c   : > { %v5740_v44 = vpop.permute.xlu0 %5739  ;;  %v5742_v27 = vpop.permute.xlu1 %5741  ;;  %v6053_v31 = vld [vmem:[#allocation3 + $0xc0] sm:$0xff] }
0x137d   : > { %v5769_v12 = vsel %vm15913_vm11, %v5738_v22, %v5740_v44  ;;  %5833 = vst.msk [vmem:[#allocation3 + $0xe0] sm:$0xff] %vm4145_vm0, %v5742_v27  ;;  %vm15928_vm11 = vmmov %vm15927_vm2 }
0x137e   : > { %v6052_v8 = vld [vmem:[#allocation3 + $0xb8] sm:$0xff]  ;;  %6479 = vst.msk [vmem:[#allocation3 + $0xc0] sm:$0xff] %vm15914_vm7, %v13898_v41  ;;  %vm15929_vm7 = vmmov %vm15927_vm2 }
0x137f   : > { %5832 = vst.msk [vmem:[#allocation3 + $0xd8] sm:$0xff] %vm15916_vm8, %v5769_v12  ;;  %v10494_v24 = vpack.c.bf16 %v6052_v8, %v6048_v18  ;;  %vm15931_vm8 = vmmov %vm15927_vm2 }
0x1380   : > { %v5744_v47 = vpop.permute.xlu0 %5743  ;;  %v5746_v54 = vpop.permute.xlu1 %5745 }
0x1381   : > { %10495 = vmatprep.subr.bf16.mxu0 %v10494_v24  ;;  %v5770_v30 = vsel %vm15918_vm9, %v5742_v27, %v5744_v47  ;;  %vm15933_vm9 = vmmov %vm15927_vm2 }
0x1382   : > { %10497 = vmatpush1.bf16.msra.mxu0 %v10496_v3  ;;  %v10450_v44 = vpack.c.bf16 %v5770_v30, %v5767_v59  ;;  %v5943_v59 = vsel %vm4274_vm15, %v13985_v15, %v13987_v60  ;;  %v6080_v30 = vld [vmem:[#allocation3 + $0x198] sm:$0xff] }
0x1383   : > { %v10510_v56 = vpack.c.bf16 %v6084_v2, %v6080_v30  ;;  %v10474_v40 = vpack.c.bf16 %v5943_v59, %v5940_v19  ;;  %v5628_v19 = vld [vmem:[#allocation4 + $0x140] sm:$0xff] }
0x1384   : > { %v5748_v13 = vpop.permute.xlu0 %5747  ;;  %v14021_v33 = vpop.permute.xlu1 %5885  ;;  %10451 = vmatprep.subr.bf16.mxu1 %v10450_v44  ;;  %v6057_v43 = vld [vmem:[#allocation3 + $0xe0] sm:$0xff]  ;;  %v6092_v44 = vld [vmem:[#allocation3 + $0x1f8] sm:$0xff] }
0x1385   : > { %v5772_v25 = vsel %vm15919_vm5, %v5746_v54, %v5748_v13  ;;  %v10452_v51 = vpack.c.bf16 %v6057_v43, %v6053_v31  ;;  %6480 = vst.msk [vmem:[#allocation3 + $0xe0] sm:$0xff] %vm15920_vm3, %v13898_v41  ;;  %v5771_v13 = vsel %vm15922_vm12, %v5744_v47, %v5746_v54  ;;  %v15923_v31 = vpack.c.bf16 %v13697_v11, %v13695_v45  ;;  %v6064_v45 = vld [vmem:[#allocation3 + $0x118] sm:$0xff]  ;;  %vm15934_vm5 = vmmov %vm15927_vm2 }
0x1386   : > { %5836 = vst.msk [vmem:[#allocation3 + $0xf8] sm:$0xff] %vm15921_vm13, %v5772_v25  ;;  %v6056_v12 = vld [vmem:[#allocation3 + $0xd8] sm:$0xff]  ;;  %v10502_v8 = vpack.c.bf16 %v6068_v32, %v6064_v45  ;;  %v5934_v47 = vsel %vm4274_vm15, %v13909_v35, %v13886_v57  ;;  %v10472_v25 = vpack.c.bf16 %v5936_v6, %v5933_v48  ;;  %v5620_v6 = vld [vmem:[#allocation4 + $0x100] sm:$0xff]  ;;  %v5622_v48 = vld [vmem:[#allocation4 + $0x110] sm:$0xff] }
0x1387   : > { %10453 = vmatpush1.bf16.msra.mxu1 %v10452_v51  ;;  %vm15935_vm3 = vmmov %vm15927_vm2 }
0x1388   : > { %v5894_v62 = vpop.permute.xlu0 %5893  ;;  %v14027_v5 = vpop.permute.xlu1 %5903  ;;  %10455 = vmatprep.subr.bf16.mxu1 %v10454_v1  ;;  %v10500_v1 = vpack.c.bf16 %v5771_v13, %v5768_v4  ;;  %v10512_v13 = vpack.c.bf16 %v13817_v46, %v13801_v53  ;;  %v6104_v4 = vld [vmem:[#allocation3 + $0x258] sm:$0xff]  ;;  %vm15936_vm13 = vmmov %vm15927_vm2 }
0x1389   : > { %v5942_v51 = vsel %vm4274_vm15, %v5894_v62, %v13985_v15  ;;  %vm15937_vm12 = vmmov %vm15927_vm2 }
0x138b   : > { %10457 = vmatpush1.bf16.msra.mxu1 %v10456_v49  ;;  %v10462_v49 = vpack.c.bf16 %v13819_v26, %v13803_v55  ;;  %v5937_v55 = vsel %vm4274_vm15, %v13950_v37, %v13952_v23  ;;  %v6072_v26 = vld [vmem:[#allocation3 + $0x158] sm:$0xff]  ;;  %v15926_v37 = vpack.c.bf16 %v13713_v58, %v13711_v52  ;;  %v5939_v52 = vsel %vm4274_vm15, %v14021_v33, %v13968_v28 }
0x138c   : > { %v14036_v43 = vpop.permute.xlu0 %5905  ;;  %v14038_v27 = vpop.permute.xlu1 %5907  ;;  %10459 = vmatprep.subr.bf16.mxu1 %v15923_v31  ;;  %v10506_v24 = vpack.c.bf16 %v6076_v50, %v6072_v26  ;;  %v10470_v54 = vpack.c.bf16 %v5937_v55, %v5934_v47  ;;  %v6088_v31 = vld [vmem:[#allocation3 + $0x1d8] sm:$0xff]  ;;  %v10476_v53 = vpack.c.bf16 %v5942_v51, %v5939_v52  ;;  %v10516_v28 = vpack.c.bf16 %v13849_v10, %v13833_v39  ;;  %v5632_v51 = vld [vmem:[#allocation4 + $0x160] sm:$0xff] }
0x138d   : > { %v6060_v18 = vld [vmem:[#allocation3 + $0xf8] sm:$0xff]  ;;  %6008 = vst.msk [vmem:[#allocation3 + $0x298] sm:$0xff] %vm4334_vm4, %v14038_v27  ;;  %v10514_v32 = vpack.c.bf16 %v6092_v44, %v6088_v31  ;;  %v5946_v15 = vsel %vm4274_vm15, %v14027_v5, %v14036_v43  ;;  %v5935_v10 = vsel %vm4274_vm15, %v13886_v57, %v13924_v21  ;;  %v5944_v55 = vsel %vm4274_vm15, %v13987_v60, %v13992_v42  ;;  %v5630_v44 = vld [vmem:[#allocation4 + $0x150] sm:$0xff] }
0x138e   : > { %v10498_v9 = vpack.c.bf16 %v6060_v18, %v6056_v12  ;;  %6025 = vst.msk [vmem:[#allocation3 + $0x298] sm:$0xff] %vm4364_vm6, %v13898_v41  ;;  %v6096_v12 = vld [vmem:[#allocation3 + $0x218] sm:$0xff]  ;;  %v5941_v57 = vsel %vm4274_vm15, %v13966_v36, %v13972_v34  ;;  %v5947_v36 = vsel %vm4274_vm15, %v14036_v43, %v14038_v27  ;;  %v5625_v43 = vld [vmem:[#allocation4 + $0x128] sm:$0xff]  ;;  %v5624_v27 = vld [vmem:[#allocation4 + $0x120] sm:$0xff] }
0x138f   : > { %10461 = vmatpush1.bf16.msra.mxu1 %v10460_v63  ;;  %v6100_v18 = vld [vmem:[#allocation3 + $0x238] sm:$0xff] }
0x1390   : > { %v5912_v11 = vpop.permute.xlu0 %5911  ;;  %10499 = vmatprep.subr.bf16.mxu0 %v10498_v9  ;;  %v14052_v38 = vpop.permute.xlu1 %5913  ;;  %10463 = vmatprep.subr.bf16.mxu1 %v10462_v49  ;;  %v10518_v62 = vpack.c.bf16 %v6100_v18, %v6096_v12  ;;  %v6108_v9 = vld [vmem:[#allocation3 + $0x278] sm:$0xff]  ;;  %v5938_v49 = vsel %vm4274_vm15, %v13952_v23, %v13957_v16 }
0x1391   : > { %10501 = vmatpush1.bf16.msra.mxu0 %v10500_v1  ;;  %v5949_v35 = vsel %vm4274_vm15, %v5912_v11, %v14052_v38  ;;  %v10520_v16 = vpack.c.bf16 %v5938_v49, %v5935_v10 }
0x1392   : > { %10503 = vmatprep.subr.bf16.mxu0 %v10502_v8  ;;  %v10478_v33 = vpack.c.bf16 %v5949_v35, %v5946_v15  ;;  %v5634_v35 = vld [vmem:[#allocation4 + $0x170] sm:$0xff] }
0x1393   : > { %10465 = vmatpush1.bf16.msra.mxu1 %v10464_v17  ;;  %v10522_v17 = vpack.c.bf16 %v6108_v9, %v6104_v4 }
0x1394   : > { %v14061_v22 = vpop.permute.xlu0 %5915  ;;  %v5902_v3 = vpop.permute.xlu1 %5901  ;;  %10467 = vmatprep.subr.bf16.mxu1 %v10466_v29 }
0x1395   : > { %6012 = vst.msk [vmem:[#allocation3 + $0x2b8] sm:$0xff] %vm4334_vm4, %v14061_v22  ;;  %10505 = vmatpush1.bf16.msra.mxu0 %v15925_v14  ;;  %v5945_v1 = vsel %vm4274_vm15, %v5902_v3, %v14027_v5  ;;  %v6112_v5 = vld [vmem:[#allocation3 + $0x298] sm:$0xff]  ;;  %v10524_v3 = vpack.c.bf16 %v5944_v55, %v5941_v57  ;;  %v5950_v60 = vsel %vm4274_vm15, %v14052_v38, %v14061_v22 }
0x1396   : > { %6026 = vst.msk [vmem:[#allocation3 + $0x2b8] sm:$0xff] %vm4364_vm6, %v13898_v41  ;;  %10507 = vmatprep.subr.bf16.mxu0 %v10506_v24  ;;  %v10528_v34 = vpack.c.bf16 %v5950_v60, %v5947_v36  ;;  %v5623_v22 = vld [vmem:[#allocation4 + $0x118] sm:$0xff] }
0x1397   : > { %10469 = vmatpush1.bf16.msra.mxu1 %v10468_v61 }
0x1398   : > { %v5910_v20 = vpop.permute.xlu0 %5909  ;;  %v14084_v7 = vpop.permute.xlu1 %5919  ;;  %10471 = vmatprep.subr.bf16.mxu1 %v10470_v54 }
0x1399   : > { %10509 = vmatpush1.bf16.msra.mxu0 %v15926_v37  ;;  %v5948_v46 = vsel %vm4274_vm15, %v5910_v20, %v5912_v11  ;;  %v5627_v20 = vld [vmem:[#allocation4 + $0x138] sm:$0xff] }
0x139a   : > { %10511 = vmatprep.subr.bf16.mxu0 %v10510_v56  ;;  %v10480_v39 = vpack.c.bf16 %v5948_v46, %v5945_v1  ;;  %v5626_v56 = vld [vmem:[#allocation4 + $0x130] sm:$0xff]  ;;  %v5631_v37 = vld [vmem:[#allocation4 + $0x158] sm:$0xff] }
0x139b   : > { %10473 = vmatpush1.bf16.msra.mxu1 %v10472_v25  ;;  %v5633_v25 = vld [vmem:[#allocation4 + $0x168] sm:$0xff] }
0x139c   : > { %v5922_v58 = vpop.permute.xlu0 %5921  ;;  %v5924_v63 = vpop.permute.xlu1 %5923  ;;  %10475 = vmatprep.subr.bf16.mxu1 %v10474_v40  ;;  %v5635_v40 = vld [vmem:[#allocation4 + $0x178] sm:$0xff] }
0x139d   : > { %10513 = vmatpush1.bf16.msra.mxu0 %v10512_v13  ;;  %6016 = vst.msk [vmem:[#allocation3 + $0x2d8] sm:$0xff] %vm4334_vm4, %v5924_v63  ;;  %v5952_v8 = vsel %vm4274_vm15, %v14084_v7, %v5922_v58  ;;  %v6116_v29 = vld [vmem:[#allocation3 + $0x2b8] sm:$0xff]  ;;  %v5953_v54 = vsel %vm4274_vm15, %v5922_v58, %v5924_v63 }
0x139e   : > { %10515 = vmatprep.subr.bf16.mxu0 %v10514_v32  ;;  %6027 = vst.msk [vmem:[#allocation3 + $0x2d8] sm:$0xff] %vm4364_vm6, %v13898_v41  ;;  %v10526_v24 = vpack.c.bf16 %v6116_v29, %v6112_v5 }
0x139f   : > { %10477 = vmatpush1.bf16.msra.mxu1 %v10476_v53 }
0x13a0   : > { %v5928_v45 = vpop.permute.xlu0 %5927  ;;  %v5930_v11 = vpop.permute.xlu1 %5929  ;;  %10479 = vmatprep.subr.bf16.mxu1 %v10478_v33 }
0x13a1   : > { %10517 = vmatpush1.bf16.msra.mxu0 %v10516_v28  ;;  %v5955_v50 = vsel %vm4274_vm15, %v5928_v45, %v5930_v11 }
0x13a2   : > { %10519 = vmatprep.subr.bf16.mxu0 %v10518_v62  ;;  %v10482_v23 = vpack.c.bf16 %v5955_v50, %v5952_v8 }
0x13a3   : > { %10481 = vmatpush1.bf16.msra.mxu1 %v10480_v39 }
0x13a4   : > { %v5932_v26 = vpop.permute.xlu0 %5931  ;;  %10483 = vmatprep.subr.bf16.mxu1 %v10482_v23  ;;  %v5918_v21 = vpop.permute.xlu1 %5917 }
0x13a5   : > { %6020 = vst.msk [vmem:[#allocation3 + $0x2f8] sm:$0xff] %vm4334_vm4, %v5932_v26  ;;  %10521 = vmatpush1.bf16.msra.mxu0 %v10520_v16  ;;  %v5951_v14 = vsel %vm4274_vm15, %v5918_v21, %v14084_v7  ;;  %v6120_v2 = vld [vmem:[#allocation3 + $0x2d8] sm:$0xff]  ;;  %v5956_v61 = vsel %vm4274_vm15, %v5930_v11, %v5932_v26  ;;  %v5629_v7 = vld [vmem:[#allocation4 + $0x148] sm:$0xff] }
0x13a6   : > { %6028 = vst.msk [vmem:[#allocation3 + $0x2f8] sm:$0xff] %vm4364_vm6, %v13898_v41  ;;  %10523 = vmatprep.subr.bf16.mxu0 %v10522_v17  ;;  %v10532_v30 = vpack.c.bf16 %v5956_v61, %v5953_v54 }
0x13a8   : > { %v5926_v42 = vpop.permute.xlu0 %5925 }
0x13a9   : > { %v5954_v47 = vsel %vm4274_vm15, %v5926_v42, %v5928_v45  ;;  %10525 = vmatpush1.bf16.msra.mxu0 %v10524_v3 }
0x13aa   : > { %10527 = vmatprep.subr.bf16.mxu0 %v10526_v24  ;;  %v10484_v41 = vpack.c.bf16 %v5954_v47, %v5951_v14 }
0x13ac   : > { %10485 = vmatpush1.bf16.msra.mxu1 %v10484_v41 }
0x13ad   : > { %10529 = vmatpush1.bf16.msra.mxu0 %v10528_v34  ;;  %v6124_v38 = vld [vmem:[#allocation3 + $0x2f8] sm:$0xff] }
0x13ae   : > { %v10530_v59 = vpack.c.bf16 %v6124_v38, %v6120_v2 }
0x13af   : > { %6254 = vmatmul.mubr.f32.vlgmr.msra.gmra.mrb[120].mxu1 %v5620_v6 }
0x13b0   : > { %10531 = vmatprep.subr.bf16.mxu0 %v10530_v59  ;;  %9410 = vmatprep.mubr.msk.f32.mxu1 %vm15927_vm2, %v5623_v22  ;;  %vm15939_vm2 = vmmov %vm15938_vm1 }
0x13b1   : > { %10533 = vmatpush1.bf16.msra.mxu0 %v10532_v30 }
0x13b3   : > { %6260 = vmatmul.mubr.f32.gmra.mrb[122].mxu1 %v5622_v48 }
0x13b4   : > { %6367 = vmatmul.mubr.f32.vlgmr.msra.gmra.mrb[120].mxu0 %v5620_v6  ;;  %9411 = vmatprep.mubr.msk.f32.mxu1 %vm15928_vm11, %v5625_v43  ;;  %vm15940_vm11 = vmmov %vm15938_vm1 }
0x13b5   : > { %9418 = vmatprep.mubr.msk.f32.mxu0 %vm15929_vm7, %v5623_v22  ;;  %v6128_v13 = vpop.permute.xlu1 %6127  ;;  %vm15941_vm7 = vcmask 949248  }
0x13b7   : > { %6266 = vmatmul.mubr.f32.gmra.mrb[124].mxu1 %v5624_v27 }
0x13b8   : > { %6373 = vmatmul.mubr.f32.gmra.mrb[122].mxu0 %v5622_v48  ;;  %9412 = vmatprep.mubr.msk.f32.mxu1 %vm15930_vm14, %v5627_v20  ;;  %vm15942_vm14 = vmmov %vm15941_vm7 }
0x13b9   : > { %9419 = vmatprep.mubr.msk.f32.mxu0 %vm15931_vm8, %v5625_v43  ;;  %v6133_v58 = vpop.permute.xlu0 %6132  ;;  %v14177_v5 = vpop.permute.xlu1 %6137  ;;  %vm15943_vm8 = vmmov %vm15941_vm7 }
0x13bb   : > { %6272 = vmatmul.mubr.f32.gmra.mrb[126].mxu1 %v5626_v56 }
0x13bc   : > { %6379 = vmatmul.mubr.f32.gmra.mrb[124].mxu0 %v5624_v27  ;;  %9413 = vmatprep.mubr.msk.f32.mxu1 %vm15932_vm10, %v5629_v7  ;;  %vm15944_vm10 = vmmov %vm15941_vm7 }
0x13bd   : > { %9420 = vmatprep.mubr.msk.f32.mxu0 %vm15933_vm9, %v5627_v20  ;;  %v14180_v55 = vpop.permute.xlu0 %6142  ;;  %vm15945_vm9 = vmmov %vm15941_vm7 }
0x13bf   : > { %6278 = vmatmul.mubr.f32.gmra.mrb[128].mxu1 %v5628_v19 }
0x13c0   : > { %6385 = vmatmul.mubr.f32.gmra.mrb[126].mxu0 %v5626_v56  ;;  %9414 = vmatprep.mubr.msk.f32.mxu1 %vm15934_vm5, %v5631_v37  ;;  %vm15946_vm5 = vmmov %vm15941_vm7 }
0x13c1   : > { %9421 = vmatprep.mubr.msk.f32.mxu0 %vm15935_vm3, %v5629_v7  ;;  %vm15947_vm3 = vmmov %vm15946_vm5 }
0x13c3   : > { %6284 = vmatmul.mubr.f32.gmra.mrb[130].mxu1 %v5630_v44 }
0x13c4   : > { %6391 = vmatmul.mubr.f32.gmra.mrb[128].mxu0 %v5628_v19  ;;  %9415 = vmatprep.mubr.msk.f32.mxu1 %vm15936_vm13, %v5633_v25  ;;  %vm15948_vm13 = vmmov %vm15947_vm3 }
0x13c5   : > { %9422 = vmatprep.mubr.msk.f32.mxu0 %vm15937_vm12, %v5631_v37  ;;  %v6148_v37 = vpop.permute.xlu1 %6147  ;;  %vm15949_vm12 = vmmov %vm15938_vm1 }
0x13c7   : > { %6290 = vmatmul.mubr.f32.gmra.mrb[132].mxu1 %v5632_v51 }
0x13c8   : > { %6397 = vmatmul.mubr.f32.gmra.mrb[130].mxu0 %v5630_v44  ;;  %9416 = vmatprep.mubr.msk.f32.mxu1 %vm15938_vm1, %v5635_v40 }
0x13c9   : > { %9423 = vmatprep.mubr.msk.f32.mxu0 %vm15939_vm2, %v5633_v25  ;;  %vm15950_vm2 = vcmask 7168  }
0x13cb   : > { %6296 = vmatmul.mubr.f32.gmra.mrb[134].mxu1 %v5634_v35 }
0x13cc   : > { %6403 = vmatmul.mubr.f32.gmra.mrb[132].mxu0 %v5632_v51 }
0x13cd   : > { %9424 = vmatprep.mubr.msk.f32.mxu0 %vm15940_vm11, %v5635_v40  ;;  %vm15951_vm11 = vmmov %vm15950_vm2 }
0x13d0   : > { %6409 = vmatmul.mubr.f32.gmra.mrb[134].mxu0 %v5634_v35 }
0x1482   : > { %v6255_v31 = vpop.f32.mrb[120].mxu1 }
0x1483   : > { %v6256_v12 = vadd.f32 %v6255_v31, %v6128_v13  ;;  %v6257_v18 = vpop.f32.mrb[121].mxu1 }
0x1484   : > { %v6258_v32 = vadd.f32 %v6257_v18, %v6128_v13 }
0x1485   : > { %v14155_v52 = vmax.f32 %v6256_v12, 0.0  ;;  %v6153_v12 = vpop.permute.xlu0 %6152 }
0x1486   : > { %v6261_v63 = vpop.f32.mrb[122].mxu1  ;;  %v14163_v1 = vmax.f32 %v6258_v32, 0.0 }
0x1487   : > { %v6368_v15 = vpop.f32.mrb[120].mxu0  ;;  %v6262_v53 = vadd.f32 %v6261_v63, %v6133_v58  ;;  %v6263_v46 = vpop.f32.mrb[123].mxu1  ;;  %6513 = vrot.lane.b32.xlu1 %v14155_v52, %s10916_s20 }
0x1488   : > { %v6369_v62 = vadd.f32 %v6368_v15, %v6128_v13  ;;  %v6370_v33 = vpop.f32.mrb[121].mxu0  ;;  %v6264_v28 = vadd.f32 %v6263_v46, %v6133_v58  ;;  %v6158_v46 = vpop.permute.xlu1 %6157 }
0x1489   : > { %v6371_v4 = vadd.f32 %v6370_v33, %v6128_v13  ;;  %v14159_v9 = vmax.f32 %v6262_v53, 0.0 }
0x148a   : > { %v14161_v49 = vmax.f32 %v6369_v62, 0.0  ;;  %v14165_v45 = vmax.f32 %v6264_v28, 0.0  ;;  %v14167_v11 = vpop.f32.mrb[124].mxu1 }
0x148b   : > { %v6418_v8 = vmax.f32 %v6371_v4, 0.0  ;;  %v6374_v50 = vpop.f32.mrb[122].mxu0  ;;  %v6269_v39 = vpop.f32.mrb[125].mxu1  ;;  %v10552_v10 = vpack.c.bf16 %v14159_v9, %v14155_v52  ;;  %v6268_v28 = vadd.f32 %v14167_v11, %v14177_v5 }
0x148c   : > { %v6375_v17 = vadd.f32 %v6374_v50, %v6133_v58  ;;  %v6376_v23 = vpop.f32.mrb[123].mxu0  ;;  %6701 = vrot.lane.b32.xlu0 %v14161_v49, %s10917_s16  ;;  %6517 = vrot.lane.b32.xlu1 %v14161_v49, %s10916_s20  ;;  %v10550_v16 = vpack.c.bf16 %v14165_v45, %v14163_v1  ;;  %v6270_v57 = vadd.f32 %v6269_v39, %v14177_v5  ;;  %v6163_v50 = vpop.permute.xlu0 %6162 }
0x148d   : > { %6668 = vst.msk [vmem:[#allocation3 + $0x118] sm:$0xff] %vm15941_vm7, %v6418_v8  ;;  %v6377_v29 = vadd.f32 %v6376_v23, %v6133_v58  ;;  %v14264_v23 = vmax.f32 %v6268_v28, 0.0  ;;  %vm15952_vm7 = vmmov %vm15947_vm3 }
0x148e   : > { %v14182_v26 = vmax.f32 %v6375_v17, 0.0  ;;  %v14185_v21 = vpop.f32.mrb[126].mxu1  ;;  %v14200_v34 = vmax.f32 %v6270_v57, 0.0 }
0x148f   : > { %v14187_v24 = vmax.f32 %v6377_v29, 0.0  ;;  %v6380_v3 = vpop.f32.mrb[124].mxu0  ;;  %v6275_v60 = vpop.f32.mrb[127].mxu1  ;;  %v6274_v11 = vadd.f32 %v14185_v21, %v14180_v55 }
0x1490   : > { %v6382_v42 = vpop.f32.mrb[125].mxu0  ;;  %6515 = vrot.lane.b32.xlu0 %v14163_v1, %s10916_s20  ;;  %v6276_v47 = vadd.f32 %v6275_v60, %v14180_v55  ;;  %6697 = vrot.lane.b32.xlu1 %v14155_v52, %s10917_s16  ;;  %v6381_v41 = vadd.f32 %v6380_v3, %v14177_v5 }
0x1491   : > { %6672 = vst.msk [vmem:[#allocation3 + $0x138] sm:$0xff] %vm15942_vm14, %v14187_v24  ;;  %v6383_v36 = vadd.f32 %v6382_v42, %v14177_v5  ;;  %v14286_v5 = vmax.f32 %v6274_v11, 0.0  ;;  %vm15953_vm14 = vmmov %vm15950_vm2 }
0x1492   : > { %v14202_v2 = vmax.f32 %v6276_v47, 0.0  ;;  %v14204_v61 = vpop.f32.mrb[128].mxu1  ;;  %v14216_v43 = vmax.f32 %v6381_v41, 0.0 }
0x1493   : > { %v6426_v6 = vmax.f32 %v6383_v36, 0.0  ;;  %v6386_v38 = vpop.f32.mrb[126].mxu0  ;;  %v14206_v22 = vpop.f32.mrb[129].mxu1  ;;  %v6280_v57 = vadd.f32 %v14204_v61, %v6148_v37  ;;  %v10556_v52 = vpack.c.bf16 %v14286_v5, %v14264_v23 }
0x1494   : > { %v6387_v54 = vadd.f32 %v6386_v38, %v14180_v55  ;;  %v6388_v59 = vpop.f32.mrb[127].mxu0  ;;  %6519 = vrot.lane.b32.xlu0 %v6418_v8, %s10916_s20  ;;  %6699 = vrot.lane.b32.xlu1 %v14163_v1, %s10917_s16 }
0x1495   : > { %6676 = vst.msk [vmem:[#allocation3 + $0x158] sm:$0xff] %vm15943_vm8, %v6426_v6  ;;  %v6389_v48 = vadd.f32 %v6388_v59, %v14180_v55  ;;  %v14300_v21 = vmax.f32 %v6280_v57, 0.0  ;;  %vm15954_vm8 = vmmov %vm15950_vm2 }
0x1496   : > { %v14218_v27 = vmax.f32 %v6387_v54, 0.0  ;;  %v14220_v20 = vpop.f32.mrb[130].mxu1 }
0x1497   : > { %v6430_v56 = vmax.f32 %v6389_v48, 0.0  ;;  %v6392_v7 = vpop.f32.mrb[128].mxu0  ;;  %v14222_v19 = vpop.f32.mrb[131].mxu1  ;;  %v6286_v42 = vadd.f32 %v14220_v20, %v6153_v12 }
0x1498   : > { %v6394_v44 = vpop.f32.mrb[129].mxu0  ;;  %6705 = vrot.lane.b32.xlu0 %v14159_v9, %s10917_s16  ;;  %6703 = vrot.lane.b32.xlu1 %v6418_v8, %s10917_s16  ;;  %v6393_v55 = vadd.f32 %v6392_v7, %v6148_v37  ;;  %v6288_v41 = vadd.f32 %v14222_v19, %v6153_v12  ;;  %v6896_v1 = vld [vmem:[#allocation3 + $0x138] sm:$0xff] }
0x1499   : > { %6680 = vst.msk [vmem:[#allocation3 + $0x178] sm:$0xff] %vm15944_vm10, %v6430_v56  ;;  %v6395_v51 = vadd.f32 %v6394_v44, %v6148_v37  ;;  %v14315_v36 = vmax.f32 %v6286_v42, 0.0  ;;  %vm15955_vm10 = vmmov %vm15950_vm2 }
0x149a   : > { %v14230_v40 = vpop.f32.mrb[132].mxu1  ;;  %v14306_v3 = vmax.f32 %v6393_v55, 0.0  ;;  %v9430_v55 = vld [vmem:[%s15606_s9 + $0xe8] sm:$0xff] }
0x149b   : > { %v14232_v35 = vmax.f32 %v6395_v51, 0.0  ;;  %v6398_v13 = vpop.f32.mrb[130].mxu0  ;;  %v14234_v31 = vpop.f32.mrb[133].mxu1  ;;  %v6292_v38 = vadd.f32 %v14230_v40, %v6158_v46 }
0x149c   : > { %v6400_v18 = vpop.f32.mrb[131].mxu0  ;;  %6523 = vrot.lane.b32.xlu0 %v14165_v45, %s10916_s20  ;;  %6521 = vrot.lane.b32.xlu1 %v14159_v9, %s10916_s20  ;;  %v6399_v47 = vadd.f32 %v6398_v13, %v6153_v12  ;;  %v6294_v59 = vadd.f32 %v14234_v31, %v6158_v46  ;;  %v6449_v31 = vld [vmem:[#allocation4 + $0x188] sm:$0xff] }
0x149d   : > { %6684 = vst.msk [vmem:[#allocation3 + $0x198] sm:$0xff] %vm15945_vm9, %v14232_v35  ;;  %v6401_v58 = vadd.f32 %v6400_v18, %v6153_v12  ;;  %v14331_v54 = vmax.f32 %v6292_v38, 0.0  ;;  %9441 = vmatprep.mubr.msk.f32.mxu0 %vm15949_vm12, %v6449_v31  ;;  %9433 = vmatprep.mubr.msk.f32.mxu1 %vm15938_vm1, %v6449_v31  ;;  %vm15956_vm9 = vmmov %vm15947_vm3  ;;  %v9432_v38 = vld [vmem:[%s15606_s9 + $0xf8] sm:$0xff] }
0x149e   : > { %v14242_v32 = vpop.f32.mrb[134].mxu1  ;;  %v14322_v61 = vmax.f32 %v6399_v47, 0.0  ;;  %v14340_v20 = vmax.f32 %v6294_v59, 0.0  ;;  %vm15960_vm12 = vmmov %vm15950_vm2 }
0x149f   : > { %v14244_v63 = vmax.f32 %v6401_v58, 0.0  ;;  %v6404_v15 = vpop.f32.mrb[132].mxu0  ;;  %v14246_v53 = vpop.f32.mrb[135].mxu1  ;;  %vm15961_vm1 = vmmov %vm15950_vm2 }
0x14a0   : > { %v6406_v62 = vpop.f32.mrb[133].mxu0  ;;  %6527 = vrot.lane.b32.xlu0 %v14187_v24, %s10916_s20  ;;  %6525 = vrot.lane.b32.xlu1 %v14182_v26, %s10916_s20 }
0x14a1   : > { %6688 = vst.msk [vmem:[#allocation3 + $0x1b8] sm:$0xff] %vm15946_vm5, %v14244_v63  ;;  %v6407_v33 = vadd.f32 %v6406_v62, %v6158_v46  ;;  %v9426_v62 = vld [vmem:[%s15606_s9 + $0xc8] sm:$0xff]  ;;  %vm15957_vm5 = vmmov %vm15950_vm2 }
0x14a3   : > { %v14256_v4 = vmax.f32 %v6407_v33, 0.0  ;;  %v6410_v8 = vpop.f32.mrb[134].mxu0  ;;  %v9427_v33 = vld [vmem:[%s15606_s9 + $0xd0] sm:$0xff] }
0x14a4   : > { %v6412_v39 = vpop.f32.mrb[135].mxu0  ;;  %6707 = vrot.lane.b32.xlu0 %v14165_v45, %s10917_s16  ;;  %6709 = vrot.lane.b32.xlu1 %v14182_v26, %s10917_s16  ;;  %v6411_v7 = vadd.f32 %v6410_v8, %v6163_v50  ;;  %v9428_v8 = vld [vmem:[%s15606_s9 + $0xd8] sm:$0xff] }
0x14a5   : > { %6692 = vst.msk [vmem:[#allocation3 + $0x1d8] sm:$0xff] %vm15947_vm3, %v14256_v4  ;;  %v6413_v17 = vadd.f32 %v6412_v39, %v6163_v50  ;;  %vm15958_vm3 = vmmov %vm15950_vm2 }
0x14a6   : > { %v14354_v44 = vmax.f32 %v6411_v7, 0.0 }
0x14a7   : > { %v14266_v29 = vmax.f32 %v6413_v17, 0.0 }
0x14a8   : > { %6711 = vrot.lane.b32.xlu0 %v14187_v24, %s10917_s16  ;;  %6529 = vrot.lane.b32.xlu1 %v14264_v23, %s10916_s20  ;;  %v6282_v24 = vadd.f32 %v14206_v22, %v6148_v37  ;;  %v6405_v22 = vadd.f32 %v6404_v15, %v6158_v46  ;;  %v6300_v37 = vadd.f32 %v14246_v53, %v6163_v50 }
0x14a9   : > { %6696 = vst.msk [vmem:[#allocation3 + $0x1f8] sm:$0xff] %vm15948_vm13, %v14266_v29  ;;  %vm15959_vm13 = vmmov %vm15950_vm2 }
0x14aa   : > { %v14308_v60 = vmax.f32 %v6282_v24, 0.0  ;;  %v14338_v48 = vmax.f32 %v6405_v22, 0.0  ;;  %v14356_v51 = vmax.f32 %v6300_v37, 0.0  ;;  %v9431_v24 = vld [vmem:[%s15606_s9 + $0xf0] sm:$0xff] }
0x14ac   : > { %6717 = vrot.lane.b32.xlu0 %v14216_v43, %s10917_s16  ;;  %6533 = vrot.lane.b32.xlu1 %v14216_v43, %s10916_s20 }
0x14b0   : > { %6531 = vrot.lane.b32.xlu0 %v14200_v34, %s10916_s20  ;;  %6715 = vrot.lane.b32.xlu1 %v14200_v34, %s10917_s16 }
0x14b4   : > { %6535 = vrot.lane.b32.xlu0 %v6426_v6, %s10916_s20  ;;  %6719 = vrot.lane.b32.xlu1 %v6426_v6, %s10917_s16  ;;  %v14324_v6 = vmax.f32 %v6288_v41, 0.0 }
0x14b8   : > { %6539 = vrot.lane.b32.xlu0 %v14202_v2, %s10916_s20  ;;  %6537 = vrot.lane.b32.xlu1 %v14286_v5, %s10916_s20 }
0x14bc   : > { %6543 = vrot.lane.b32.xlu0 %v6430_v56, %s10916_s20  ;;  %6541 = vrot.lane.b32.xlu1 %v14218_v27, %s10916_s20 }
0x14c0   : > { %6723 = vrot.lane.b32.xlu0 %v14202_v2, %s10917_s16  ;;  %6725 = vrot.lane.b32.xlu1 %v14218_v27, %s10917_s16 }
0x14c4   : > { %6727 = vrot.lane.b32.xlu0 %v6430_v56, %s10917_s16  ;;  %6545 = vrot.lane.b32.xlu1 %v14300_v21, %s10916_s20  ;;  %v6298_v56 = vadd.f32 %v14242_v32, %v6163_v50  ;;  %v14403_v32 = vld [vmem:[#allocation2 + $0xc8] sm:$0xff]  ;;  %v9429_v50 = vld [vmem:[%s15606_s9 + $0xe0] sm:$0xff] }
0x14c6   : > { %v14347_v19 = vmax.f32 %v6298_v56, 0.0 }
0x14c8   : > { %6547 = vrot.lane.b32.xlu0 %v14308_v60, %s10916_s20  ;;  %6549 = vrot.lane.b32.xlu1 %v14306_v3, %s10916_s20 }
0x14cc   : > { %6551 = vrot.lane.b32.xlu0 %v14232_v35, %s10916_s20  ;;  %6553 = vrot.lane.b32.xlu1 %v14315_v36, %s10916_s20 }
0x14d0   : > { %6555 = vrot.lane.b32.xlu0 %v14324_v6, %s10916_s20  ;;  %6557 = vrot.lane.b32.xlu1 %v14322_v61, %s10916_s20 }
0x14d4   : > { %6559 = vrot.lane.b32.xlu0 %v14244_v63, %s10916_s20  ;;  %6561 = vrot.lane.b32.xlu1 %v14331_v54, %s10916_s20 }
0x14d8   : > { %6563 = vrot.lane.b32.xlu0 %v14340_v20, %s10916_s20  ;;  %6565 = vrot.lane.b32.xlu1 %v14338_v48, %s10916_s20 }
0x14dc   : > { %6567 = vrot.lane.b32.xlu0 %v14256_v4, %s10916_s20  ;;  %6569 = vrot.lane.b32.xlu1 %v14347_v19, %s10916_s20 }
0x14e0   : > { %6571 = vrot.lane.b32.xlu0 %v14356_v51, %s10916_s20  ;;  %6573 = vrot.lane.b32.xlu1 %v14354_v44, %s10916_s20 }
0x14e4   : > { %6575 = vrot.lane.b32.xlu0 %v14266_v29, %s10916_s20  ;;  %6713 = vrot.lane.b32.xlu1 %v14264_v23, %s10917_s16  ;;  %v6904_v23 = vld [vmem:[#allocation3 + $0x178] sm:$0xff] }
0x14e8   : > { %6721 = vrot.lane.b32.xlu0 %v14286_v5, %s10917_s16  ;;  %6731 = vrot.lane.b32.xlu1 %v14308_v60, %s10917_s16  ;;  %v10560_v5 = vpack.c.bf16 %v14315_v36, %v14300_v21 }
0x14ec   : > { %6733 = vrot.lane.b32.xlu0 %v14306_v3, %s10917_s16  ;;  %6735 = vrot.lane.b32.xlu1 %v14232_v35, %s10917_s16 }
0x14f0   : > { %6739 = vrot.lane.b32.xlu0 %v14324_v6, %s10917_s16  ;;  %6741 = vrot.lane.b32.xlu1 %v14322_v61, %s10917_s16 }
0x14f4   : > { %6743 = vrot.lane.b32.xlu0 %v14244_v63, %s10917_s16  ;;  %6729 = vrot.lane.b32.xlu1 %v14300_v21, %s10917_s16  ;;  %v9425_v63 = vld [vmem:[%s15606_s9 + $0xc0] sm:$0xff]  ;;  %v15989_v21 = vpack.c.bf16 %v14182_v26, %v14161_v49 }
0x14f8   : > { %6737 = vrot.lane.b32.xlu0 %v14315_v36, %s10917_s16  ;;  %6747 = vrot.lane.b32.xlu1 %v14340_v20, %s10917_s16  ;;  %v6912_v36 = vld [vmem:[#allocation3 + $0x1b8] sm:$0xff] }
0x14f9   : > { %v6514_v40 = vpop.permute.xlu1 %6513 }
0x14fa   : > { %6633 = vst.msk [vmem:[#allocation3] sm:$0xff] %vm4145_vm0, %v6514_v40 }
0x14fc   : > { %6749 = vrot.lane.b32.xlu0 %v14338_v48, %s10917_s16  ;;  %6751 = vrot.lane.b32.xlu1 %v14256_v4, %s10917_s16 }
0x14fe   : > { %v14391_v35 = vpop.permute.xlu0 %6701  ;;  %v14393_v13 = vpop.permute.xlu1 %6517 }
0x1500   : > { %6755 = vrot.lane.b32.xlu0 %v14356_v51, %s10917_s16  ;;  %6757 = vrot.lane.b32.xlu1 %v14354_v44, %s10917_s16 }
0x1501   : > { %v6857_v12 = vld [vmem:[#allocation3] sm:$0xff] }
0x1502   : > { %v6516_v18 = vpop.permute.xlu0 %6515  ;;  %v14401_v58 = vpop.permute.xlu1 %6697  ;;  %7301 = vst.msk [vmem:[#allocation3] sm:$0xff] %vm15950_vm2, %v14403_v32  ;;  %vm15962_vm2 = vmmov %vm15952_vm7 }
0x1504   : > { %6759 = vrot.lane.b32.xlu0 %v14266_v29, %s10917_s16  ;;  %6745 = vrot.lane.b32.xlu1 %v14331_v54, %s10917_s16  ;;  %v6577_v29 = vsel %vm15953_vm14, %v6514_v40, %v6516_v18  ;;  %vm15965_vm14 = vmmov %vm15961_vm1 }
0x1506   : > { %v6520_v15 = vpop.permute.xlu0 %6519  ;;  %v14414_v53 = vpop.permute.xlu1 %6699 }
0x1507   : > { %v6579_v46 = vsel %vm15951_vm11, %v14393_v13, %v6520_v15  ;;  %vm15963_vm11 = vmmov %vm15961_vm1  ;;  %v6761_v49 = vsel %vm4274_vm15, %v14401_v58, %v14414_v53 }
0x1508   : > { %6636 = vst.msk [vmem:[#allocation3 + $0x18] sm:$0xff] %vm15952_vm7, %v6579_v46  ;;  %6753 = vrot.lane.b32.xlu0 %v14347_v19, %s10917_s16  ;;  %6955 = vperm.xlu1 %10852, %v9425_v63   ;;  %vm15964_vm7 = vmmov %vm15961_vm1 }
0x150a   : > { %v14427_v28 = vpop.permute.xlu0 %6705  ;;  %v14429_v4 = vpop.permute.xlu1 %6703 }
0x150b   : > { %6820 = vst.msk [vmem:[#allocation3 + $0x218] sm:$0xff] %vm4334_vm4, %v14429_v4 }
0x150c   : > { %6960 = vperm.xlu0 %10851, %v9426_v62   ;;  %6849 = vst.msk [vmem:[#allocation3 + $0x218] sm:$0xff] %vm4364_vm6, %v14403_v32  ;;  %6965 = vperm.xlu1 %10852, %v9427_v33  }
0x150e   : > { %v6524_v39 = vpop.permute.xlu0 %6523  ;;  %v6522_v17 = vpop.permute.xlu1 %6521 }
0x150f   : > { %v6580_v11 = vsel %vm15954_vm8, %v6522_v17, %v6524_v39  ;;  %6637 = vst.msk [vmem:[#allocation3 + $0x20] sm:$0xff] %vm4145_vm0, %v6522_v17  ;;  %v6860_v63 = vld [vmem:[#allocation3 + $0x18] sm:$0xff]  ;;  %vm15966_vm8 = vmmov %vm15962_vm2 }
0x1510   : > { %6970 = vperm.xlu0 %10851, %v9428_v8   ;;  %6975 = vperm.xlu1 %10852, %v9429_v50   ;;  %v10534_v57 = vpack.c.bf16 %v6580_v11, %v6577_v29 }
0x1512   : > { %v6528_v42 = vpop.permute.xlu0 %6527  ;;  %v6526_v47 = vpop.permute.xlu1 %6525  ;;  %10535 = vmatprep.subr.bf16.mxu1 %v10534_v57 }
0x1513   : > { %v6582_v41 = vsel %vm15955_vm10, %v6526_v47, %v6528_v42  ;;  %v6581_v37 = vsel %vm15958_vm3, %v6524_v39, %v6526_v47  ;;  %vm15967_vm10 = vmmov %vm15961_vm1 }
0x1514   : > { %6980 = vperm.xlu0 %10851, %v9430_v55   ;;  %6640 = vst.msk [vmem:[#allocation3 + $0x38] sm:$0xff] %vm15956_vm9, %v6582_v41  ;;  %6985 = vperm.xlu1 %10852, %v9431_v24   ;;  %vm15968_vm9 = vmmov %vm15961_vm1 }
0x1515   : > { %vm15970_vm3 = vmmov %vm15961_vm1 }
0x1516   : > { %v14455_v22 = vpop.permute.xlu0 %6707  ;;  %v14457_v59 = vpop.permute.xlu1 %6709  ;;  %v6861_v56 = vld [vmem:[#allocation3 + $0x20] sm:$0xff] }
0x1517   : > { %v10536_v7 = vpack.c.bf16 %v6861_v56, %v6857_v12  ;;  %7302 = vst.msk [vmem:[#allocation3 + $0x20] sm:$0xff] %vm15957_vm5, %v14403_v32  ;;  %v6578_v12 = vsel %vm15959_vm13, %v6516_v18, %v14393_v13  ;;  %vm15969_vm5 = vmmov %vm15961_vm1 }
0x1518   : > { %6990 = vperm.xlu0 %10851, %v9432_v38   ;;  %v10584_v62 = vpack.c.bf16 %v6581_v37, %v6578_v12  ;;  %vm15971_vm13 = vmmov %vm15961_vm1 }
0x1519   : > { %10537 = vmatpush1.bf16.msra.mxu1 %v10536_v7 }
0x151a   : > { %v14462_v40 = vpop.permute.xlu0 %6711  ;;  %v6530_v31 = vpop.permute.xlu1 %6529 }
0x151b   : > { %6824 = vst.msk [vmem:[#allocation3 + $0x238] sm:$0xff] %vm4334_vm4, %v14462_v40  ;;  %v6864_v15 = vld [vmem:[#allocation3 + $0x38] sm:$0xff] }
0x151c   : > { %6641 = vst.msk [vmem:[#allocation3 + $0x40] sm:$0xff] %vm4145_vm0, %v6530_v31  ;;  %v10582_v46 = vpack.c.bf16 %v6864_v15, %v6860_v63 }
0x151d   : > { %6850 = vst.msk [vmem:[#allocation3 + $0x238] sm:$0xff] %vm4364_vm6, %v14403_v32 }
0x151e   : > { %v14471_v33 = vpop.permute.xlu0 %6717  ;;  %10583 = vmatprep.subr.bf16.mxu0 %v10582_v46  ;;  %v6534_v8 = vpop.permute.xlu1 %6533 }
0x151f   : > { %10585 = vmatpush1.bf16.msra.mxu0 %v10584_v62 }
0x1522   : > { %v6532_v50 = vpop.permute.xlu0 %6531  ;;  %v14473_v39 = vpop.permute.xlu1 %6715 }
0x1523   : > { %v6865_v17 = vld [vmem:[#allocation3 + $0x40] sm:$0xff]  ;;  %v6583_v55 = vsel %vm15963_vm11, %v6530_v31, %v6532_v50  ;;  %vm15974_vm11 = vmmov %vm15961_vm1 }
0x1524   : > { %7303 = vst.msk [vmem:[#allocation3 + $0x40] sm:$0xff] %vm15960_vm12, %v14403_v32  ;;  %vm15972_vm12 = vmmov %vm15962_vm2 }
0x1526   : > { %v6536_v29 = vpop.permute.xlu0 %6535  ;;  %v14477_v11 = vpop.permute.xlu1 %6719 }
0x1527   : > { %v6585_v13 = vsel %vm15961_vm1, %v6534_v8, %v6536_v29  ;;  %6828 = vst.msk [vmem:[#allocation3 + $0x258] sm:$0xff] %vm4334_vm4, %v14477_v11  ;;  %v6584_v29 = vsel %vm15969_vm5, %v6532_v50, %v6534_v8  ;;  %vm15980_vm5 = vmmov %vm15961_vm1 }
0x1528   : > { %6644 = vst.msk [vmem:[#allocation3 + $0x58] sm:$0xff] %vm15962_vm2, %v6585_v13  ;;  %vm15973_vm2 = vmmov %vm15961_vm1 }
0x1529   : > { %6851 = vst.msk [vmem:[#allocation3 + $0x258] sm:$0xff] %vm4364_vm6, %v14403_v32 }
0x152a   : > { %v6540_v18 = vpop.permute.xlu0 %6539  ;;  %v6538_v57 = vpop.permute.xlu1 %6537 }
0x152b   : > { %v6586_v24 = vsel %vm15964_vm7, %v6538_v57, %v6540_v18  ;;  %6645 = vst.msk [vmem:[#allocation3 + $0x60] sm:$0xff] %vm4145_vm0, %v6538_v57  ;;  %vm15975_vm7 = vmmov %vm15961_vm1 }
0x152c   : > { %v10538_v42 = vpack.c.bf16 %v6586_v24, %v6583_v55 }
0x152e   : > { %v6544_v47 = vpop.permute.xlu0 %6543  ;;  %v6542_v41 = vpop.permute.xlu1 %6541  ;;  %10539 = vmatprep.subr.bf16.mxu1 %v10538_v42 }
0x152f   : > { %v6588_v38 = vsel %vm15965_vm14, %v6542_v41, %v6544_v47  ;;  %v6587_v31 = vsel %vm15968_vm9, %v6540_v18, %v6542_v41  ;;  %v6868_v46 = vld [vmem:[#allocation3 + $0x58] sm:$0xff]  ;;  %vm15976_vm14 = vmmov %vm15966_vm8 }
0x1530   : > { %6648 = vst.msk [vmem:[#allocation3 + $0x78] sm:$0xff] %vm15966_vm8, %v6588_v38  ;;  %v10588_v13 = vpack.c.bf16 %v6587_v31, %v6584_v29  ;;  %vm15977_vm8 = vmmov %vm15961_vm1 }
0x1531   : > { %vm15979_vm9 = vmmov %vm15961_vm1 }
0x1532   : > { %v14490_v56 = vpop.permute.xlu0 %6723  ;;  %v14492_v7 = vpop.permute.xlu1 %6725  ;;  %v6869_v37 = vld [vmem:[#allocation3 + $0x60] sm:$0xff] }
0x1533   : > { %v10540_v63 = vpack.c.bf16 %v6869_v37, %v6865_v17  ;;  %7304 = vst.msk [vmem:[#allocation3 + $0x60] sm:$0xff] %vm15967_vm10, %v14403_v32  ;;  %vm15978_vm10 = vmmov %vm15961_vm1 }
0x1535   : > { %10541 = vmatpush1.bf16.msra.mxu1 %v10540_v63 }
0x1536   : > { %v14497_v15 = vpop.permute.xlu0 %6727  ;;  %v6546_v12 = vpop.permute.xlu1 %6545 }
0x1537   : > { %6832 = vst.msk [vmem:[#allocation3 + $0x278] sm:$0xff] %vm4334_vm4, %v14497_v15  ;;  %v6872_v62 = vld [vmem:[#allocation3 + $0x78] sm:$0xff] }
0x1538   : > { %6649 = vst.msk [vmem:[#allocation3 + $0x80] sm:$0xff] %vm4145_vm0, %v6546_v12  ;;  %v10586_v17 = vpack.c.bf16 %v6872_v62, %v6868_v46 }
0x1539   : > { %6852 = vst.msk [vmem:[#allocation3 + $0x278] sm:$0xff] %vm4364_vm6, %v14403_v32 }
0x153a   : > { %v6548_v57 = vpop.permute.xlu0 %6547  ;;  %10587 = vmatprep.subr.bf16.mxu0 %v10586_v17  ;;  %v6550_v18 = vpop.permute.xlu1 %6549 }
0x153b   : > { %10589 = vmatpush1.bf16.msra.mxu0 %v10588_v13  ;;  %v6589_v41 = vsel %vm15961_vm1, %v6546_v12, %v6548_v57 }
0x153e   : > { %v6552_v55 = vpop.permute.xlu0 %6551  ;;  %v6554_v24 = vpop.permute.xlu1 %6553 }
0x153f   : > { %v6873_v42 = vld [vmem:[#allocation3 + $0x80] sm:$0xff]  ;;  %v6591_v47 = vsel %vm15970_vm3, %v6550_v18, %v6552_v55  ;;  %6653 = vst.msk [vmem:[#allocation3 + $0xa0] sm:$0xff] %vm4145_vm0, %v6554_v24  ;;  %vm15981_vm3 = vmmov %vm15972_vm12 }
0x1540   : > { %7305 = vst.msk [vmem:[#allocation3 + $0x80] sm:$0xff] %vm15971_vm13, %v14403_v32  ;;  %vm15982_vm13 = vmmov %vm15961_vm1 }
0x1541   : > { %6652 = vst.msk [vmem:[#allocation3 + $0x98] sm:$0xff] %vm15972_vm12, %v6591_v47  ;;  %vm15983_vm12 = vmmov %vm15961_vm1 }
0x1542   : > { %v6556_v8 = vpop.permute.xlu0 %6555  ;;  %v6558_v50 = vpop.permute.xlu1 %6557 }
0x1543   : > { %v6592_v38 = vsel %vm15973_vm2, %v6554_v24, %v6556_v8  ;;  %v6593_v13 = vsel %vm15977_vm8, %v6556_v8, %v6558_v50  ;;  %vm15984_vm2 = vmmov %vm15961_vm1  ;;  %vm15991_vm8 = vcmask 523264  }
0x1544   : > { %v10542_v37 = vpack.c.bf16 %v6592_v38, %v6589_v41 }
0x1546   : > { %v6560_v63 = vpop.permute.xlu0 %6559  ;;  %v6562_v31 = vpop.permute.xlu1 %6561  ;;  %10543 = vmatprep.subr.bf16.mxu1 %v10542_v37  ;;  %v6877_v46 = vld [vmem:[#allocation3 + $0xa0] sm:$0xff] }
0x1547   : > { %v6594_v62 = vsel %vm15974_vm11, %v6558_v50, %v6560_v63  ;;  %6657 = vst.msk [vmem:[#allocation3 + $0xc0] sm:$0xff] %vm4145_vm0, %v6562_v31  ;;  %v10544_v29 = vpack.c.bf16 %v6877_v46, %v6873_v42  ;;  %v6590_v42 = vsel %vm15980_vm5, %v6548_v57, %v6550_v18  ;;  %vm15985_vm11 = vmmov %vm15981_vm3 }
0x1548   : > { %7306 = vst.msk [vmem:[#allocation3 + $0xa0] sm:$0xff] %vm15975_vm7, %v14403_v32  ;;  %v6876_v38 = vld [vmem:[#allocation3 + $0x98] sm:$0xff]  ;;  %v10592_v46 = vpack.c.bf16 %v6593_v13, %v6590_v42  ;;  %vm15986_vm7 = vmmov %vm15961_vm1 }
0x1549   : > { %6656 = vst.msk [vmem:[#allocation3 + $0xb8] sm:$0xff] %vm15976_vm14, %v6594_v62  ;;  %10545 = vmatpush1.bf16.msra.mxu1 %v10544_v29  ;;  %vm15988_vm14 = vmmov %vm15961_vm1 }
0x154a   : > { %v6564_v17 = vpop.permute.xlu0 %6563  ;;  %v6566_v12 = vpop.permute.xlu1 %6565  ;;  %vm15994_vm5 = vmmov %vm15991_vm8 }
0x154b   : > { %v6595_v50 = vsel %vm15982_vm13, %v6562_v31, %v6564_v17  ;;  %v6596_v9 = vsel %vm15988_vm14, %v6564_v17, %v6566_v12  ;;  %v10562_v17 = vpack.c.bf16 %v14356_v51, %v14340_v20  ;;  %v10564_v20 = vpack.c.bf16 %v14347_v19, %v14331_v54 }
0x154c   : > { %v6764_v51 = vsel %vm4274_vm15, %v14427_v28, %v14455_v22  ;;  %v6768_v28 = vsel %vm4274_vm15, %v14473_v39, %v14471_v33 }
0x154e   : > { %v6568_v55 = vpop.permute.xlu0 %6567  ;;  %v6570_v24 = vpop.permute.xlu1 %6569  ;;  %v6881_v47 = vld [vmem:[#allocation3 + $0xc0] sm:$0xff] }
0x154f   : > { %v6597_v41 = vsel %vm15978_vm10, %v6566_v12, %v6568_v55  ;;  %6661 = vst.msk [vmem:[#allocation3 + $0xe0] sm:$0xff] %vm4145_vm0, %v6570_v24  ;;  %vm15992_vm10 = vmmov %vm15991_vm8 }
0x1550   : > { %v6880_v37 = vld [vmem:[#allocation3 + $0xb8] sm:$0xff]  ;;  %7307 = vst.msk [vmem:[#allocation3 + $0xc0] sm:$0xff] %vm15979_vm9, %v14403_v32  ;;  %vm15993_vm9 = vmmov %vm15991_vm8 }
0x1551   : > { %6660 = vst.msk [vmem:[#allocation3 + $0xd8] sm:$0xff] %vm15981_vm3, %v6597_v41  ;;  %v10590_v63 = vpack.c.bf16 %v6880_v37, %v6876_v38  ;;  %vm15995_vm3 = vmmov %vm15994_vm5 }
0x1552   : > { %v6572_v62 = vpop.permute.xlu0 %6571  ;;  %v6574_v8 = vpop.permute.xlu1 %6573  ;;  %vm15996_vm13 = vmmov %vm15995_vm3 }
0x1553   : > { %10591 = vmatprep.subr.bf16.mxu0 %v10590_v63  ;;  %v6598_v29 = vsel %vm15983_vm12, %v6570_v24, %v6572_v62  ;;  %vm15997_vm12 = vmmov %vm15995_vm3 }
0x1554   : > { %10593 = vmatpush1.bf16.msra.mxu0 %v10592_v46  ;;  %v10546_v55 = vpack.c.bf16 %v6598_v29, %v6595_v50  ;;  %v6771_v50 = vsel %vm4274_vm15, %v14490_v56, %v14492_v7  ;;  %v6908_v29 = vld [vmem:[#allocation3 + $0x198] sm:$0xff] }
0x1555   : > { %v10606_v54 = vpack.c.bf16 %v6912_v36, %v6908_v29  ;;  %v10570_v58 = vpack.c.bf16 %v6771_v50, %v6768_v28  ;;  %v6456_v28 = vld [vmem:[#allocation4 + $0x1c0] sm:$0xff] }
0x1556   : > { %v6576_v25 = vpop.permute.xlu0 %6575  ;;  %v14526_v14 = vpop.permute.xlu1 %6713  ;;  %10547 = vmatprep.subr.bf16.mxu1 %v10546_v55  ;;  %v6885_v30 = vld [vmem:[#allocation3 + $0xe0] sm:$0xff]  ;;  %v6920_v55 = vld [vmem:[#allocation3 + $0x1f8] sm:$0xff] }
0x1557   : > { %v6600_v57 = vsel %vm15961_vm1, %v6574_v8, %v6576_v25  ;;  %v10548_v18 = vpack.c.bf16 %v6885_v30, %v6881_v47  ;;  %7308 = vst.msk [vmem:[#allocation3 + $0xe0] sm:$0xff] %vm15984_vm2, %v14403_v32  ;;  %v6599_v25 = vsel %vm15986_vm7, %v6572_v62, %v6574_v8  ;;  %v15987_v47 = vpack.c.bf16 %v14202_v2, %v14200_v34  ;;  %v6892_v34 = vld [vmem:[#allocation3 + $0x118] sm:$0xff]  ;;  %vm15998_vm1 = vmmov %vm15995_vm3 }
0x1558   : > { %6664 = vst.msk [vmem:[#allocation3 + $0xf8] sm:$0xff] %vm15985_vm11, %v6600_v57  ;;  %v6884_v41 = vld [vmem:[#allocation3 + $0xd8] sm:$0xff]  ;;  %v10598_v37 = vpack.c.bf16 %v6896_v1, %v6892_v34  ;;  %v6762_v62 = vsel %vm4274_vm15, %v14414_v53, %v14391_v35  ;;  %v10568_v57 = vpack.c.bf16 %v6764_v51, %v6761_v49  ;;  %v6448_v51 = vld [vmem:[#allocation4 + $0x180] sm:$0xff]  ;;  %v6450_v49 = vld [vmem:[#allocation4 + $0x190] sm:$0xff] }
0x1559   : > { %10549 = vmatpush1.bf16.msra.mxu1 %v10548_v18  ;;  %vm15999_vm2 = vmmov %vm15998_vm1 }
0x155a   : > { %v6722_v13 = vpop.permute.xlu0 %6721  ;;  %v14532_v31 = vpop.permute.xlu1 %6731  ;;  %10551 = vmatprep.subr.bf16.mxu1 %v10550_v16  ;;  %v10596_v16 = vpack.c.bf16 %v6599_v25, %v6596_v9  ;;  %v10608_v25 = vpack.c.bf16 %v14322_v61, %v14306_v3  ;;  %v6932_v9 = vld [vmem:[#allocation3 + $0x258] sm:$0xff]  ;;  %vm16000_vm11 = vmmov %vm15998_vm1 }
0x155b   : > { %v6770_v18 = vsel %vm4274_vm15, %v6722_v13, %v14490_v56  ;;  %vm16001_vm7 = vmmov %vm15998_vm1 }
0x155c   : > { %vm16002_vm14 = vmmov %vm15998_vm1 }
0x155d   : > { %10553 = vmatpush1.bf16.msra.mxu1 %v10552_v10  ;;  %v10558_v10 = vpack.c.bf16 %v14324_v6, %v14308_v60  ;;  %v6765_v60 = vsel %vm4274_vm15, %v14455_v22, %v14457_v59  ;;  %v6900_v6 = vld [vmem:[#allocation3 + $0x158] sm:$0xff]  ;;  %v15990_v22 = vpack.c.bf16 %v14218_v27, %v14216_v43  ;;  %v6767_v43 = vsel %vm4274_vm15, %v14526_v14, %v14473_v39 }
0x155e   : > { %v14541_v30 = vpop.permute.xlu0 %6733  ;;  %v14543_v24 = vpop.permute.xlu1 %6735  ;;  %10555 = vmatprep.subr.bf16.mxu1 %v15987_v47  ;;  %v10602_v63 = vpack.c.bf16 %v6904_v23, %v6900_v6  ;;  %v10566_v8 = vpack.c.bf16 %v6765_v60, %v6762_v62  ;;  %v6916_v47 = vld [vmem:[#allocation3 + $0x1d8] sm:$0xff]  ;;  %v10572_v3 = vpack.c.bf16 %v6770_v18, %v6767_v43  ;;  %v10612_v39 = vpack.c.bf16 %v14354_v44, %v14338_v48  ;;  %v6460_v18 = vld [vmem:[#allocation4 + $0x1e0] sm:$0xff] }
0x155f   : > { %v6888_v38 = vld [vmem:[#allocation3 + $0xf8] sm:$0xff]  ;;  %6836 = vst.msk [vmem:[#allocation3 + $0x298] sm:$0xff] %vm4334_vm4, %v14543_v24  ;;  %v10610_v1 = vpack.c.bf16 %v6920_v55, %v6916_v47  ;;  %v6774_v56 = vsel %vm4274_vm15, %v14532_v31, %v14541_v30  ;;  %v6763_v44 = vsel %vm4274_vm15, %v14391_v35, %v14429_v4  ;;  %v6772_v60 = vsel %vm4274_vm15, %v14492_v7, %v14497_v15  ;;  %v6458_v55 = vld [vmem:[#allocation4 + $0x1d0] sm:$0xff] }
0x1560   : > { %v10594_v45 = vpack.c.bf16 %v6888_v38, %v6884_v41  ;;  %6853 = vst.msk [vmem:[#allocation3 + $0x298] sm:$0xff] %vm4364_vm6, %v14403_v32  ;;  %v6924_v41 = vld [vmem:[#allocation3 + $0x218] sm:$0xff]  ;;  %v6769_v35 = vsel %vm4274_vm15, %v14471_v33, %v14477_v11  ;;  %v6775_v33 = vsel %vm4274_vm15, %v14541_v30, %v14543_v24  ;;  %v6453_v30 = vld [vmem:[#allocation4 + $0x1a8] sm:$0xff]  ;;  %v6452_v24 = vld [vmem:[#allocation4 + $0x1a0] sm:$0xff] }
0x1561   : > { %10557 = vmatpush1.bf16.msra.mxu1 %v10556_v52  ;;  %v6928_v38 = vld [vmem:[#allocation3 + $0x238] sm:$0xff] }
0x1562   : > { %v6740_v2 = vpop.permute.xlu0 %6739  ;;  %10595 = vmatprep.subr.bf16.mxu0 %v10594_v45  ;;  %v14557_v42 = vpop.permute.xlu1 %6741  ;;  %10559 = vmatprep.subr.bf16.mxu1 %v10558_v10  ;;  %v10614_v13 = vpack.c.bf16 %v6928_v38, %v6924_v41  ;;  %v6936_v45 = vld [vmem:[#allocation3 + $0x278] sm:$0xff]  ;;  %v6766_v10 = vsel %vm4274_vm15, %v14457_v59, %v14462_v40 }
0x1563   : > { %10597 = vmatpush1.bf16.msra.mxu0 %v10596_v16  ;;  %v6777_v53 = vsel %vm4274_vm15, %v6740_v2, %v14557_v42  ;;  %v10616_v40 = vpack.c.bf16 %v6766_v10, %v6763_v44 }
0x1564   : > { %10599 = vmatprep.subr.bf16.mxu0 %v10598_v37  ;;  %v10574_v14 = vpack.c.bf16 %v6777_v53, %v6774_v56  ;;  %v6462_v53 = vld [vmem:[#allocation4 + $0x1f0] sm:$0xff] }
0x1565   : > { %10561 = vmatpush1.bf16.msra.mxu1 %v10560_v5  ;;  %v10618_v5 = vpack.c.bf16 %v6936_v45, %v6932_v9 }
0x1566   : > { %v14566_v12 = vpop.permute.xlu0 %6743  ;;  %v6730_v46 = vpop.permute.xlu1 %6729  ;;  %10563 = vmatprep.subr.bf16.mxu1 %v10562_v17 }
0x1567   : > { %6840 = vst.msk [vmem:[#allocation3 + $0x2b8] sm:$0xff] %vm4334_vm4, %v14566_v12  ;;  %10601 = vmatpush1.bf16.msra.mxu0 %v15989_v21  ;;  %v6773_v16 = vsel %vm4274_vm15, %v6730_v46, %v14532_v31  ;;  %v6940_v31 = vld [vmem:[#allocation3 + $0x298] sm:$0xff]  ;;  %v10620_v46 = vpack.c.bf16 %v6772_v60, %v6769_v35  ;;  %v6778_v7 = vsel %vm4274_vm15, %v14557_v42, %v14566_v12 }
0x1568   : > { %6854 = vst.msk [vmem:[#allocation3 + $0x2b8] sm:$0xff] %vm4364_vm6, %v14403_v32  ;;  %10603 = vmatprep.subr.bf16.mxu0 %v10602_v63  ;;  %v10624_v11 = vpack.c.bf16 %v6778_v7, %v6775_v33  ;;  %v6451_v12 = vld [vmem:[#allocation4 + $0x198] sm:$0xff] }
0x1569   : > { %10565 = vmatpush1.bf16.msra.mxu1 %v10564_v20 }
0x156a   : > { %v6738_v26 = vpop.permute.xlu0 %6737  ;;  %v14589_v19 = vpop.permute.xlu1 %6747  ;;  %10567 = vmatprep.subr.bf16.mxu1 %v10566_v8 }
0x156b   : > { %10605 = vmatpush1.bf16.msra.mxu0 %v15990_v22  ;;  %v6776_v61 = vsel %vm4274_vm15, %v6738_v26, %v6740_v2  ;;  %v6455_v26 = vld [vmem:[#allocation4 + $0x1b8] sm:$0xff] }
0x156c   : > { %10607 = vmatprep.subr.bf16.mxu0 %v10606_v54  ;;  %v10576_v48 = vpack.c.bf16 %v6776_v61, %v6773_v16  ;;  %v6454_v54 = vld [vmem:[#allocation4 + $0x1b0] sm:$0xff]  ;;  %v6459_v22 = vld [vmem:[#allocation4 + $0x1d8] sm:$0xff] }
0x156d   : > { %10569 = vmatpush1.bf16.msra.mxu1 %v10568_v57  ;;  %v6461_v57 = vld [vmem:[#allocation4 + $0x1e8] sm:$0xff] }
0x156e   : > { %v6750_v27 = vpop.permute.xlu0 %6749  ;;  %v6752_v52 = vpop.permute.xlu1 %6751  ;;  %10571 = vmatprep.subr.bf16.mxu1 %v10570_v58  ;;  %v6463_v58 = vld [vmem:[#allocation4 + $0x1f8] sm:$0xff] }
0x156f   : > { %10609 = vmatpush1.bf16.msra.mxu0 %v10608_v25  ;;  %6844 = vst.msk [vmem:[#allocation3 + $0x2d8] sm:$0xff] %vm4334_vm4, %v6752_v52  ;;  %v6780_v37 = vsel %vm4274_vm15, %v14589_v19, %v6750_v27  ;;  %v6944_v17 = vld [vmem:[#allocation3 + $0x2b8] sm:$0xff]  ;;  %v6781_v8 = vsel %vm4274_vm15, %v6750_v27, %v6752_v52 }
0x1570   : > { %10611 = vmatprep.subr.bf16.mxu0 %v10610_v1  ;;  %6855 = vst.msk [vmem:[#allocation3 + $0x2d8] sm:$0xff] %vm4364_vm6, %v14403_v32  ;;  %v10622_v63 = vpack.c.bf16 %v6944_v17, %v6940_v31 }
0x1571   : > { %10573 = vmatpush1.bf16.msra.mxu1 %v10572_v3 }
0x1572   : > { %v6756_v34 = vpop.permute.xlu0 %6755  ;;  %v6758_v2 = vpop.permute.xlu1 %6757  ;;  %10575 = vmatprep.subr.bf16.mxu1 %v10574_v14 }
0x1573   : > { %10613 = vmatpush1.bf16.msra.mxu0 %v10612_v39  ;;  %v6783_v23 = vsel %vm4274_vm15, %v6756_v34, %v6758_v2 }
0x1574   : > { %10615 = vmatprep.subr.bf16.mxu0 %v10614_v13  ;;  %v10578_v59 = vpack.c.bf16 %v6783_v23, %v6780_v37 }
0x1575   : > { %10577 = vmatpush1.bf16.msra.mxu1 %v10576_v48 }
0x1576   : > { %v6760_v6 = vpop.permute.xlu0 %6759  ;;  %10579 = vmatprep.subr.bf16.mxu1 %v10578_v59  ;;  %v6746_v4 = vpop.permute.xlu1 %6745 }
0x1577   : > { %6848 = vst.msk [vmem:[#allocation3 + $0x2f8] sm:$0xff] %vm4334_vm4, %v6760_v6  ;;  %10617 = vmatpush1.bf16.msra.mxu0 %v10616_v40  ;;  %v6779_v21 = vsel %vm4274_vm15, %v6746_v4, %v14589_v19  ;;  %v6948_v36 = vld [vmem:[#allocation3 + $0x2d8] sm:$0xff]  ;;  %v6784_v20 = vsel %vm4274_vm15, %v6758_v2, %v6760_v6  ;;  %v6457_v19 = vld [vmem:[#allocation4 + $0x1c8] sm:$0xff] }
0x1578   : > { %6856 = vst.msk [vmem:[#allocation3 + $0x2f8] sm:$0xff] %vm4364_vm6, %v14403_v32  ;;  %10619 = vmatprep.subr.bf16.mxu0 %v10618_v5  ;;  %v10628_v29 = vpack.c.bf16 %v6784_v20, %v6781_v8 }
0x157a   : > { %v6754_v15 = vpop.permute.xlu0 %6753 }
0x157b   : > { %v6782_v62 = vsel %vm4274_vm15, %v6754_v15, %v6756_v34  ;;  %10621 = vmatpush1.bf16.msra.mxu0 %v10620_v46 }
0x157c   : > { %10623 = vmatprep.subr.bf16.mxu0 %v10622_v63  ;;  %v10580_v32 = vpack.c.bf16 %v6782_v62, %v6779_v21 }
0x157e   : > { %10581 = vmatpush1.bf16.msra.mxu1 %v10580_v32 }
0x157f   : > { %10625 = vmatpush1.bf16.msra.mxu0 %v10624_v11  ;;  %v6952_v42 = vld [vmem:[#allocation3 + $0x2f8] sm:$0xff] }
0x1580   : > { %v10626_v50 = vpack.c.bf16 %v6952_v42, %v6948_v36 }
0x1581   : > { %7082 = vmatmul.mubr.f32.vlgmr.msra.gmra.mrb[136].mxu1 %v6448_v51 }
0x1582   : > { %10627 = vmatprep.subr.bf16.mxu0 %v10626_v50  ;;  %9434 = vmatprep.mubr.msk.f32.mxu1 %vm15991_vm8, %v6451_v12  ;;  %vm16003_vm8 = vmmov %vm15998_vm1 }
0x1583   : > { %10629 = vmatpush1.bf16.msra.mxu0 %v10628_v29 }
0x1585   : > { %7088 = vmatmul.mubr.f32.gmra.mrb[138].mxu1 %v6450_v49 }
0x1586   : > { %7195 = vmatmul.mubr.f32.vlgmr.msra.gmra.mrb[136].mxu0 %v6448_v51  ;;  %9435 = vmatprep.mubr.msk.f32.mxu1 %vm15992_vm10, %v6453_v30  ;;  %vm16004_vm10 = vmmov %vm15998_vm1 }
0x1587   : > { %9442 = vmatprep.mubr.msk.f32.mxu0 %vm15993_vm9, %v6451_v12  ;;  %v6956_v25 = vpop.permute.xlu1 %6955  ;;  %vm16005_vm9 = vcmask 949248  }
0x1589   : > { %7094 = vmatmul.mubr.f32.gmra.mrb[140].mxu1 %v6452_v24 }
0x158a   : > { %7201 = vmatmul.mubr.f32.gmra.mrb[138].mxu0 %v6450_v49  ;;  %9436 = vmatprep.mubr.msk.f32.mxu1 %vm15994_vm5, %v6455_v26  ;;  %vm16006_vm5 = vmmov %vm16005_vm9 }
0x158b   : > { %9443 = vmatprep.mubr.msk.f32.mxu0 %vm15995_vm3, %v6453_v30  ;;  %v6961_v27 = vpop.permute.xlu0 %6960  ;;  %v14682_v31 = vpop.permute.xlu1 %6965  ;;  %vm16007_vm3 = vmmov %vm16006_vm5 }
0x158d   : > { %7100 = vmatmul.mubr.f32.gmra.mrb[142].mxu1 %v6454_v54 }
0x158e   : > { %7207 = vmatmul.mubr.f32.gmra.mrb[140].mxu0 %v6452_v24  ;;  %9437 = vmatprep.mubr.msk.f32.mxu1 %vm15996_vm13, %v6457_v19  ;;  %vm16008_vm13 = vmmov %vm16007_vm3 }
0x158f   : > { %9444 = vmatprep.mubr.msk.f32.mxu0 %vm15997_vm12, %v6455_v26  ;;  %v14685_v60 = vpop.permute.xlu0 %6970  ;;  %vm16009_vm12 = vmmov %vm16007_vm3 }
0x1591   : > { %7106 = vmatmul.mubr.f32.gmra.mrb[144].mxu1 %v6456_v28 }
0x1592   : > { %7213 = vmatmul.mubr.f32.gmra.mrb[142].mxu0 %v6454_v54  ;;  %9438 = vmatprep.mubr.msk.f32.mxu1 %vm15998_vm1, %v6459_v22  ;;  %vm16010_vm1 = vmmov %vm16007_vm3 }
0x1593   : > { %9445 = vmatprep.mubr.msk.f32.mxu0 %vm15999_vm2, %v6457_v19  ;;  %vm16011_vm2 = vmmov %vm16010_vm1 }
0x1595   : > { %7112 = vmatmul.mubr.f32.gmra.mrb[146].mxu1 %v6458_v55 }
0x1596   : > { %7219 = vmatmul.mubr.f32.gmra.mrb[144].mxu0 %v6456_v28  ;;  %9439 = vmatprep.mubr.msk.f32.mxu1 %vm16000_vm11, %v6461_v57  ;;  %vm16012_vm11 = vmmov %vm16010_vm1 }
0x1597   : > { %9446 = vmatprep.mubr.msk.f32.mxu0 %vm16001_vm7, %v6459_v22  ;;  %v6976_v22 = vpop.permute.xlu1 %6975 }
0x1599   : > { %7118 = vmatmul.mubr.f32.gmra.mrb[148].mxu1 %v6460_v18 }
0x159a   : > { %7225 = vmatmul.mubr.f32.gmra.mrb[146].mxu0 %v6458_v55  ;;  %9440 = vmatprep.mubr.msk.f32.mxu1 %vm16002_vm14, %v6463_v58  ;;  %vm16013_vm14 = vmmov %vm16001_vm7 }
0x159b   : > { %9447 = vmatprep.mubr.msk.f32.mxu0 %vm16003_vm8, %v6461_v57  ;;  %vm16014_vm8 = vcmask 7168  }
0x159d   : > { %7124 = vmatmul.mubr.f32.gmra.mrb[150].mxu1 %v6462_v53 }
0x159e   : > { %7231 = vmatmul.mubr.f32.gmra.mrb[148].mxu0 %v6460_v18 }
0x159f   : > { %9448 = vmatprep.mubr.msk.f32.mxu0 %vm16004_vm10, %v6463_v58  ;;  %vm16015_vm10 = vmmov %vm16014_vm8 }
0x15a2   : > { %7237 = vmatmul.mubr.f32.gmra.mrb[150].mxu0 %v6462_v53 }
0x1654   : > { %v7083_v47 = vpop.f32.mrb[136].mxu1 }
0x1655   : > { %v7084_v41 = vadd.f32 %v7083_v47, %v6956_v25  ;;  %v7085_v38 = vpop.f32.mrb[137].mxu1 }
0x1656   : > { %v7086_v1 = vadd.f32 %v7085_v38, %v6956_v25 }
0x1657   : > { %v14660_v43 = vmax.f32 %v7084_v41, 0.0  ;;  %v6981_v41 = vpop.permute.xlu0 %6980 }
0x1658   : > { %v7089_v52 = vpop.f32.mrb[138].mxu1  ;;  %v14668_v16 = vmax.f32 %v7086_v1, 0.0 }
0x1659   : > { %v7196_v56 = vpop.f32.mrb[136].mxu0  ;;  %v7090_v3 = vadd.f32 %v7089_v52, %v6961_v27  ;;  %v7091_v61 = vpop.f32.mrb[139].mxu1  ;;  %7341 = vrot.lane.b32.xlu1 %v14660_v43, %s10916_s20 }
0x165a   : > { %v7197_v13 = vadd.f32 %v7196_v56, %v6956_v25  ;;  %v7198_v14 = vpop.f32.mrb[137].mxu0  ;;  %v7092_v39 = vadd.f32 %v7091_v61, %v6961_v27  ;;  %v6986_v61 = vpop.permute.xlu1 %6985 }
0x165b   : > { %v7199_v9 = vadd.f32 %v7198_v14, %v6956_v25  ;;  %v14664_v45 = vmax.f32 %v7090_v3, 0.0 }
0x165c   : > { %v14666_v10 = vmax.f32 %v7197_v13, 0.0  ;;  %v14670_v34 = vmax.f32 %v7092_v39, 0.0  ;;  %v14672_v2 = vpop.f32.mrb[140].mxu1 }
0x165d   : > { %v7246_v37 = vmax.f32 %v7199_v9, 0.0  ;;  %v7202_v23 = vpop.f32.mrb[138].mxu0  ;;  %v7097_v48 = vpop.f32.mrb[141].mxu1  ;;  %v10648_v44 = vpack.c.bf16 %v14664_v45, %v14660_v43  ;;  %v7096_v39 = vadd.f32 %v14672_v2, %v14682_v31 }
0x165e   : > { %v7203_v5 = vadd.f32 %v7202_v23, %v6961_v27  ;;  %v7204_v59 = vpop.f32.mrb[139].mxu0  ;;  %7529 = vrot.lane.b32.xlu0 %v14666_v10, %s10917_s16  ;;  %7345 = vrot.lane.b32.xlu1 %v14666_v10, %s10916_s20  ;;  %v10646_v40 = vpack.c.bf16 %v14670_v34, %v14668_v16  ;;  %v7098_v35 = vadd.f32 %v7097_v48, %v14682_v31  ;;  %v6991_v23 = vpop.permute.xlu0 %6990 }
0x165f   : > { %7496 = vst.msk [vmem:[#allocation3 + $0x118] sm:$0xff] %vm16005_vm9, %v7246_v37  ;;  %v7205_v17 = vadd.f32 %v7204_v59, %v6961_v27  ;;  %v14769_v59 = vmax.f32 %v7096_v39, 0.0  ;;  %vm16016_vm9 = vmmov %vm16010_vm1 }
0x1660   : > { %v14687_v6 = vmax.f32 %v7203_v5, 0.0  ;;  %v14690_v4 = vpop.f32.mrb[142].mxu1  ;;  %v14705_v11 = vmax.f32 %v7098_v35, 0.0 }
0x1661   : > { %v14692_v63 = vmax.f32 %v7205_v17, 0.0  ;;  %v7208_v46 = vpop.f32.mrb[140].mxu0  ;;  %v7103_v7 = vpop.f32.mrb[143].mxu1  ;;  %v7102_v2 = vadd.f32 %v14690_v4, %v14685_v60 }
0x1662   : > { %v7210_v15 = vpop.f32.mrb[141].mxu0  ;;  %7343 = vrot.lane.b32.xlu0 %v14668_v16, %s10916_s20  ;;  %v7104_v62 = vadd.f32 %v7103_v7, %v14685_v60  ;;  %7525 = vrot.lane.b32.xlu1 %v14660_v43, %s10917_s16  ;;  %v7209_v32 = vadd.f32 %v7208_v46, %v14682_v31 }
0x1663   : > { %7500 = vst.msk [vmem:[#allocation3 + $0x138] sm:$0xff] %vm16006_vm5, %v14692_v63  ;;  %v7211_v33 = vadd.f32 %v7210_v15, %v14682_v31  ;;  %v14791_v31 = vmax.f32 %v7102_v2, 0.0  ;;  %vm16017_vm5 = vmmov %vm16014_vm8 }
0x1664   : > { %v14707_v36 = vmax.f32 %v7104_v62, 0.0  ;;  %v14709_v20 = vpop.f32.mrb[144].mxu1  ;;  %v14721_v30 = vmax.f32 %v7209_v32, 0.0 }
0x1665   : > { %v7254_v51 = vmax.f32 %v7211_v33, 0.0  ;;  %v7214_v42 = vpop.f32.mrb[142].mxu0  ;;  %v14711_v12 = vpop.f32.mrb[145].mxu1  ;;  %v7108_v35 = vadd.f32 %v14709_v20, %v6976_v22  ;;  %v10652_v43 = vpack.c.bf16 %v14791_v31, %v14769_v59 }
0x1666   : > { %v7215_v8 = vadd.f32 %v7214_v42, %v14685_v60  ;;  %v7216_v50 = vpop.f32.mrb[143].mxu0  ;;  %7347 = vrot.lane.b32.xlu0 %v7246_v37, %s10916_s20  ;;  %7527 = vrot.lane.b32.xlu1 %v14668_v16, %s10917_s16 }
0x1667   : > { %7504 = vst.msk [vmem:[#allocation3 + $0x158] sm:$0xff] %vm16007_vm3, %v7254_v51  ;;  %v7217_v49 = vadd.f32 %v7216_v50, %v14685_v60  ;;  %v14805_v4 = vmax.f32 %v7108_v35, 0.0  ;;  %vm16018_vm3 = vmmov %vm16017_vm5 }
0x1668   : > { %v14723_v24 = vmax.f32 %v7215_v8, 0.0  ;;  %v14725_v26 = vpop.f32.mrb[146].mxu1 }
0x1669   : > { %v7258_v54 = vmax.f32 %v7217_v49, 0.0  ;;  %v7220_v19 = vpop.f32.mrb[144].mxu0  ;;  %v14727_v28 = vpop.f32.mrb[147].mxu1  ;;  %v7114_v15 = vadd.f32 %v14725_v26, %v6981_v41 }
0x166a   : > { %v7222_v55 = vpop.f32.mrb[145].mxu0  ;;  %7533 = vrot.lane.b32.xlu0 %v14664_v45, %s10917_s16  ;;  %7531 = vrot.lane.b32.xlu1 %v7246_v37, %s10917_s16  ;;  %v7221_v60 = vadd.f32 %v7220_v19, %v6976_v22  ;;  %v7116_v32 = vadd.f32 %v14727_v28, %v6981_v41  ;;  %v7724_v16 = vld [vmem:[#allocation3 + $0x138] sm:$0xff] }
0x166b   : > { %7508 = vst.msk [vmem:[#allocation3 + $0x178] sm:$0xff] %vm16008_vm13, %v7258_v54  ;;  %v7223_v18 = vadd.f32 %v7222_v55, %v6976_v22  ;;  %v14820_v33 = vmax.f32 %v7114_v15, 0.0  ;;  %vm16019_vm13 = vmmov %vm16018_vm3 }
0x166c   : > { %v14735_v58 = vpop.f32.mrb[148].mxu1  ;;  %v14811_v46 = vmax.f32 %v7221_v60, 0.0  ;;  %v9454_v60 = vld [vmem:[%s15606_s9 + $0x128] sm:$0xff] }
0x166d   : > { %v14737_v53 = vmax.f32 %v7223_v18, 0.0  ;;  %v7226_v25 = vpop.f32.mrb[146].mxu0  ;;  %v14739_v47 = vpop.f32.mrb[149].mxu1  ;;  %v7120_v42 = vadd.f32 %v14735_v58, %v6986_v61 }
0x166e   : > { %v7228_v38 = vpop.f32.mrb[147].mxu0  ;;  %7351 = vrot.lane.b32.xlu0 %v14670_v34, %s10916_s20  ;;  %7349 = vrot.lane.b32.xlu1 %v14664_v45, %s10916_s20  ;;  %v7227_v62 = vadd.f32 %v7226_v25, %v6981_v41  ;;  %v7122_v50 = vadd.f32 %v14739_v47, %v6986_v61  ;;  %v7277_v47 = vld [vmem:[#allocation4 + $0x208] sm:$0xff] }
0x166f   : > { %7512 = vst.msk [vmem:[#allocation3 + $0x198] sm:$0xff] %vm16009_vm12, %v14737_v53  ;;  %v7229_v27 = vadd.f32 %v7228_v38, %v6981_v41  ;;  %v14836_v8 = vmax.f32 %v7120_v42, 0.0  ;;  %9465 = vmatprep.mubr.msk.f32.mxu0 %vm16001_vm7, %v7277_v47  ;;  %9457 = vmatprep.mubr.msk.f32.mxu1 %vm16013_vm14, %v7277_v47  ;;  %vm16020_vm12 = vmmov %vm16010_vm1  ;;  %v9456_v42 = vld [vmem:[%s15606_s9 + $0x138] sm:$0xff] }
0x1670   : > { %v14747_v1 = vpop.f32.mrb[150].mxu1  ;;  %v14827_v20 = vmax.f32 %v7227_v62, 0.0  ;;  %v14845_v26 = vmax.f32 %v7122_v50, 0.0 }
0x1671   : > { %v14749_v52 = vmax.f32 %v7229_v27, 0.0  ;;  %v7232_v56 = vpop.f32.mrb[148].mxu0  ;;  %v14751_v3 = vpop.f32.mrb[151].mxu1 }
0x1672   : > { %v7234_v13 = vpop.f32.mrb[149].mxu0  ;;  %7355 = vrot.lane.b32.xlu0 %v14692_v63, %s10916_s20  ;;  %7353 = vrot.lane.b32.xlu1 %v14687_v6, %s10916_s20 }
0x1673   : > { %7516 = vst.msk [vmem:[#allocation3 + $0x1b8] sm:$0xff] %vm16010_vm1, %v14749_v52  ;;  %v7235_v14 = vadd.f32 %v7234_v13, %v6986_v61  ;;  %v9450_v13 = vld [vmem:[%s15606_s9 + $0x108] sm:$0xff]  ;;  %vm16021_vm1 = vmmov %vm16018_vm3 }
0x1674   : > { %vm16024_vm7 = vmmov %vm16021_vm1 }
0x1675   : > { %v14761_v9 = vmax.f32 %v7235_v14, 0.0  ;;  %v7238_v37 = vpop.f32.mrb[150].mxu0  ;;  %v9451_v14 = vld [vmem:[%s15606_s9 + $0x110] sm:$0xff]  ;;  %vm16025_vm14 = vmmov %vm16021_vm1 }
0x1676   : > { %v7240_v48 = vpop.f32.mrb[151].mxu0  ;;  %7535 = vrot.lane.b32.xlu0 %v14670_v34, %s10917_s16  ;;  %7537 = vrot.lane.b32.xlu1 %v14687_v6, %s10917_s16  ;;  %v7239_v19 = vadd.f32 %v7238_v37, %v6991_v23  ;;  %v9452_v37 = vld [vmem:[%s15606_s9 + $0x118] sm:$0xff] }
0x1677   : > { %7520 = vst.msk [vmem:[#allocation3 + $0x1d8] sm:$0xff] %vm16011_vm2, %v14761_v9  ;;  %v7241_v5 = vadd.f32 %v7240_v48, %v6991_v23  ;;  %vm16022_vm2 = vmmov %vm16021_vm1 }
0x1678   : > { %v14859_v55 = vmax.f32 %v7239_v19, 0.0 }
0x1679   : > { %v14771_v17 = vmax.f32 %v7241_v5, 0.0 }
0x167a   : > { %7539 = vrot.lane.b32.xlu0 %v14692_v63, %s10917_s16  ;;  %7357 = vrot.lane.b32.xlu1 %v14769_v59, %s10916_s20  ;;  %v7110_v63 = vadd.f32 %v14711_v12, %v6976_v22  ;;  %v7233_v12 = vadd.f32 %v7232_v56, %v6986_v61  ;;  %v7128_v22 = vadd.f32 %v14751_v3, %v6991_v23 }
0x167b   : > { %7524 = vst.msk [vmem:[#allocation3 + $0x1f8] sm:$0xff] %vm16012_vm11, %v14771_v17  ;;  %vm16023_vm11 = vmmov %vm16021_vm1 }
0x167c   : > { %v14813_v7 = vmax.f32 %v7110_v63, 0.0  ;;  %v14843_v49 = vmax.f32 %v7233_v12, 0.0  ;;  %v14861_v18 = vmax.f32 %v7128_v22, 0.0  ;;  %v9455_v63 = vld [vmem:[%s15606_s9 + $0x130] sm:$0xff] }
0x167e   : > { %7545 = vrot.lane.b32.xlu0 %v14721_v30, %s10917_s16  ;;  %7361 = vrot.lane.b32.xlu1 %v14721_v30, %s10916_s20 }
0x1682   : > { %7359 = vrot.lane.b32.xlu0 %v14705_v11, %s10916_s20  ;;  %7543 = vrot.lane.b32.xlu1 %v14705_v11, %s10917_s16 }
0x1686   : > { %7363 = vrot.lane.b32.xlu0 %v7254_v51, %s10916_s20  ;;  %7547 = vrot.lane.b32.xlu1 %v7254_v51, %s10917_s16  ;;  %v14829_v51 = vmax.f32 %v7116_v32, 0.0 }
0x168a   : > { %7367 = vrot.lane.b32.xlu0 %v14707_v36, %s10916_s20  ;;  %7365 = vrot.lane.b32.xlu1 %v14791_v31, %s10916_s20 }
0x168e   : > { %7371 = vrot.lane.b32.xlu0 %v7258_v54, %s10916_s20  ;;  %7369 = vrot.lane.b32.xlu1 %v14723_v24, %s10916_s20 }
0x1692   : > { %7551 = vrot.lane.b32.xlu0 %v14707_v36, %s10917_s16  ;;  %7553 = vrot.lane.b32.xlu1 %v14723_v24, %s10917_s16 }
0x1696   : > { %7555 = vrot.lane.b32.xlu0 %v7258_v54, %s10917_s16  ;;  %7373 = vrot.lane.b32.xlu1 %v14805_v4, %s10916_s20  ;;  %v7126_v54 = vadd.f32 %v14747_v1, %v6991_v23  ;;  %v14908_v1 = vld [vmem:[#allocation2 + $0xc8] sm:$0xff]  ;;  %v9453_v23 = vld [vmem:[%s15606_s9 + $0x120] sm:$0xff] }
0x1698   : > { %v14852_v28 = vmax.f32 %v7126_v54, 0.0 }
0x169a   : > { %7375 = vrot.lane.b32.xlu0 %v14813_v7, %s10916_s20  ;;  %7377 = vrot.lane.b32.xlu1 %v14811_v46, %s10916_s20 }
0x169e   : > { %7379 = vrot.lane.b32.xlu0 %v14737_v53, %s10916_s20  ;;  %7381 = vrot.lane.b32.xlu1 %v14820_v33, %s10916_s20 }
0x16a2   : > { %7383 = vrot.lane.b32.xlu0 %v14829_v51, %s10916_s20  ;;  %7385 = vrot.lane.b32.xlu1 %v14827_v20, %s10916_s20 }
0x16a6   : > { %7387 = vrot.lane.b32.xlu0 %v14749_v52, %s10916_s20  ;;  %7389 = vrot.lane.b32.xlu1 %v14836_v8, %s10916_s20 }
0x16aa   : > { %7391 = vrot.lane.b32.xlu0 %v14845_v26, %s10916_s20  ;;  %7393 = vrot.lane.b32.xlu1 %v14843_v49, %s10916_s20 }
0x16ae   : > { %7395 = vrot.lane.b32.xlu0 %v14761_v9, %s10916_s20  ;;  %7397 = vrot.lane.b32.xlu1 %v14852_v28, %s10916_s20 }
0x16b2   : > { %7399 = vrot.lane.b32.xlu0 %v14861_v18, %s10916_s20  ;;  %7401 = vrot.lane.b32.xlu1 %v14859_v55, %s10916_s20 }
0x16b6   : > { %7403 = vrot.lane.b32.xlu0 %v14771_v17, %s10916_s20  ;;  %7541 = vrot.lane.b32.xlu1 %v14769_v59, %s10917_s16  ;;  %v7732_v59 = vld [vmem:[#allocation3 + $0x178] sm:$0xff] }
0x16ba   : > { %7549 = vrot.lane.b32.xlu0 %v14791_v31, %s10917_s16  ;;  %7559 = vrot.lane.b32.xlu1 %v14813_v7, %s10917_s16  ;;  %v10656_v31 = vpack.c.bf16 %v14820_v33, %v14805_v4 }
0x16be   : > { %7561 = vrot.lane.b32.xlu0 %v14811_v46, %s10917_s16  ;;  %7563 = vrot.lane.b32.xlu1 %v14737_v53, %s10917_s16 }
0x16c2   : > { %7567 = vrot.lane.b32.xlu0 %v14829_v51, %s10917_s16  ;;  %7569 = vrot.lane.b32.xlu1 %v14827_v20, %s10917_s16 }
0x16c6   : > { %7571 = vrot.lane.b32.xlu0 %v14749_v52, %s10917_s16  ;;  %7557 = vrot.lane.b32.xlu1 %v14805_v4, %s10917_s16  ;;  %v9449_v52 = vld [vmem:[%s15606_s9 + $0x100] sm:$0xff]  ;;  %v16053_v4 = vpack.c.bf16 %v14687_v6, %v14666_v10 }
0x16ca   : > { %7565 = vrot.lane.b32.xlu0 %v14820_v33, %s10917_s16  ;;  %7575 = vrot.lane.b32.xlu1 %v14845_v26, %s10917_s16  ;;  %v7740_v33 = vld [vmem:[#allocation3 + $0x1b8] sm:$0xff] }
0x16cb   : > { %v7342_v58 = vpop.permute.xlu1 %7341 }
0x16cc   : > { %7461 = vst.msk [vmem:[#allocation3] sm:$0xff] %vm4145_vm0, %v7342_v58 }
0x16ce   : > { %7577 = vrot.lane.b32.xlu0 %v14843_v49, %s10917_s16  ;;  %7579 = vrot.lane.b32.xlu1 %v14761_v9, %s10917_s16 }
0x16d0   : > { %v14896_v53 = vpop.permute.xlu0 %7529  ;;  %v14898_v25 = vpop.permute.xlu1 %7345 }
0x16d2   : > { %7583 = vrot.lane.b32.xlu0 %v14861_v18, %s10917_s16  ;;  %7585 = vrot.lane.b32.xlu1 %v14859_v55, %s10917_s16 }
0x16d3   : > { %v7685_v41 = vld [vmem:[#allocation3] sm:$0xff] }
0x16d4   : > { %v7344_v38 = vpop.permute.xlu0 %7343  ;;  %v14906_v27 = vpop.permute.xlu1 %7525  ;;  %8129 = vst.msk [vmem:[#allocation3] sm:$0xff] %vm16014_vm8, %v14908_v1  ;;  %vm16026_vm8 = vmmov %vm16016_vm9 }
0x16d6   : > { %7587 = vrot.lane.b32.xlu0 %v14771_v17, %s10917_s16  ;;  %7573 = vrot.lane.b32.xlu1 %v14836_v8, %s10917_s16  ;;  %v7405_v17 = vsel %vm16017_vm5, %v7342_v58, %v7344_v38  ;;  %vm16029_vm5 = vmmov %vm16021_vm1 }
0x16d8   : > { %v7348_v56 = vpop.permute.xlu0 %7347  ;;  %v14919_v3 = vpop.permute.xlu1 %7527 }
0x16d9   : > { %v7407_v61 = vsel %vm16015_vm10, %v14898_v25, %v7348_v56  ;;  %vm16027_vm10 = vmmov %vm16021_vm1  ;;  %v7589_v10 = vsel %vm4274_vm15, %v14906_v27, %v14919_v3 }
0x16da   : > { %7464 = vst.msk [vmem:[#allocation3 + $0x18] sm:$0xff] %vm16016_vm9, %v7407_v61  ;;  %7581 = vrot.lane.b32.xlu0 %v14852_v28, %s10917_s16  ;;  %7783 = vperm.xlu1 %10852, %v9449_v52   ;;  %vm16028_vm9 = vmmov %vm16021_vm1 }
0x16dc   : > { %v14932_v39 = vpop.permute.xlu0 %7533  ;;  %v14934_v9 = vpop.permute.xlu1 %7531 }
0x16dd   : > { %7648 = vst.msk [vmem:[#allocation3 + $0x218] sm:$0xff] %vm4334_vm4, %v14934_v9 }
0x16de   : > { %7788 = vperm.xlu0 %10851, %v9450_v13   ;;  %7677 = vst.msk [vmem:[#allocation3 + $0x218] sm:$0xff] %vm4364_vm6, %v14908_v1  ;;  %7793 = vperm.xlu1 %10852, %v9451_v14  }
0x16e0   : > { %v7352_v48 = vpop.permute.xlu0 %7351  ;;  %v7350_v5 = vpop.permute.xlu1 %7349 }
0x16e1   : > { %v7408_v2 = vsel %vm16018_vm3, %v7350_v5, %v7352_v48  ;;  %7465 = vst.msk [vmem:[#allocation3 + $0x20] sm:$0xff] %vm4145_vm0, %v7350_v5  ;;  %v7688_v52 = vld [vmem:[#allocation3 + $0x18] sm:$0xff]  ;;  %vm16030_vm3 = vmmov %vm16026_vm8 }
0x16e2   : > { %7798 = vperm.xlu0 %10851, %v9452_v37   ;;  %7803 = vperm.xlu1 %10852, %v9453_v23   ;;  %v10630_v35 = vpack.c.bf16 %v7408_v2, %v7405_v17 }
0x16e4   : > { %v7356_v15 = vpop.permute.xlu0 %7355  ;;  %v7354_v62 = vpop.permute.xlu1 %7353  ;;  %10631 = vmatprep.subr.bf16.mxu1 %v10630_v35 }
0x16e5   : > { %v7410_v32 = vsel %vm16019_vm13, %v7354_v62, %v7356_v15  ;;  %v7409_v22 = vsel %vm16022_vm2, %v7352_v48, %v7354_v62  ;;  %vm16031_vm13 = vmmov %vm16021_vm1 }
0x16e6   : > { %7808 = vperm.xlu0 %10851, %v9454_v60   ;;  %7468 = vst.msk [vmem:[#allocation3 + $0x38] sm:$0xff] %vm16020_vm12, %v7410_v32  ;;  %7813 = vperm.xlu1 %10852, %v9455_v63   ;;  %vm16032_vm12 = vmmov %vm16021_vm1 }
0x16e7   : > { %vm16033_vm2 = vmmov %vm16021_vm1 }
0x16e8   : > { %v14960_v12 = vpop.permute.xlu0 %7535  ;;  %v14962_v50 = vpop.permute.xlu1 %7537  ;;  %v7689_v54 = vld [vmem:[#allocation3 + $0x20] sm:$0xff] }
0x16e9   : > { %v10632_v19 = vpack.c.bf16 %v7689_v54, %v7685_v41  ;;  %8130 = vst.msk [vmem:[#allocation3 + $0x20] sm:$0xff] %vm16021_vm1, %v14908_v1  ;;  %v7406_v41 = vsel %vm16023_vm11, %v7344_v38, %v14898_v25  ;;  %vm16034_vm11 = vmmov %vm16021_vm1 }
0x16ea   : > { %7818 = vperm.xlu0 %10851, %v9456_v42   ;;  %v10680_v13 = vpack.c.bf16 %v7409_v22, %v7406_v41 }
0x16eb   : > { %10633 = vmatpush1.bf16.msra.mxu1 %v10632_v19 }
0x16ec   : > { %v14967_v58 = vpop.permute.xlu0 %7539  ;;  %v7358_v47 = vpop.permute.xlu1 %7357 }
0x16ed   : > { %7652 = vst.msk [vmem:[#allocation3 + $0x238] sm:$0xff] %vm4334_vm4, %v14967_v58  ;;  %v7692_v56 = vld [vmem:[#allocation3 + $0x38] sm:$0xff] }
0x16ee   : > { %7469 = vst.msk [vmem:[#allocation3 + $0x40] sm:$0xff] %vm4145_vm0, %v7358_v47  ;;  %v10678_v61 = vpack.c.bf16 %v7692_v56, %v7688_v52 }
0x16ef   : > { %7678 = vst.msk [vmem:[#allocation3 + $0x238] sm:$0xff] %vm4364_vm6, %v14908_v1 }
0x16f0   : > { %v14976_v14 = vpop.permute.xlu0 %7545  ;;  %10679 = vmatprep.subr.bf16.mxu0 %v10678_v61  ;;  %v7362_v37 = vpop.permute.xlu1 %7361 }
0x16f1   : > { %10681 = vmatpush1.bf16.msra.mxu0 %v10680_v13 }
0x16f4   : > { %v7360_v23 = vpop.permute.xlu0 %7359  ;;  %v14978_v48 = vpop.permute.xlu1 %7543 }
0x16f5   : > { %v7693_v5 = vld [vmem:[#allocation3 + $0x40] sm:$0xff]  ;;  %v7411_v60 = vsel %vm16027_vm10, %v7358_v47, %v7360_v23  ;;  %vm16038_vm10 = vmmov %vm16021_vm1 }
0x16f6   : > { %8131 = vst.msk [vmem:[#allocation3 + $0x40] sm:$0xff] %vm16024_vm7, %v14908_v1  ;;  %vm16035_vm7 = vmmov %vm16030_vm3 }
0x16f8   : > { %v7364_v17 = vpop.permute.xlu0 %7363  ;;  %v14982_v2 = vpop.permute.xlu1 %7547 }
0x16f9   : > { %v7413_v25 = vsel %vm16025_vm14, %v7362_v37, %v7364_v17  ;;  %7656 = vst.msk [vmem:[#allocation3 + $0x258] sm:$0xff] %vm4334_vm4, %v14982_v2  ;;  %v7412_v17 = vsel %vm16021_vm1, %v7360_v23, %v7362_v37  ;;  %vm16036_vm14 = vmmov %vm16021_vm1 }
0x16fa   : > { %7472 = vst.msk [vmem:[#allocation3 + $0x58] sm:$0xff] %vm16026_vm8, %v7413_v25  ;;  %vm16037_vm8 = vmmov %vm16021_vm1 }
0x16fb   : > { %7679 = vst.msk [vmem:[#allocation3 + $0x258] sm:$0xff] %vm4364_vm6, %v14908_v1 }
0x16fc   : > { %v7368_v38 = vpop.permute.xlu0 %7367  ;;  %v7366_v35 = vpop.permute.xlu1 %7365 }
0x16fd   : > { %v7414_v63 = vsel %vm16028_vm9, %v7366_v35, %v7368_v38  ;;  %7473 = vst.msk [vmem:[#allocation3 + $0x60] sm:$0xff] %vm4145_vm0, %v7366_v35  ;;  %vm16039_vm9 = vmmov %vm16021_vm1 }
0x16fe   : > { %v10634_v15 = vpack.c.bf16 %v7414_v63, %v7411_v60 }
0x1700   : > { %v7372_v62 = vpop.permute.xlu0 %7371  ;;  %v7370_v32 = vpop.permute.xlu1 %7369  ;;  %10635 = vmatprep.subr.bf16.mxu1 %v10634_v15 }
0x1701   : > { %v7416_v42 = vsel %vm16029_vm5, %v7370_v32, %v7372_v62  ;;  %v7415_v47 = vsel %vm16032_vm12, %v7368_v38, %v7370_v32  ;;  %v7696_v61 = vld [vmem:[#allocation3 + $0x58] sm:$0xff]  ;;  %vm16040_vm5 = vmmov %vm16030_vm3 }
0x1702   : > { %7476 = vst.msk [vmem:[#allocation3 + $0x78] sm:$0xff] %vm16030_vm3, %v7416_v42  ;;  %v10684_v25 = vpack.c.bf16 %v7415_v47, %v7412_v17  ;;  %vm16041_vm3 = vmmov %vm16021_vm1 }
0x1703   : > { %vm16043_vm12 = vmmov %vm16021_vm1 }
0x1704   : > { %v14995_v54 = vpop.permute.xlu0 %7551  ;;  %v14997_v19 = vpop.permute.xlu1 %7553  ;;  %v7697_v22 = vld [vmem:[#allocation3 + $0x60] sm:$0xff] }
0x1705   : > { %v10636_v52 = vpack.c.bf16 %v7697_v22, %v7693_v5  ;;  %8132 = vst.msk [vmem:[#allocation3 + $0x60] sm:$0xff] %vm16031_vm13, %v14908_v1  ;;  %vm16042_vm13 = vmmov %vm16021_vm1 }
0x1707   : > { %10637 = vmatpush1.bf16.msra.mxu1 %v10636_v52 }
0x1708   : > { %v15002_v56 = vpop.permute.xlu0 %7555  ;;  %v7374_v41 = vpop.permute.xlu1 %7373 }
0x1709   : > { %7660 = vst.msk [vmem:[#allocation3 + $0x278] sm:$0xff] %vm4334_vm4, %v15002_v56  ;;  %v7700_v13 = vld [vmem:[#allocation3 + $0x78] sm:$0xff] }
0x170a   : > { %7477 = vst.msk [vmem:[#allocation3 + $0x80] sm:$0xff] %vm4145_vm0, %v7374_v41  ;;  %v10682_v5 = vpack.c.bf16 %v7700_v13, %v7696_v61 }
0x170b   : > { %7680 = vst.msk [vmem:[#allocation3 + $0x278] sm:$0xff] %vm4364_vm6, %v14908_v1 }
0x170c   : > { %v7376_v35 = vpop.permute.xlu0 %7375  ;;  %10683 = vmatprep.subr.bf16.mxu0 %v10682_v5  ;;  %v7378_v38 = vpop.permute.xlu1 %7377 }
0x170d   : > { %10685 = vmatpush1.bf16.msra.mxu0 %v10684_v25  ;;  %v7417_v32 = vsel %vm16036_vm14, %v7374_v41, %v7376_v35  ;;  %vm16047_vm14 = vmmov %vm16021_vm1 }
0x1710   : > { %v7380_v60 = vpop.permute.xlu0 %7379  ;;  %v7382_v63 = vpop.permute.xlu1 %7381 }
0x1711   : > { %v7701_v15 = vld [vmem:[#allocation3 + $0x80] sm:$0xff]  ;;  %v7419_v62 = vsel %vm16033_vm2, %v7378_v38, %v7380_v60  ;;  %7481 = vst.msk [vmem:[#allocation3 + $0xa0] sm:$0xff] %vm4145_vm0, %v7382_v63  ;;  %vm16044_vm2 = vmmov %vm16040_vm5 }
0x1712   : > { %8133 = vst.msk [vmem:[#allocation3 + $0x80] sm:$0xff] %vm16034_vm11, %v14908_v1  ;;  %vm16045_vm11 = vmmov %vm16021_vm1 }
0x1713   : > { %7480 = vst.msk [vmem:[#allocation3 + $0x98] sm:$0xff] %vm16035_vm7, %v7419_v62  ;;  %vm16046_vm7 = vmmov %vm16021_vm1 }
0x1714   : > { %v7384_v37 = vpop.permute.xlu0 %7383  ;;  %v7386_v23 = vpop.permute.xlu1 %7385 }
0x1715   : > { %v7420_v42 = vsel %vm16037_vm8, %v7382_v63, %v7384_v37  ;;  %v7421_v25 = vsel %vm16041_vm3, %v7384_v37, %v7386_v23  ;;  %vm16048_vm8 = vmmov %vm16021_vm1  ;;  %vm16055_vm3 = vcmask 523264  }
0x1716   : > { %v10638_v22 = vpack.c.bf16 %v7420_v42, %v7417_v32 }
0x1718   : > { %v7388_v52 = vpop.permute.xlu0 %7387  ;;  %v7390_v47 = vpop.permute.xlu1 %7389  ;;  %10639 = vmatprep.subr.bf16.mxu1 %v10638_v22  ;;  %v7705_v61 = vld [vmem:[#allocation3 + $0xa0] sm:$0xff] }
0x1719   : > { %v7422_v13 = vsel %vm16038_vm10, %v7386_v23, %v7388_v52  ;;  %7485 = vst.msk [vmem:[#allocation3 + $0xc0] sm:$0xff] %vm4145_vm0, %v7390_v47  ;;  %v10640_v17 = vpack.c.bf16 %v7705_v61, %v7701_v15  ;;  %v7418_v15 = vsel %vm16021_vm1, %v7376_v35, %v7378_v38  ;;  %vm16049_vm10 = vmmov %vm16044_vm2 }
0x171a   : > { %8134 = vst.msk [vmem:[#allocation3 + $0xa0] sm:$0xff] %vm16039_vm9, %v14908_v1  ;;  %v7704_v42 = vld [vmem:[#allocation3 + $0x98] sm:$0xff]  ;;  %v10688_v61 = vpack.c.bf16 %v7421_v25, %v7418_v15  ;;  %vm16050_vm9 = vmmov %vm16021_vm1 }
0x171b   : > { %7484 = vst.msk [vmem:[#allocation3 + $0xb8] sm:$0xff] %vm16040_vm5, %v7422_v13  ;;  %10641 = vmatpush1.bf16.msra.mxu1 %v10640_v17  ;;  %vm16052_vm5 = vmmov %vm16021_vm1 }
0x171c   : > { %v7392_v5 = vpop.permute.xlu0 %7391  ;;  %v7394_v41 = vpop.permute.xlu1 %7393  ;;  %vm16058_vm1 = vmmov %vm16055_vm3 }
0x171d   : > { %v7423_v23 = vsel %vm16045_vm11, %v7390_v47, %v7392_v5  ;;  %v7424_v45 = vsel %vm16052_vm5, %v7392_v5, %v7394_v41  ;;  %v10658_v5 = vpack.c.bf16 %v14861_v18, %v14845_v26  ;;  %v10660_v26 = vpack.c.bf16 %v14852_v28, %v14836_v8  ;;  %vm16060_vm11 = vmmov %vm16058_vm1 }
0x171e   : > { %v7592_v18 = vsel %vm4274_vm15, %v14932_v39, %v14960_v12  ;;  %v7596_v39 = vsel %vm4274_vm15, %v14978_v48, %v14976_v14  ;;  %vm16066_vm5 = vmmov %vm16058_vm1 }
0x1720   : > { %v7396_v60 = vpop.permute.xlu0 %7395  ;;  %v7398_v63 = vpop.permute.xlu1 %7397  ;;  %v7709_v62 = vld [vmem:[#allocation3 + $0xc0] sm:$0xff] }
0x1721   : > { %v7425_v32 = vsel %vm16042_vm13, %v7394_v41, %v7396_v60  ;;  %7489 = vst.msk [vmem:[#allocation3 + $0xe0] sm:$0xff] %vm4145_vm0, %v7398_v63  ;;  %vm16056_vm13 = vmmov %vm16055_vm3 }
0x1722   : > { %v7708_v22 = vld [vmem:[#allocation3 + $0xb8] sm:$0xff]  ;;  %8135 = vst.msk [vmem:[#allocation3 + $0xc0] sm:$0xff] %vm16043_vm12, %v14908_v1  ;;  %vm16057_vm12 = vmmov %vm16055_vm3 }
0x1723   : > { %7488 = vst.msk [vmem:[#allocation3 + $0xd8] sm:$0xff] %vm16044_vm2, %v7425_v32  ;;  %v10686_v52 = vpack.c.bf16 %v7708_v22, %v7704_v42  ;;  %vm16059_vm2 = vmmov %vm16058_vm1 }
0x1724   : > { %v7400_v13 = vpop.permute.xlu0 %7399  ;;  %v7402_v37 = vpop.permute.xlu1 %7401 }
0x1725   : > { %10687 = vmatprep.subr.bf16.mxu0 %v10686_v52  ;;  %v7426_v17 = vsel %vm16046_vm7, %v7398_v63, %v7400_v13  ;;  %vm16061_vm7 = vmmov %vm16058_vm1 }
0x1726   : > { %10689 = vmatpush1.bf16.msra.mxu0 %v10688_v61  ;;  %v10642_v60 = vpack.c.bf16 %v7426_v17, %v7423_v23  ;;  %v7599_v23 = vsel %vm4274_vm15, %v14995_v54, %v14997_v19  ;;  %v7736_v17 = vld [vmem:[#allocation3 + $0x198] sm:$0xff] }
0x1727   : > { %v10702_v8 = vpack.c.bf16 %v7740_v33, %v7736_v17  ;;  %v10666_v27 = vpack.c.bf16 %v7599_v23, %v7596_v39  ;;  %v7284_v39 = vld [vmem:[#allocation4 + $0x240] sm:$0xff] }
0x1728   : > { %v7404_v57 = vpop.permute.xlu0 %7403  ;;  %v15031_v21 = vpop.permute.xlu1 %7541  ;;  %10643 = vmatprep.subr.bf16.mxu1 %v10642_v60  ;;  %v7713_v29 = vld [vmem:[#allocation3 + $0xe0] sm:$0xff]  ;;  %v7748_v60 = vld [vmem:[#allocation3 + $0x1f8] sm:$0xff] }
0x1729   : > { %v7428_v35 = vsel %vm16047_vm14, %v7402_v37, %v7404_v57  ;;  %v10644_v38 = vpack.c.bf16 %v7713_v29, %v7709_v62  ;;  %8136 = vst.msk [vmem:[#allocation3 + $0xe0] sm:$0xff] %vm16048_vm8, %v14908_v1  ;;  %v7427_v57 = vsel %vm16050_vm9, %v7400_v13, %v7402_v37  ;;  %v16051_v62 = vpack.c.bf16 %v14707_v36, %v14705_v11  ;;  %v7720_v11 = vld [vmem:[#allocation3 + $0x118] sm:$0xff]  ;;  %vm16062_vm14 = vmmov %vm16058_vm1 }
0x172a   : > { %7492 = vst.msk [vmem:[#allocation3 + $0xf8] sm:$0xff] %vm16049_vm10, %v7428_v35  ;;  %v7712_v32 = vld [vmem:[#allocation3 + $0xd8] sm:$0xff]  ;;  %v10694_v22 = vpack.c.bf16 %v7724_v16, %v7720_v11  ;;  %v7590_v13 = vsel %vm4274_vm15, %v14919_v3, %v14896_v53  ;;  %v10664_v35 = vpack.c.bf16 %v7592_v18, %v7589_v10  ;;  %v7276_v18 = vld [vmem:[#allocation4 + $0x200] sm:$0xff]  ;;  %v7278_v10 = vld [vmem:[#allocation4 + $0x210] sm:$0xff] }
0x172b   : > { %10645 = vmatpush1.bf16.msra.mxu1 %v10644_v38  ;;  %vm16063_vm8 = vmmov %vm16058_vm1 }
0x172c   : > { %v7550_v25 = vpop.permute.xlu0 %7549  ;;  %v15037_v47 = vpop.permute.xlu1 %7559  ;;  %10647 = vmatprep.subr.bf16.mxu1 %v10646_v40  ;;  %v10692_v40 = vpack.c.bf16 %v7427_v57, %v7424_v45  ;;  %v10704_v57 = vpack.c.bf16 %v14827_v20, %v14811_v46  ;;  %v7760_v45 = vld [vmem:[#allocation3 + $0x258] sm:$0xff]  ;;  %vm16064_vm10 = vmmov %vm16058_vm1 }
0x172d   : > { %v7598_v38 = vsel %vm4274_vm15, %v7550_v25, %v14995_v54  ;;  %vm16065_vm9 = vmmov %vm16058_vm1 }
0x172f   : > { %10649 = vmatpush1.bf16.msra.mxu1 %v10648_v44  ;;  %v10654_v44 = vpack.c.bf16 %v14829_v51, %v14813_v7  ;;  %v7593_v7 = vsel %vm4274_vm15, %v14960_v12, %v14962_v50  ;;  %v7728_v51 = vld [vmem:[#allocation3 + $0x158] sm:$0xff]  ;;  %v16054_v12 = vpack.c.bf16 %v14723_v24, %v14721_v30  ;;  %v7595_v30 = vsel %vm4274_vm15, %v15031_v21, %v14978_v48 }
0x1730   : > { %v15046_v29 = vpop.permute.xlu0 %7561  ;;  %v15048_v63 = vpop.permute.xlu1 %7563  ;;  %10651 = vmatprep.subr.bf16.mxu1 %v16051_v62  ;;  %v10698_v52 = vpack.c.bf16 %v7732_v59, %v7728_v51  ;;  %v10662_v37 = vpack.c.bf16 %v7593_v7, %v7590_v13  ;;  %v7744_v62 = vld [vmem:[#allocation3 + $0x1d8] sm:$0xff]  ;;  %v10668_v46 = vpack.c.bf16 %v7598_v38, %v7595_v30  ;;  %v10708_v48 = vpack.c.bf16 %v14859_v55, %v14843_v49  ;;  %v7288_v38 = vld [vmem:[#allocation4 + $0x260] sm:$0xff] }
0x1731   : > { %v7716_v42 = vld [vmem:[#allocation3 + $0xf8] sm:$0xff]  ;;  %7664 = vst.msk [vmem:[#allocation3 + $0x298] sm:$0xff] %vm4334_vm4, %v15048_v63  ;;  %v10706_v16 = vpack.c.bf16 %v7748_v60, %v7744_v62  ;;  %v7602_v54 = vsel %vm4274_vm15, %v15037_v47, %v15046_v29  ;;  %v7591_v55 = vsel %vm4274_vm15, %v14896_v53, %v14934_v9  ;;  %v7600_v7 = vsel %vm4274_vm15, %v14997_v19, %v15002_v56  ;;  %v7286_v60 = vld [vmem:[#allocation4 + $0x250] sm:$0xff] }
0x1732   : > { %v10690_v34 = vpack.c.bf16 %v7716_v42, %v7712_v32  ;;  %7681 = vst.msk [vmem:[#allocation3 + $0x298] sm:$0xff] %vm4364_vm6, %v14908_v1  ;;  %v7752_v32 = vld [vmem:[#allocation3 + $0x218] sm:$0xff]  ;;  %v7597_v53 = vsel %vm4274_vm15, %v14976_v14, %v14982_v2  ;;  %v7603_v14 = vsel %vm4274_vm15, %v15046_v29, %v15048_v63  ;;  %v7281_v29 = vld [vmem:[#allocation4 + $0x228] sm:$0xff]  ;;  %v7280_v63 = vld [vmem:[#allocation4 + $0x220] sm:$0xff] }
0x1733   : > { %10653 = vmatpush1.bf16.msra.mxu1 %v10652_v43  ;;  %v7756_v42 = vld [vmem:[#allocation3 + $0x238] sm:$0xff] }
0x1734   : > { %v7568_v36 = vpop.permute.xlu0 %7567  ;;  %10691 = vmatprep.subr.bf16.mxu0 %v10690_v34  ;;  %v15062_v15 = vpop.permute.xlu1 %7569  ;;  %10655 = vmatprep.subr.bf16.mxu1 %v10654_v44  ;;  %v10710_v25 = vpack.c.bf16 %v7756_v42, %v7752_v32  ;;  %v7764_v34 = vld [vmem:[#allocation3 + $0x278] sm:$0xff]  ;;  %v7594_v44 = vsel %vm4274_vm15, %v14962_v50, %v14967_v58 }
0x1735   : > { %10693 = vmatpush1.bf16.msra.mxu0 %v10692_v40  ;;  %v7605_v3 = vsel %vm4274_vm15, %v7568_v36, %v15062_v15  ;;  %v10712_v58 = vpack.c.bf16 %v7594_v44, %v7591_v55 }
0x1736   : > { %10695 = vmatprep.subr.bf16.mxu0 %v10694_v22  ;;  %v10670_v21 = vpack.c.bf16 %v7605_v3, %v7602_v54  ;;  %v7290_v3 = vld [vmem:[#allocation4 + $0x270] sm:$0xff] }
0x1737   : > { %10657 = vmatpush1.bf16.msra.mxu1 %v10656_v31  ;;  %v10714_v31 = vpack.c.bf16 %v7764_v34, %v7760_v45 }
0x1738   : > { %v15071_v41 = vpop.permute.xlu0 %7571  ;;  %v7558_v61 = vpop.permute.xlu1 %7557  ;;  %10659 = vmatprep.subr.bf16.mxu1 %v10658_v5 }
0x1739   : > { %7668 = vst.msk [vmem:[#allocation3 + $0x2b8] sm:$0xff] %vm4334_vm4, %v15071_v41  ;;  %10697 = vmatpush1.bf16.msra.mxu0 %v16053_v4  ;;  %v7601_v40 = vsel %vm4274_vm15, %v7558_v61, %v15037_v47  ;;  %v7768_v47 = vld [vmem:[#allocation3 + $0x298] sm:$0xff]  ;;  %v10716_v61 = vpack.c.bf16 %v7600_v7, %v7597_v53  ;;  %v7606_v19 = vsel %vm4274_vm15, %v15062_v15, %v15071_v41 }
0x173a   : > { %7682 = vst.msk [vmem:[#allocation3 + $0x2b8] sm:$0xff] %vm4364_vm6, %v14908_v1  ;;  %10699 = vmatprep.subr.bf16.mxu0 %v10698_v52  ;;  %v10720_v2 = vpack.c.bf16 %v7606_v19, %v7603_v14  ;;  %v7279_v41 = vld [vmem:[#allocation4 + $0x218] sm:$0xff] }
0x173b   : > { %10661 = vmatpush1.bf16.msra.mxu1 %v10660_v26 }
0x173c   : > { %v7566_v6 = vpop.permute.xlu0 %7565  ;;  %v15094_v28 = vpop.permute.xlu1 %7575  ;;  %10663 = vmatprep.subr.bf16.mxu1 %v10662_v37 }
0x173d   : > { %10701 = vmatpush1.bf16.msra.mxu0 %v16054_v12  ;;  %v7604_v20 = vsel %vm4274_vm15, %v7566_v6, %v7568_v36  ;;  %v7283_v6 = vld [vmem:[#allocation4 + $0x238] sm:$0xff] }
0x173e   : > { %10703 = vmatprep.subr.bf16.mxu0 %v10702_v8  ;;  %v10672_v49 = vpack.c.bf16 %v7604_v20, %v7601_v40  ;;  %v7282_v8 = vld [vmem:[#allocation4 + $0x230] sm:$0xff]  ;;  %v7287_v12 = vld [vmem:[#allocation4 + $0x258] sm:$0xff] }
0x173f   : > { %10665 = vmatpush1.bf16.msra.mxu1 %v10664_v35  ;;  %v7289_v35 = vld [vmem:[#allocation4 + $0x268] sm:$0xff] }
0x1740   : > { %v7578_v24 = vpop.permute.xlu0 %7577  ;;  %v7580_v43 = vpop.permute.xlu1 %7579  ;;  %10667 = vmatprep.subr.bf16.mxu1 %v10666_v27  ;;  %v7291_v27 = vld [vmem:[#allocation4 + $0x278] sm:$0xff] }
0x1741   : > { %10705 = vmatpush1.bf16.msra.mxu0 %v10704_v57  ;;  %7672 = vst.msk [vmem:[#allocation3 + $0x2d8] sm:$0xff] %vm4334_vm4, %v7580_v43  ;;  %v7608_v22 = vsel %vm4274_vm15, %v15094_v28, %v7578_v24  ;;  %v7772_v5 = vld [vmem:[#allocation3 + $0x2b8] sm:$0xff]  ;;  %v7609_v37 = vsel %vm4274_vm15, %v7578_v24, %v7580_v43 }
0x1742   : > { %10707 = vmatprep.subr.bf16.mxu0 %v10706_v16  ;;  %7683 = vst.msk [vmem:[#allocation3 + $0x2d8] sm:$0xff] %vm4364_vm6, %v14908_v1  ;;  %v10718_v52 = vpack.c.bf16 %v7772_v5, %v7768_v47 }
0x1743   : > { %10669 = vmatpush1.bf16.msra.mxu1 %v10668_v46 }
0x1744   : > { %v7584_v11 = vpop.permute.xlu0 %7583  ;;  %v7586_v36 = vpop.permute.xlu1 %7585  ;;  %10671 = vmatprep.subr.bf16.mxu1 %v10670_v21 }
0x1745   : > { %10709 = vmatpush1.bf16.msra.mxu0 %v10708_v48  ;;  %v7611_v59 = vsel %vm4274_vm15, %v7584_v11, %v7586_v36 }
0x1746   : > { %10711 = vmatprep.subr.bf16.mxu0 %v10710_v25  ;;  %v10674_v50 = vpack.c.bf16 %v7611_v59, %v7608_v22 }
0x1747   : > { %10673 = vmatpush1.bf16.msra.mxu1 %v10672_v49 }
0x1748   : > { %v7588_v51 = vpop.permute.xlu0 %7587  ;;  %10675 = vmatprep.subr.bf16.mxu1 %v10674_v50  ;;  %v7574_v9 = vpop.permute.xlu1 %7573 }
0x1749   : > { %7676 = vst.msk [vmem:[#allocation3 + $0x2f8] sm:$0xff] %vm4334_vm4, %v7588_v51  ;;  %10713 = vmatpush1.bf16.msra.mxu0 %v10712_v58  ;;  %v7607_v4 = vsel %vm4274_vm15, %v7574_v9, %v15094_v28  ;;  %v7776_v33 = vld [vmem:[#allocation3 + $0x2d8] sm:$0xff]  ;;  %v7612_v26 = vsel %vm4274_vm15, %v7586_v36, %v7588_v51  ;;  %v7285_v28 = vld [vmem:[#allocation4 + $0x248] sm:$0xff] }
0x174a   : > { %7684 = vst.msk [vmem:[#allocation3 + $0x2f8] sm:$0xff] %vm4364_vm6, %v14908_v1  ;;  %10715 = vmatprep.subr.bf16.mxu0 %v10714_v31  ;;  %v10724_v17 = vpack.c.bf16 %v7612_v26, %v7609_v37 }
0x174c   : > { %v7582_v56 = vpop.permute.xlu0 %7581 }
0x174d   : > { %v7610_v13 = vsel %vm4274_vm15, %v7582_v56, %v7584_v11  ;;  %10717 = vmatpush1.bf16.msra.mxu0 %v10716_v61 }
0x174e   : > { %10719 = vmatprep.subr.bf16.mxu0 %v10718_v52  ;;  %v10676_v1 = vpack.c.bf16 %v7610_v13, %v7607_v4 }
0x1750   : > { %10677 = vmatpush1.bf16.msra.mxu1 %v10676_v1 }
0x1751   : > { %10721 = vmatpush1.bf16.msra.mxu0 %v10720_v2  ;;  %v7780_v15 = vld [vmem:[#allocation3 + $0x2f8] sm:$0xff] }
0x1752   : > { %v10722_v23 = vpack.c.bf16 %v7780_v15, %v7776_v33 }
0x1753   : > { %7910 = vmatmul.mubr.f32.vlgmr.msra.gmra.mrb[152].mxu1 %v7276_v18 }
0x1754   : > { %10723 = vmatprep.subr.bf16.mxu0 %v10722_v23  ;;  %9458 = vmatprep.mubr.msk.f32.mxu1 %vm16055_vm3, %v7279_v41  ;;  %vm16067_vm3 = vmmov %vm16058_vm1 }
0x1755   : > { %10725 = vmatpush1.bf16.msra.mxu0 %v10724_v17 }
0x1757   : > { %7916 = vmatmul.mubr.f32.gmra.mrb[154].mxu1 %v7278_v10 }
0x1758   : > { %8023 = vmatmul.mubr.f32.vlgmr.msra.gmra.mrb[152].mxu0 %v7276_v18  ;;  %9459 = vmatprep.mubr.msk.f32.mxu1 %vm16056_vm13, %v7281_v29  ;;  %vm16068_vm13 = vmmov %vm16058_vm1 }
0x1759   : > { %9466 = vmatprep.mubr.msk.f32.mxu0 %vm16057_vm12, %v7279_v41  ;;  %v7784_v57 = vpop.permute.xlu1 %7783  ;;  %vm16069_vm12 = vcmask 949248  }
0x175b   : > { %7922 = vmatmul.mubr.f32.gmra.mrb[156].mxu1 %v7280_v63 }
0x175c   : > { %8029 = vmatmul.mubr.f32.gmra.mrb[154].mxu0 %v7278_v10  ;;  %9460 = vmatprep.mubr.msk.f32.mxu1 %vm16058_vm1, %v7283_v6  ;;  %vm16070_vm1 = vmmov %vm16069_vm12 }
0x175d   : > { %9467 = vmatprep.mubr.msk.f32.mxu0 %vm16059_vm2, %v7281_v29  ;;  %v7789_v16 = vpop.permute.xlu0 %7788  ;;  %v7794_v40 = vpop.permute.xlu1 %7793  ;;  %vm16071_vm2 = vmmov %vm16070_vm1 }
0x175f   : > { %7928 = vmatmul.mubr.f32.gmra.mrb[158].mxu1 %v7282_v8 }
0x1760   : > { %8035 = vmatmul.mubr.f32.gmra.mrb[156].mxu0 %v7280_v63  ;;  %9461 = vmatprep.mubr.msk.f32.mxu1 %vm16060_vm11, %v7285_v28  ;;  %vm16072_vm11 = vmmov %vm16070_vm1 }
0x1761   : > { %9468 = vmatprep.mubr.msk.f32.mxu0 %vm16061_vm7, %v7283_v6  ;;  %v7799_v9 = vpop.permute.xlu0 %7798  ;;  %v7804_v41 = vpop.permute.xlu1 %7803  ;;  %vm16073_vm7 = vmmov %vm16070_vm1 }
0x1763   : > { %7934 = vmatmul.mubr.f32.gmra.mrb[160].mxu1 %v7284_v39 }
0x1764   : > { %8041 = vmatmul.mubr.f32.gmra.mrb[158].mxu0 %v7282_v8  ;;  %9462 = vmatprep.mubr.msk.f32.mxu1 %vm16062_vm14, %v7287_v12  ;;  %vm16074_vm14 = vmmov %vm16070_vm1 }
0x1765   : > { %9469 = vmatprep.mubr.msk.f32.mxu0 %vm16063_vm8, %v7285_v28  ;;  %vm16075_vm8 = vmmov %vm16070_vm1 }
0x1767   : > { %7940 = vmatmul.mubr.f32.gmra.mrb[162].mxu1 %v7286_v60 }
0x1768   : > { %8047 = vmatmul.mubr.f32.gmra.mrb[160].mxu0 %v7284_v39  ;;  %9463 = vmatprep.mubr.msk.f32.mxu1 %vm16064_vm10, %v7289_v35  ;;  %vm16076_vm10 = vmmov %vm16070_vm1 }
0x1769   : > { %9470 = vmatprep.mubr.msk.f32.mxu0 %vm16065_vm9, %v7287_v12  ;;  %vm16077_vm9 = vmmov %vm16067_vm3 }
0x176b   : > { %7946 = vmatmul.mubr.f32.gmra.mrb[164].mxu1 %v7288_v38 }
0x176c   : > { %8053 = vmatmul.mubr.f32.gmra.mrb[162].mxu0 %v7286_v60  ;;  %9464 = vmatprep.mubr.msk.f32.mxu1 %vm16066_vm5, %v7291_v27  ;;  %vm16078_vm5 = vmmov %vm16067_vm3 }
0x176d   : > { %9471 = vmatprep.mubr.msk.f32.mxu0 %vm16067_vm3, %v7289_v35  ;;  %vm16079_vm3 = vcmask 7168  }
0x176f   : > { %7952 = vmatmul.mubr.f32.gmra.mrb[166].mxu1 %v7290_v3 }
0x1770   : > { %8059 = vmatmul.mubr.f32.gmra.mrb[164].mxu0 %v7288_v38  ;;  %v7809_v38 = vpop.permute.xlu0 %7808 }
0x1771   : > { %9472 = vmatprep.mubr.msk.f32.mxu0 %vm16068_vm13, %v7291_v27  ;;  %vm16080_vm13 = vmmov %vm16079_vm3 }
0x1774   : > { %8065 = vmatmul.mubr.f32.gmra.mrb[166].mxu0 %v7290_v3 }
0x1826   : > { %v7911_v62 = vpop.f32.mrb[152].mxu1 }
0x1827   : > { %v7912_v32 = vadd.f32 %v7911_v62, %v7784_v57  ;;  %v7913_v42 = vpop.f32.mrb[153].mxu1 }
0x1828   : > { %v7914_v30 = vadd.f32 %v7913_v42, %v7784_v57 }
0x1829   : > { %v15165_v24 = vmax.f32 %v7912_v32, 0.0 }
0x182a   : > { %v15167_v43 = vmax.f32 %v7914_v30, 0.0  ;;  %v7917_v54 = vpop.f32.mrb[154].mxu1 }
0x182b   : > { %v8024_v46 = vpop.f32.mrb[152].mxu0  ;;  %8321 = vst [vmem:[#allocation3 + $0x100] sm:$0xff] %v15165_v24  ;;  %v7918_v20 = vadd.f32 %v7917_v54, %v7789_v16  ;;  %v7919_v25 = vpop.f32.mrb[155].mxu1  ;;  %8169 = vrot.lane.b32.xlu1 %v15165_v24, %s10916_s20 }
0x182c   : > { %v8025_v21 = vadd.f32 %v8024_v46, %v7784_v57  ;;  %v8026_v48 = vpop.f32.mrb[153].mxu0  ;;  %v7920_v45 = vadd.f32 %v7919_v25, %v7789_v16 }
0x182d   : > { %v8027_v34 = vadd.f32 %v8026_v48, %v7784_v57  ;;  %v15172_v44 = vmax.f32 %v7918_v20, 0.0  ;;  %v7814_v48 = vpop.permute.xlu1 %7813 }
0x182e   : > { %v15174_v11 = vmax.f32 %v8025_v21, 0.0  ;;  %v15176_v36 = vmax.f32 %v7920_v45, 0.0  ;;  %v7923_v22 = vpop.f32.mrb[156].mxu1 }
0x182f   : > { %v15178_v59 = vmax.f32 %v8027_v34, 0.0  ;;  %v8030_v49 = vpop.f32.mrb[154].mxu0  ;;  %8325 = vst [vmem:[#allocation3 + $0x120] sm:$0xff] %v15172_v44  ;;  %v7924_v55 = vadd.f32 %v7923_v22, %v7794_v40  ;;  %v7925_v31 = vpop.f32.mrb[157].mxu1  ;;  %v10744_v50 = vpack.c.bf16 %v15172_v44, %v15165_v24 }
0x1830   : > { %v8031_v58 = vadd.f32 %v8030_v49, %v7789_v16  ;;  %v8032_v47 = vpop.f32.mrb[155].mxu0  ;;  %8357 = vrot.lane.b32.xlu0 %v15174_v11, %s10917_s16  ;;  %v7926_v5 = vadd.f32 %v7925_v31, %v7794_v40  ;;  %8173 = vrot.lane.b32.xlu1 %v15174_v11, %s10916_s20  ;;  %v10742_v7 = vpack.c.bf16 %v15176_v36, %v15167_v43 }
0x1831   : > { %8324 = vst.msk [vmem:[#allocation3 + $0x118] sm:$0xff] %vm16069_vm12, %v15178_v59  ;;  %v8033_v51 = vadd.f32 %v8032_v47, %v7789_v16  ;;  %v15191_v53 = vmax.f32 %v7924_v55, 0.0  ;;  %vm16081_vm12 = vmmov %vm16079_vm3 }
0x1832   : > { %v15193_v52 = vmax.f32 %v8031_v58, 0.0  ;;  %v15195_v61 = vmax.f32 %v7926_v5, 0.0  ;;  %v7929_v19 = vpop.f32.mrb[158].mxu1 }
0x1833   : > { %v15197_v56 = vmax.f32 %v8033_v51, 0.0  ;;  %v8036_v13 = vpop.f32.mrb[156].mxu0  ;;  %8329 = vst [vmem:[#allocation3 + $0x140] sm:$0xff] %v15191_v53  ;;  %v7930_v4 = vadd.f32 %v7929_v19, %v7799_v9  ;;  %v7931_v14 = vpop.f32.mrb[159].mxu1 }
0x1834   : > { %v8037_v1 = vadd.f32 %v8036_v13, %v7794_v40  ;;  %v8038_v2 = vpop.f32.mrb[157].mxu0  ;;  %8171 = vrot.lane.b32.xlu0 %v15167_v43, %s10916_s20  ;;  %v7932_v33 = vadd.f32 %v7931_v14, %v7799_v9  ;;  %8353 = vrot.lane.b32.xlu1 %v15165_v24, %s10917_s16  ;;  %v10792_v26 = vpack.c.bf16 %v15193_v52, %v15174_v11 }
0x1835   : > { %8328 = vst.msk [vmem:[#allocation3 + $0x138] sm:$0xff] %vm16070_vm1, %v15197_v56  ;;  %v8039_v18 = vadd.f32 %v8038_v2, %v7794_v40  ;;  %v15208_v15 = vmax.f32 %v7930_v4, 0.0 }
0x1836   : > { %v15210_v37 = vmax.f32 %v8037_v1, 0.0  ;;  %v15212_v23 = vmax.f32 %v7932_v33, 0.0  ;;  %v7935_v17 = vpop.f32.mrb[160].mxu1 }
0x1837   : > { %v15214_v10 = vmax.f32 %v8039_v18, 0.0  ;;  %v8042_v29 = vpop.f32.mrb[158].mxu0  ;;  %8333 = vst [vmem:[#allocation3 + $0x160] sm:$0xff] %v15208_v15  ;;  %v7936_v63 = vadd.f32 %v7935_v17, %v7804_v41  ;;  %v7937_v6 = vpop.f32.mrb[161].mxu1  ;;  %v10748_v24 = vpack.c.bf16 %v15208_v15, %v15191_v53 }
0x1838   : > { %v8043_v8 = vadd.f32 %v8042_v29, %v7799_v9  ;;  %v8044_v28 = vpop.f32.mrb[159].mxu0  ;;  %8175 = vrot.lane.b32.xlu0 %v15178_v59, %s10916_s20  ;;  %v7938_v39 = vadd.f32 %v7937_v6, %v7804_v41  ;;  %8355 = vrot.lane.b32.xlu1 %v15167_v43, %s10917_s16  ;;  %v10746_v12 = vpack.c.bf16 %v15212_v23, %v15195_v61 }
0x1839   : > { %8332 = vst.msk [vmem:[#allocation3 + $0x158] sm:$0xff] %vm16071_vm2, %v15214_v10  ;;  %v8045_v60 = vadd.f32 %v8044_v28, %v7799_v9  ;;  %v15225_v35 = vmax.f32 %v7936_v63, 0.0  ;;  %v7819_v9 = vpop.permute.xlu0 %7818  ;;  %vm16082_vm2 = vmmov %vm16079_vm3 }
0x183a   : > { %v15227_v27 = vmax.f32 %v8043_v8, 0.0  ;;  %v15229_v3 = vmax.f32 %v7938_v39, 0.0  ;;  %v7941_v57 = vpop.f32.mrb[162].mxu1 }
0x183b   : > { %v15231_v62 = vmax.f32 %v8045_v60, 0.0  ;;  %v8048_v32 = vpop.f32.mrb[160].mxu0  ;;  %8337 = vst [vmem:[#allocation3 + $0x180] sm:$0xff] %v15225_v35  ;;  %v7942_v42 = vadd.f32 %v7941_v57, %v7809_v38  ;;  %v7943_v30 = vpop.f32.mrb[163].mxu1 }
0x183c   : > { %v8049_v16 = vadd.f32 %v8048_v32, %v7804_v41  ;;  %v8050_v54 = vpop.f32.mrb[161].mxu0  ;;  %8361 = vrot.lane.b32.xlu0 %v15172_v44, %s10917_s16  ;;  %v7944_v46 = vadd.f32 %v7943_v30, %v7809_v38  ;;  %8359 = vrot.lane.b32.xlu1 %v15178_v59, %s10917_s16  ;;  %v10796_v20 = vpack.c.bf16 %v15227_v27, %v15210_v37  ;;  %v8105_v30 = vld [vmem:[#allocation4 + $0x288] sm:$0xff] }
0x183d   : > { %8336 = vst.msk [vmem:[#allocation3 + $0x178] sm:$0xff] %vm16072_vm11, %v15231_v62  ;;  %v8051_v25 = vadd.f32 %v8050_v54, %v7804_v41  ;;  %v15242_v21 = vmax.f32 %v7942_v42, 0.0  ;;  %9489 = vmatprep.mubr.msk.f32.mxu0 %vm16077_vm9, %v8105_v30  ;;  %9481 = vmatprep.mubr.msk.f32.mxu1 %vm16078_vm5, %v8105_v30  ;;  %vm16083_vm11 = vmmov %vm16082_vm2 }
0x183e   : > { %v15244_v45 = vmax.f32 %v8049_v16, 0.0  ;;  %v15246_v34 = vmax.f32 %v7944_v46, 0.0  ;;  %v7947_v40 = vpop.f32.mrb[164].mxu1  ;;  %vm16088_vm9 = vmmov %vm16082_vm2 }
0x183f   : > { %v15248_v22 = vmax.f32 %v8051_v25, 0.0  ;;  %v8054_v49 = vpop.f32.mrb[162].mxu0  ;;  %8341 = vst [vmem:[#allocation3 + $0x1a0] sm:$0xff] %v15242_v21  ;;  %v7948_v59 = vadd.f32 %v7947_v40, %v7814_v48  ;;  %v7949_v55 = vpop.f32.mrb[165].mxu1  ;;  %vm16089_vm5 = vmmov %vm16070_vm1 }
0x1840   : > { %v8055_v31 = vadd.f32 %v8054_v49, %v7809_v38  ;;  %v8056_v58 = vpop.f32.mrb[163].mxu0  ;;  %8179 = vrot.lane.b32.xlu0 %v15176_v36, %s10916_s20  ;;  %v7950_v47 = vadd.f32 %v7949_v55, %v7814_v48  ;;  %8177 = vrot.lane.b32.xlu1 %v15172_v44, %s10916_s20 }
0x1841   : > { %8340 = vst.msk [vmem:[#allocation3 + $0x198] sm:$0xff] %vm16073_vm7, %v15248_v22  ;;  %v8057_v5 = vadd.f32 %v8056_v58, %v7809_v38  ;;  %v15257_v51 = vmax.f32 %v7948_v59, 0.0  ;;  %vm16084_vm7 = vmmov %vm16082_vm2 }
0x1842   : > { %v15259_v19 = vmax.f32 %v8055_v31, 0.0  ;;  %v15261_v13 = vmax.f32 %v7950_v47, 0.0  ;;  %v7953_v4 = vpop.f32.mrb[166].mxu1 }
0x1843   : > { %v15263_v14 = vmax.f32 %v8057_v5, 0.0  ;;  %v8060_v1 = vpop.f32.mrb[164].mxu0  ;;  %8345 = vst [vmem:[#allocation3 + $0x1c0] sm:$0xff] %v15257_v51  ;;  %v7954_v2 = vadd.f32 %v7953_v4, %v7819_v9  ;;  %v7955_v33 = vpop.f32.mrb[167].mxu1  ;;  %v15402_v5 = vld [vmem:[#allocation2 + $0xc8] sm:$0xff] }
0x1844   : > { %v8061_v18 = vadd.f32 %v8060_v1, %v7814_v48  ;;  %v8062_v41 = vpop.f32.mrb[165].mxu0  ;;  %8183 = vrot.lane.b32.xlu0 %v15197_v56, %s10916_s20  ;;  %v7956_v17 = vadd.f32 %v7955_v33, %v7819_v9  ;;  %8181 = vrot.lane.b32.xlu1 %v15193_v52, %s10916_s20 }
0x1845   : > { %8344 = vst.msk [vmem:[#allocation3 + $0x1b8] sm:$0xff] %vm16074_vm14, %v15263_v14  ;;  %v8063_v29 = vadd.f32 %v8062_v41, %v7814_v48  ;;  %v15272_v63 = vmax.f32 %v7954_v2, 0.0  ;;  %v9473_v48 = vld [vmem:[%s15606_s9 + $0x140] sm:$0xff]  ;;  %vm16085_vm14 = vmmov %vm16070_vm1 }
0x1846   : > { %v15274_v6 = vmax.f32 %v8061_v18, 0.0  ;;  %v15276_v8 = vmax.f32 %v7956_v17, 0.0 }
0x1847   : > { %v8098_v28 = vmax.f32 %v8063_v29, 0.0  ;;  %v8066_v39 = vpop.f32.mrb[166].mxu0  ;;  %8349 = vst [vmem:[#allocation3 + $0x1e0] sm:$0xff] %v15272_v63 }
0x1848   : > { %v8067_v60 = vadd.f32 %v8066_v39, %v7819_v9  ;;  %v8068_v38 = vpop.f32.mrb[167].mxu0  ;;  %8363 = vrot.lane.b32.xlu0 %v15176_v36, %s10917_s16  ;;  %8365 = vrot.lane.b32.xlu1 %v15193_v52, %s10917_s16 }
0x1849   : > { %8348 = vst.msk [vmem:[#allocation3 + $0x1d8] sm:$0xff] %vm16075_vm8, %v8098_v28  ;;  %v8069_v57 = vadd.f32 %v8068_v38, %v7819_v9  ;;  %vm16086_vm8 = vmmov %vm16082_vm2 }
0x184a   : > { %v15284_v32 = vmax.f32 %v8067_v60, 0.0 }
0x184b   : > { %v8102_v42 = vmax.f32 %v8069_v57, 0.0 }
0x184c   : > { %8367 = vrot.lane.b32.xlu0 %v15197_v56, %s10917_s16  ;;  %8185 = vrot.lane.b32.xlu1 %v15191_v53, %s10916_s20 }
0x184d   : > { %8352 = vst.msk [vmem:[#allocation3 + $0x1f8] sm:$0xff] %vm16076_vm10, %v8102_v42  ;;  %vm16087_vm10 = vmmov %vm16082_vm2 }
0x1850   : > { %8373 = vrot.lane.b32.xlu0 %v15210_v37, %s10917_s16  ;;  %8189 = vrot.lane.b32.xlu1 %v15210_v37, %s10916_s20 }
0x1854   : > { %8187 = vrot.lane.b32.xlu0 %v15195_v61, %s10916_s20  ;;  %8371 = vrot.lane.b32.xlu1 %v15195_v61, %s10917_s16  ;;  %v8576_v52 = vld [vmem:[#allocation3 + $0x1f8] sm:$0xff] }
0x1858   : > { %8191 = vrot.lane.b32.xlu0 %v15214_v10, %s10916_s20  ;;  %8375 = vrot.lane.b32.xlu1 %v15214_v10, %s10917_s16 }
0x185c   : > { %8195 = vrot.lane.b32.xlu0 %v15212_v23, %s10916_s20  ;;  %8193 = vrot.lane.b32.xlu1 %v15208_v15, %s10916_s20 }
0x1860   : > { %8199 = vrot.lane.b32.xlu0 %v15231_v62, %s10916_s20  ;;  %8197 = vrot.lane.b32.xlu1 %v15227_v27, %s10916_s20 }
0x1864   : > { %8379 = vrot.lane.b32.xlu0 %v15212_v23, %s10917_s16  ;;  %8381 = vrot.lane.b32.xlu1 %v15227_v27, %s10917_s16  ;;  %v8548_v23 = vld [vmem:[#allocation3 + $0x118] sm:$0xff] }
0x1868   : > { %8383 = vrot.lane.b32.xlu0 %v15231_v62, %s10917_s16  ;;  %8201 = vrot.lane.b32.xlu1 %v15225_v35, %s10916_s20 }
0x186c   : > { %8203 = vrot.lane.b32.xlu0 %v15229_v3, %s10916_s20  ;;  %8205 = vrot.lane.b32.xlu1 %v15244_v45, %s10916_s20 }
0x1870   : > { %8207 = vrot.lane.b32.xlu0 %v15248_v22, %s10916_s20  ;;  %8209 = vrot.lane.b32.xlu1 %v15242_v21, %s10916_s20 }
0x1874   : > { %8211 = vrot.lane.b32.xlu0 %v15246_v34, %s10916_s20  ;;  %8213 = vrot.lane.b32.xlu1 %v15259_v19, %s10916_s20 }
0x1878   : > { %8215 = vrot.lane.b32.xlu0 %v15263_v14, %s10916_s20  ;;  %8217 = vrot.lane.b32.xlu1 %v15257_v51, %s10916_s20 }
0x187c   : > { %8219 = vrot.lane.b32.xlu0 %v15261_v13, %s10916_s20  ;;  %8221 = vrot.lane.b32.xlu1 %v15274_v6, %s10916_s20 }
0x1880   : > { %8223 = vrot.lane.b32.xlu0 %v8098_v28, %s10916_s20  ;;  %8225 = vrot.lane.b32.xlu1 %v15272_v63, %s10916_s20 }
0x1884   : > { %8227 = vrot.lane.b32.xlu0 %v15276_v8, %s10916_s20  ;;  %8229 = vrot.lane.b32.xlu1 %v15284_v32, %s10916_s20 }
0x1888   : > { %8231 = vrot.lane.b32.xlu0 %v8102_v42, %s10916_s20  ;;  %8369 = vrot.lane.b32.xlu1 %v15191_v53, %s10917_s16  ;;  %v10752_v53 = vpack.c.bf16 %v15242_v21, %v15225_v35 }
0x188c   : > { %8377 = vrot.lane.b32.xlu0 %v15208_v15, %s10917_s16  ;;  %8387 = vrot.lane.b32.xlu1 %v15229_v3, %s10917_s16  ;;  %v10754_v15 = vpack.c.bf16 %v15276_v8, %v15261_v13 }
0x1890   : > { %8389 = vrot.lane.b32.xlu0 %v15244_v45, %s10917_s16  ;;  %8391 = vrot.lane.b32.xlu1 %v15248_v22, %s10917_s16 }
0x1894   : > { %8395 = vrot.lane.b32.xlu0 %v15246_v34, %s10917_s16  ;;  %8397 = vrot.lane.b32.xlu1 %v15259_v19, %s10917_s16 }
0x1898   : > { %8399 = vrot.lane.b32.xlu0 %v15263_v14, %s10917_s16  ;;  %8385 = vrot.lane.b32.xlu1 %v15225_v35, %s10917_s16 }
0x189c   : > { %8393 = vrot.lane.b32.xlu0 %v15242_v21, %s10917_s16  ;;  %8403 = vrot.lane.b32.xlu1 %v15261_v13, %s10917_s16  ;;  %v8568_v21 = vld [vmem:[#allocation3 + $0x1b8] sm:$0xff]  ;;  %v10756_v13 = vpack.c.bf16 %v15272_v63, %v15257_v51 }
0x189d   : > { %v8170_v56 = vpop.permute.xlu1 %8169 }
0x189e   : > { %8289 = vst.msk [vmem:[#allocation3] sm:$0xff] %vm4145_vm0, %v8170_v56 }
0x18a0   : > { %8405 = vrot.lane.b32.xlu0 %v15274_v6, %s10917_s16  ;;  %8407 = vrot.lane.b32.xlu1 %v8098_v28, %s10917_s16 }
0x18a2   : > { %v8358_v10 = vpop.permute.xlu0 %8357  ;;  %v8174_v62 = vpop.permute.xlu1 %8173 }
0x18a4   : > { %8411 = vrot.lane.b32.xlu0 %v15276_v8, %s10917_s16  ;;  %8413 = vrot.lane.b32.xlu1 %v15284_v32, %s10917_s16  ;;  %v8564_v8 = vld [vmem:[#allocation3 + $0x198] sm:$0xff] }
0x18a5   : > { %v8513_v28 = vld [vmem:[#allocation3] sm:$0xff] }
0x18a6   : > { %v8172_v16 = vpop.permute.xlu0 %8171  ;;  %v8354_v54 = vpop.permute.xlu1 %8353 }
0x18a7   : > { %v8233_v46 = vsel %vm16079_vm3, %v8170_v56, %v8172_v16  ;;  %v8234_v25 = vsel %vm16080_vm13, %v8172_v16, %v8174_v62  ;;  %vm16090_vm3 = vmmov %vm16082_vm2 }
0x18a8   : > { %8415 = vrot.lane.b32.xlu0 %v8102_v42, %s10917_s16  ;;  %8401 = vrot.lane.b32.xlu1 %v15257_v51, %s10917_s16  ;;  %vm16091_vm13 = vmmov %vm16082_vm2  ;;  %v10800_v51 = vpack.c.bf16 %v15259_v19, %v15244_v45 }
0x18aa   : > { %v8176_v40 = vpop.permute.xlu0 %8175  ;;  %v8356_v22 = vpop.permute.xlu1 %8355 }
0x18ab   : > { %v8235_v49 = vsel %vm16081_vm12, %v8174_v62, %v8176_v40  ;;  %v15389_v59 = vsel %vm4274_vm15, %v8354_v54, %v8356_v22  ;;  %v15392_v55 = vsel %vm4274_vm15, %v8356_v22, %v8358_v10  ;;  %vm16092_vm12 = vmmov %vm16082_vm2 }
0x18ac   : > { %8292 = vst.msk [vmem:[#allocation3 + $0x18] sm:$0xff] %vm16070_vm1, %v8235_v49  ;;  %8409 = vrot.lane.b32.xlu0 %v15272_v63, %s10917_s16  ;;  %8473 = vst [vmem:[#allocation3 + $0x200] sm:$0xff] %v15389_v59  ;;  %8611 = vperm.xlu1 %10852, %v9473_v48   ;;  %v8572_v63 = vld [vmem:[#allocation3 + $0x1d8] sm:$0xff]  ;;  %s9507_s16 = sshll.u32 %s16125_s14, 3 }
0x18ad   : > { %s414_s23 = scalar_lea.vmem %s15607_s10, %s9507_s16 }
0x18ae   : > { %v8362_v31 = vpop.permute.xlu0 %8361  ;;  %v8360_v58 = vpop.permute.xlu1 %8359 }
0x18af   : > { %v15399_v47 = vsel %vm4274_vm15, %v8358_v10, %v8360_v58  ;;  %8476 = vst.msk [vmem:[#allocation3 + $0x218] sm:$0xff] %vm4334_vm4, %v8360_v58 }
0x18b0   : > { %8505 = vst.msk [vmem:[#allocation3 + $0x218] sm:$0xff] %vm4364_vm6, %v15402_v5 }
0x18b2   : > { %v8180_v9 = vpop.permute.xlu0 %8179  ;;  %v8178_v4 = vpop.permute.xlu1 %8177 }
0x18b3   : > { %v8236_v14 = vsel %vm16082_vm2, %v8178_v4, %v8180_v9  ;;  %8293 = vst.msk [vmem:[#allocation3 + $0x20] sm:$0xff] %vm4145_vm0, %v8178_v4  ;;  %v8516_v16 = vld [vmem:[#allocation3 + $0x18] sm:$0xff] }
0x18b4   : > { %v10726_v1 = vpack.c.bf16 %v8236_v14, %v8233_v46 }
0x18b6   : > { %v8184_v2 = vpop.permute.xlu0 %8183  ;;  %v8182_v33 = vpop.permute.xlu1 %8181  ;;  %10727 = vmatprep.subr.bf16.mxu1 %v10726_v1 }
0x18b7   : > { %v8237_v18 = vsel %vm16083_vm11, %v8180_v9, %v8182_v33  ;;  %v8238_v41 = vsel %vm16084_vm7, %v8182_v33, %v8184_v2  ;;  %vm16093_vm11 = vmmov %vm16082_vm2 }
0x18b8   : > { %8296 = vst.msk [vmem:[#allocation3 + $0x38] sm:$0xff] %vm16085_vm14, %v8238_v41  ;;  %v10776_v40 = vpack.c.bf16 %v8237_v18, %v8234_v25  ;;  %vm16094_vm7 = vmmov %vm16082_vm2 }
0x18b9   : > { %vm16095_vm14 = vmmov %vm16070_vm1 }
0x18ba   : > { %v8364_v17 = vpop.permute.xlu0 %8363  ;;  %v8366_v29 = vpop.permute.xlu1 %8365  ;;  %v8517_v39 = vld [vmem:[#allocation3 + $0x20] sm:$0xff] }
0x18bb   : > { %v15412_v60 = vsel %vm4274_vm15, %v8362_v31, %v8364_v17  ;;  %v15415_v38 = vsel %vm4274_vm15, %v8364_v17, %v8366_v29  ;;  %v10728_v57 = vpack.c.bf16 %v8517_v39, %v8513_v28 }
0x18bc   : > { %8477 = vst [vmem:[#allocation3 + $0x220] sm:$0xff] %v15412_v60  ;;  %v10758_v42 = vpack.c.bf16 %v15415_v38, %v15392_v55  ;;  %v16106_v55 = vpack.c.bf16 %v15412_v60, %v15389_v59  ;;  %v8580_v38 = vld [vmem:[#allocation3 + $0x218] sm:$0xff]  ;;  %v10804_v60 = vpack.c.bf16 %v15284_v32, %v15274_v6 }
0x18bd   : > { %10729 = vmatpush1.bf16.msra.mxu1 %v10728_v57 }
0x18be   : > { %v8368_v10 = vpop.permute.xlu0 %8367  ;;  %v8186_v62 = vpop.permute.xlu1 %8185 }
0x18bf   : > { %8480 = vst.msk [vmem:[#allocation3 + $0x238] sm:$0xff] %vm4334_vm4, %v8368_v10  ;;  %v15424_v30 = vsel %vm4274_vm15, %v8366_v29, %v8368_v10  ;;  %v8520_v54 = vld [vmem:[#allocation3 + $0x38] sm:$0xff] }
0x18c0   : > { %8297 = vst.msk [vmem:[#allocation3 + $0x40] sm:$0xff] %vm4145_vm0, %v8186_v62  ;;  %v10774_v46 = vpack.c.bf16 %v8520_v54, %v8516_v16  ;;  %v16107_v32 = vpack.c.bf16 %v15424_v30, %v15399_v47 }
0x18c1   : > { %8506 = vst.msk [vmem:[#allocation3 + $0x238] sm:$0xff] %vm4364_vm6, %v15402_v5 }
0x18c2   : > { %v8374_v22 = vpop.permute.xlu0 %8373  ;;  %10775 = vmatprep.subr.bf16.mxu0 %v10774_v46  ;;  %v8190_v49 = vpop.permute.xlu1 %8189 }
0x18c3   : > { %10777 = vmatpush1.bf16.msra.mxu0 %v10776_v40 }
0x18c6   : > { %v8188_v31 = vpop.permute.xlu0 %8187  ;;  %v15431_v58 = vpop.permute.xlu1 %8371 }
0x18c7   : > { %v8239_v9 = vsel %vm16086_vm8, %v8186_v62, %v8188_v31  ;;  %v8240_v4 = vsel %vm16087_vm10, %v8188_v31, %v8190_v49  ;;  %v15437_v14 = vsel %vm4274_vm15, %v15431_v58, %v8374_v22  ;;  %v8521_v54 = vld [vmem:[#allocation3 + $0x40] sm:$0xff]  ;;  %vm16096_vm8 = vmmov %vm16082_vm2 }
0x18c8   : > { %vm16097_vm10 = vmmov %vm16082_vm2 }
0x18ca   : > { %v8192_v1 = vpop.permute.xlu0 %8191  ;;  %v8376_v2 = vpop.permute.xlu1 %8375 }
0x18cb   : > { %v8241_v33 = vsel %vm16088_vm9, %v8190_v49, %v8192_v1  ;;  %v15441_v25 = vsel %vm4274_vm15, %v8374_v22, %v8376_v2  ;;  %8484 = vst.msk [vmem:[#allocation3 + $0x258] sm:$0xff] %vm4334_vm4, %v8376_v2  ;;  %vm16098_vm9 = vmmov %vm16082_vm2 }
0x18cc   : > { %8300 = vst.msk [vmem:[#allocation3 + $0x58] sm:$0xff] %vm16089_vm5, %v8241_v33  ;;  %vm16099_vm5 = vmmov %vm16070_vm1 }
0x18cd   : > { %8507 = vst.msk [vmem:[#allocation3 + $0x258] sm:$0xff] %vm4364_vm6, %v15402_v5 }
0x18ce   : > { %v8196_v18 = vpop.permute.xlu0 %8195  ;;  %v8194_v41 = vpop.permute.xlu1 %8193 }
0x18cf   : > { %v8242_v17 = vsel %vm16090_vm3, %v8194_v41, %v8196_v18  ;;  %8301 = vst.msk [vmem:[#allocation3 + $0x60] sm:$0xff] %vm4145_vm0, %v8194_v41  ;;  %vm16100_vm3 = vmmov %vm16082_vm2 }
0x18d0   : > { %v10730_v29 = vpack.c.bf16 %v8242_v17, %v8239_v9 }
0x18d2   : > { %v8200_v28 = vpop.permute.xlu0 %8199  ;;  %v8198_v39 = vpop.permute.xlu1 %8197  ;;  %10731 = vmatprep.subr.bf16.mxu1 %v10730_v29 }
0x18d3   : > { %v8243_v57 = vsel %vm16091_vm13, %v8196_v18, %v8198_v39  ;;  %v8244_v10 = vsel %vm16092_vm12, %v8198_v39, %v8200_v28  ;;  %v8524_v1 = vld [vmem:[#allocation3 + $0x58] sm:$0xff]  ;;  %vm16101_vm13 = vmmov %vm16082_vm2 }
0x18d4   : > { %8304 = vst.msk [vmem:[#allocation3 + $0x78] sm:$0xff] %vm16070_vm1, %v8244_v10  ;;  %v10780_v41 = vpack.c.bf16 %v8243_v57, %v8240_v4  ;;  %vm16102_vm12 = vmmov %vm16082_vm2 }
0x18d6   : > { %v15452_v62 = vpop.permute.xlu0 %8379  ;;  %v8382_v16 = vpop.permute.xlu1 %8381  ;;  %v8525_v46 = vld [vmem:[#allocation3 + $0x60] sm:$0xff] }
0x18d7   : > { %v15456_v40 = vsel %vm4274_vm15, %v15452_v62, %v8382_v16  ;;  %v10732_v22 = vpack.c.bf16 %v8525_v46, %v8521_v54 }
0x18d9   : > { %10733 = vmatpush1.bf16.msra.mxu1 %v10732_v22 }
0x18da   : > { %v8384_v49 = vpop.permute.xlu0 %8383  ;;  %v8202_v31 = vpop.permute.xlu1 %8201 }
0x18db   : > { %8488 = vst.msk [vmem:[#allocation3 + $0x278] sm:$0xff] %vm4334_vm4, %v8384_v49  ;;  %v15460_v9 = vsel %vm4274_vm15, %v8382_v16, %v8384_v49  ;;  %v8528_v2 = vld [vmem:[#allocation3 + $0x78] sm:$0xff] }
0x18dc   : > { %8305 = vst.msk [vmem:[#allocation3 + $0x80] sm:$0xff] %vm4145_vm0, %v8202_v31  ;;  %v10778_v33 = vpack.c.bf16 %v8528_v2, %v8524_v1 }
0x18dd   : > { %8508 = vst.msk [vmem:[#allocation3 + $0x278] sm:$0xff] %vm4364_vm6, %v15402_v5 }
0x18de   : > { %v8204_v17 = vpop.permute.xlu0 %8203  ;;  %10779 = vmatprep.subr.bf16.mxu0 %v10778_v33  ;;  %v8206_v29 = vpop.permute.xlu1 %8205 }
0x18df   : > { %v8245_v28 = vsel %vm16082_vm2, %v8202_v31, %v8204_v17  ;;  %v8246_v39 = vsel %vm16093_vm11, %v8204_v17, %v8206_v29  ;;  %10781 = vmatpush1.bf16.msra.mxu0 %v10780_v41  ;;  %vm16103_vm11 = vmmov %vm16082_vm2 }
0x18e2   : > { %v8208_v10 = vpop.permute.xlu0 %8207  ;;  %v8210_v16 = vpop.permute.xlu1 %8209 }
0x18e3   : > { %v8247_v54 = vsel %vm16094_vm7, %v8206_v29, %v8208_v10  ;;  %8309 = vst.msk [vmem:[#allocation3 + $0xa0] sm:$0xff] %vm4145_vm0, %v8210_v16  ;;  %v8529_v2 = vld [vmem:[#allocation3 + $0x80] sm:$0xff]  ;;  %vm16104_vm7 = vmmov %vm16082_vm2 }
0x18e4   : > { %8308 = vst.msk [vmem:[#allocation3 + $0x98] sm:$0xff] %vm16095_vm14, %v8247_v54 }
0x18e6   : > { %v8212_v46 = vpop.permute.xlu0 %8211  ;;  %v8214_v22 = vpop.permute.xlu1 %8213 }
0x18e7   : > { %v8248_v4 = vsel %vm16096_vm8, %v8210_v16, %v8212_v46  ;;  %v8249_v57 = vsel %vm16097_vm10, %v8212_v46, %v8214_v22 }
0x18e8   : > { %v10734_v49 = vpack.c.bf16 %v8248_v4, %v8245_v28 }
0x18ea   : > { %v8216_v1 = vpop.permute.xlu0 %8215  ;;  %v8218_v31 = vpop.permute.xlu1 %8217  ;;  %10735 = vmatprep.subr.bf16.mxu1 %v10734_v49  ;;  %v8533_v33 = vld [vmem:[#allocation3 + $0xa0] sm:$0xff] }
0x18eb   : > { %v8250_v41 = vsel %vm16098_vm9, %v8214_v22, %v8216_v1  ;;  %8313 = vst.msk [vmem:[#allocation3 + $0xc0] sm:$0xff] %vm4145_vm0, %v8218_v31  ;;  %v10736_v17 = vpack.c.bf16 %v8533_v33, %v8529_v2  ;;  %v8532_v49 = vld [vmem:[#allocation3 + $0x98] sm:$0xff]  ;;  %v10784_v1 = vpack.c.bf16 %v8249_v57, %v8246_v39 }
0x18ec   : > { %8312 = vst.msk [vmem:[#allocation3 + $0xb8] sm:$0xff] %vm16099_vm5, %v8250_v41 }
0x18ed   : > { %10737 = vmatpush1.bf16.msra.mxu1 %v10736_v17 }
0x18ee   : > { %v8220_v29 = vpop.permute.xlu0 %8219  ;;  %v8222_v10 = vpop.permute.xlu1 %8221 }
0x18ef   : > { %v8251_v16 = vsel %vm16100_vm3, %v8218_v31, %v8220_v29  ;;  %v8252_v54 = vsel %vm16101_vm13, %v8220_v29, %v8222_v10 }
0x18f2   : > { %v8224_v28 = vpop.permute.xlu0 %8223  ;;  %v8226_v46 = vpop.permute.xlu1 %8225 }
0x18f3   : > { %v8253_v4 = vsel %vm16102_vm12, %v8222_v10, %v8224_v28  ;;  %v8536_v18 = vld [vmem:[#allocation3 + $0xb8] sm:$0xff]  ;;  %8317 = vst.msk [vmem:[#allocation3 + $0xe0] sm:$0xff] %vm4145_vm0, %v8226_v46  ;;  %v8537_v10 = vld [vmem:[#allocation3 + $0xc0] sm:$0xff]  ;;  %vm16105_vm0 = vmmov %vm16070_vm1 }
0x18f4   : > { %8316 = vst.msk [vmem:[#allocation3 + $0xd8] sm:$0xff] %vm16070_vm1, %v8253_v4  ;;  %v10782_v22 = vpack.c.bf16 %v8536_v18, %v8532_v49 }
0x18f6   : > { %v8228_v2 = vpop.permute.xlu0 %8227  ;;  %10783 = vmatprep.subr.bf16.mxu0 %v10782_v22  ;;  %v8230_v33 = vpop.permute.xlu1 %8229 }
0x18f7   : > { %v8254_v41 = vsel %vm16082_vm2, %v8226_v46, %v8228_v2  ;;  %10785 = vmatpush1.bf16.msra.mxu0 %v10784_v1  ;;  %v8255_v31 = vsel %vm16103_vm11, %v8228_v2, %v8230_v33  ;;  %v8560_v1 = vld [vmem:[#allocation3 + $0x178] sm:$0xff] }
0x18f8   : > { %v10738_v17 = vpack.c.bf16 %v8254_v41, %v8251_v16  ;;  %v10788_v61 = vpack.c.bf16 %v8255_v31, %v8252_v54  ;;  %v10798_v31 = vpack.c.bf16 %v8568_v21, %v8564_v8 }
0x18fa   : > { %v8232_v29 = vpop.permute.xlu0 %8231  ;;  %v8370_v48 = vpop.permute.xlu1 %8369  ;;  %10739 = vmatprep.subr.bf16.mxu1 %v10738_v17  ;;  %v8541_v28 = vld [vmem:[#allocation3 + $0xe0] sm:$0xff] }
0x18fb   : > { %v8256_v56 = vsel %vm16104_vm7, %v8230_v33, %v8232_v29  ;;  %v15487_v18 = vsel %vm4274_vm15, %v8370_v48, %v15431_v58  ;;  %v10740_v39 = vpack.c.bf16 %v8541_v28, %v8537_v10  ;;  %v8540_v43 = vld [vmem:[#allocation3 + $0xd8] sm:$0xff]  ;;  %v10802_v10 = vpack.c.bf16 %v8576_v52, %v8572_v63 }
0x18fc   : > { %8320 = vst.msk [vmem:[#allocation3 + $0xf8] sm:$0xff] %vm16105_vm0, %v8256_v56  ;;  %8481 = vst [vmem:[#allocation3 + $0x240] sm:$0xff] %v15487_v18 }
0x18fd   : > { %10741 = vmatpush1.bf16.msra.mxu1 %v10740_v39 }
0x18fe   : > { %v8378_v57 = vpop.permute.xlu0 %8377  ;;  %v8388_v46 = vpop.permute.xlu1 %8387  ;;  %10743 = vmatprep.subr.bf16.mxu1 %v10742_v7 }
0x18ff   : > { %v15496_v16 = vsel %vm4274_vm15, %v8378_v57, %v15452_v62  ;;  %v8552_v62 = vld [vmem:[#allocation3 + $0x138] sm:$0xff] }
0x1900   : > { %8485 = vst [vmem:[#allocation3 + $0x260] sm:$0xff] %v15496_v16  ;;  %v10790_v4 = vpack.c.bf16 %v8552_v62, %v8548_v23  ;;  %v10764_v45 = vpack.c.bf16 %v15496_v16, %v15487_v18  ;;  %v8104_v23 = vld [vmem:[#allocation4 + $0x280] sm:$0xff] }
0x1901   : > { %10745 = vmatpush1.bf16.msra.mxu1 %v10744_v50  ;;  %v10750_v50 = vpack.c.bf16 %v15246_v34, %v15229_v3  ;;  %v8556_v3 = vld [vmem:[#allocation3 + $0x158] sm:$0xff] }
0x1902   : > { %v8390_v56 = vpop.permute.xlu0 %8389  ;;  %v8392_v48 = vpop.permute.xlu1 %8391  ;;  %10747 = vmatprep.subr.bf16.mxu1 %v10746_v12  ;;  %v10794_v54 = vpack.c.bf16 %v8560_v1, %v8556_v3  ;;  %v8110_v1 = vld [vmem:[#allocation4 + $0x2b0] sm:$0xff]  ;;  %v8115_v3 = vld [vmem:[#allocation4 + $0x2d8] sm:$0xff] }
0x1903   : > { %v15506_v58 = vsel %vm4274_vm15, %v8388_v46, %v8390_v56  ;;  %v8544_v36 = vld [vmem:[#allocation3 + $0xf8] sm:$0xff]  ;;  %v15509_v7 = vsel %vm4274_vm15, %v8390_v56, %v8392_v48  ;;  %8492 = vst.msk [vmem:[#allocation3 + $0x298] sm:$0xff] %vm4334_vm4, %v8392_v48 }
0x1904   : > { %v10786_v44 = vpack.c.bf16 %v8544_v36, %v8540_v43  ;;  %8509 = vst.msk [vmem:[#allocation3 + $0x298] sm:$0xff] %vm4364_vm6, %v15402_v5 }
0x1905   : > { %10749 = vmatpush1.bf16.msra.mxu1 %v10748_v24 }
0x1906   : > { %v8396_v12 = vpop.permute.xlu0 %8395  ;;  %10787 = vmatprep.subr.bf16.mxu0 %v10786_v44  ;;  %v8398_v49 = vpop.permute.xlu1 %8397  ;;  %10751 = vmatprep.subr.bf16.mxu1 %v10750_v50  ;;  %v16108_v50 = vpack.c.bf16 %v15460_v9, %v15441_v25  ;;  %v8106_v25 = vld [vmem:[#allocation4 + $0x290] sm:$0xff]  ;;  %v8109_v9 = vld [vmem:[#allocation4 + $0x2a8] sm:$0xff] }
0x1907   : > { %10789 = vmatpush1.bf16.msra.mxu0 %v10788_v61  ;;  %v8433_v22 = vsel %vm4274_vm15, %v8396_v12, %v8398_v49 }
0x1908   : > { %10791 = vmatprep.subr.bf16.mxu0 %v10790_v4  ;;  %v10766_v59 = vpack.c.bf16 %v8433_v22, %v15506_v58  ;;  %v8111_v22 = vld [vmem:[#allocation4 + $0x2b8] sm:$0xff] }
0x1909   : > { %10753 = vmatpush1.bf16.msra.mxu1 %v10752_v53  ;;  %v8113_v53 = vld [vmem:[#allocation4 + $0x2c8] sm:$0xff] }
0x190a   : > { %v8400_v34 = vpop.permute.xlu0 %8399  ;;  %v8386_v2 = vpop.permute.xlu1 %8385  ;;  %10755 = vmatprep.subr.bf16.mxu1 %v10754_v15  ;;  %v8112_v15 = vld [vmem:[#allocation4 + $0x2c0] sm:$0xff] }
0x190b   : > { %8496 = vst.msk [vmem:[#allocation3 + $0x2b8] sm:$0xff] %vm4334_vm4, %v8400_v34  ;;  %v15525_v33 = vsel %vm4274_vm15, %v8398_v49, %v8400_v34  ;;  %10793 = vmatpush1.bf16.msra.mxu0 %v10792_v26  ;;  %v8429_v35 = vsel %vm4274_vm15, %v8386_v2, %v8388_v46  ;;  %v10762_v26 = vpack.c.bf16 %v15456_v40, %v15437_v14  ;;  %v8588_v14 = vld [vmem:[#allocation3 + $0x258] sm:$0xff]  ;;  %v8114_v34 = vld [vmem:[#allocation4 + $0x2d0] sm:$0xff]  ;;  %v8116_v2 = vld [vmem:[#allocation4 + $0x2e0] sm:$0xff] }
0x190c   : > { %8510 = vst.msk [vmem:[#allocation3 + $0x2b8] sm:$0xff] %vm4364_vm6, %v15402_v5  ;;  %10795 = vmatprep.subr.bf16.mxu0 %v10794_v54  ;;  %8489 = vst [vmem:[#allocation3 + $0x280] sm:$0xff] %v8429_v35  ;;  %v8592_v40 = vld [vmem:[#allocation3 + $0x278] sm:$0xff]  ;;  %v10816_v47 = vpack.c.bf16 %v15525_v33, %v15509_v7  ;;  %v8108_v7 = vld [vmem:[#allocation4 + $0x2a0] sm:$0xff] }
0x190d   : > { %10757 = vmatpush1.bf16.msra.mxu1 %v10756_v13  ;;  %v10810_v46 = vpack.c.bf16 %v8592_v40, %v8588_v14  ;;  %v8596_v56 = vld [vmem:[#allocation3 + $0x298] sm:$0xff]  ;;  %v8117_v54 = vld [vmem:[#allocation4 + $0x2e8] sm:$0xff] }
0x190e   : > { %v8394_v41 = vpop.permute.xlu0 %8393  ;;  %v8404_v17 = vpop.permute.xlu1 %8403  ;;  %10759 = vmatprep.subr.bf16.mxu1 %v10758_v42  ;;  %v8584_v42 = vld [vmem:[#allocation3 + $0x238] sm:$0xff] }
0x190f   : > { %v8432_v11 = vsel %vm4274_vm15, %v8394_v41, %v8396_v12  ;;  %10797 = vmatpush1.bf16.msra.mxu0 %v10796_v20  ;;  %v10806_v19 = vpack.c.bf16 %v8584_v42, %v8580_v38  ;;  %v8107_v12 = vld [vmem:[#allocation4 + $0x298] sm:$0xff] }
0x1910   : > { %8493 = vst [vmem:[#allocation3 + $0x2a0] sm:$0xff] %v8432_v11  ;;  %10799 = vmatprep.subr.bf16.mxu0 %v10798_v31  ;;  %v10768_v18 = vpack.c.bf16 %v8432_v11, %v8429_v35  ;;  %v8119_v33 = vld [vmem:[#allocation4 + $0x2f8] sm:$0xff]  ;;  %v8118_v35 = vld [vmem:[#allocation4 + $0x2f0] sm:$0xff] }
0x1911   : > { %10761 = vmatpush1.bf16.msra.mxu1 %v16106_v55 }
0x1912   : > { %v8406_v29 = vpop.permute.xlu0 %8405  ;;  %v8408_v37 = vpop.permute.xlu1 %8407  ;;  %10763 = vmatprep.subr.bf16.mxu1 %v10762_v26 }
0x1913   : > { %v8436_v27 = vsel %vm4274_vm15, %v8404_v17, %v8406_v29  ;;  %10801 = vmatpush1.bf16.msra.mxu0 %v10800_v51  ;;  %v8437_v20 = vsel %vm4274_vm15, %v8406_v29, %v8408_v37  ;;  %8500 = vst.msk [vmem:[#allocation3 + $0x2d8] sm:$0xff] %vm4334_vm4, %v8408_v37  ;;  %v8600_v48 = vld [vmem:[#allocation3 + $0x2b8] sm:$0xff] }
0x1914   : > { %10803 = vmatprep.subr.bf16.mxu0 %v10802_v10  ;;  %8511 = vst.msk [vmem:[#allocation3 + $0x2d8] sm:$0xff] %vm4364_vm6, %v15402_v5  ;;  %v10814_v62 = vpack.c.bf16 %v8600_v48, %v8596_v56  ;;  %v10921_v10 = vmov 1966171168  }
0x1915   : > { %10765 = vmatpush1.bf16.msra.mxu1 %v10764_v45  ;;  %v8883_v37 = vunpack.c.l.s4 %v10921_v10 }
0x1916   : > { %v8412_v28 = vpop.permute.xlu0 %8411  ;;  %v8414_v39 = vpop.permute.xlu1 %8413  ;;  %10767 = vmatprep.subr.bf16.mxu1 %v10766_v59 }
0x1917   : > { %10805 = vmatpush1.bf16.msra.mxu0 %v10804_v60  ;;  %v8439_v57 = vsel %vm4274_vm15, %v8412_v28, %v8414_v39 }
0x1918   : > { %10807 = vmatprep.subr.bf16.mxu0 %v10806_v19  ;;  %v10770_v16 = vpack.c.bf16 %v8439_v57, %v8436_v27  ;;  %v8884_v57 = vunpack.c.0.s8 %v8883_v37 }
0x1919   : > { %10769 = vmatpush1.bf16.msra.mxu1 %v10768_v18 }
0x191a   : > { %v8416_v58 = vpop.permute.xlu0 %8415  ;;  %v8402_v43 = vpop.permute.xlu1 %8401  ;;  %10771 = vmatprep.subr.bf16.mxu1 %v10770_v16 }
0x191b   : > { %8504 = vst.msk [vmem:[#allocation3 + $0x2f8] sm:$0xff] %vm4334_vm4, %v8416_v58  ;;  %v8440_v6 = vsel %vm4274_vm15, %v8414_v39, %v8416_v58  ;;  %10809 = vmatpush1.bf16.msra.mxu0 %v16107_v32  ;;  %v8435_v36 = vsel %vm4274_vm15, %v8402_v43, %v8404_v17  ;;  %v8604_v30 = vld [vmem:[#allocation3 + $0x2d8] sm:$0xff]  ;;  %vm16109_vm4 = vcmask 523264  }
0x191c   : > { %8512 = vst.msk [vmem:[#allocation3 + $0x2f8] sm:$0xff] %vm4364_vm6, %v15402_v5  ;;  %10811 = vmatprep.subr.bf16.mxu0 %v10810_v46  ;;  %8497 = vst [vmem:[#allocation3 + $0x2c0] sm:$0xff] %v8435_v36  ;;  %v10820_v49 = vpack.c.bf16 %v8440_v6, %v8437_v20 }
0x191d   : > { %vm16110_vm6 = vmmov %vm16109_vm4 }
0x191e   : > { %v8410_v24 = vpop.permute.xlu0 %8409  ;;  %vm16112_vm14 = vmmov %vm16109_vm4 }
0x191f   : > { %v8438_v44 = vsel %vm4274_vm15, %v8410_v24, %v8412_v28  ;;  %10813 = vmatpush1.bf16.msra.mxu0 %v16108_v50  ;;  %vm16111_vm15 = vmmov %vm16109_vm4  ;;  %v8887_v50 = vsub.s32 %v8884_v57, %v11219_v0  ;;  %v16123_v0 = vlaneseq }
0x1920   : > { %8501 = vst [vmem:[#allocation3 + $0x2e0] sm:$0xff] %v8438_v44  ;;  %10815 = vmatprep.subr.bf16.mxu0 %v10814_v62  ;;  %v10772_v61 = vpack.c.bf16 %v8438_v44, %v8435_v36  ;;  %vm16113_vm8 = vmmov %vm16109_vm4 }
0x1921   : > { %vm16114_vm10 = vmmov %vm16109_vm4  ;;  %vm8907_vm7 = vcmp.lt.s32.totalorder %v16123_v0, 500 }
0x1922   : > { %10773 = vmatpush1.bf16.msra.mxu1 %v10772_v61  ;;  %vm16115_vm9 = vmmov %vm16109_vm4 }
0x1923   : > { %10817 = vmatpush1.bf16.msra.mxu0 %v10816_v47  ;;  %v8608_v5 = vld [vmem:[#allocation3 + $0x2f8] sm:$0xff]  ;;  %vm16116_vm5 = vmmov %vm16109_vm4 }
0x1924   : > { %v10818_v4 = vpack.c.bf16 %v8608_v5, %v8604_v30  ;;  %vm16117_vm3 = vmmov %vm16109_vm4 }
0x1925   : > { %8731 = vmatmul.mubr.f32.vlgmr.msra.gmra.mrb[168].mxu1 %v8104_v23  ;;  %vm16118_vm13 = vmmov %vm16117_vm3 }
0x1926   : > { %10819 = vmatprep.subr.bf16.mxu0 %v10818_v4  ;;  %9482 = vmatprep.mubr.msk.f32.mxu1 %vm16109_vm4, %v8107_v12  ;;  %vm16119_vm12 = vmmov %vm16117_vm3 }
0x1927   : > { %10821 = vmatpush1.bf16.msra.mxu0 %v10820_v49  ;;  %vm16120_vm1 = vmmov %vm16117_vm3 }
0x1928   : > { %vm16121_vm2 = vmmov %vm16120_vm1 }
0x1929   : > { %8737 = vmatmul.mubr.f32.gmra.mrb[170].mxu1 %v8106_v25  ;;  %vm16122_vm11 = vmmov %vm16120_vm1 }
0x192a   : > { %8830 = vmatmul.mubr.f32.vlgmr.msra.gmra.mrb[168].mxu0 %v8104_v23  ;;  %9483 = vmatprep.mubr.msk.f32.mxu1 %vm16110_vm6, %v8109_v9 }
0x192b   : > { %9490 = vmatprep.mubr.msk.f32.mxu0 %vm16111_vm15, %v8107_v12  ;;  %v8612_v21 = vpop.permute.xlu1 %8611 }
0x192d   : > { %8741 = vmatmul.mubr.f32.gmra.mrb[172].mxu1 %v8108_v7 }
0x192e   : > { %8836 = vmatmul.mubr.f32.gmra.mrb[170].mxu0 %v8106_v25  ;;  %9484 = vmatprep.mubr.msk.f32.mxu1 %vm16112_vm14, %v8111_v22 }
0x192f   : > { %9491 = vmatprep.mubr.msk.f32.mxu0 %vm16113_vm8, %v8109_v9 }
0x1931   : > { %8745 = vmatmul.mubr.f32.gmra.mrb[174].mxu1 %v8110_v1 }
0x1932   : > { %8840 = vmatmul.mubr.f32.gmra.mrb[172].mxu0 %v8108_v7  ;;  %9485 = vmatprep.mubr.msk.f32.mxu1 %vm16114_vm10, %v8113_v53 }
0x1933   : > { %9492 = vmatprep.mubr.msk.f32.mxu0 %vm16115_vm9, %v8111_v22 }
0x1935   : > { %8749 = vmatmul.mubr.f32.gmra.mrb[176].mxu1 %v8112_v15 }
0x1936   : > { %8844 = vmatmul.mubr.f32.gmra.mrb[174].mxu0 %v8110_v1  ;;  %9486 = vmatprep.mubr.msk.f32.mxu1 %vm16116_vm5, %v8115_v3 }
0x1937   : > { %9493 = vmatprep.mubr.msk.f32.mxu0 %vm16117_vm3, %v8113_v53 }
0x1939   : > { %8753 = vmatmul.mubr.f32.gmra.mrb[178].mxu1 %v8114_v34 }
0x193a   : > { %8848 = vmatmul.mubr.f32.gmra.mrb[176].mxu0 %v8112_v15  ;;  %9487 = vmatprep.mubr.msk.f32.mxu1 %vm16118_vm13, %v8117_v54 }
0x193b   : > { %9494 = vmatprep.mubr.msk.f32.mxu0 %vm16119_vm12, %v8115_v3 }
0x193d   : > { %8757 = vmatmul.mubr.f32.gmra.mrb[180].mxu1 %v8116_v2 }
0x193e   : > { %8852 = vmatmul.mubr.f32.gmra.mrb[178].mxu0 %v8114_v34  ;;  %9488 = vmatprep.mubr.msk.f32.mxu1 %vm16120_vm1, %v8119_v33 }
0x193f   : > { %9495 = vmatprep.mubr.msk.f32.mxu0 %vm16121_vm2, %v8117_v54 }
0x1941   : > { %8761 = vmatmul.mubr.f32.gmra.mrb[182].mxu1 %v8118_v35 }
0x1942   : > { %8856 = vmatmul.mubr.f32.gmra.mrb[180].mxu0 %v8116_v2 }
0x1943   : > { %9496 = vmatprep.mubr.msk.f32.mxu0 %vm16122_vm11, %v8119_v33 }
0x1946   : > { %8860 = vmatmul.mubr.f32.gmra.mrb[182].mxu0 %v8118_v35 }
0x19f8   : > { %v8732_v13 = vpop.f32.mrb[168].mxu1 }
0x19f9   : > { %v8733_v8 = vadd.f32 %v8732_v13, %v8612_v21  ;;  %v8734_v41 = vpop.f32.mrb[169].mxu1 }
0x19fa   : > { %v8735_v31 = vadd.f32 %v8734_v41, %v8612_v21 }
0x19fb   : > { %10855 = vtanh.f32 %v8733_v8 }
0x19fc   : > { %10857 = vtanh.f32 %v8735_v31  ;;  %v8738_v17 = vpop.f32.mrb[170].mxu1 }
0x19fd   : > { %v8831_v11 = vpop.f32.mrb[168].mxu0  ;;  %v8739_v52 = vpop.f32.mrb[171].mxu1 }
0x19fe   : > { %v8832_v26 = vadd.f32 %v8831_v11, %v8612_v21  ;;  %v8833_v51 = vpop.f32.mrb[169].mxu0 }
0x19ff   : > { %v8834_v63 = vadd.f32 %v8833_v51, %v8612_v21 }
0x1a00   : > { %10859 = vtanh.f32 %v8832_v26  ;;  %v8742_v55 = vpop.f32.mrb[172].mxu1 }
0x1a01   : > { %10861 = vtanh.f32 %v8834_v63  ;;  %v8837_v38 = vpop.f32.mrb[170].mxu0  ;;  %v8743_v42 = vpop.f32.mrb[173].mxu1 }
0x1a02   : > { %v8838_v29 = vpop.f32.mrb[171].mxu0 }
0x1a04   : > { %v8746_v27 = vpop.f32.mrb[174].mxu1 }
0x1a05   : > { %v10856_v20 = vpop.eup %10855  ;;  %v8841_v45 = vpop.f32.mrb[172].mxu0 }
0x1a06   : > { %v8747_v19 = vpop.f32.mrb[175].mxu1  ;;  %v10858_v59 = vpop.eup %10857  ;;  %v8868_v60 = vmul.f32 0.0095, %v10856_v20  ;;  %v8910_v14 = vmul.f32 0.032, %v10856_v20 }
0x1a07   : > { %v8842_v40 = vpop.f32.mrb[173].mxu0  ;;  %v8869_v28 = vmul.f32 0.0095, %v10858_v59  ;;  %v8911_v39 = vmul.f32 0.032, %v10858_v59 }
0x1a08   : > { %v9497_v18 = vadd.f32 -0.003, %v8868_v60  ;;  %v8750_v46 = vpop.f32.mrb[176].mxu1 }
0x1a09   : > { %v9498_v16 = vadd.f32 -0.003, %v8869_v28  ;;  %v8918_v56 = vcombine.low %v8910_v14, %v8911_v39  ;;  %v8845_v48 = vpop.f32.mrb[174].mxu0  ;;  %v8751_v58 = vpop.f32.mrb[177].mxu1 }
0x1a0a   : > { %v10860_v43 = vpop.eup %10859  ;;  %v8846_v6 = vpop.f32.mrb[175].mxu0 }
0x1a0b   : > { %v10862_v32 = vpop.eup %10861  ;;  %v8870_v36 = vmul.f32 0.0095, %v10860_v43  ;;  %v8912_v62 = vmul.f32 0.032, %v10860_v43  ;;  %v8880_v24 = vcombine.low %v9497_v18, %v9498_v16  ;;  %v8926_v7 = vrot.slane %v8918_v56, %v8887_v50 }
0x1a0c   : > { %v8871_v44 = vmul.f32 0.0095, %v10862_v32  ;;  %v8913_v61 = vmul.f32 0.032, %v10862_v32  ;;  %v8754_v47 = vpop.f32.mrb[178].mxu1 }
0x1a0d   : > { %v9499_v30 = vadd.f32 -0.003, %v8870_v36  ;;  %v8849_v23 = vpop.f32.mrb[176].mxu0  ;;  %v8755_v5 = vpop.f32.mrb[179].mxu1  ;;  %v8888_v3 = vrot.slane %v8880_v24, %v8887_v50 }
0x1a0e   : > { %v9500_v12 = vadd.f32 -0.003, %v8871_v44  ;;  %v8919_v4 = vcombine.low %v8912_v62, %v8913_v61  ;;  %v8850_v49 = vpop.f32.mrb[177].mxu0 }
0x1a10   : > { %v8881_v25 = vcombine.low %v9499_v30, %v9500_v12  ;;  %v8933_v9 = vrot.slane %v8919_v4, %v8887_v50  ;;  %v8758_v22 = vpop.f32.mrb[180].mxu1 }
0x1a11   : > { %v8853_v1 = vpop.f32.mrb[178].mxu0  ;;  %v8759_v53 = vpop.f32.mrb[181].mxu1 }
0x1a12   : > { %v8895_v15 = vrot.slane %v8881_v25, %v8887_v50  ;;  %v8934_v34 = vcombine.high %v8926_v7, %v8933_v9  ;;  %v8854_v54 = vpop.f32.mrb[179].mxu0 }
0x1a14   : > { %v8896_v2 = vcombine.low %v8888_v3, %v8895_v15  ;;  %v8941_v33 = vrot.slane %v8934_v34, %v8887_v50  ;;  %v8762_v35 = vpop.f32.mrb[182].mxu1 }
0x1a15   : > { %v8857_v21 = vpop.f32.mrb[180].mxu0  ;;  %v8763_v13 = vpop.f32.mrb[183].mxu1 }
0x1a16   : > { %v8903_v8 = vrot.slane %v8896_v2, %v8887_v50  ;;  %9501 = vst.msk [vmem:[%s414_s23 + $0x1] ss:$2 sm:$0xf] %vm8907_vm7, %v8941_v33  ;;  %v8858_v41 = vpop.f32.mrb[181].mxu0 }
0x1a18   : > { %8909 = vst.msk [vmem:[%s414_s23] ss:$2 sm:$0xf] %vm8907_vm7, %v8903_v8 }
0x1a19   : > { %v8861_v31 = vpop.f32.mrb[182].mxu0 }
0x1a1a   : > { %v8862_v17 = vpop.f32.mrb[183].mxu0 }
0x1a1b PF: > { %s21_s13 = sadd.s32 1, %s10909_s13  }
0x1a1c   : > { %p18_p2 = scmp.ge.s32.totalorder %s21_s13, 4  }
0x1a1e   :  { %20 = sbr.rel (!%p18_p2) target bundleno = 1 (0x1), region = 122 }
0x1a25   :  { %8966 = vsyncpa [#allocation5], 1 }
0x1a26   :  { %8968 = vsyncpa [#allocation5 + $0x1], 1 }

</bundles_post_ra>
